<compile_context>
chip_gen: v5e
topology: v5e:2x2
jax: 0.10.0
libtpu: 0.0.40
codegen_flags: <defaults>
</compile_context>

<pallas_src>
import jax
import jax.numpy as jnp
from jax.experimental import pallas as pl
from jax.experimental.pallas import tpu as pltpu

# ----------------------------- configuration --------------------------------
CHANNELS = 4                 # must be even
HALF = CHANNELS // 2
HIDDEN = 32                  # hidden_channels
KERNEL_SIZE = 5
DILATION_RATE = 1
N_LAYERS = 4
N_FLOWS = 4
B = 2
T = 16
# gin_channels = 0 (no conditioning), p_dropout = 0, mean_only = True

LANE = 128
MAXPAD = max((KERNEL_SIZE * DILATION_RATE ** i - DILATION_RATE ** i) // 2
             for i in range(N_LAYERS))
HALO = LANE                  # left halo of the conv scratch -> lane-aligned interior store

assert CHANNELS % 2 == 0
assert N_FLOWS % 2 == 0, "kernel fuses flows in (even, odd) pairs per grid step"
assert all(MAXPAD >= (KERNEL_SIZE * DILATION_RATE ** i - DILATION_RATE ** i) // 2
           for i in range(N_LAYERS)), "per-batch margins must cover every layer's conv pad"

# ---- packed bf16 weight slab (rows x HIDDEN columns) row offsets -----------
CONV_ROWS = N_LAYERS * KERNEL_SIZE * 2 * HIDDEN


def _conv_row(i, j):
    return (i * KERNEL_SIZE + j) * 2 * HIDDEN


def _rs_row(i):
    return CONV_ROWS + i * 2 * HIDDEN


RS_LAST_ROW = CONV_ROWS + (N_LAYERS - 1) * 2 * HIDDEN
POST_ROW = RS_LAST_ROW + HIDDEN
WMAT_ROWS = POST_ROW + HALF

# ---- packed f32 bias / pre-conv slab ((2*HIDDEN) x BIAS_COLS) column offsets
C_INB = 0                          # N_LAYERS columns of in_b
C_RSB = N_LAYERS                   # N_LAYERS-1 columns of rs_b
C_RSB_LAST = 2 * N_LAYERS - 1      # last layer rs_b (top HIDDEN rows)
C_PREB = 2 * N_LAYERS              # pre_b (top HIDDEN rows)
C_POSTB = 2 * N_LAYERS + 1         # post_b (top HALF rows)
C_PREW = 2 * N_LAYERS + 2          # HALF columns of pre_w (top HIDDEN rows)
BIAS_COLS = C_PREW + HALF


# ------------------------------ Pallas kernel -------------------------------
def _pair_kernel(xp_ref, maskp_ref, wmat_ref, bias_ref, y_ref, hbuf):
    """One grid step = flows (2k, 2k+1) on the whole batch; state resident in y_ref."""
    k = pl.program_id(0)
    Wp = y_ref.shape[1]                      # lane-dense width (multiple of 128)

    @pl.when(k == 0)
    def _init():
        y_ref[...] = xp_ref[...]             # resident state <- padded input (only once)
        hbuf[...] = jnp.zeros_like(hbuf)     # zero halos once; interior rewritten per layer

    mask = maskp_ref[...]                    # (1, Wp); zero in margins & tail padding
    s = y_ref[...]                           # (C, Wp) resident state
    top = s[:HALF, :]
    bot = s[HALF:, :]

    def couple(fs, a, b):
        """ResidualCouplingLayer of flow slot `fs` (0=even, 1=odd) -> new transformed half."""
        # pre: 1x1 conv over HALF channels; tiny K, done as broadcast-multiply accumulation.
        acc = jnp.zeros((HIDDEN, Wp), jnp.float32)
        for c in range(HALF):
            w_c = bias_ref[fs, :HIDDEN, C_PREW + c:C_PREW + c + 1]      # (H, 1) f32
            acc = acc + w_c * a[c:c + 1, :]
        pre_b = bias_ref[fs, :HIDDEN, C_PREB:C_PREB + 1]                # (H, 1) f32
        h = (acc + pre_b) * mask                                        # (H, Wp) f32

        out = jnp.zeros((HIDDEN, Wp), jnp.float32)
        for i in range(N_LAYERS):
            d = DILATION_RATE ** i
            pad = (KERNEL_SIZE * d - d) // 2
            # lane-aligned (offset = 128) interior store of the conv input (bf16)
            hbuf[:, HALO:HALO + Wp] = h.astype(jnp.bfloat16)
            # dilated conv = K accumulating (2H,H)x(H,Wp) MXU matmuls on shifted windows
            x_in = bias_ref[fs, :, C_INB + i:C_INB + i + 1]             # (2H, 1) f32
            for j in range(KERNEL_SIZE):
                r = _conv_row(i, j)
                off = HALO - pad + j * d
                x_in = x_in + jnp.dot(wmat_ref[fs, r:r + 2 * HIDDEN, :],
                                      hbuf[:, off:off + Wp],
                                      preferred_element_type=jnp.float32)
            # fused_add_tanh_sigmoid_multiply with g = 0 (gin_channels = 0)
            acts = (jnp.tanh(x_in[:HIDDEN, :])
                    * jax.nn.sigmoid(x_in[HIDDEN:, :])).astype(jnp.bfloat16)
            if i < N_LAYERS - 1:
                r = _rs_row(i)
                rs = (jnp.dot(wmat_ref[fs, r:r + 2 * HIDDEN, :], acts,
                              preferred_element_type=jnp.float32)
                      + bias_ref[fs, :, C_RSB + i:C_RSB + i + 1])       # (2H, Wp)
                h = (h + rs[:HIDDEN, :]) * mask
                out = out + rs[HIDDEN:, :]
            else:
                rs = (jnp.dot(wmat_ref[fs, RS_LAST_ROW:RS_LAST_ROW + HIDDEN, :], acts,
                              preferred_element_type=jnp.float32)
                      + bias_ref[fs, :HIDDEN, C_RSB_LAST:C_RSB_LAST + 1])  # (H, Wp)
                out = out + rs
        out = (out * mask).astype(jnp.bfloat16)

        # post: 1x1 conv;  mean_only=True  =>  m = stats, logs = 0
        post_w = wmat_ref[fs, POST_ROW:POST_ROW + HALF, :]              # (HALF, H) bf16
        post_b = bias_ref[fs, :HALF, C_POSTB:C_POSTB + 1]               # (HALF, 1) f32
        stats = (jnp.dot(post_w, out, preferred_element_type=jnp.float32)
                 + post_b) * mask
        return stats + b * mask

    # even flow 2k: reads (a=top, b=bot), replaces the bottom half.
    bot = couple(0, top, bot)
    # odd flow 2k+1: the inter-flow Flip is folded host-side into its weights
    # (pre_w columns / post_w rows & post_b reversed), so it reads (a=bot, b=top)
    # and replaces the top half -- no in-kernel channel flip at all.
    top = couple(1, bot, top)

    # single lane-dense full-block state store per 2 flows
    y_ref[...] = jnp.concatenate([top, bot], axis=0)


# ------------------------------- wrapper -------------------------------------
def residual_coupling_block_pallas(x, x_mask, packed):
    B_, C_, T_ = x.shape
    Tseg = T_ + 2 * MAXPAD
    W = B_ * Tseg
    Wp = pl.cdiv(W, LANE) * LANE           # lane-dense width

    # (B, C, T) -> (C, B*(T+2*MAXPAD)) with per-batch zero margins, zero-padded to Wp lanes
    xp = jnp.pad(jnp.transpose(x, (1, 0, 2)),
                 ((0, 0), (0, 0), (MAXPAD, MAXPAD))).reshape(C_, W)
    xp = jnp.pad(xp, ((0, 0), (0, Wp - W)))
    maskp = jnp.pad(x_mask[:, 0, :], ((0, 0), (MAXPAD, MAXPAD))).reshape(1, W)
    maskp = jnp.pad(maskp, ((0, 0), (0, Wp - W)))

    y_flat = pl.pallas_call(
        _pair_kernel,
        out_shape=jax.ShapeDtypeStruct((C_, Wp), jnp.float32),
        grid_spec=pltpu.PrefetchScalarGridSpec(
            num_scalar_prefetch=0,
            grid=(N_FLOWS // 2,),          # one grid step per (even, odd) flow pair
            in_specs=[
                pl.BlockSpec((C_, Wp), lambda k: (0, 0)),                      # padded x (once)
                pl.BlockSpec((1, Wp), lambda k: (0, 0)),                       # padded mask (once)
                pl.BlockSpec((2, WMAT_ROWS, HIDDEN), lambda k: (k, 0, 0)),     # bf16 weight slab
                pl.BlockSpec((2, 2 * HIDDEN, BIAS_COLS), lambda k: (k, 0, 0)),  # f32 bias/pre slab
            ],
            # constant index map across flow pairs => output stays resident in VMEM
            out_specs=pl.BlockSpec((C_, Wp), lambda k: (0, 0)),
            scratch_shapes=[
                pltpu.VMEM((HIDDEN, HALO + Wp + LANE), jnp.bfloat16),  # halo'd conv buffer
            ],
        ),
        input_output_aliases={0: 0},       # donate padded input buffer to the output
        compiler_params=pltpu.CompilerParams(
            dimension_semantics=("arbitrary",),        # flows carry state sequentially
            vmem_limit_bytes=32 * 1024 * 1024,
        ),
    )(xp, maskp, packed["wmat"], packed["bias"])

    y = y_flat[:, :W].reshape(C_, B_, Tseg)[:, :, MAXPAD:MAXPAD + T_]
    if N_FLOWS % 2 == 1:                   # not reachable for the asserted even N_FLOWS
        y = y[::-1]
    return jnp.transpose(y, (1, 0, 2))


# --------------------------- parameter packing --------------------------------
def pack_params(p):
    """Pack per-flow params into 2 slabs; fold the Flip into odd flows' pre/post weights."""
    bf = jnp.bfloat16
    wmat_list, bias_list = [], []
    for f in range(N_FLOWS):
        pre_w = p["pre_w"][f]              # (H, HALF)
        post_w = p["post_w"][f]            # (HALF, H)
        post_b = p["post_b"][f]            # (HALF, 1)
        if f % 2 == 1:                     # fold Flip: reverse pre_w cols / post rows
            pre_w = pre_w[:, ::-1]
            post_w = post_w[::-1, :]
            post_b = post_b[::-1, :]

        rows = []
        for i in range(N_LAYERS):
            for j in range(KERNEL_SIZE):
                rows.append(p["in_w"][f, i, :, :, j])          # (2H, H) conv tap
        for i in range(N_LAYERS - 1):
            rows.append(p["rs_w"][f, i])                       # (2H, H)
        rows.append(p["rs_w"][f, N_LAYERS - 1, :HIDDEN])       # (H, H) last layer (res only)
        rows.append(post_w)                                    # (HALF, H)
        wmat_list.append(jnp.concatenate(rows, axis=0).astype(bf))

        b = jnp.zeros((2 * HIDDEN, BIAS_COLS), jnp.float32)
        for i in range(N_LAYERS):
            b = b.at[:, C_INB + i].set(p["in_b"][f, i, :, 0])
        for i in range(N_LAYERS - 1):
            b = b.at[:, C_RSB + i].set(p["rs_b"][f, i, :, 0])
        b = b.at[:HIDDEN, C_RSB_LAST].set(p["rs_b"][f, N_LAYERS - 1, :HIDDEN, 0])
        b = b.at[:HIDDEN, C_PREB].set(p["pre_b"][f, :, 0])
        b = b.at[:HALF, C_POSTB].set(post_b[:, 0])
        b = b.at[:HIDDEN, C_PREW:C_PREW + HALF].set(pre_w)
        bias_list.append(b)

    return {"wmat": jnp.stack(wmat_list), "bias": jnp.stack(bias_list)}


# --------------------------- pure-JAX reference ------------------------------
# Mirrors the kernel's MXU dtype (bf16 operands, f32 accumulation) so the comparison
# isolates structural bugs from quantization noise; elementwise math stays f32.
def _coupling_layer_ref(x, x_mask, p, f):
    bf = jnp.bfloat16
    Bx, _, Tx = x.shape
    x0, x1 = x[:, :HALF], x[:, HALF:]
    h = jnp.einsum("oc,bct->bot", p["pre_w"][f], x0) + p["pre_b"][f][None]
    h = h * x_mask
    output = jnp.zeros((Bx, HIDDEN, Tx), jnp.float32)
    in_w_bf = p["in_w"].astype(bf)
    rs_w_bf = p["rs_w"].astype(bf)
    for i in range(N_LAYERS):
        d = DILATION_RATE ** i
        pad = (KERNEL_SIZE * d - d) // 2
        h_pad = jnp.pad(h.astype(bf), ((0, 0), (0, 0), (pad, pad)))
        x_in = jnp.broadcast_to(p["in_b"][f, i][None],
                                (Bx, 2 * HIDDEN, Tx)).astype(jnp.float32)
        for j in range(KERNEL_SIZE):
            x_in = x_in + jnp.einsum("oc,bct->bot", in_w_bf[f, i, :, :, j],
                                     h_pad[:, :, j * d:j * d + Tx],
                                     preferred_element_type=jnp.float32)
        acts = (jnp.tanh(x_in[:, :HIDDEN]) * jax.nn.sigmoid(x_in[:, HIDDEN:])).astype(bf)
        if i < N_LAYERS - 1:
            rs = (jnp.einsum("oc,bct->bot", rs_w_bf[f, i], acts,
                             preferred_element_type=jnp.float32)
                  + p["rs_b"][f, i][None])
            h = (h + rs[:, :HIDDEN]) * x_mask
            output = output + rs[:, HIDDEN:]
        else:
            rs = (jnp.einsum("oc,bct->bot", rs_w_bf[f, i, :HIDDEN], acts,
                             preferred_element_type=jnp.float32)
                  + p["rs_b"][f, i, :HIDDEN][None])
            output = output + rs
    output = (output * x_mask).astype(bf)
    stats = (jnp.einsum("oc,bct->bot", p["post_w"].astype(bf)[f], output,
                        preferred_element_type=jnp.float32)
             + p["post_b"][f][None]) * x_mask
    y1 = stats + x1 * x_mask
    return jnp.concatenate([x0, y1], axis=1)


def residual_coupling_block_ref(x, x_mask, p):
    for f in range(N_FLOWS):
        x = _coupling_layer_ref(x, x_mask, p, f)
        x = x[:, ::-1, :]                  # Flip (torch.flip(x, [1]))
    return x


# ------------------------------ parameter init -------------------------------
def init_block_params(key):
    ks = jax.random.split(key, 8)
    pre_w = jax.random.normal(ks[0], (N_FLOWS, HIDDEN, HALF), jnp.float32) * 0.1
    pre_b = jax.random.normal(ks[1], (N_FLOWS, HIDDEN, 1), jnp.float32) * 0.1
    in_w = jax.random.normal(ks[2], (N_FLOWS, N_LAYERS, 2 * HIDDEN, HIDDEN,
                                     KERNEL_SIZE), jnp.float32) * 0.05
    in_b = jax.random.normal(ks[3], (N_FLOWS, N_LAYERS, 2 * HIDDEN, 1), jnp.float32) * 0.05
    rs_w = jax.random.normal(ks[4], (N_FLOWS, N_LAYERS, 2 * HIDDEN, HIDDEN), jnp.float32) * 0.05
    rs_b = jax.random.normal(ks[5], (N_FLOWS, N_LAYERS, 2 * HIDDEN, 1), jnp.float32) * 0.05
    # NOTE: the PyTorch __init__ zero-inits `post`; small random values are used here so the
    # coupling path exercises real compute (flagged: differs from fresh-init parity).
    post_w = jax.random.normal(ks[6], (N_FLOWS, HALF, HIDDEN), jnp.float32) * 0.05
    post_b = jax.random.normal(ks[7], (N_FLOWS, HALF, 1), jnp.float32) * 0.05
    return {"pre_w": pre_w, "pre_b": pre_b, "in_w": in_w, "in_b": in_b,
            "rs_w": rs_w, "rs_b": rs_b, "post_w": post_w, "post_b": post_b}


# ----------------------------------- main ------------------------------------
if __name__ == "__main__":
    key = jax.random.PRNGKey(0)
    k_x, k_p = jax.random.split(key)

    x = jax.random.normal(k_x, (B, CHANNELS, T), jnp.float32)
    lengths = jnp.array([T, T - 4], dtype=jnp.int32)
    x_mask = (jnp.arange(T)[None, None, :] < lengths[:, None, None]).astype(jnp.float32)

    params = init_block_params(k_p)
    packed = pack_params(params)

    block_fn = jax.jit(residual_coupling_block_pallas)
    y_pallas = jax.block_until_ready(block_fn(x, x_mask, packed))

    y_ref = jax.block_until_ready(residual_coupling_block_ref(x, x_mask, params))

    assert y_pallas.shape == (B, CHANNELS, T)
    max_err = float(jnp.max(jnp.abs(y_pallas - y_ref)))
    assert max_err < 2e-3, f"max abs err = {max_err}"

    print("KERNEL_OK")
</pallas_src>

<mosaic_0001>
module attributes {stable_mosaic.version = 11 : i64} {
  func.func @_pair_kernel(%arg0: i32, %arg1: memref<4x128xf32, #tpu.memory_space<vmem>>, %arg2: memref<1x128xf32, #tpu.memory_space<vmem>>, %arg3: memref<2x1506x32xbf16, #tpu.memory_space<vmem>>, %arg4: memref<2x64x12xf32, #tpu.memory_space<vmem>>, %arg5: memref<4x128xf32, #tpu.memory_space<vmem>>, %arg6: memref<32x384xbf16, #tpu.memory_space<vmem>>) attributes {dimension_semantics = [#tpu.dimension_semantics<arbitrary>], iteration_bounds = array<i64: 2>, scalar_prefetch = 0 : i64, scratch_operands = 1 : i64, tpu.core_type = #tpu.core_type<tc>, window_params = [{pipeline_mode = #tpu.pipeline_mode<synchronous>, transform_indices = @transform_0, window_bounds = array<i64: 4, 128>}, {pipeline_mode = #tpu.pipeline_mode<synchronous>, transform_indices = @transform_1, window_bounds = array<i64: 1, 128>}, {transform_indices = @transform_2, window_bounds = array<i64: 2, 1506, 32>}, {transform_indices = @transform_3, window_bounds = array<i64: 2, 64, 12>}, {pipeline_mode = #tpu.pipeline_mode<synchronous>, transform_indices = @transform_4, window_bounds = array<i64: 4, 128>}]} {
    %c0_i32 = arith.constant 0 : i32
    %0 = arith.cmpi eq, %arg0, %c0_i32 : i32
    %1 = arith.extui %0 : i1 to i32
    %c0_i32_0 = arith.constant 0 : i32
    %2 = arith.cmpi ne, %1, %c0_i32_0 : i32
    scf.if %2 {
      %c0_346 = arith.constant 0 : index
      %c0_347 = arith.constant 0 : index
      %497 = vector.load %arg1[%c0_346, %c0_347] : memref<4x128xf32, #tpu.memory_space<vmem>>, vector<4x128xf32>
      %c0_348 = arith.constant 0 : index
      %c0_349 = arith.constant 0 : index
      %498 = vector.load %arg5[%c0_348, %c0_349] : memref<4x128xf32, #tpu.memory_space<vmem>>, vector<4x128xf32>
      tpu.vector_store %arg5[%c0_348, %c0_349], %497 {strides = array<i32>} : memref<4x128xf32, #tpu.memory_space<vmem>>, vector<4x128xf32>,
      %cst_350 = arith.constant 0.000000e+00 : bf16
      %499 = vector.broadcast %cst_350 : bf16 to vector<32x384xbf16>
      %c0_351 = arith.constant 0 : index
      %c0_352 = arith.constant 0 : index
      %500 = vector.load %arg6[%c0_351, %c0_352] : memref<32x384xbf16, #tpu.memory_space<vmem>>, vector<32x384xbf16>
      tpu.vector_store %arg6[%c0_351, %c0_352], %499 {strides = array<i32>} : memref<32x384xbf16, #tpu.memory_space<vmem>>, vector<32x384xbf16>,
    } else {
    }
    %c0 = arith.constant 0 : index
    %c0_1 = arith.constant 0 : index
    %3 = vector.load %arg2[%c0, %c0_1] : memref<1x128xf32, #tpu.memory_space<vmem>>, vector<1x128xf32>
    %c0_2 = arith.constant 0 : index
    %c0_3 = arith.constant 0 : index
    %4 = vector.load %arg5[%c0_2, %c0_3] : memref<4x128xf32, #tpu.memory_space<vmem>>, vector<4x128xf32>
    %5 = vector.extract_strided_slice %4 {offsets = [0, 0], sizes = [2, 128], strides = [1, 1]} : vector<4x128xf32> to vector<2x128xf32>
    %6 = vector.extract_strided_slice %4 {offsets = [2, 0], sizes = [2, 128], strides = [1, 1]} : vector<4x128xf32> to vector<2x128xf32>
    %cst = arith.constant 0.000000e+00 : f32
    %7 = vector.broadcast %cst : f32 to vector<32x128xf32>
    %c0_4 = arith.constant 0 : index
    %c0_5 = arith.constant 0 : index
    %c10 = arith.constant 10 : index
    %8 = vector.load %arg4[%c0_4, %c0_5, %c10] : memref<2x64x12xf32, #tpu.memory_space<vmem>>, vector<1x32x1xf32>
    %9 = vector.shape_cast %8 : vector<1x32x1xf32> to vector<32x1xf32>
    %10 = vector.extract_strided_slice %5 {offsets = [0, 0], sizes = [1, 128], strides = [1, 1]} : vector<2x128xf32> to vector<1x128xf32>
    %11 = vector.broadcast %9 : vector<32x1xf32> to vector<32x128xf32>
    %12 = vector.broadcast %10 : vector<1x128xf32> to vector<32x128xf32>
    %13 = arith.mulf %11, %12 : vector<32x128xf32>
    %14 = arith.addf %7, %13 : vector<32x128xf32>
    %c0_6 = arith.constant 0 : index
    %c0_7 = arith.constant 0 : index
    %c11 = arith.constant 11 : index
    %15 = vector.load %arg4[%c0_6, %c0_7, %c11] : memref<2x64x12xf32, #tpu.memory_space<vmem>>, vector<1x32x1xf32>
    %16 = vector.shape_cast %15 : vector<1x32x1xf32> to vector<32x1xf32>
    %17 = vector.extract_strided_slice %5 {offsets = [1, 0], sizes = [1, 128], strides = [1, 1]} : vector<2x128xf32> to vector<1x128xf32>
    %18 = vector.broadcast %16 : vector<32x1xf32> to vector<32x128xf32>
    %19 = vector.broadcast %17 : vector<1x128xf32> to vector<32x128xf32>
    %20 = arith.mulf %18, %19 : vector<32x128xf32>
    %21 = arith.addf %14, %20 : vector<32x128xf32>
    %c0_8 = arith.constant 0 : index
    %c0_9 = arith.constant 0 : index
    %c8 = arith.constant 8 : index
    %22 = vector.load %arg4[%c0_8, %c0_9, %c8] : memref<2x64x12xf32, #tpu.memory_space<vmem>>, vector<1x32x1xf32>
    %23 = vector.shape_cast %22 : vector<1x32x1xf32> to vector<32x1xf32>
    %24 = vector.broadcast %23 : vector<32x1xf32> to vector<32x128xf32>
    %25 = arith.addf %21, %24 : vector<32x128xf32>
    %26 = vector.broadcast %3 : vector<1x128xf32> to vector<32x128xf32>
    %27 = arith.mulf %25, %26 : vector<32x128xf32>
    %cst_10 = arith.constant 0.000000e+00 : f32
    %28 = vector.broadcast %cst_10 : f32 to vector<32x128xf32>
    %29 = arith.truncf %27 : vector<32x128xf32> to vector<32x128xbf16>
    %c0_11 = arith.constant 0 : index
    %c128 = arith.constant 128 : index
    %30 = vector.load %arg6[%c0_11, %c128] : memref<32x384xbf16, #tpu.memory_space<vmem>>, vector<32x128xbf16>
    tpu.vector_store %arg6[%c0_11, %c128], %29 {strides = array<i32>} : memref<32x384xbf16, #tpu.memory_space<vmem>>, vector<32x128xbf16>,
    %c0_12 = arith.constant 0 : index
    %c0_13 = arith.constant 0 : index
    %c0_14 = arith.constant 0 : index
    %31 = vector.load %arg4[%c0_12, %c0_13, %c0_14] : memref<2x64x12xf32, #tpu.memory_space<vmem>>, vector<1x64x1xf32>
    %32 = vector.shape_cast %31 : vector<1x64x1xf32> to vector<64x1xf32>
    %c0_15 = arith.constant 0 : index
    %c0_16 = arith.constant 0 : index
    %c0_17 = arith.constant 0 : index
    %33 = vector.load %arg3[%c0_15, %c0_16, %c0_17] : memref<2x1506x32xbf16, #tpu.memory_space<vmem>>, vector<1x64x32xbf16>
    %34 = vector.shape_cast %33 : vector<1x64x32xbf16> to vector<64x32xbf16>
    %c0_18 = arith.constant 0 : index
    %c126 = arith.constant 126 : index
    %35 = vector.load %arg6[%c0_18, %c126] : memref<32x384xbf16, #tpu.memory_space<vmem>>, vector<32x128xbf16>
    %cst_19 = arith.constant dense<0.000000e+00> : vector<64x128xf32>
    %36 = tpu.matmul %34, %35, %cst_19 {dimension_numbers = #tpu.dot_dimension_numbers<[1], [0], [0], [1], [0, 0, 1, 1], [], []>} : vector<64x32xbf16>, vector<32x128xbf16>, vector<64x128xf32> -> vector<64x128xf32>
    %37 = vector.broadcast %32 : vector<64x1xf32> to vector<64x128xf32>
    %38 = arith.addf %37, %36 : vector<64x128xf32>
    %c0_20 = arith.constant 0 : index
    %c64 = arith.constant 64 : index
    %c0_21 = arith.constant 0 : index
    %39 = vector.load %arg3[%c0_20, %c64, %c0_21] : memref<2x1506x32xbf16, #tpu.memory_space<vmem>>, vector<1x64x32xbf16>
    %40 = vector.shape_cast %39 : vector<1x64x32xbf16> to vector<64x32xbf16>
    %c0_22 = arith.constant 0 : index
    %c127 = arith.constant 127 : index
    %41 = vector.load %arg6[%c0_22, %c127] : memref<32x384xbf16, #tpu.memory_space<vmem>>, vector<32x128xbf16>
    %cst_23 = arith.constant dense<0.000000e+00> : vector<64x128xf32>
    %42 = tpu.matmul %40, %41, %cst_23 {dimension_numbers = #tpu.dot_dimension_numbers<[1], [0], [0], [1], [0, 0, 1, 1], [], []>} : vector<64x32xbf16>, vector<32x128xbf16>, vector<64x128xf32> -> vector<64x128xf32>
    %43 = arith.addf %38, %42 : vector<64x128xf32>
    %c0_24 = arith.constant 0 : index
    %c128_25 = arith.constant 128 : index
    %c0_26 = arith.constant 0 : index
    %44 = vector.load %arg3[%c0_24, %c128_25, %c0_26] : memref<2x1506x32xbf16, #tpu.memory_space<vmem>>, vector<1x64x32xbf16>
    %45 = vector.shape_cast %44 : vector<1x64x32xbf16> to vector<64x32xbf16>
    %c0_27 = arith.constant 0 : index
    %c128_28 = arith.constant 128 : index
    %46 = vector.load %arg6[%c0_27, %c128_28] : memref<32x384xbf16, #tpu.memory_space<vmem>>, vector<32x128xbf16>
    %cst_29 = arith.constant dense<0.000000e+00> : vector<64x128xf32>
    %47 = tpu.matmul %45, %46, %cst_29 {dimension_numbers = #tpu.dot_dimension_numbers<[1], [0], [0], [1], [0, 0, 1, 1], [], []>} : vector<64x32xbf16>, vector<32x128xbf16>, vector<64x128xf32> -> vector<64x128xf32>
    %48 = arith.addf %43, %47 : vector<64x128xf32>
    %c0_30 = arith.constant 0 : index
    %c192 = arith.constant 192 : index
    %c0_31 = arith.constant 0 : index
    %49 = vector.load %arg3[%c0_30, %c192, %c0_31] : memref<2x1506x32xbf16, #tpu.memory_space<vmem>>, vector<1x64x32xbf16>
    %50 = vector.shape_cast %49 : vector<1x64x32xbf16> to vector<64x32xbf16>
    %c0_32 = arith.constant 0 : index
    %c129 = arith.constant 129 : index
    %51 = vector.load %arg6[%c0_32, %c129] : memref<32x384xbf16, #tpu.memory_space<vmem>>, vector<32x128xbf16>
    %cst_33 = arith.constant dense<0.000000e+00> : vector<64x128xf32>
    %52 = tpu.matmul %50, %51, %cst_33 {dimension_numbers = #tpu.dot_dimension_numbers<[1], [0], [0], [1], [0, 0, 1, 1], [], []>} : vector<64x32xbf16>, vector<32x128xbf16>, vector<64x128xf32> -> vector<64x128xf32>
    %53 = arith.addf %48, %52 : vector<64x128xf32>
    %c0_34 = arith.constant 0 : index
    %c256 = arith.constant 256 : index
    %c0_35 = arith.constant 0 : index
    %54 = vector.load %arg3[%c0_34, %c256, %c0_35] : memref<2x1506x32xbf16, #tpu.memory_space<vmem>>, vector<1x64x32xbf16>
    %55 = vector.shape_cast %54 : vector<1x64x32xbf16> to vector<64x32xbf16>
    %c0_36 = arith.constant 0 : index
    %c130 = arith.constant 130 : index
    %56 = vector.load %arg6[%c0_36, %c130] : memref<32x384xbf16, #tpu.memory_space<vmem>>, vector<32x128xbf16>
    %cst_37 = arith.constant dense<0.000000e+00> : vector<64x128xf32>
    %57 = tpu.matmul %55, %56, %cst_37 {dimension_numbers = #tpu.dot_dimension_numbers<[1], [0], [0], [1], [0, 0, 1, 1], [], []>} : vector<64x32xbf16>, vector<32x128xbf16>, vector<64x128xf32> -> vector<64x128xf32>
    %58 = arith.addf %53, %57 : vector<64x128xf32>
    %59 = vector.extract_strided_slice %58 {offsets = [0, 0], sizes = [32, 128], strides = [1, 1]} : vector<64x128xf32> to vector<32x128xf32>
    %60 = math.tanh %59 : vector<32x128xf32>
    %61 = vector.extract_strided_slice %58 {offsets = [32, 0], sizes = [32, 128], strides = [1, 1]} : vector<64x128xf32> to vector<32x128xf32>
    %62 = arith.negf %61 : vector<32x128xf32>
    %63 = math.exp %62 : vector<32x128xf32>
    %cst_38 = arith.constant 1.000000e+00 : f32
    %64 = vector.broadcast %cst_38 : f32 to vector<32x128xf32>
    %65 = arith.addf %64, %63 : vector<32x128xf32>
    %66 = arith.divf %64, %65 : vector<32x128xf32>
    %67 = arith.mulf %60, %66 : vector<32x128xf32>
    %68 = arith.truncf %67 : vector<32x128xf32> to vector<32x128xbf16>
    %c0_39 = arith.constant 0 : index
    %c1280 = arith.constant 1280 : index
    %c0_40 = arith.constant 0 : index
    %69 = vector.load %arg3[%c0_39, %c1280, %c0_40] : memref<2x1506x32xbf16, #tpu.memory_space<vmem>>, vector<1x64x32xbf16>
    %70 = vector.shape_cast %69 : vector<1x64x32xbf16> to vector<64x32xbf16>
    %cst_41 = arith.constant dense<0.000000e+00> : vector<64x128xf32>
    %71 = tpu.matmul %70, %68, %cst_41 {dimension_numbers = #tpu.dot_dimension_numbers<[1], [0], [0], [1], [0, 0, 1, 1], [], []>} : vector<64x32xbf16>, vector<32x128xbf16>, vector<64x128xf32> -> vector<64x128xf32>
    %c0_42 = arith.constant 0 : index
    %c0_43 = arith.constant 0 : index
    %c4 = arith.constant 4 : index
    %72 = vector.load %arg4[%c0_42, %c0_43, %c4] : memref<2x64x12xf32, #tpu.memory_space<vmem>>, vector<1x64x1xf32>
    %73 = vector.shape_cast %72 : vector<1x64x1xf32> to vector<64x1xf32>
    %74 = vector.broadcast %73 : vector<64x1xf32> to vector<64x128xf32>
    %75 = arith.addf %71, %74 : vector<64x128xf32>
    %76 = vector.extract_strided_slice %75 {offsets = [0, 0], sizes = [32, 128], strides = [1, 1]} : vector<64x128xf32> to vector<32x128xf32>
    %77 = arith.addf %27, %76 : vector<32x128xf32>
    %78 = vector.broadcast %3 : vector<1x128xf32> to vector<32x128xf32>
    %79 = arith.mulf %77, %78 : vector<32x128xf32>
    %80 = vector.extract_strided_slice %75 {offsets = [32, 0], sizes = [32, 128], strides = [1, 1]} : vector<64x128xf32> to vector<32x128xf32>
    %81 = arith.addf %28, %80 : vector<32x128xf32>
    %82 = arith.truncf %79 : vector<32x128xf32> to vector<32x128xbf16>
    %c0_44 = arith.constant 0 : index
    %c128_45 = arith.constant 128 : index
    %83 = vector.load %arg6[%c0_44, %c128_45] : memref<32x384xbf16, #tpu.memory_space<vmem>>, vector<32x128xbf16>
    tpu.vector_store %arg6[%c0_44, %c128_45], %82 {strides = array<i32>} : memref<32x384xbf16, #tpu.memory_space<vmem>>, vector<32x128xbf16>,
    %c0_46 = arith.constant 0 : index
    %c0_47 = arith.constant 0 : index
    %c1 = arith.constant 1 : index
    %84 = vector.load %arg4[%c0_46, %c0_47, %c1] : memref<2x64x12xf32, #tpu.memory_space<vmem>>, vector<1x64x1xf32>
    %85 = vector.shape_cast %84 : vector<1x64x1xf32> to vector<64x1xf32>
    %c0_48 = arith.constant 0 : index
    %c320 = arith.constant 320 : index
    %c0_49 = arith.constant 0 : index
    %86 = vector.load %arg3[%c0_48, %c320, %c0_49] : memref<2x1506x32xbf16, #tpu.memory_space<vmem>>, vector<1x64x32xbf16>
    %87 = vector.shape_cast %86 : vector<1x64x32xbf16> to vector<64x32xbf16>
    %c0_50 = arith.constant 0 : index
    %c126_51 = arith.constant 126 : index
    %88 = vector.load %arg6[%c0_50, %c126_51] : memref<32x384xbf16, #tpu.memory_space<vmem>>, vector<32x128xbf16>
    %cst_52 = arith.constant dense<0.000000e+00> : vector<64x128xf32>
    %89 = tpu.matmul %87, %88, %cst_52 {dimension_numbers = #tpu.dot_dimension_numbers<[1], [0], [0], [1], [0, 0, 1, 1], [], []>} : vector<64x32xbf16>, vector<32x128xbf16>, vector<64x128xf32> -> vector<64x128xf32>
    %90 = vector.broadcast %85 : vector<64x1xf32> to vector<64x128xf32>
    %91 = arith.addf %90, %89 : vector<64x128xf32>
    %c0_53 = arith.constant 0 : index
    %c384 = arith.constant 384 : index
    %c0_54 = arith.constant 0 : index
    %92 = vector.load %arg3[%c0_53, %c384, %c0_54] : memref<2x1506x32xbf16, #tpu.memory_space<vmem>>, vector<1x64x32xbf16>
    %93 = vector.shape_cast %92 : vector<1x64x32xbf16> to vector<64x32xbf16>
    %c0_55 = arith.constant 0 : index
    %c127_56 = arith.constant 127 : index
    %94 = vector.load %arg6[%c0_55, %c127_56] : memref<32x384xbf16, #tpu.memory_space<vmem>>, vector<32x128xbf16>
    %cst_57 = arith.constant dense<0.000000e+00> : vector<64x128xf32>
    %95 = tpu.matmul %93, %94, %cst_57 {dimension_numbers = #tpu.dot_dimension_numbers<[1], [0], [0], [1], [0, 0, 1, 1], [], []>} : vector<64x32xbf16>, vector<32x128xbf16>, vector<64x128xf32> -> vector<64x128xf32>
    %96 = arith.addf %91, %95 : vector<64x128xf32>
    %c0_58 = arith.constant 0 : index
    %c448 = arith.constant 448 : index
    %c0_59 = arith.constant 0 : index
    %97 = vector.load %arg3[%c0_58, %c448, %c0_59] : memref<2x1506x32xbf16, #tpu.memory_space<vmem>>, vector<1x64x32xbf16>
    %98 = vector.shape_cast %97 : vector<1x64x32xbf16> to vector<64x32xbf16>
    %c0_60 = arith.constant 0 : index
    %c128_61 = arith.constant 128 : index
    %99 = vector.load %arg6[%c0_60, %c128_61] : memref<32x384xbf16, #tpu.memory_space<vmem>>, vector<32x128xbf16>
    %cst_62 = arith.constant dense<0.000000e+00> : vector<64x128xf32>
    %100 = tpu.matmul %98, %99, %cst_62 {dimension_numbers = #tpu.dot_dimension_numbers<[1], [0], [0], [1], [0, 0, 1, 1], [], []>} : vector<64x32xbf16>, vector<32x128xbf16>, vector<64x128xf32> -> vector<64x128xf32>
    %101 = arith.addf %96, %100 : vector<64x128xf32>
    %c0_63 = arith.constant 0 : index
    %c512 = arith.constant 512 : index
    %c0_64 = arith.constant 0 : index
    %102 = vector.load %arg3[%c0_63, %c512, %c0_64] : memref<2x1506x32xbf16, #tpu.memory_space<vmem>>, vector<1x64x32xbf16>
    %103 = vector.shape_cast %102 : vector<1x64x32xbf16> to vector<64x32xbf16>
    %c0_65 = arith.constant 0 : index
    %c129_66 = arith.constant 129 : index
    %104 = vector.load %arg6[%c0_65, %c129_66] : memref<32x384xbf16, #tpu.memory_space<vmem>>, vector<32x128xbf16>
    %cst_67 = arith.constant dense<0.000000e+00> : vector<64x128xf32>
    %105 = tpu.matmul %103, %104, %cst_67 {dimension_numbers = #tpu.dot_dimension_numbers<[1], [0], [0], [1], [0, 0, 1, 1], [], []>} : vector<64x32xbf16>, vector<32x128xbf16>, vector<64x128xf32> -> vector<64x128xf32>
    %106 = arith.addf %101, %105 : vector<64x128xf32>
    %c0_68 = arith.constant 0 : index
    %c576 = arith.constant 576 : index
    %c0_69 = arith.constant 0 : index
    %107 = vector.load %arg3[%c0_68, %c576, %c0_69] : memref<2x1506x32xbf16, #tpu.memory_space<vmem>>, vector<1x64x32xbf16>
    %108 = vector.shape_cast %107 : vector<1x64x32xbf16> to vector<64x32xbf16>
    %c0_70 = arith.constant 0 : index
    %c130_71 = arith.constant 130 : index
    %109 = vector.load %arg6[%c0_70, %c130_71] : memref<32x384xbf16, #tpu.memory_space<vmem>>, vector<32x128xbf16>
    %cst_72 = arith.constant dense<0.000000e+00> : vector<64x128xf32>
    %110 = tpu.matmul %108, %109, %cst_72 {dimension_numbers = #tpu.dot_dimension_numbers<[1], [0], [0], [1], [0, 0, 1, 1], [], []>} : vector<64x32xbf16>, vector<32x128xbf16>, vector<64x128xf32> -> vector<64x128xf32>
    %111 = arith.addf %106, %110 : vector<64x128xf32>
    %112 = vector.extract_strided_slice %111 {offsets = [0, 0], sizes = [32, 128], strides = [1, 1]} : vector<64x128xf32> to vector<32x128xf32>
    %113 = math.tanh %112 : vector<32x128xf32>
    %114 = vector.extract_strided_slice %111 {offsets = [32, 0], sizes = [32, 128], strides = [1, 1]} : vector<64x128xf32> to vector<32x128xf32>
    %115 = arith.negf %114 : vector<32x128xf32>
    %116 = math.exp %115 : vector<32x128xf32>
    %cst_73 = arith.constant 1.000000e+00 : f32
    %117 = vector.broadcast %cst_73 : f32 to vector<32x128xf32>
    %118 = arith.addf %117, %116 : vector<32x128xf32>
    %119 = arith.divf %117, %118 : vector<32x128xf32>
    %120 = arith.mulf %113, %119 : vector<32x128xf32>
    %121 = arith.truncf %120 : vector<32x128xf32> to vector<32x128xbf16>
    %c0_74 = arith.constant 0 : index
    %c1344 = arith.constant 1344 : index
    %c0_75 = arith.constant 0 : index
    %122 = vector.load %arg3[%c0_74, %c1344, %c0_75] : memref<2x1506x32xbf16, #tpu.memory_space<vmem>>, vector<1x64x32xbf16>
    %123 = vector.shape_cast %122 : vector<1x64x32xbf16> to vector<64x32xbf16>
    %cst_76 = arith.constant dense<0.000000e+00> : vector<64x128xf32>
    %124 = tpu.matmul %123, %121, %cst_76 {dimension_numbers = #tpu.dot_dimension_numbers<[1], [0], [0], [1], [0, 0, 1, 1], [], []>} : vector<64x32xbf16>, vector<32x128xbf16>, vector<64x128xf32> -> vector<64x128xf32>
    %c0_77 = arith.constant 0 : index
    %c0_78 = arith.constant 0 : index
    %c5 = arith.constant 5 : index
    %125 = vector.load %arg4[%c0_77, %c0_78, %c5] : memref<2x64x12xf32, #tpu.memory_space<vmem>>, vector<1x64x1xf32>
    %126 = vector.shape_cast %125 : vector<1x64x1xf32> to vector<64x1xf32>
    %127 = vector.broadcast %126 : vector<64x1xf32> to vector<64x128xf32>
    %128 = arith.addf %124, %127 : vector<64x128xf32>
    %129 = vector.extract_strided_slice %128 {offsets = [0, 0], sizes = [32, 128], strides = [1, 1]} : vector<64x128xf32> to vector<32x128xf32>
    %130 = arith.addf %79, %129 : vector<32x128xf32>
    %131 = vector.broadcast %3 : vector<1x128xf32> to vector<32x128xf32>
    %132 = arith.mulf %130, %131 : vector<32x128xf32>
    %133 = vector.extract_strided_slice %128 {offsets = [32, 0], sizes = [32, 128], strides = [1, 1]} : vector<64x128xf32> to vector<32x128xf32>
    %134 = arith.addf %81, %133 : vector<32x128xf32>
    %135 = arith.truncf %132 : vector<32x128xf32> to vector<32x128xbf16>
    %c0_79 = arith.constant 0 : index
    %c128_80 = arith.constant 128 : index
    %136 = vector.load %arg6[%c0_79, %c128_80] : memref<32x384xbf16, #tpu.memory_space<vmem>>, vector<32x128xbf16>
    tpu.vector_store %arg6[%c0_79, %c128_80], %135 {strides = array<i32>} : memref<32x384xbf16, #tpu.memory_space<vmem>>, vector<32x128xbf16>,
    %c0_81 = arith.constant 0 : index
    %c0_82 = arith.constant 0 : index
    %c2 = arith.constant 2 : index
    %137 = vector.load %arg4[%c0_81, %c0_82, %c2] : memref<2x64x12xf32, #tpu.memory_space<vmem>>, vector<1x64x1xf32>
    %138 = vector.shape_cast %137 : vector<1x64x1xf32> to vector<64x1xf32>
    %c0_83 = arith.constant 0 : index
    %c640 = arith.constant 640 : index
    %c0_84 = arith.constant 0 : index
    %139 = vector.load %arg3[%c0_83, %c640, %c0_84] : memref<2x1506x32xbf16, #tpu.memory_space<vmem>>, vector<1x64x32xbf16>
    %140 = vector.shape_cast %139 : vector<1x64x32xbf16> to vector<64x32xbf16>
    %c0_85 = arith.constant 0 : index
    %c126_86 = arith.constant 126 : index
    %141 = vector.load %arg6[%c0_85, %c126_86] : memref<32x384xbf16, #tpu.memory_space<vmem>>, vector<32x128xbf16>
    %cst_87 = arith.constant dense<0.000000e+00> : vector<64x128xf32>
    %142 = tpu.matmul %140, %141, %cst_87 {dimension_numbers = #tpu.dot_dimension_numbers<[1], [0], [0], [1], [0, 0, 1, 1], [], []>} : vector<64x32xbf16>, vector<32x128xbf16>, vector<64x128xf32> -> vector<64x128xf32>
    %143 = vector.broadcast %138 : vector<64x1xf32> to vector<64x128xf32>
    %144 = arith.addf %143, %142 : vector<64x128xf32>
    %c0_88 = arith.constant 0 : index
    %c704 = arith.constant 704 : index
    %c0_89 = arith.constant 0 : index
    %145 = vector.load %arg3[%c0_88, %c704, %c0_89] : memref<2x1506x32xbf16, #tpu.memory_space<vmem>>, vector<1x64x32xbf16>
    %146 = vector.shape_cast %145 : vector<1x64x32xbf16> to vector<64x32xbf16>
    %c0_90 = arith.constant 0 : index
    %c127_91 = arith.constant 127 : index
    %147 = vector.load %arg6[%c0_90, %c127_91] : memref<32x384xbf16, #tpu.memory_space<vmem>>, vector<32x128xbf16>
    %cst_92 = arith.constant dense<0.000000e+00> : vector<64x128xf32>
    %148 = tpu.matmul %146, %147, %cst_92 {dimension_numbers = #tpu.dot_dimension_numbers<[1], [0], [0], [1], [0, 0, 1, 1], [], []>} : vector<64x32xbf16>, vector<32x128xbf16>, vector<64x128xf32> -> vector<64x128xf32>
    %149 = arith.addf %144, %148 : vector<64x128xf32>
    %c0_93 = arith.constant 0 : index
    %c768 = arith.constant 768 : index
    %c0_94 = arith.constant 0 : index
    %150 = vector.load %arg3[%c0_93, %c768, %c0_94] : memref<2x1506x32xbf16, #tpu.memory_space<vmem>>, vector<1x64x32xbf16>
    %151 = vector.shape_cast %150 : vector<1x64x32xbf16> to vector<64x32xbf16>
    %c0_95 = arith.constant 0 : index
    %c128_96 = arith.constant 128 : index
    %152 = vector.load %arg6[%c0_95, %c128_96] : memref<32x384xbf16, #tpu.memory_space<vmem>>, vector<32x128xbf16>
    %cst_97 = arith.constant dense<0.000000e+00> : vector<64x128xf32>
    %153 = tpu.matmul %151, %152, %cst_97 {dimension_numbers = #tpu.dot_dimension_numbers<[1], [0], [0], [1], [0, 0, 1, 1], [], []>} : vector<64x32xbf16>, vector<32x128xbf16>, vector<64x128xf32> -> vector<64x128xf32>
    %154 = arith.addf %149, %153 : vector<64x128xf32>
    %c0_98 = arith.constant 0 : index
    %c832 = arith.constant 832 : index
    %c0_99 = arith.constant 0 : index
    %155 = vector.load %arg3[%c0_98, %c832, %c0_99] : memref<2x1506x32xbf16, #tpu.memory_space<vmem>>, vector<1x64x32xbf16>
    %156 = vector.shape_cast %155 : vector<1x64x32xbf16> to vector<64x32xbf16>
    %c0_100 = arith.constant 0 : index
    %c129_101 = arith.constant 129 : index
    %157 = vector.load %arg6[%c0_100, %c129_101] : memref<32x384xbf16, #tpu.memory_space<vmem>>, vector<32x128xbf16>
    %cst_102 = arith.constant dense<0.000000e+00> : vector<64x128xf32>
    %158 = tpu.matmul %156, %157, %cst_102 {dimension_numbers = #tpu.dot_dimension_numbers<[1], [0], [0], [1], [0, 0, 1, 1], [], []>} : vector<64x32xbf16>, vector<32x128xbf16>, vector<64x128xf32> -> vector<64x128xf32>
    %159 = arith.addf %154, %158 : vector<64x128xf32>
    %c0_103 = arith.constant 0 : index
    %c896 = arith.constant 896 : index
    %c0_104 = arith.constant 0 : index
    %160 = vector.load %arg3[%c0_103, %c896, %c0_104] : memref<2x1506x32xbf16, #tpu.memory_space<vmem>>, vector<1x64x32xbf16>
    %161 = vector.shape_cast %160 : vector<1x64x32xbf16> to vector<64x32xbf16>
    %c0_105 = arith.constant 0 : index
    %c130_106 = arith.constant 130 : index
    %162 = vector.load %arg6[%c0_105, %c130_106] : memref<32x384xbf16, #tpu.memory_space<vmem>>, vector<32x128xbf16>
    %cst_107 = arith.constant dense<0.000000e+00> : vector<64x128xf32>
    %163 = tpu.matmul %161, %162, %cst_107 {dimension_numbers = #tpu.dot_dimension_numbers<[1], [0], [0], [1], [0, 0, 1, 1], [], []>} : vector<64x32xbf16>, vector<32x128xbf16>, vector<64x128xf32> -> vector<64x128xf32>
    %164 = arith.addf %159, %163 : vector<64x128xf32>
    %165 = vector.extract_strided_slice %164 {offsets = [0, 0], sizes = [32, 128], strides = [1, 1]} : vector<64x128xf32> to vector<32x128xf32>
    %166 = math.tanh %165 : vector<32x128xf32>
    %167 = vector.extract_strided_slice %164 {offsets = [32, 0], sizes = [32, 128], strides = [1, 1]} : vector<64x128xf32> to vector<32x128xf32>
    %168 = arith.negf %167 : vector<32x128xf32>
    %169 = math.exp %168 : vector<32x128xf32>
    %cst_108 = arith.constant 1.000000e+00 : f32
    %170 = vector.broadcast %cst_108 : f32 to vector<32x128xf32>
    %171 = arith.addf %170, %169 : vector<32x128xf32>
    %172 = arith.divf %170, %171 : vector<32x128xf32>
    %173 = arith.mulf %166, %172 : vector<32x128xf32>
    %174 = arith.truncf %173 : vector<32x128xf32> to vector<32x128xbf16>
    %c0_109 = arith.constant 0 : index
    %c1408 = arith.constant 1408 : index
    %c0_110 = arith.constant 0 : index
    %175 = vector.load %arg3[%c0_109, %c1408, %c0_110] : memref<2x1506x32xbf16, #tpu.memory_space<vmem>>, vector<1x64x32xbf16>
    %176 = vector.shape_cast %175 : vector<1x64x32xbf16> to vector<64x32xbf16>
    %cst_111 = arith.constant dense<0.000000e+00> : vector<64x128xf32>
    %177 = tpu.matmul %176, %174, %cst_111 {dimension_numbers = #tpu.dot_dimension_numbers<[1], [0], [0], [1], [0, 0, 1, 1], [], []>} : vector<64x32xbf16>, vector<32x128xbf16>, vector<64x128xf32> -> vector<64x128xf32>
    %c0_112 = arith.constant 0 : index
    %c0_113 = arith.constant 0 : index
    %c6 = arith.constant 6 : index
    %178 = vector.load %arg4[%c0_112, %c0_113, %c6] : memref<2x64x12xf32, #tpu.memory_space<vmem>>, vector<1x64x1xf32>
    %179 = vector.shape_cast %178 : vector<1x64x1xf32> to vector<64x1xf32>
    %180 = vector.broadcast %179 : vector<64x1xf32> to vector<64x128xf32>
    %181 = arith.addf %177, %180 : vector<64x128xf32>
    %182 = vector.extract_strided_slice %181 {offsets = [0, 0], sizes = [32, 128], strides = [1, 1]} : vector<64x128xf32> to vector<32x128xf32>
    %183 = arith.addf %132, %182 : vector<32x128xf32>
    %184 = vector.broadcast %3 : vector<1x128xf32> to vector<32x128xf32>
    %185 = arith.mulf %183, %184 : vector<32x128xf32>
    %186 = vector.extract_strided_slice %181 {offsets = [32, 0], sizes = [32, 128], strides = [1, 1]} : vector<64x128xf32> to vector<32x128xf32>
    %187 = arith.addf %134, %186 : vector<32x128xf32>
    %188 = arith.truncf %185 : vector<32x128xf32> to vector<32x128xbf16>
    %c0_114 = arith.constant 0 : index
    %c128_115 = arith.constant 128 : index
    %189 = vector.load %arg6[%c0_114, %c128_115] : memref<32x384xbf16, #tpu.memory_space<vmem>>, vector<32x128xbf16>
    tpu.vector_store %arg6[%c0_114, %c128_115], %188 {strides = array<i32>} : memref<32x384xbf16, #tpu.memory_space<vmem>>, vector<32x128xbf16>,
    %c0_116 = arith.constant 0 : index
    %c0_117 = arith.constant 0 : index
    %c3 = arith.constant 3 : index
    %190 = vector.load %arg4[%c0_116, %c0_117, %c3] : memref<2x64x12xf32, #tpu.memory_space<vmem>>, vector<1x64x1xf32>
    %191 = vector.shape_cast %190 : vector<1x64x1xf32> to vector<64x1xf32>
    %c0_118 = arith.constant 0 : index
    %c960 = arith.constant 960 : index
    %c0_119 = arith.constant 0 : index
    %192 = vector.load %arg3[%c0_118, %c960, %c0_119] : memref<2x1506x32xbf16, #tpu.memory_space<vmem>>, vector<1x64x32xbf16>
    %193 = vector.shape_cast %192 : vector<1x64x32xbf16> to vector<64x32xbf16>
    %c0_120 = arith.constant 0 : index
    %c126_121 = arith.constant 126 : index
    %194 = vector.load %arg6[%c0_120, %c126_121] : memref<32x384xbf16, #tpu.memory_space<vmem>>, vector<32x128xbf16>
    %cst_122 = arith.constant dense<0.000000e+00> : vector<64x128xf32>
    %195 = tpu.matmul %193, %194, %cst_122 {dimension_numbers = #tpu.dot_dimension_numbers<[1], [0], [0], [1], [0, 0, 1, 1], [], []>} : vector<64x32xbf16>, vector<32x128xbf16>, vector<64x128xf32> -> vector<64x128xf32>
    %196 = vector.broadcast %191 : vector<64x1xf32> to vector<64x128xf32>
    %197 = arith.addf %196, %195 : vector<64x128xf32>
    %c0_123 = arith.constant 0 : index
    %c1024 = arith.constant 1024 : index
    %c0_124 = arith.constant 0 : index
    %198 = vector.load %arg3[%c0_123, %c1024, %c0_124] : memref<2x1506x32xbf16, #tpu.memory_space<vmem>>, vector<1x64x32xbf16>
    %199 = vector.shape_cast %198 : vector<1x64x32xbf16> to vector<64x32xbf16>
    %c0_125 = arith.constant 0 : index
    %c127_126 = arith.constant 127 : index
    %200 = vector.load %arg6[%c0_125, %c127_126] : memref<32x384xbf16, #tpu.memory_space<vmem>>, vector<32x128xbf16>
    %cst_127 = arith.constant dense<0.000000e+00> : vector<64x128xf32>
    %201 = tpu.matmul %199, %200, %cst_127 {dimension_numbers = #tpu.dot_dimension_numbers<[1], [0], [0], [1], [0, 0, 1, 1], [], []>} : vector<64x32xbf16>, vector<32x128xbf16>, vector<64x128xf32> -> vector<64x128xf32>
    %202 = arith.addf %197, %201 : vector<64x128xf32>
    %c0_128 = arith.constant 0 : index
    %c1088 = arith.constant 1088 : index
    %c0_129 = arith.constant 0 : index
    %203 = vector.load %arg3[%c0_128, %c1088, %c0_129] : memref<2x1506x32xbf16, #tpu.memory_space<vmem>>, vector<1x64x32xbf16>
    %204 = vector.shape_cast %203 : vector<1x64x32xbf16> to vector<64x32xbf16>
    %c0_130 = arith.constant 0 : index
    %c128_131 = arith.constant 128 : index
    %205 = vector.load %arg6[%c0_130, %c128_131] : memref<32x384xbf16, #tpu.memory_space<vmem>>, vector<32x128xbf16>
    %cst_132 = arith.constant dense<0.000000e+00> : vector<64x128xf32>
    %206 = tpu.matmul %204, %205, %cst_132 {dimension_numbers = #tpu.dot_dimension_numbers<[1], [0], [0], [1], [0, 0, 1, 1], [], []>} : vector<64x32xbf16>, vector<32x128xbf16>, vector<64x128xf32> -> vector<64x128xf32>
    %207 = arith.addf %202, %206 : vector<64x128xf32>
    %c0_133 = arith.constant 0 : index
    %c1152 = arith.constant 1152 : index
    %c0_134 = arith.constant 0 : index
    %208 = vector.load %arg3[%c0_133, %c1152, %c0_134] : memref<2x1506x32xbf16, #tpu.memory_space<vmem>>, vector<1x64x32xbf16>
    %209 = vector.shape_cast %208 : vector<1x64x32xbf16> to vector<64x32xbf16>
    %c0_135 = arith.constant 0 : index
    %c129_136 = arith.constant 129 : index
    %210 = vector.load %arg6[%c0_135, %c129_136] : memref<32x384xbf16, #tpu.memory_space<vmem>>, vector<32x128xbf16>
    %cst_137 = arith.constant dense<0.000000e+00> : vector<64x128xf32>
    %211 = tpu.matmul %209, %210, %cst_137 {dimension_numbers = #tpu.dot_dimension_numbers<[1], [0], [0], [1], [0, 0, 1, 1], [], []>} : vector<64x32xbf16>, vector<32x128xbf16>, vector<64x128xf32> -> vector<64x128xf32>
    %212 = arith.addf %207, %211 : vector<64x128xf32>
    %c0_138 = arith.constant 0 : index
    %c1216 = arith.constant 1216 : index
    %c0_139 = arith.constant 0 : index
    %213 = vector.load %arg3[%c0_138, %c1216, %c0_139] : memref<2x1506x32xbf16, #tpu.memory_space<vmem>>, vector<1x64x32xbf16>
    %214 = vector.shape_cast %213 : vector<1x64x32xbf16> to vector<64x32xbf16>
    %c0_140 = arith.constant 0 : index
    %c130_141 = arith.constant 130 : index
    %215 = vector.load %arg6[%c0_140, %c130_141] : memref<32x384xbf16, #tpu.memory_space<vmem>>, vector<32x128xbf16>
    %cst_142 = arith.constant dense<0.000000e+00> : vector<64x128xf32>
    %216 = tpu.matmul %214, %215, %cst_142 {dimension_numbers = #tpu.dot_dimension_numbers<[1], [0], [0], [1], [0, 0, 1, 1], [], []>} : vector<64x32xbf16>, vector<32x128xbf16>, vector<64x128xf32> -> vector<64x128xf32>
    %217 = arith.addf %212, %216 : vector<64x128xf32>
    %218 = vector.extract_strided_slice %217 {offsets = [0, 0], sizes = [32, 128], strides = [1, 1]} : vector<64x128xf32> to vector<32x128xf32>
    %219 = math.tanh %218 : vector<32x128xf32>
    %220 = vector.extract_strided_slice %217 {offsets = [32, 0], sizes = [32, 128], strides = [1, 1]} : vector<64x128xf32> to vector<32x128xf32>
    %221 = arith.negf %220 : vector<32x128xf32>
    %222 = math.exp %221 : vector<32x128xf32>
    %cst_143 = arith.constant 1.000000e+00 : f32
    %223 = vector.broadcast %cst_143 : f32 to vector<32x128xf32>
    %224 = arith.addf %223, %222 : vector<32x128xf32>
    %225 = arith.divf %223, %224 : vector<32x128xf32>
    %226 = arith.mulf %219, %225 : vector<32x128xf32>
    %227 = arith.truncf %226 : vector<32x128xf32> to vector<32x128xbf16>
    %c0_144 = arith.constant 0 : index
    %c1472 = arith.constant 1472 : index
    %c0_145 = arith.constant 0 : index
    %228 = vector.load %arg3[%c0_144, %c1472, %c0_145] : memref<2x1506x32xbf16, #tpu.memory_space<vmem>>, vector<1x32x32xbf16>
    %229 = vector.shape_cast %228 : vector<1x32x32xbf16> to vector<32x32xbf16>
    %cst_146 = arith.constant dense<0.000000e+00> : vector<32x128xf32>
    %230 = tpu.matmul %229, %227, %cst_146 {dimension_numbers = #tpu.dot_dimension_numbers<[1], [0], [0], [1], [0, 0, 1, 1], [], []>} : vector<32x32xbf16>, vector<32x128xbf16>, vector<32x128xf32> -> vector<32x128xf32>
    %c0_147 = arith.constant 0 : index
    %c0_148 = arith.constant 0 : index
    %c7 = arith.constant 7 : index
    %231 = vector.load %arg4[%c0_147, %c0_148, %c7] : memref<2x64x12xf32, #tpu.memory_space<vmem>>, vector<1x32x1xf32>
    %232 = vector.shape_cast %231 : vector<1x32x1xf32> to vector<32x1xf32>
    %233 = vector.broadcast %232 : vector<32x1xf32> to vector<32x128xf32>
    %234 = arith.addf %230, %233 : vector<32x128xf32>
    %235 = arith.addf %187, %234 : vector<32x128xf32>
    %236 = vector.broadcast %3 : vector<1x128xf32> to vector<32x128xf32>
    %237 = arith.mulf %235, %236 : vector<32x128xf32>
    %238 = arith.truncf %237 : vector<32x128xf32> to vector<32x128xbf16>
    %c0_149 = arith.constant 0 : index
    %c1504 = arith.constant 1504 : index
    %c0_150 = arith.constant 0 : index
    %239 = vector.load %arg3[%c0_149, %c1504, %c0_150] : memref<2x1506x32xbf16, #tpu.memory_space<vmem>>, vector<1x2x32xbf16>
    %240 = vector.shape_cast %239 : vector<1x2x32xbf16> to vector<2x32xbf16>
    %c0_151 = arith.constant 0 : index
    %c0_152 = arith.constant 0 : index
    %c9 = arith.constant 9 : index
    %241 = vector.load %arg4[%c0_151, %c0_152, %c9] : memref<2x64x12xf32, #tpu.memory_space<vmem>>, vector<1x2x1xf32>
    %242 = vector.shape_cast %241 : vector<1x2x1xf32> to vector<2x1xf32>
    %cst_153 = arith.constant dense<0.000000e+00> : vector<2x128xf32>
    %243 = tpu.matmul %240, %238, %cst_153 {dimension_numbers = #tpu.dot_dimension_numbers<[1], [0], [0], [1], [0, 0, 1, 1], [], []>} : vector<2x32xbf16>, vector<32x128xbf16>, vector<2x128xf32> -> vector<2x128xf32>
    %244 = vector.broadcast %242 : vector<2x1xf32> to vector<2x128xf32>
    %245 = arith.addf %243, %244 : vector<2x128xf32>
    %246 = vector.broadcast %3 : vector<1x128xf32> to vector<2x128xf32>
    %247 = arith.mulf %245, %246 : vector<2x128xf32>
    %248 = vector.broadcast %3 : vector<1x128xf32> to vector<2x128xf32>
    %249 = arith.mulf %6, %248 : vector<2x128xf32>
    %250 = arith.addf %247, %249 : vector<2x128xf32>
    %cst_154 = arith.constant 0.000000e+00 : f32
    %251 = vector.broadcast %cst_154 : f32 to vector<32x128xf32>
    %c1_155 = arith.constant 1 : index
    %c0_156 = arith.constant 0 : index
    %c10_157 = arith.constant 10 : index
    %252 = vector.load %arg4[%c1_155, %c0_156, %c10_157] : memref<2x64x12xf32, #tpu.memory_space<vmem>>, vector<1x32x1xf32>
    %253 = vector.shape_cast %252 : vector<1x32x1xf32> to vector<32x1xf32>
    %254 = vector.extract_strided_slice %250 {offsets = [0, 0], sizes = [1, 128], strides = [1, 1]} : vector<2x128xf32> to vector<1x128xf32>
    %255 = vector.broadcast %253 : vector<32x1xf32> to vector<32x128xf32>
    %256 = vector.broadcast %254 : vector<1x128xf32> to vector<32x128xf32>
    %257 = arith.mulf %255, %256 : vector<32x128xf32>
    %258 = arith.addf %251, %257 : vector<32x128xf32>
    %c1_158 = arith.constant 1 : index
    %c0_159 = arith.constant 0 : index
    %c11_160 = arith.constant 11 : index
    %259 = vector.load %arg4[%c1_158, %c0_159, %c11_160] : memref<2x64x12xf32, #tpu.memory_space<vmem>>, vector<1x32x1xf32>
    %260 = vector.shape_cast %259 : vector<1x32x1xf32> to vector<32x1xf32>
    %261 = vector.extract_strided_slice %250 {offsets = [1, 0], sizes = [1, 128], strides = [1, 1]} : vector<2x128xf32> to vector<1x128xf32>
    %262 = vector.broadcast %260 : vector<32x1xf32> to vector<32x128xf32>
    %263 = vector.broadcast %261 : vector<1x128xf32> to vector<32x128xf32>
    %264 = arith.mulf %262, %263 : vector<32x128xf32>
    %265 = arith.addf %258, %264 : vector<32x128xf32>
    %c1_161 = arith.constant 1 : index
    %c0_162 = arith.constant 0 : index
    %c8_163 = arith.constant 8 : index
    %266 = vector.load %arg4[%c1_161, %c0_162, %c8_163] : memref<2x64x12xf32, #tpu.memory_space<vmem>>, vector<1x32x1xf32>
    %267 = vector.shape_cast %266 : vector<1x32x1xf32> to vector<32x1xf32>
    %268 = vector.broadcast %267 : vector<32x1xf32> to vector<32x128xf32>
    %269 = arith.addf %265, %268 : vector<32x128xf32>
    %270 = vector.broadcast %3 : vector<1x128xf32> to vector<32x128xf32>
    %271 = arith.mulf %269, %270 : vector<32x128xf32>
    %cst_164 = arith.constant 0.000000e+00 : f32
    %272 = vector.broadcast %cst_164 : f32 to vector<32x128xf32>
    %273 = arith.truncf %271 : vector<32x128xf32> to vector<32x128xbf16>
    %c0_165 = arith.constant 0 : index
    %c128_166 = arith.constant 128 : index
    %274 = vector.load %arg6[%c0_165, %c128_166] : memref<32x384xbf16, #tpu.memory_space<vmem>>, vector<32x128xbf16>
    tpu.vector_store %arg6[%c0_165, %c128_166], %273 {strides = array<i32>} : memref<32x384xbf16, #tpu.memory_space<vmem>>, vector<32x128xbf16>,
    %c1_167 = arith.constant 1 : index
    %c0_168 = arith.constant 0 : index
    %c0_169 = arith.constant 0 : index
    %275 = vector.load %arg4[%c1_167, %c0_168, %c0_169] : memref<2x64x12xf32, #tpu.memory_space<vmem>>, vector<1x64x1xf32>
    %276 = vector.shape_cast %275 : vector<1x64x1xf32> to vector<64x1xf32>
    %c1_170 = arith.constant 1 : index
    %c0_171 = arith.constant 0 : index
    %c0_172 = arith.constant 0 : index
    %277 = vector.load %arg3[%c1_170, %c0_171, %c0_172] : memref<2x1506x32xbf16, #tpu.memory_space<vmem>>, vector<1x64x32xbf16>
    %278 = vector.shape_cast %277 : vector<1x64x32xbf16> to vector<64x32xbf16>
    %c0_173 = arith.constant 0 : index
    %c126_174 = arith.constant 126 : index
    %279 = vector.load %arg6[%c0_173, %c126_174] : memref<32x384xbf16, #tpu.memory_space<vmem>>, vector<32x128xbf16>
    %cst_175 = arith.constant dense<0.000000e+00> : vector<64x128xf32>
    %280 = tpu.matmul %278, %279, %cst_175 {dimension_numbers = #tpu.dot_dimension_numbers<[1], [0], [0], [1], [0, 0, 1, 1], [], []>} : vector<64x32xbf16>, vector<32x128xbf16>, vector<64x128xf32> -> vector<64x128xf32>
    %281 = vector.broadcast %276 : vector<64x1xf32> to vector<64x128xf32>
    %282 = arith.addf %281, %280 : vector<64x128xf32>
    %c1_176 = arith.constant 1 : index
    %c64_177 = arith.constant 64 : index
    %c0_178 = arith.constant 0 : index
    %283 = vector.load %arg3[%c1_176, %c64_177, %c0_178] : memref<2x1506x32xbf16, #tpu.memory_space<vmem>>, vector<1x64x32xbf16>
    %284 = vector.shape_cast %283 : vector<1x64x32xbf16> to vector<64x32xbf16>
    %c0_179 = arith.constant 0 : index
    %c127_180 = arith.constant 127 : index
    %285 = vector.load %arg6[%c0_179, %c127_180] : memref<32x384xbf16, #tpu.memory_space<vmem>>, vector<32x128xbf16>
    %cst_181 = arith.constant dense<0.000000e+00> : vector<64x128xf32>
    %286 = tpu.matmul %284, %285, %cst_181 {dimension_numbers = #tpu.dot_dimension_numbers<[1], [0], [0], [1], [0, 0, 1, 1], [], []>} : vector<64x32xbf16>, vector<32x128xbf16>, vector<64x128xf32> -> vector<64x128xf32>
    %287 = arith.addf %282, %286 : vector<64x128xf32>
    %c1_182 = arith.constant 1 : index
    %c128_183 = arith.constant 128 : index
    %c0_184 = arith.constant 0 : index
    %288 = vector.load %arg3[%c1_182, %c128_183, %c0_184] : memref<2x1506x32xbf16, #tpu.memory_space<vmem>>, vector<1x64x32xbf16>
    %289 = vector.shape_cast %288 : vector<1x64x32xbf16> to vector<64x32xbf16>
    %c0_185 = arith.constant 0 : index
    %c128_186 = arith.constant 128 : index
    %290 = vector.load %arg6[%c0_185, %c128_186] : memref<32x384xbf16, #tpu.memory_space<vmem>>, vector<32x128xbf16>
    %cst_187 = arith.constant dense<0.000000e+00> : vector<64x128xf32>
    %291 = tpu.matmul %289, %290, %cst_187 {dimension_numbers = #tpu.dot_dimension_numbers<[1], [0], [0], [1], [0, 0, 1, 1], [], []>} : vector<64x32xbf16>, vector<32x128xbf16>, vector<64x128xf32> -> vector<64x128xf32>
    %292 = arith.addf %287, %291 : vector<64x128xf32>
    %c1_188 = arith.constant 1 : index
    %c192_189 = arith.constant 192 : index
    %c0_190 = arith.constant 0 : index
    %293 = vector.load %arg3[%c1_188, %c192_189, %c0_190] : memref<2x1506x32xbf16, #tpu.memory_space<vmem>>, vector<1x64x32xbf16>
    %294 = vector.shape_cast %293 : vector<1x64x32xbf16> to vector<64x32xbf16>
    %c0_191 = arith.constant 0 : index
    %c129_192 = arith.constant 129 : index
    %295 = vector.load %arg6[%c0_191, %c129_192] : memref<32x384xbf16, #tpu.memory_space<vmem>>, vector<32x128xbf16>
    %cst_193 = arith.constant dense<0.000000e+00> : vector<64x128xf32>
    %296 = tpu.matmul %294, %295, %cst_193 {dimension_numbers = #tpu.dot_dimension_numbers<[1], [0], [0], [1], [0, 0, 1, 1], [], []>} : vector<64x32xbf16>, vector<32x128xbf16>, vector<64x128xf32> -> vector<64x128xf32>
    %297 = arith.addf %292, %296 : vector<64x128xf32>
    %c1_194 = arith.constant 1 : index
    %c256_195 = arith.constant 256 : index
    %c0_196 = arith.constant 0 : index
    %298 = vector.load %arg3[%c1_194, %c256_195, %c0_196] : memref<2x1506x32xbf16, #tpu.memory_space<vmem>>, vector<1x64x32xbf16>
    %299 = vector.shape_cast %298 : vector<1x64x32xbf16> to vector<64x32xbf16>
    %c0_197 = arith.constant 0 : index
    %c130_198 = arith.constant 130 : index
    %300 = vector.load %arg6[%c0_197, %c130_198] : memref<32x384xbf16, #tpu.memory_space<vmem>>, vector<32x128xbf16>
    %cst_199 = arith.constant dense<0.000000e+00> : vector<64x128xf32>
    %301 = tpu.matmul %299, %300, %cst_199 {dimension_numbers = #tpu.dot_dimension_numbers<[1], [0], [0], [1], [0, 0, 1, 1], [], []>} : vector<64x32xbf16>, vector<32x128xbf16>, vector<64x128xf32> -> vector<64x128xf32>
    %302 = arith.addf %297, %301 : vector<64x128xf32>
    %303 = vector.extract_strided_slice %302 {offsets = [0, 0], sizes = [32, 128], strides = [1, 1]} : vector<64x128xf32> to vector<32x128xf32>
    %304 = math.tanh %303 : vector<32x128xf32>
    %305 = vector.extract_strided_slice %302 {offsets = [32, 0], sizes = [32, 128], strides = [1, 1]} : vector<64x128xf32> to vector<32x128xf32>
    %306 = arith.negf %305 : vector<32x128xf32>
    %307 = math.exp %306 : vector<32x128xf32>
    %cst_200 = arith.constant 1.000000e+00 : f32
    %308 = vector.broadcast %cst_200 : f32 to vector<32x128xf32>
    %309 = arith.addf %308, %307 : vector<32x128xf32>
    %310 = arith.divf %308, %309 : vector<32x128xf32>
    %311 = arith.mulf %304, %310 : vector<32x128xf32>
    %312 = arith.truncf %311 : vector<32x128xf32> to vector<32x128xbf16>
    %c1_201 = arith.constant 1 : index
    %c1280_202 = arith.constant 1280 : index
    %c0_203 = arith.constant 0 : index
    %313 = vector.load %arg3[%c1_201, %c1280_202, %c0_203] : memref<2x1506x32xbf16, #tpu.memory_space<vmem>>, vector<1x64x32xbf16>
    %314 = vector.shape_cast %313 : vector<1x64x32xbf16> to vector<64x32xbf16>
    %cst_204 = arith.constant dense<0.000000e+00> : vector<64x128xf32>
    %315 = tpu.matmul %314, %312, %cst_204 {dimension_numbers = #tpu.dot_dimension_numbers<[1], [0], [0], [1], [0, 0, 1, 1], [], []>} : vector<64x32xbf16>, vector<32x128xbf16>, vector<64x128xf32> -> vector<64x128xf32>
    %c1_205 = arith.constant 1 : index
    %c0_206 = arith.constant 0 : index
    %c4_207 = arith.constant 4 : index
    %316 = vector.load %arg4[%c1_205, %c0_206, %c4_207] : memref<2x64x12xf32, #tpu.memory_space<vmem>>, vector<1x64x1xf32>
    %317 = vector.shape_cast %316 : vector<1x64x1xf32> to vector<64x1xf32>
    %318 = vector.broadcast %317 : vector<64x1xf32> to vector<64x128xf32>
    %319 = arith.addf %315, %318 : vector<64x128xf32>
    %320 = vector.extract_strided_slice %319 {offsets = [0, 0], sizes = [32, 128], strides = [1, 1]} : vector<64x128xf32> to vector<32x128xf32>
    %321 = arith.addf %271, %320 : vector<32x128xf32>
    %322 = vector.broadcast %3 : vector<1x128xf32> to vector<32x128xf32>
    %323 = arith.mulf %321, %322 : vector<32x128xf32>
    %324 = vector.extract_strided_slice %319 {offsets = [32, 0], sizes = [32, 128], strides = [1, 1]} : vector<64x128xf32> to vector<32x128xf32>
    %325 = arith.addf %272, %324 : vector<32x128xf32>
    %326 = arith.truncf %323 : vector<32x128xf32> to vector<32x128xbf16>
    %c0_208 = arith.constant 0 : index
    %c128_209 = arith.constant 128 : index
    %327 = vector.load %arg6[%c0_208, %c128_209] : memref<32x384xbf16, #tpu.memory_space<vmem>>, vector<32x128xbf16>
    tpu.vector_store %arg6[%c0_208, %c128_209], %326 {strides = array<i32>} : memref<32x384xbf16, #tpu.memory_space<vmem>>, vector<32x128xbf16>,
    %c1_210 = arith.constant 1 : index
    %c0_211 = arith.constant 0 : index
    %c1_212 = arith.constant 1 : index
    %328 = vector.load %arg4[%c1_210, %c0_211, %c1_212] : memref<2x64x12xf32, #tpu.memory_space<vmem>>, vector<1x64x1xf32>
    %329 = vector.shape_cast %328 : vector<1x64x1xf32> to vector<64x1xf32>
    %c1_213 = arith.constant 1 : index
    %c320_214 = arith.constant 320 : index
    %c0_215 = arith.constant 0 : index
    %330 = vector.load %arg3[%c1_213, %c320_214, %c0_215] : memref<2x1506x32xbf16, #tpu.memory_space<vmem>>, vector<1x64x32xbf16>
    %331 = vector.shape_cast %330 : vector<1x64x32xbf16> to vector<64x32xbf16>
    %c0_216 = arith.constant 0 : index
    %c126_217 = arith.constant 126 : index
    %332 = vector.load %arg6[%c0_216, %c126_217] : memref<32x384xbf16, #tpu.memory_space<vmem>>, vector<32x128xbf16>
    %cst_218 = arith.constant dense<0.000000e+00> : vector<64x128xf32>
    %333 = tpu.matmul %331, %332, %cst_218 {dimension_numbers = #tpu.dot_dimension_numbers<[1], [0], [0], [1], [0, 0, 1, 1], [], []>} : vector<64x32xbf16>, vector<32x128xbf16>, vector<64x128xf32> -> vector<64x128xf32>
    %334 = vector.broadcast %329 : vector<64x1xf32> to vector<64x128xf32>
    %335 = arith.addf %334, %333 : vector<64x128xf32>
    %c1_219 = arith.constant 1 : index
    %c384_220 = arith.constant 384 : index
    %c0_221 = arith.constant 0 : index
    %336 = vector.load %arg3[%c1_219, %c384_220, %c0_221] : memref<2x1506x32xbf16, #tpu.memory_space<vmem>>, vector<1x64x32xbf16>
    %337 = vector.shape_cast %336 : vector<1x64x32xbf16> to vector<64x32xbf16>
    %c0_222 = arith.constant 0 : index
    %c127_223 = arith.constant 127 : index
    %338 = vector.load %arg6[%c0_222, %c127_223] : memref<32x384xbf16, #tpu.memory_space<vmem>>, vector<32x128xbf16>
    %cst_224 = arith.constant dense<0.000000e+00> : vector<64x128xf32>
    %339 = tpu.matmul %337, %338, %cst_224 {dimension_numbers = #tpu.dot_dimension_numbers<[1], [0], [0], [1], [0, 0, 1, 1], [], []>} : vector<64x32xbf16>, vector<32x128xbf16>, vector<64x128xf32> -> vector<64x128xf32>
    %340 = arith.addf %335, %339 : vector<64x128xf32>
    %c1_225 = arith.constant 1 : index
    %c448_226 = arith.constant 448 : index
    %c0_227 = arith.constant 0 : index
    %341 = vector.load %arg3[%c1_225, %c448_226, %c0_227] : memref<2x1506x32xbf16, #tpu.memory_space<vmem>>, vector<1x64x32xbf16>
    %342 = vector.shape_cast %341 : vector<1x64x32xbf16> to vector<64x32xbf16>
    %c0_228 = arith.constant 0 : index
    %c128_229 = arith.constant 128 : index
    %343 = vector.load %arg6[%c0_228, %c128_229] : memref<32x384xbf16, #tpu.memory_space<vmem>>, vector<32x128xbf16>
    %cst_230 = arith.constant dense<0.000000e+00> : vector<64x128xf32>
    %344 = tpu.matmul %342, %343, %cst_230 {dimension_numbers = #tpu.dot_dimension_numbers<[1], [0], [0], [1], [0, 0, 1, 1], [], []>} : vector<64x32xbf16>, vector<32x128xbf16>, vector<64x128xf32> -> vector<64x128xf32>
    %345 = arith.addf %340, %344 : vector<64x128xf32>
    %c1_231 = arith.constant 1 : index
    %c512_232 = arith.constant 512 : index
    %c0_233 = arith.constant 0 : index
    %346 = vector.load %arg3[%c1_231, %c512_232, %c0_233] : memref<2x1506x32xbf16, #tpu.memory_space<vmem>>, vector<1x64x32xbf16>
    %347 = vector.shape_cast %346 : vector<1x64x32xbf16> to vector<64x32xbf16>
    %c0_234 = arith.constant 0 : index
    %c129_235 = arith.constant 129 : index
    %348 = vector.load %arg6[%c0_234, %c129_235] : memref<32x384xbf16, #tpu.memory_space<vmem>>, vector<32x128xbf16>
    %cst_236 = arith.constant dense<0.000000e+00> : vector<64x128xf32>
    %349 = tpu.matmul %347, %348, %cst_236 {dimension_numbers = #tpu.dot_dimension_numbers<[1], [0], [0], [1], [0, 0, 1, 1], [], []>} : vector<64x32xbf16>, vector<32x128xbf16>, vector<64x128xf32> -> vector<64x128xf32>
    %350 = arith.addf %345, %349 : vector<64x128xf32>
    %c1_237 = arith.constant 1 : index
    %c576_238 = arith.constant 576 : index
    %c0_239 = arith.constant 0 : index
    %351 = vector.load %arg3[%c1_237, %c576_238, %c0_239] : memref<2x1506x32xbf16, #tpu.memory_space<vmem>>, vector<1x64x32xbf16>
    %352 = vector.shape_cast %351 : vector<1x64x32xbf16> to vector<64x32xbf16>
    %c0_240 = arith.constant 0 : index
    %c130_241 = arith.constant 130 : index
    %353 = vector.load %arg6[%c0_240, %c130_241] : memref<32x384xbf16, #tpu.memory_space<vmem>>, vector<32x128xbf16>
    %cst_242 = arith.constant dense<0.000000e+00> : vector<64x128xf32>
    %354 = tpu.matmul %352, %353, %cst_242 {dimension_numbers = #tpu.dot_dimension_numbers<[1], [0], [0], [1], [0, 0, 1, 1], [], []>} : vector<64x32xbf16>, vector<32x128xbf16>, vector<64x128xf32> -> vector<64x128xf32>
    %355 = arith.addf %350, %354 : vector<64x128xf32>
    %356 = vector.extract_strided_slice %355 {offsets = [0, 0], sizes = [32, 128], strides = [1, 1]} : vector<64x128xf32> to vector<32x128xf32>
    %357 = math.tanh %356 : vector<32x128xf32>
    %358 = vector.extract_strided_slice %355 {offsets = [32, 0], sizes = [32, 128], strides = [1, 1]} : vector<64x128xf32> to vector<32x128xf32>
    %359 = arith.negf %358 : vector<32x128xf32>
    %360 = math.exp %359 : vector<32x128xf32>
    %cst_243 = arith.constant 1.000000e+00 : f32
    %361 = vector.broadcast %cst_243 : f32 to vector<32x128xf32>
    %362 = arith.addf %361, %360 : vector<32x128xf32>
    %363 = arith.divf %361, %362 : vector<32x128xf32>
    %364 = arith.mulf %357, %363 : vector<32x128xf32>
    %365 = arith.truncf %364 : vector<32x128xf32> to vector<32x128xbf16>
    %c1_244 = arith.constant 1 : index
    %c1344_245 = arith.constant 1344 : index
    %c0_246 = arith.constant 0 : index
    %366 = vector.load %arg3[%c1_244, %c1344_245, %c0_246] : memref<2x1506x32xbf16, #tpu.memory_space<vmem>>, vector<1x64x32xbf16>
    %367 = vector.shape_cast %366 : vector<1x64x32xbf16> to vector<64x32xbf16>
    %cst_247 = arith.constant dense<0.000000e+00> : vector<64x128xf32>
    %368 = tpu.matmul %367, %365, %cst_247 {dimension_numbers = #tpu.dot_dimension_numbers<[1], [0], [0], [1], [0, 0, 1, 1], [], []>} : vector<64x32xbf16>, vector<32x128xbf16>, vector<64x128xf32> -> vector<64x128xf32>
    %c1_248 = arith.constant 1 : index
    %c0_249 = arith.constant 0 : index
    %c5_250 = arith.constant 5 : index
    %369 = vector.load %arg4[%c1_248, %c0_249, %c5_250] : memref<2x64x12xf32, #tpu.memory_space<vmem>>, vector<1x64x1xf32>
    %370 = vector.shape_cast %369 : vector<1x64x1xf32> to vector<64x1xf32>
    %371 = vector.broadcast %370 : vector<64x1xf32> to vector<64x128xf32>
    %372 = arith.addf %368, %371 : vector<64x128xf32>
    %373 = vector.extract_strided_slice %372 {offsets = [0, 0], sizes = [32, 128], strides = [1, 1]} : vector<64x128xf32> to vector<32x128xf32>
    %374 = arith.addf %323, %373 : vector<32x128xf32>
    %375 = vector.broadcast %3 : vector<1x128xf32> to vector<32x128xf32>
    %376 = arith.mulf %374, %375 : vector<32x128xf32>
    %377 = vector.extract_strided_slice %372 {offsets = [32, 0], sizes = [32, 128], strides = [1, 1]} : vector<64x128xf32> to vector<32x128xf32>
    %378 = arith.addf %325, %377 : vector<32x128xf32>
    %379 = arith.truncf %376 : vector<32x128xf32> to vector<32x128xbf16>
    %c0_251 = arith.constant 0 : index
    %c128_252 = arith.constant 128 : index
    %380 = vector.load %arg6[%c0_251, %c128_252] : memref<32x384xbf16, #tpu.memory_space<vmem>>, vector<32x128xbf16>
    tpu.vector_store %arg6[%c0_251, %c128_252], %379 {strides = array<i32>} : memref<32x384xbf16, #tpu.memory_space<vmem>>, vector<32x128xbf16>,
    %c1_253 = arith.constant 1 : index
    %c0_254 = arith.constant 0 : index
    %c2_255 = arith.constant 2 : index
    %381 = vector.load %arg4[%c1_253, %c0_254, %c2_255] : memref<2x64x12xf32, #tpu.memory_space<vmem>>, vector<1x64x1xf32>
    %382 = vector.shape_cast %381 : vector<1x64x1xf32> to vector<64x1xf32>
    %c1_256 = arith.constant 1 : index
    %c640_257 = arith.constant 640 : index
    %c0_258 = arith.constant 0 : index
    %383 = vector.load %arg3[%c1_256, %c640_257, %c0_258] : memref<2x1506x32xbf16, #tpu.memory_space<vmem>>, vector<1x64x32xbf16>
    %384 = vector.shape_cast %383 : vector<1x64x32xbf16> to vector<64x32xbf16>
    %c0_259 = arith.constant 0 : index
    %c126_260 = arith.constant 126 : index
    %385 = vector.load %arg6[%c0_259, %c126_260] : memref<32x384xbf16, #tpu.memory_space<vmem>>, vector<32x128xbf16>
    %cst_261 = arith.constant dense<0.000000e+00> : vector<64x128xf32>
    %386 = tpu.matmul %384, %385, %cst_261 {dimension_numbers = #tpu.dot_dimension_numbers<[1], [0], [0], [1], [0, 0, 1, 1], [], []>} : vector<64x32xbf16>, vector<32x128xbf16>, vector<64x128xf32> -> vector<64x128xf32>
    %387 = vector.broadcast %382 : vector<64x1xf32> to vector<64x128xf32>
    %388 = arith.addf %387, %386 : vector<64x128xf32>
    %c1_262 = arith.constant 1 : index
    %c704_263 = arith.constant 704 : index
    %c0_264 = arith.constant 0 : index
    %389 = vector.load %arg3[%c1_262, %c704_263, %c0_264] : memref<2x1506x32xbf16, #tpu.memory_space<vmem>>, vector<1x64x32xbf16>
    %390 = vector.shape_cast %389 : vector<1x64x32xbf16> to vector<64x32xbf16>
    %c0_265 = arith.constant 0 : index
    %c127_266 = arith.constant 127 : index
    %391 = vector.load %arg6[%c0_265, %c127_266] : memref<32x384xbf16, #tpu.memory_space<vmem>>, vector<32x128xbf16>
    %cst_267 = arith.constant dense<0.000000e+00> : vector<64x128xf32>
    %392 = tpu.matmul %390, %391, %cst_267 {dimension_numbers = #tpu.dot_dimension_numbers<[1], [0], [0], [1], [0, 0, 1, 1], [], []>} : vector<64x32xbf16>, vector<32x128xbf16>, vector<64x128xf32> -> vector<64x128xf32>
    %393 = arith.addf %388, %392 : vector<64x128xf32>
    %c1_268 = arith.constant 1 : index
    %c768_269 = arith.constant 768 : index
    %c0_270 = arith.constant 0 : index
    %394 = vector.load %arg3[%c1_268, %c768_269, %c0_270] : memref<2x1506x32xbf16, #tpu.memory_space<vmem>>, vector<1x64x32xbf16>
    %395 = vector.shape_cast %394 : vector<1x64x32xbf16> to vector<64x32xbf16>
    %c0_271 = arith.constant 0 : index
    %c128_272 = arith.constant 128 : index
    %396 = vector.load %arg6[%c0_271, %c128_272] : memref<32x384xbf16, #tpu.memory_space<vmem>>, vector<32x128xbf16>
    %cst_273 = arith.constant dense<0.000000e+00> : vector<64x128xf32>
    %397 = tpu.matmul %395, %396, %cst_273 {dimension_numbers = #tpu.dot_dimension_numbers<[1], [0], [0], [1], [0, 0, 1, 1], [], []>} : vector<64x32xbf16>, vector<32x128xbf16>, vector<64x128xf32> -> vector<64x128xf32>
    %398 = arith.addf %393, %397 : vector<64x128xf32>
    %c1_274 = arith.constant 1 : index
    %c832_275 = arith.constant 832 : index
    %c0_276 = arith.constant 0 : index
    %399 = vector.load %arg3[%c1_274, %c832_275, %c0_276] : memref<2x1506x32xbf16, #tpu.memory_space<vmem>>, vector<1x64x32xbf16>
    %400 = vector.shape_cast %399 : vector<1x64x32xbf16> to vector<64x32xbf16>
    %c0_277 = arith.constant 0 : index
    %c129_278 = arith.constant 129 : index
    %401 = vector.load %arg6[%c0_277, %c129_278] : memref<32x384xbf16, #tpu.memory_space<vmem>>, vector<32x128xbf16>
    %cst_279 = arith.constant dense<0.000000e+00> : vector<64x128xf32>
    %402 = tpu.matmul %400, %401, %cst_279 {dimension_numbers = #tpu.dot_dimension_numbers<[1], [0], [0], [1], [0, 0, 1, 1], [], []>} : vector<64x32xbf16>, vector<32x128xbf16>, vector<64x128xf32> -> vector<64x128xf32>
    %403 = arith.addf %398, %402 : vector<64x128xf32>
    %c1_280 = arith.constant 1 : index
    %c896_281 = arith.constant 896 : index
    %c0_282 = arith.constant 0 : index
    %404 = vector.load %arg3[%c1_280, %c896_281, %c0_282] : memref<2x1506x32xbf16, #tpu.memory_space<vmem>>, vector<1x64x32xbf16>
    %405 = vector.shape_cast %404 : vector<1x64x32xbf16> to vector<64x32xbf16>
    %c0_283 = arith.constant 0 : index
    %c130_284 = arith.constant 130 : index
    %406 = vector.load %arg6[%c0_283, %c130_284] : memref<32x384xbf16, #tpu.memory_space<vmem>>, vector<32x128xbf16>
    %cst_285 = arith.constant dense<0.000000e+00> : vector<64x128xf32>
    %407 = tpu.matmul %405, %406, %cst_285 {dimension_numbers = #tpu.dot_dimension_numbers<[1], [0], [0], [1], [0, 0, 1, 1], [], []>} : vector<64x32xbf16>, vector<32x128xbf16>, vector<64x128xf32> -> vector<64x128xf32>
    %408 = arith.addf %403, %407 : vector<64x128xf32>
    %409 = vector.extract_strided_slice %408 {offsets = [0, 0], sizes = [32, 128], strides = [1, 1]} : vector<64x128xf32> to vector<32x128xf32>
    %410 = math.tanh %409 : vector<32x128xf32>
    %411 = vector.extract_strided_slice %408 {offsets = [32, 0], sizes = [32, 128], strides = [1, 1]} : vector<64x128xf32> to vector<32x128xf32>
    %412 = arith.negf %411 : vector<32x128xf32>
    %413 = math.exp %412 : vector<32x128xf32>
    %cst_286 = arith.constant 1.000000e+00 : f32
    %414 = vector.broadcast %cst_286 : f32 to vector<32x128xf32>
    %415 = arith.addf %414, %413 : vector<32x128xf32>
    %416 = arith.divf %414, %415 : vector<32x128xf32>
    %417 = arith.mulf %410, %416 : vector<32x128xf32>
    %418 = arith.truncf %417 : vector<32x128xf32> to vector<32x128xbf16>
    %c1_287 = arith.constant 1 : index
    %c1408_288 = arith.constant 1408 : index
    %c0_289 = arith.constant 0 : index
    %419 = vector.load %arg3[%c1_287, %c1408_288, %c0_289] : memref<2x1506x32xbf16, #tpu.memory_space<vmem>>, vector<1x64x32xbf16>
    %420 = vector.shape_cast %419 : vector<1x64x32xbf16> to vector<64x32xbf16>
    %cst_290 = arith.constant dense<0.000000e+00> : vector<64x128xf32>
    %421 = tpu.matmul %420, %418, %cst_290 {dimension_numbers = #tpu.dot_dimension_numbers<[1], [0], [0], [1], [0, 0, 1, 1], [], []>} : vector<64x32xbf16>, vector<32x128xbf16>, vector<64x128xf32> -> vector<64x128xf32>
    %c1_291 = arith.constant 1 : index
    %c0_292 = arith.constant 0 : index
    %c6_293 = arith.constant 6 : index
    %422 = vector.load %arg4[%c1_291, %c0_292, %c6_293] : memref<2x64x12xf32, #tpu.memory_space<vmem>>, vector<1x64x1xf32>
    %423 = vector.shape_cast %422 : vector<1x64x1xf32> to vector<64x1xf32>
    %424 = vector.broadcast %423 : vector<64x1xf32> to vector<64x128xf32>
    %425 = arith.addf %421, %424 : vector<64x128xf32>
    %426 = vector.extract_strided_slice %425 {offsets = [0, 0], sizes = [32, 128], strides = [1, 1]} : vector<64x128xf32> to vector<32x128xf32>
    %427 = arith.addf %376, %426 : vector<32x128xf32>
    %428 = vector.broadcast %3 : vector<1x128xf32> to vector<32x128xf32>
    %429 = arith.mulf %427, %428 : vector<32x128xf32>
    %430 = vector.extract_strided_slice %425 {offsets = [32, 0], sizes = [32, 128], strides = [1, 1]} : vector<64x128xf32> to vector<32x128xf32>
    %431 = arith.addf %378, %430 : vector<32x128xf32>
    %432 = arith.truncf %429 : vector<32x128xf32> to vector<32x128xbf16>
    %c0_294 = arith.constant 0 : index
    %c128_295 = arith.constant 128 : index
    %433 = vector.load %arg6[%c0_294, %c128_295] : memref<32x384xbf16, #tpu.memory_space<vmem>>, vector<32x128xbf16>
    tpu.vector_store %arg6[%c0_294, %c128_295], %432 {strides = array<i32>} : memref<32x384xbf16, #tpu.memory_space<vmem>>, vector<32x128xbf16>,
    %c1_296 = arith.constant 1 : index
    %c0_297 = arith.constant 0 : index
    %c3_298 = arith.constant 3 : index
    %434 = vector.load %arg4[%c1_296, %c0_297, %c3_298] : memref<2x64x12xf32, #tpu.memory_space<vmem>>, vector<1x64x1xf32>
    %435 = vector.shape_cast %434 : vector<1x64x1xf32> to vector<64x1xf32>
    %c1_299 = arith.constant 1 : index
    %c960_300 = arith.constant 960 : index
    %c0_301 = arith.constant 0 : index
    %436 = vector.load %arg3[%c1_299, %c960_300, %c0_301] : memref<2x1506x32xbf16, #tpu.memory_space<vmem>>, vector<1x64x32xbf16>
    %437 = vector.shape_cast %436 : vector<1x64x32xbf16> to vector<64x32xbf16>
    %c0_302 = arith.constant 0 : index
    %c126_303 = arith.constant 126 : index
    %438 = vector.load %arg6[%c0_302, %c126_303] : memref<32x384xbf16, #tpu.memory_space<vmem>>, vector<32x128xbf16>
    %cst_304 = arith.constant dense<0.000000e+00> : vector<64x128xf32>
    %439 = tpu.matmul %437, %438, %cst_304 {dimension_numbers = #tpu.dot_dimension_numbers<[1], [0], [0], [1], [0, 0, 1, 1], [], []>} : vector<64x32xbf16>, vector<32x128xbf16>, vector<64x128xf32> -> vector<64x128xf32>
    %440 = vector.broadcast %435 : vector<64x1xf32> to vector<64x128xf32>
    %441 = arith.addf %440, %439 : vector<64x128xf32>
    %c1_305 = arith.constant 1 : index
    %c1024_306 = arith.constant 1024 : index
    %c0_307 = arith.constant 0 : index
    %442 = vector.load %arg3[%c1_305, %c1024_306, %c0_307] : memref<2x1506x32xbf16, #tpu.memory_space<vmem>>, vector<1x64x32xbf16>
    %443 = vector.shape_cast %442 : vector<1x64x32xbf16> to vector<64x32xbf16>
    %c0_308 = arith.constant 0 : index
    %c127_309 = arith.constant 127 : index
    %444 = vector.load %arg6[%c0_308, %c127_309] : memref<32x384xbf16, #tpu.memory_space<vmem>>, vector<32x128xbf16>
    %cst_310 = arith.constant dense<0.000000e+00> : vector<64x128xf32>
    %445 = tpu.matmul %443, %444, %cst_310 {dimension_numbers = #tpu.dot_dimension_numbers<[1], [0], [0], [1], [0, 0, 1, 1], [], []>} : vector<64x32xbf16>, vector<32x128xbf16>, vector<64x128xf32> -> vector<64x128xf32>
    %446 = arith.addf %441, %445 : vector<64x128xf32>
    %c1_311 = arith.constant 1 : index
    %c1088_312 = arith.constant 1088 : index
    %c0_313 = arith.constant 0 : index
    %447 = vector.load %arg3[%c1_311, %c1088_312, %c0_313] : memref<2x1506x32xbf16, #tpu.memory_space<vmem>>, vector<1x64x32xbf16>
    %448 = vector.shape_cast %447 : vector<1x64x32xbf16> to vector<64x32xbf16>
    %c0_314 = arith.constant 0 : index
    %c128_315 = arith.constant 128 : index
    %449 = vector.load %arg6[%c0_314, %c128_315] : memref<32x384xbf16, #tpu.memory_space<vmem>>, vector<32x128xbf16>
    %cst_316 = arith.constant dense<0.000000e+00> : vector<64x128xf32>
    %450 = tpu.matmul %448, %449, %cst_316 {dimension_numbers = #tpu.dot_dimension_numbers<[1], [0], [0], [1], [0, 0, 1, 1], [], []>} : vector<64x32xbf16>, vector<32x128xbf16>, vector<64x128xf32> -> vector<64x128xf32>
    %451 = arith.addf %446, %450 : vector<64x128xf32>
    %c1_317 = arith.constant 1 : index
    %c1152_318 = arith.constant 1152 : index
    %c0_319 = arith.constant 0 : index
    %452 = vector.load %arg3[%c1_317, %c1152_318, %c0_319] : memref<2x1506x32xbf16, #tpu.memory_space<vmem>>, vector<1x64x32xbf16>
    %453 = vector.shape_cast %452 : vector<1x64x32xbf16> to vector<64x32xbf16>
    %c0_320 = arith.constant 0 : index
    %c129_321 = arith.constant 129 : index
    %454 = vector.load %arg6[%c0_320, %c129_321] : memref<32x384xbf16, #tpu.memory_space<vmem>>, vector<32x128xbf16>
    %cst_322 = arith.constant dense<0.000000e+00> : vector<64x128xf32>
    %455 = tpu.matmul %453, %454, %cst_322 {dimension_numbers = #tpu.dot_dimension_numbers<[1], [0], [0], [1], [0, 0, 1, 1], [], []>} : vector<64x32xbf16>, vector<32x128xbf16>, vector<64x128xf32> -> vector<64x128xf32>
    %456 = arith.addf %451, %455 : vector<64x128xf32>
    %c1_323 = arith.constant 1 : index
    %c1216_324 = arith.constant 1216 : index
    %c0_325 = arith.constant 0 : index
    %457 = vector.load %arg3[%c1_323, %c1216_324, %c0_325] : memref<2x1506x32xbf16, #tpu.memory_space<vmem>>, vector<1x64x32xbf16>
    %458 = vector.shape_cast %457 : vector<1x64x32xbf16> to vector<64x32xbf16>
    %c0_326 = arith.constant 0 : index
    %c130_327 = arith.constant 130 : index
    %459 = vector.load %arg6[%c0_326, %c130_327] : memref<32x384xbf16, #tpu.memory_space<vmem>>, vector<32x128xbf16>
    %cst_328 = arith.constant dense<0.000000e+00> : vector<64x128xf32>
    %460 = tpu.matmul %458, %459, %cst_328 {dimension_numbers = #tpu.dot_dimension_numbers<[1], [0], [0], [1], [0, 0, 1, 1], [], []>} : vector<64x32xbf16>, vector<32x128xbf16>, vector<64x128xf32> -> vector<64x128xf32>
    %461 = arith.addf %456, %460 : vector<64x128xf32>
    %462 = vector.extract_strided_slice %461 {offsets = [0, 0], sizes = [32, 128], strides = [1, 1]} : vector<64x128xf32> to vector<32x128xf32>
    %463 = math.tanh %462 : vector<32x128xf32>
    %464 = vector.extract_strided_slice %461 {offsets = [32, 0], sizes = [32, 128], strides = [1, 1]} : vector<64x128xf32> to vector<32x128xf32>
    %465 = arith.negf %464 : vector<32x128xf32>
    %466 = math.exp %465 : vector<32x128xf32>
    %cst_329 = arith.constant 1.000000e+00 : f32
    %467 = vector.broadcast %cst_329 : f32 to vector<32x128xf32>
    %468 = arith.addf %467, %466 : vector<32x128xf32>
    %469 = arith.divf %467, %468 : vector<32x128xf32>
    %470 = arith.mulf %463, %469 : vector<32x128xf32>
    %471 = arith.truncf %470 : vector<32x128xf32> to vector<32x128xbf16>
    %c1_330 = arith.constant 1 : index
    %c1472_331 = arith.constant 1472 : index
    %c0_332 = arith.constant 0 : index
    %472 = vector.load %arg3[%c1_330, %c1472_331, %c0_332] : memref<2x1506x32xbf16, #tpu.memory_space<vmem>>, vector<1x32x32xbf16>
    %473 = vector.shape_cast %472 : vector<1x32x32xbf16> to vector<32x32xbf16>
    %cst_333 = arith.constant dense<0.000000e+00> : vector<32x128xf32>
    %474 = tpu.matmul %473, %471, %cst_333 {dimension_numbers = #tpu.dot_dimension_numbers<[1], [0], [0], [1], [0, 0, 1, 1], [], []>} : vector<32x32xbf16>, vector<32x128xbf16>, vector<32x128xf32> -> vector<32x128xf32>
    %c1_334 = arith.constant 1 : index
    %c0_335 = arith.constant 0 : index
    %c7_336 = arith.constant 7 : index
    %475 = vector.load %arg4[%c1_334, %c0_335, %c7_336] : memref<2x64x12xf32, #tpu.memory_space<vmem>>, vector<1x32x1xf32>
    %476 = vector.shape_cast %475 : vector<1x32x1xf32> to vector<32x1xf32>
    %477 = vector.broadcast %476 : vector<32x1xf32> to vector<32x128xf32>
    %478 = arith.addf %474, %477 : vector<32x128xf32>
    %479 = arith.addf %431, %478 : vector<32x128xf32>
    %480 = vector.broadcast %3 : vector<1x128xf32> to vector<32x128xf32>
    %481 = arith.mulf %479, %480 : vector<32x128xf32>
    %482 = arith.truncf %481 : vector<32x128xf32> to vector<32x128xbf16>
    %c1_337 = arith.constant 1 : index
    %c1504_338 = arith.constant 1504 : index
    %c0_339 = arith.constant 0 : index
    %483 = vector.load %arg3[%c1_337, %c1504_338, %c0_339] : memref<2x1506x32xbf16, #tpu.memory_space<vmem>>, vector<1x2x32xbf16>
    %484 = vector.shape_cast %483 : vector<1x2x32xbf16> to vector<2x32xbf16>
    %c1_340 = arith.constant 1 : index
    %c0_341 = arith.constant 0 : index
    %c9_342 = arith.constant 9 : index
    %485 = vector.load %arg4[%c1_340, %c0_341, %c9_342] : memref<2x64x12xf32, #tpu.memory_space<vmem>>, vector<1x2x1xf32>
    %486 = vector.shape_cast %485 : vector<1x2x1xf32> to vector<2x1xf32>
    %cst_343 = arith.constant dense<0.000000e+00> : vector<2x128xf32>
    %487 = tpu.matmul %484, %482, %cst_343 {dimension_numbers = #tpu.dot_dimension_numbers<[1], [0], [0], [1], [0, 0, 1, 1], [], []>} : vector<2x32xbf16>, vector<32x128xbf16>, vector<2x128xf32> -> vector<2x128xf32>
    %488 = vector.broadcast %486 : vector<2x1xf32> to vector<2x128xf32>
    %489 = arith.addf %487, %488 : vector<2x128xf32>
    %490 = vector.broadcast %3 : vector<1x128xf32> to vector<2x128xf32>
    %491 = arith.mulf %489, %490 : vector<2x128xf32>
    %492 = vector.broadcast %3 : vector<1x128xf32> to vector<2x128xf32>
    %493 = arith.mulf %5, %492 : vector<2x128xf32>
    %494 = arith.addf %491, %493 : vector<2x128xf32>
    %495 = tpu.concatenate %494, %250 in 0 : vector<2x128xf32>, vector<2x128xf32> -> vector<4x128xf32>
    %c0_344 = arith.constant 0 : index
    %c0_345 = arith.constant 0 : index
    %496 = vector.load %arg5[%c0_344, %c0_345] : memref<4x128xf32, #tpu.memory_space<vmem>>, vector<4x128xf32>
    tpu.vector_store %arg5[%c0_344, %c0_345], %495 {strides = array<i32>} : memref<4x128xf32, #tpu.memory_space<vmem>>, vector<4x128xf32>,
    return
  }
  func.func @transform_0(%arg0: i32) -> (i32, i32) {
    %c0_i32 = arith.constant 0 : i32
    %c0_i32_0 = arith.constant 0 : i32
    %c0_i32_1 = arith.constant 0 : i32
    return %c0_i32, %c0_i32_0 : i32, i32
  }
  func.func @transform_1(%arg0: i32) -> (i32, i32) {
    %c0_i32 = arith.constant 0 : i32
    %c0_i32_0 = arith.constant 0 : i32
    %c0_i32_1 = arith.constant 0 : i32
    return %c0_i32, %c0_i32_0 : i32, i32
  }
  func.func @transform_2(%arg0: i32) -> (i32, i32, i32) {
    %c0_i32 = arith.constant 0 : i32
    %c0_i32_0 = arith.constant 0 : i32
    %c0_i32_1 = arith.constant 0 : i32
    return %arg0, %c0_i32, %c0_i32_0 : i32, i32, i32
  }
  func.func @transform_3(%arg0: i32) -> (i32, i32, i32) {
    %c0_i32 = arith.constant 0 : i32
    %c0_i32_0 = arith.constant 0 : i32
    %c0_i32_1 = arith.constant 0 : i32
    return %arg0, %c0_i32, %c0_i32_0 : i32, i32, i32
  }
  func.func @transform_4(%arg0: i32) -> (i32, i32) {
    %c0_i32 = arith.constant 0 : i32
    %c0_i32_0 = arith.constant 0 : i32
    %c0_i32_1 = arith.constant 0 : i32
    return %c0_i32, %c0_i32_0 : i32, i32
  }
}

</mosaic_0001>

<bundles_post_ra>
// kernel: residual_coupling_block_pallas.1
= control target key start
LH: loop header
LB: loop body
LE: loop exit
PB: predicated region body
PF: predicated region fallthrough
CT: control target
= control target key end

     0   :  { %s8560_s15 = smov 0   ;;  %s10257_s0 = inlined_call_operand.vmem [shape: f32[4,128], index: 0, kind: input, shape index: {}, may-alias: {0,4}]   ;;  %s10258_s1 = inlined_call_operand.vmem [shape: f32[1,128], index: 1, kind: input, shape index: {}]   ;;  %s10259_s2 = inlined_call_operand.vmem [shape: bf16[4,1506,32], index: 2, kind: input, shape index: {}]   ;;  %s10260_s3 = inlined_call_operand.vmem [shape: f32[4,64,12], index: 3, kind: input, shape index: {}]   ;;  %s10261_s4 = inlined_call_operand.vmem [shape: f32[4,128], index: 4, kind: output, shape index: {}, may-alias: {0,4}]  }
   0x1 LB: > { %s6376_s16 = sadd.s32 4294967295, %s8516_s15   ;;  %p6379_p0 = scmp.ge.s32.totalorder %s8516_s15, 1  ;;  %s8516_s15 = sphi %s8560_s15, %s14_s15  }
   0x2   : > { %p171_p1 = scmp.lt.s32.totalorder %s8516_s15, 3 }
   0x4   : > { %p172_p2 = pnand %p6379_p0, %p171_p1 }
   0x5   : > { %s6380_s17 = sshll.u32 (!%p172_p2), %s6376_s16, 1  ;;  %p6385_p4 = scmp.ne.s32.totalorder (!%p172_p2), %s6376_s16, 0 }
   0x6   : > { %175 = sbr.rel (%p172_p2) target bundleno = 5122 (0x1402), region = 36  ;;  %p200_p3 = scmp.lt.s32.totalorder (!%p172_p2), %s6380_s17, 3 }
   0xb   : > { %s10281_s17 = smov (!%p200_p3, %s6380_s17), 3  ;;  %217 = sbr.rel (%p6385_p4) target bundleno = 26 (0x1a), region = 40 }
   0xc   : > { %s8181_s18 = smul.u32 756, %s10281_s17  ;;  %s7912_s19 = sshll.u32 %s10281_s17, 6 }
   0xd   : > { %s8571_s22 = scalar_lea.vmem %s10260_s3, %s7912_s19 }
   0xe   : > { %s8576_s25 = scalar_lea.vmem %s10259_s2, %s8181_s18 }
  0x10   : > { %v218_v0 = vld [vmem:[%s10257_s0] sm:$0xf]  ;;  %v8518_v1 = vmov 0  }
  0x11   : > { %219 = vst [vmem:[%s10261_s4] sm:$0xf] %v218_v0 }
  0x12   : > { %220 = vst [vmem:[#allocation2] sm:$0xff] %v8518_v1 }
  0x13   : > { %221 = vst [vmem:[#allocation2 + $0x8] sm:$0xf] %v8518_v1 }
  0x14   : > { %222 = vst [vmem:[#allocation2 + $0xc] sm:$0xff] %v8518_v1 }
  0x15   : > { %223 = vst [vmem:[#allocation2 + $0x14] sm:$0xf] %v8518_v1 }
  0x16   : > { %224 = vst [vmem:[#allocation2 + $0x18] sm:$0xff] %v8518_v1 }
  0x17   : > { %225 = vst [vmem:[#allocation2 + $0x20] sm:$0xf] %v8518_v1 }
  0x18   : > { %226 = vst [vmem:[#allocation2 + $0x24] sm:$0xff] %v8518_v1 }
  0x19   : > { %227 = vst [vmem:[#allocation2 + $0x2c] sm:$0xf] %v8518_v1 }
  0x1a PF: > { %v8585_v2 = vld [vmem:[%s8571_s22 + $0x10] sm:$0xff]  ;;  %v10270_v3 = vmov 11   ;;  %v8520_v4 = vmov 10   ;;  %v8590_v5 = vld [vmem:[%s8571_s22] sm:$0xff]  ;;  %v8597_v6 = vld [vmem:[%s8571_s22 + $0x18] sm:$0xff]  ;;  %v10268_v8 = vmov 8  }
  0x1b   : > { %8208 = vset.pattern.permute.xlu1 %v10270_v3  ;;  %8207 = vset.pattern.permute.xlu0 %v8520_v4  ;;  %v8602_v7 = vld [vmem:[%s8571_s22 + $0x8] sm:$0xff]  ;;  %s8522_s30 = smov 2   ;;  %v6404_v13 = vld [vmem:[#allocation2] sm:$0xf]  ;;  %s8523_s7 = smov 1   ;;  %vm387_vm0 = vcmask 15360  }
  0x1c   : > { %272 = vperm.xlu1 %8208, %v8585_v2   ;;  %246 = vperm.xlu0 %8207, %v8585_v2   ;;  %v7918_v14 = vld [vmem:[#allocation2 + $0x8] sm:$0xf0]  ;;  %v229_v17 = vld [vmem:[%s10261_s4] sm:$0xf]  ;;  %s8524_s10 = smov 127   ;;  %s8525_s11 = smov 126  }
  0x1d   : > { %8209 = vset.pattern.permute.xlu2 %v8520_v4  ;;  %v6412_v10 = vld [vmem:[#allocation2 + $0x18] sm:$0xf]  ;;  %v6405_v16 = vor.u32 %v7918_v14, %v6404_v13  ;;  %v254_v18 = vperm.slane %v229_v17, 0  ;;  %v279_v19 = vperm.slane %v229_v17, 1  ;;  %v8629_v29 = vld [vmem:[%s10258_s1] ss:$0 sm:$0xff] }
  0x1e   : > { %236 = vperm.xlu2 %8209, %v8590_v5   ;;  %v7937_v22 = vld [vmem:[#allocation2 + $0x20] sm:$0xf]  ;;  %vm392_vm1 = vcmask 261120   ;;  %vm721_vm2 = vcmask 1039360   ;;  %vm518_vm3 = vcmask 7168   ;;  %vm811_vm4 = vcmask 1031168  }
  0x1f   : > { %v7920_v11 = vld [vmem:[#allocation2 + $0x20] sm:$0xf0] }
  0x20   : > { %v8615_v12 = vor.u32 %v7920_v11, %v6412_v10  ;;  %v6498_v23 = vld [vmem:[#allocation2 + $0x28] sm:$0xf0] }
  0x21   : > { %v8624_v26 = vor.u32 %v7937_v22, %v6498_v23  ;;  %v8668_v23 = vld [vmem:[%s8571_s22 + $0x38] sm:$0xff] }
  0x24   : > { %276 = vperm.xlu1 %8208, %v8597_v6   ;;  %251 = vperm.xlu0 %8207, %v8597_v6  }
  0x26   : > { %241 = vperm.xlu2 %8209, %v8602_v7  }
  0x2c   : > { %8210 = vset.pattern.permute.xlu0 %v10270_v3  ;;  %268 = vperm.xlu1 %8208, %v8602_v7  }
  0x2d   : > { %264 = vperm.xlu0 %8210, %v8590_v5  }
  0x2e   : > { %8211 = vset.pattern.permute.xlu2 %v10268_v8 }
  0x2f   : > { %297 = vperm.xlu2 %8211, %v8585_v2  }
  0x34   : > { %8212 = vset.pattern.permute.xlu1 %v10268_v8 }
  0x35   : > { %301 = vperm.xlu1 %8212, %v8597_v6   ;;  %8213 = vset.pattern.permute.xlu0 %v10268_v8 }
  0x36   : > { %293 = vperm.xlu0 %8213, %v8602_v7  }
  0x37   : > { %289 = vperm.xlu2 %8211, %v8590_v5  }
  0x3d   : > { %383 = vrot.lane.b32.xlu1 %v8615_v12, %s8522_s30 }
  0x3e   : > { %510 = vrot.lane.b32.xlu0 %v6405_v16, %s8523_s7 }
  0x45   : > { %379 = vrot.lane.b32.xlu1 %v6405_v16, %s8522_s30 }
  0x4d   : > { %719 = vrot.lane.b32.xlu1 %v8624_v26, %s8524_s10 }
  0x78   : > { %v237_v9 = vpop.permute.xlu2 %236 }
  0x79   : > { %v255_v37 = vmul.f32 %v254_v18, %v237_v9 }
  0x80   : > { %v242_v15 = vpop.permute.xlu2 %241 }
  0x81   : > { %v256_v45 = vmul.f32 %v254_v18, %v242_v15 }
  0x89   : > { %v298_v27 = vpop.permute.xlu2 %297 }
  0x8e   : > { %v273_v20 = vpop.permute.xlu1 %272  ;;  %v247_v21 = vpop.permute.xlu0 %246 }
  0x8f   : > { %v282_v24 = vmul.f32 %v279_v19, %v273_v20  ;;  %v257_v25 = vmul.f32 %v254_v18, %v247_v21  ;;  %v7935_v20 = vld [vmem:[#allocation2 + $0x8] sm:$0xf]  ;;  %v6490_v21 = vld [vmem:[#allocation2 + $0x10] sm:$0xf0] }
  0x90   : > { %v6493_v22 = vor.u32 %v7935_v20, %v6490_v21 }
  0x91   : > { %v286_v28 = vadd.f32 %v282_v24, %v257_v25  ;;  %v290_v39 = vpop.permute.xlu2 %289  ;;  %v10266_v24 = vmov 0  }
  0x92   : > { %8215 = vset.pattern.permute.xlu1 %v10266_v24  ;;  %8214 = vset.pattern.permute.xlu0 %v10266_v24 }
  0x93   : > { %v306_v30 = vadd.f32 %v298_v27, %v286_v28  ;;  %8216 = vset.pattern.permute.xlu2 %v10266_v24  ;;  %v7925_v28 = vld [vmem:[%s8576_s25 + $0x40] sm:$0xff] }
  0x95   : > { %v8634_v31 = vmul.f32 %v8629_v29, %v306_v30 }
  0x96   : > { %v277_v32 = vpop.permute.xlu1 %276  ;;  %v252_v33 = vpop.permute.xlu0 %251 }
  0x97   : > { %v317_v34 = vpack.c.bf16 %v8634_v31, %v8634_v31  ;;  %v283_v40 = vmul.f32 %v279_v19, %v277_v32  ;;  %v258_v41 = vmul.f32 %v254_v18, %v252_v33  ;;  %v8683_v32 = vld [vmem:[%s8571_s22 + $0x30] sm:$0xff]  ;;  %v8687_v33 = vld [vmem:[%s8571_s22 + $0x20] sm:$0xff] }
  0x99   : > { %321 = vst [vmem:[#allocation2 + $0x1c] sm:$0xf] %v317_v34  ;;  %v287_v47 = vadd.f32 %v283_v40, %v258_v41 }
  0x9e   : > { %v269_v35 = vpop.permute.xlu1 %268 }
  0x9f   : > { %v265_v36 = vpop.permute.xlu0 %264  ;;  %v281_v43 = vmul.f32 %v279_v19, %v269_v35 }
  0xa0   : > { %v280_v38 = vmul.f32 %v279_v19, %v265_v36  ;;  %v6496_v58 = vld [vmem:[#allocation2 + $0x1c] sm:$0xf]  ;;  %v7913_v36 = vld [vmem:[%s8576_s25] sm:$0xff] }
  0xa1   : > { %v285_v49 = vadd.f32 %v281_v43, %v256_v45  ;;  %v6464_v59 = vld [vmem:[#allocation2 + $0x1c] sm:$0xf]  ;;  %v7914_v45 = vld [vmem:[%s8576_s25 + $0x8] sm:$0xff] }
  0xa2   : > { %v284_v42 = vadd.f32 %v280_v38, %v255_v37  ;;  %v7919_v60 = vld [vmem:[#allocation2 + $0x1c] sm:$0xf] }
  0xa4   : > { %v304_v44 = vadd.f32 %v290_v39, %v284_v42  ;;  %v7926_v39 = vld [vmem:[%s8576_s25 + $0x48] sm:$0xff] }
  0xa6   : > { %v8639_v46 = vmul.f32 %v8629_v29, %v304_v44 }
  0xa7   : > { %v302_v48 = vpop.permute.xlu1 %301 }
  0xa8   : > { %v315_v50 = vpack.c.bf16 %v8639_v46, %v8639_v46  ;;  %v307_v51 = vadd.f32 %v302_v48, %v287_v47  ;;  %v294_v52 = vpop.permute.xlu0 %293  ;;  %v7931_v48 = vld [vmem:[%s8576_s25 + $0x60] sm:$0xff] }
  0xa9   : > { %v305_v53 = vadd.f32 %v294_v52, %v285_v49 }
  0xaa   : > { %319 = vst [vmem:[#allocation2 + $0x4] sm:$0xf] %v315_v50  ;;  %v8644_v54 = vmul.f32 %v8629_v29, %v307_v51  ;;  %v7927_v50 = vld [vmem:[%s8576_s25 + $0x50] sm:$0xff] }
  0xab   : > { %v8647_v55 = vmul.f32 %v8629_v29, %v305_v53 }
  0xac   : > { %v318_v56 = vpack.c.bf16 %v8644_v54, %v8644_v54 }
  0xad   : > { %v316_v57 = vpack.c.bf16 %v8647_v55, %v8647_v55 }
  0xae   : > { %322 = vst [vmem:[#allocation2 + $0x28] sm:$0xf] %v318_v56 }
  0xaf   : > { %320 = vst [vmem:[#allocation2 + $0x10] sm:$0xf] %v316_v57  ;;  %v384_v25 = vpop.permute.xlu1 %383  ;;  %v7921_v57 = vld [vmem:[%s8576_s25 + $0x20] sm:$0xff] }
  0xb0   : > { %v511_v37 = vpop.permute.xlu0 %510 }
  0xb1   : > { %v6488_v10 = vld [vmem:[#allocation2 + $0x4] sm:$0xf] }
  0xb2   : > { %v6460_v15 = vld [vmem:[#allocation2 + $0x4] sm:$0xf] }
  0xb3   : > { %v7917_v18 = vld [vmem:[#allocation2 + $0x4] sm:$0xf] }
  0xb5   : > { %v7938_v61 = vld [vmem:[#allocation2 + $0x24] sm:$0xf0] }
  0xb6   : > { %v7930_v62 = vld [vmem:[#allocation2 + $0x24] sm:$0xf0]  ;;  %v6497_v0 = vor.u32 %v7938_v61, %v6496_v58  ;;  %v7936_v11 = vld [vmem:[#allocation2 + $0xc] sm:$0xf0] }
  0xb7   : > { %v6414_v63 = vld [vmem:[#allocation2 + $0x24] sm:$0xf0]  ;;  %v6465_v1 = vor.u32 %v7930_v62, %v6464_v59  ;;  %v6489_v13 = vor.u32 %v7936_v11, %v6488_v10  ;;  %v7929_v14 = vld [vmem:[#allocation2 + $0xc] sm:$0xf0]  ;;  %v380_v30 = vpop.permute.xlu1 %379  ;;  %v7916_v10 = vld [vmem:[%s8576_s25 + $0x18] sm:$0xff] }
  0xb8   : > { %v6417_v9 = vor.u32 %v7919_v60, %v6414_v63  ;;  %717 = vrot.lane.b32.xlu0 %v6497_v0, %s8524_s10  ;;  %v6461_v16 = vor.u32 %v7929_v14, %v6460_v15  ;;  %v6406_v17 = vld [vmem:[#allocation2 + $0xc] sm:$0xf0]  ;;  %v7932_v63 = vld [vmem:[%s8576_s25 + $0x68] sm:$0xff]  ;;  %v7939_v14 = vld [vmem:[%s8576_s25 + $0x80] sm:$0xff] }
  0xb9   : > { %634 = vmatpush.bf16.msra.mxu2 %v6465_v1  ;;  %713 = vrot.lane.b32.xlu1 %v6489_v13, %s8524_s10  ;;  %v6409_v19 = vor.u32 %v7917_v18, %v6406_v17  ;;  %v7915_v60 = vld [vmem:[%s8576_s25 + $0x10] sm:$0xff]  ;;  %v7928_v1 = vld [vmem:[%s8576_s25 + $0x58] sm:$0xff]  ;;  %v7940_v17 = vld [vmem:[%s8576_s25 + $0x88] sm:$0xff] }
  0xba   : > { %385 = vrot.lane.b32.xlu2 %v6417_v9, %s8522_s30  ;;  %v7933_v11 = vld [vmem:[%s8576_s25 + $0x70] sm:$0xff]  ;;  %v7934_v15 = vld [vmem:[%s8576_s25 + $0x78] sm:$0xff] }
  0xbb   : > { %v7941_v18 = vld [vmem:[%s8576_s25 + $0x90] sm:$0xff] }
  0xbd   : > { %635 = vmatpush.bf16.msra.mxu2 %v6461_v16  ;;  %v7924_v16 = vld [vmem:[%s8576_s25 + $0x38] sm:$0xff] }
  0xbf   : > { %v720_v38 = vpop.permute.xlu1 %719 }
  0xc0   : > { %516 = vrot.lane.b32.xlu0 %v6417_v9, %s8523_s7  ;;  %6466 = vmatmul.msk.bf16.vlgmr.msra.gmra.mxu2 %vm392_vm1, %v7925_v28  ;;  %v7922_v9 = vld [vmem:[%s8576_s25 + $0x28] sm:$0xff] }
  0xc1   : > { %512 = vrot.lane.b32.xlu1 %v6409_v19, %s8523_s7 }
  0xc2   : > { %381 = vrot.lane.b32.xlu2 %v6409_v19, %s8522_s30  ;;  %v7942_v19 = vld [vmem:[%s8576_s25 + $0x98] sm:$0xff] }
  0xc8   : > { %809 = vrot.lane.b32.xlu0 %v8624_v26, %s8525_s11 }
  0xc9   : > { %803 = vrot.lane.b32.xlu1 %v6489_v13, %s8525_s11  ;;  %v7923_v13 = vld [vmem:[%s8576_s25 + $0x30] sm:$0xff] }
  0xca   : > { %514 = vrot.lane.b32.xlu2 %v8615_v12, %s8523_s7  ;;  %v8675_v12 = vld [vmem:[%s8571_s22 + $0x28] sm:$0xff] }
  0xd0   : > { %466 = vperm.xlu0 %8214, %v8683_v32   ;;  %6467 = vmatmul.msk.bf16.gmra.mxu2 %vm392_vm1, %v7926_v39 }
  0xd1   : > { %471 = vperm.xlu1 %8215, %v8668_v23  }
  0xd2   : > { %715 = vrot.lane.b32.xlu2 %v6493_v22, %s8524_s10 }
  0xd8   : > { %451 = vperm.xlu0 %8214, %v8597_v6  }
  0xd9   : > { %461 = vperm.xlu1 %8215, %v8675_v12  }
  0xda   : > { %807 = vrot.lane.b32.xlu2 %v6497_v0, %s8525_s11 }
  0xe0   : > { %6468 = vmatmul.msk.bf16.gmra.mxu2 %vm392_vm1, %v7927_v50 }
  0xe1   : > { %436 = vperm.xlu1 %8215, %v8590_v5  }
  0xe2   : > { %805 = vrot.lane.b32.xlu2 %v6493_v22, %s8525_s11 }
  0xea   : > { %456 = vperm.xlu2 %8216, %v8687_v33  }
  0xf0   : > { %6469 = vmatmul.msk.bf16.gmra.mxu2 %vm392_vm1, %v7928_v1 }
  0xf2   : > { %446 = vperm.xlu2 %8216, %v8585_v2  }
  0xfa   : > { %441 = vperm.xlu2 %8216, %v8602_v7  }
 0x114   : > { %v386_v26 = vpop.permute.xlu2 %385 }
 0x115   : > { %v389_v27 = vsel %vm387_vm0, %v384_v25, %v386_v26 }
 0x116   : > { %411 = vmatpush.bf16.msra.mxu0 %v389_v27 }
 0x11c   : > { %v382_v34 = vpop.permute.xlu2 %381 }
 0x11d   : > { %v388_v35 = vsel %vm387_vm0, %v380_v30, %v382_v34 }
 0x11e   : > { %412 = vmatpush.bf16.msra.mxu0 %v388_v35 }
 0x121   : > { %6418 = vmatmul.msk.bf16.vlgmr.msra.gmra.mxu0 %vm392_vm1, %v7913_v36 }
 0x124   : > { %v515_v40 = vpop.permute.xlu2 %514 }
 0x12a   : > { %v718_v41 = vpop.permute.xlu0 %717 }
 0x12b   : > { %v714_v43 = vpop.permute.xlu1 %713  ;;  %v723_v44 = vsel %vm721_vm2, %v718_v41, %v720_v38 }
 0x12c   : > { %v716_v42 = vpop.permute.xlu2 %715  ;;  %744 = vmatpush.bf16.msra.mxu3 %v723_v44 }
 0x12d   : > { %v722_v47 = vsel %vm721_vm2, %v714_v43, %v716_v42 }
 0x130   : > { %745 = vmatpush.bf16.msra.mxu3 %v722_v47 }
 0x131   : > { %6419 = vmatmul.msk.bf16.gmra.mxu0 %vm392_vm1, %v7914_v45 }
 0x132   : > { %v517_v49 = vpop.permute.xlu0 %516 }
 0x133   : > { %v513_v52 = vpop.permute.xlu1 %512  ;;  %v520_v53 = vsel %vm518_vm3, %v515_v40, %v517_v49  ;;  %6502 = vmatmul.msk.bf16.vlgmr.msra.gmra.mxu3 %vm392_vm1, %v7931_v48 }
 0x134   : > { %v808_v51 = vpop.permute.xlu2 %807  ;;  %541 = vmatpush.bf16.msra.mxu1 %v520_v53  ;;  %v519_v56 = vsel %vm518_vm3, %v511_v37, %v513_v52 }
 0x138   : > { %542 = vmatpush.bf16.msra.mxu1 %v519_v56 }
 0x13a   : > { %v810_v58 = vpop.permute.xlu0 %809 }
 0x13b   : > { %6438 = vmatmul.msk.bf16.vlgmr.msra.gmra.mxu1 %vm392_vm1, %v7921_v57  ;;  %v813_v59 = vsel %vm811_vm4, %v808_v51, %v810_v58  ;;  %v804_v61 = vpop.permute.xlu1 %803 }
 0x13c   : > { %834 = vmatpush.bf16.msrb.mxu0 %v813_v59  ;;  %v806_v62 = vpop.permute.xlu2 %805 }
 0x13d   : > { %v812_v0 = vsel %vm811_vm4, %v804_v61, %v806_v62 }
 0x140   : > { %835 = vmatpush.bf16.msrb.mxu0 %v812_v0 }
 0x141   : > { %6420 = vmatmul.msk.bf16.gmra.mxu0 %vm392_vm1, %v7915_v60 }
 0x143   : > { %6503 = vmatmul.msk.bf16.gmra.mxu3 %vm392_vm1, %v7932_v63  ;;  %v8738_v21 = vpop.permute.xlu1 %471  ;;  %v637_v35 = vpop.f32.mrf.mxu2 }
 0x144   : > { %v457_v62 = vpop.permute.xlu2 %456 }
 0x14b   : > { %6439 = vmatmul.msk.bf16.gmra.mxu1 %vm392_vm1, %v7922_v9  ;;  %v462_v25 = vpop.permute.xlu1 %461  ;;  %v8748_v44 = vpop.f32.mrf.mxu2 }
 0x151   : > { %6421 = vmatmul.msk.bf16.gmra.mxu0 %vm392_vm1, %v7916_v10 }
 0x153   : > { %6504 = vmatmul.msk.bf16.gmra.mxu3 %vm392_vm1, %v7933_v11  ;;  %v437_v27 = vpop.permute.xlu1 %436  ;;  %v8754_v49 = vpop.f32.mrf.mxu2 }
 0x15b   : > { %6440 = vmatmul.msk.bf16.gmra.mxu1 %vm392_vm1, %v7923_v13  ;;  %v8760_v56 = vpop.f32.mrf.mxu2 }
 0x161   : > { %6522 = vmatmul.msk.bf16.vlgmr.msrb.gmra.mxu0 %vm392_vm1, %v7939_v14 }
 0x163   : > { %6505 = vmatmul.msk.bf16.gmra.mxu3 %vm392_vm1, %v7934_v15  ;;  %v647_v61 = vpop.f32.mrf.mxu2 }
 0x16b   : > { %6441 = vmatmul.msk.bf16.gmra.mxu1 %vm392_vm1, %v7924_v16  ;;  %v649_v13 = vpop.f32.mrf.mxu2 }
 0x171   : > { %6523 = vmatmul.msk.bf16.gmra.mxu0 %vm392_vm1, %v7940_v17 }
 0x181   : > { %6524 = vmatmul.msk.bf16.gmra.mxu0 %vm392_vm1, %v7941_v18 }
 0x191   : > { %6525 = vmatmul.msk.bf16.gmra.mxu0 %vm392_vm1, %v7942_v19 }
 0x19e   : > { %v414_v20 = vpop.f32.mrf.mxu0 }
 0x19f   : > { %v474_v30 = vadd.f32 %v437_v27, %v414_v20 }
 0x1a6   : > { %v8740_v22 = vpop.f32.mrf.mxu0 }
 0x1ae   : > { %v8742_v26 = vpop.f32.mrf.mxu0 }
 0x1b6   : > { %v8744_v28 = vpop.f32.mrf.mxu0  ;;  %v747_v37 = vpop.f32.mrf.mxu3 }
 0x1b8   : > { %v544_v34 = vpop.f32.mrf.mxu1 }
 0x1b9   : > { %v564_v36 = vadd.f32 %v544_v34, %v474_v30  ;;  %v467_v34 = vpop.permute.xlu0 %466 }
 0x1bb   : > { %v657_v38 = vadd.f32 %v637_v35, %v564_v36  ;;  %v652_v36 = vpop.f32.mrf.mxu2 }
 0x1bd   : > { %v767_v40 = vadd.f32 %v747_v37, %v657_v38 }
 0x1be   : > { %v424_v39 = vpop.f32.mrf.mxu0  ;;  %v8750_v45 = vpop.f32.mrf.mxu3 }
 0x1bf   : > { %v478_v63 = vadd.f32 %v457_v62, %v424_v39 }
 0x1c0   : > { %v8746_v42 = vpop.f32.mrf.mxu1 }
 0x1c6   : > { %v426_v41 = vpop.f32.mrf.mxu0  ;;  %v8756_v52 = vpop.f32.mrf.mxu3 }
 0x1c7   : > { %v479_v14 = vadd.f32 %v462_v25, %v426_v41 }
 0x1c8   : > { %v8752_v48 = vpop.f32.mrf.mxu1 }
 0x1ce   : > { %v429_v43 = vpop.f32.mrf.mxu0  ;;  %v8764_v58 = vpop.f32.mrf.mxu3 }
 0x1cf   : > { %v480_v35 = vadd.f32 %v467_v34, %v429_v43 }
 0x1d0   : > { %v8758_v53 = vpop.f32.mrf.mxu1 }
 0x1d6   : > { %v431_v47 = vpop.f32.mrf.mxu0  ;;  %v757_v0 = vpop.f32.mrf.mxu3 }
 0x1d8   : > { %v554_v59 = vpop.f32.mrf.mxu1 }
 0x1d9   : > { %v568_v1 = vadd.f32 %v554_v59, %v478_v63  ;;  %v481_v63 = vadd.f32 %v8738_v21, %v431_v47 }
 0x1db   : > { %v661_v11 = vadd.f32 %v647_v61, %v568_v1 }
 0x1dd   : > { %v771_v15 = vadd.f32 %v757_v0, %v661_v11 }
 0x1de   : > { %v837_v50 = vpop.f32.mrf.mxu0  ;;  %v759_v17 = vpop.f32.mrf.mxu3 }
 0x1df   : > { %v857_v51 = vadd.f32 %v837_v50, %v767_v40 }
 0x1e0   : > { %v556_v9 = vpop.f32.mrf.mxu1 }
 0x1e1   : > { %v569_v16 = vadd.f32 %v556_v9, %v479_v14  ;;  %v654_v9 = vpop.f32.mrf.mxu2 }
 0x1e3   : > { %v662_v27 = vadd.f32 %v649_v13, %v569_v16 }
 0x1e5   : > { %v772_v37 = vadd.f32 %v759_v17, %v662_v27 }
 0x1e6   : > { %v8762_v57 = vpop.f32.mrf.mxu0  ;;  %v762_v50 = vpop.f32.mrf.mxu3 }
 0x1e8   : > { %v559_v20 = vpop.f32.mrf.mxu1 }
 0x1e9   : > { %v570_v38 = vadd.f32 %v559_v20, %v480_v35 }
 0x1eb   : > { %v663_v61 = vadd.f32 %v652_v36, %v570_v38 }
 0x1ed   : > { %v773_v0 = vadd.f32 %v762_v50, %v663_v61  ;;  %v452_v61 = vpop.permute.xlu0 %451 }
 0x1ee   : > { %v8766_v60 = vpop.f32.mrf.mxu0  ;;  %v764_v17 = vpop.f32.mrf.mxu3 }
 0x1f0   : > { %v561_v41 = vpop.f32.mrf.mxu1 }
 0x1f1   : > { %v571_v1 = vadd.f32 %v561_v41, %v481_v63 }
 0x1f3   : > { %v664_v14 = vadd.f32 %v654_v9, %v571_v1  ;;  %v477_v1 = vadd.f32 %v452_v61, %v8744_v28 }
 0x1f5   : > { %v774_v27 = vadd.f32 %v764_v17, %v664_v14  ;;  %v8527_v14 = vmov 4  }
 0x1f6   : > { %v8768_v10 = vpop.f32.mrf.mxu0  ;;  %8218 = vset.pattern.permute.xlu1 %v8527_v14  ;;  %8217 = vset.pattern.permute.xlu0 %v8527_v14 }
 0x1f7   : > { %972 = vperm.xlu1 %8218, %v8597_v6   ;;  %968 = vperm.xlu0 %8217, %v8585_v2  }
 0x1f8   : > { %8219 = vset.pattern.permute.xlu2 %v8527_v14 }
 0x1f9   : > { %960 = vperm.xlu2 %8219, %v8590_v5  }
 0x1fe   : > { %v847_v18 = vpop.f32.mrf.mxu0 }
 0x1ff   : > { %v861_v19 = vadd.f32 %v847_v18, %v771_v15  ;;  %v447_v18 = vpop.permute.xlu2 %446  ;;  %964 = vperm.xlu1 %8218, %v8602_v7  }
 0x200   : > { %v476_v21 = vadd.f32 %v447_v18, %v8742_v26 }
 0x201   : > { %v6526_v30 = vmul.f32 -1.442695, %v861_v19 }
 0x203   : > { %8301 = vpow2.f32 %v6526_v30 }
 0x206   : > { %v849_v39 = vpop.f32.mrf.mxu0 }
 0x207   : > { %v862_v40 = vadd.f32 %v849_v39, %v772_v37  ;;  %v566_v37 = vadd.f32 %v8752_v48, %v476_v21  ;;  %v442_v63 = vpop.permute.xlu2 %441 }
 0x209   : > { %v8302_v59 = vpop.eup %8301  ;;  %v6527_v25 = vmul.f32 -1.442695, %v862_v40  ;;  %v659_v41 = vadd.f32 %v8754_v49, %v566_v37 }
 0x20a   : > { %v881_v62 = vadd.f32 1.0, %v8302_v59 }
 0x20b   : > { %8303 = vpow2.f32 %v6527_v25 }
 0x20c   : > { %8305 = vrcp.f32 %v881_v62  ;;  %v896_v36 = vand.u32 2147483648, %v881_v62  ;;  %v894_v38 = vand.u32 2147483647, %v881_v62  ;;  %vm890_vm6 = vweird.f32 %v881_v62 }
 0x20e   : > { %v852_v43 = vpop.f32.mrf.mxu0  ;;  %vm895_vm8 = vcmp.eq.f32.partialorder %v894_v38, 8.507059e+37 }
 0x20f   : > { %v863_v11 = vadd.f32 %v852_v43, %v773_v0  ;;  %v769_v43 = vadd.f32 %v8756_v52, %v659_v41 }
 0x211   : > { %v8304_v13 = vpop.eup %8303  ;;  %v6528_v15 = vmul.f32 -1.442695, %v863_v11  ;;  %v567_v11 = vadd.f32 %v8758_v53, %v477_v1 }
 0x212   : > { %v8306_v16 = vpop.eup %8305  ;;  %v8771_v20 = vadd.f32 1.0, %v8304_v13 }
 0x213   : > { %8307 = vpow2.f32 %v6528_v15  ;;  %v886_v19 = vmul.f32 %v8306_v16, %v881_v62  ;;  %vm891_vm5 = vweird.f32 %v8306_v16  ;;  %v475_v62 = vadd.f32 %v442_v63, %v8740_v22 }
 0x214   : > { %8309 = vtanh.f32 %v857_v51  ;;  %vm892_vm7 = vmor %vm890_vm6, %vm891_vm5  ;;  %v897_v51 = vor.u32 1.1754944e-38, %v896_v36  ;;  %v660_v52 = vadd.f32 %v8760_v56, %v567_v11  ;;  %vm905_vm14 = vweird.f32 %v8771_v20  ;;  %v7943_v11 = vld [vmem:[%s8576_s25 + $0x280] sm:$0xff] }
 0x215   : > { %v887_v30 = vsub.f32 1.0, %v886_v19  ;;  %8311 = vrcp.f32 %v8771_v20  ;;  %v565_v28 = vadd.f32 %v8746_v42, %v475_v62 }
 0x216   : > { %v854_v47 = vpop.f32.mrf.mxu0  ;;  %v770_v6 = vadd.f32 %v8764_v58, %v660_v52 }
 0x217   : > { %v864_v34 = vadd.f32 %v854_v47, %v774_v27  ;;  %v888_v35 = vmul.f32 %v8306_v16, %v887_v30  ;;  %v658_v19 = vadd.f32 %v8748_v44, %v565_v28  ;;  %v6576_v28 = vld [vmem:[#allocation2 + $0x18] sm:$0xf] }
 0x218   : > { %v860_v5 = vadd.f32 %v8768_v10, %v770_v6  ;;  %v911_v10 = vand.u32 2147483648, %v8771_v20 }
 0x219   : > { %v8308_v39 = vpop.eup %8307  ;;  %v6529_v40 = vmul.f32 -1.442695, %v864_v34  ;;  %v889_v50 = vadd.f32 %v8306_v16, %v888_v35  ;;  %v768_v56 = vadd.f32 %v8750_v45, %v658_v19  ;;  %v6662_v19 = vld [vmem:[#allocation2 + $0x28] sm:$0xf0] }
 0x21a   : > { %v883_v59 = vadd.f32 1.0, %v8308_v39  ;;  %v8310_v25 = vpop.eup %8309 }
 0x21b   : > { %8313 = vpow2.f32 %v6529_v40  ;;  %v893_v26 = vsel %vm892_vm7, %v8306_v16, %v889_v50  ;;  %v8777_v0 = vpop.eup %8311  ;;  %v859_v16 = vadd.f32 %v8766_v60, %v769_v43  ;;  %v858_v36 = vadd.f32 %v8762_v57, %v768_v56 }
 0x21c   : > { %8315 = vrcp.f32 %v883_v59  ;;  %v898_v48 = vsel %vm895_vm8, %v897_v51, %v893_v26  ;;  %v901_v49 = vmul.f32 %v8777_v0, %v8771_v20  ;;  %v926_v42 = vand.u32 2147483648, %v883_v59 }
 0x21d   : > { %v8780_v9 = vmul.f32 %v8310_v25, %v898_v48  ;;  %v924_v27 = vand.u32 2147483647, %v883_v59  ;;  %vm920_vm10 = vweird.f32 %v883_v59  ;;  %vm906_vm13 = vweird.f32 %v8777_v0 }
 0x21e   : > { %v902_v18 = vsub.f32 1.0, %v901_v49  ;;  %v927_v47 = vor.u32 1.1754944e-38, %v926_v42  ;;  %v909_v50 = vand.u32 2147483647, %v8771_v20  ;;  %vm907_vm5 = vmor %vm905_vm14, %vm906_vm13  ;;  %v912_v26 = vor.u32 1.1754944e-38, %v911_v10 }
 0x21f   : > { %vm925_vm12 = vcmp.eq.f32.partialorder %v924_v27, 8.507059e+37  ;;  %v7952_v49 = vld [vmem:[#allocation2 + $0x8] sm:$0xf0] }
 0x220   : > { %v903_v30 = vmul.f32 %v8777_v0, %v902_v18  ;;  %v7971_v18 = vld [vmem:[#allocation2 + $0x20] sm:$0xf] }
 0x221   : > { %v8314_v13 = vpop.eup %8313  ;;  %v6665_v42 = vor.u32 %v7971_v18, %v6662_v19 }
 0x222   : > { %v8316_v15 = vpop.eup %8315  ;;  %v884_v17 = vadd.f32 1.0, %v8314_v13  ;;  %v904_v39 = vadd.f32 %v8777_v0, %v903_v30  ;;  %v6568_v13 = vld [vmem:[#allocation2] sm:$0xf] }
 0x223   : > { %v916_v22 = vmul.f32 %v8316_v15, %v883_v59  ;;  %vm921_vm9 = vweird.f32 %v8316_v15 }
 0x224   : > { %8317 = vrcp.f32 %v884_v17  ;;  %vm922_vm11 = vmor %vm920_vm10, %vm921_vm9  ;;  %v941_v45 = vand.u32 2147483648, %v884_v17  ;;  %v939_v40 = vand.u32 2147483647, %v884_v17  ;;  %vm935_vm6 = vweird.f32 %v884_v17 }
 0x225   : > { %v917_v53 = vsub.f32 1.0, %v916_v22  ;;  %8319 = vtanh.f32 %v859_v16  ;;  %v908_v59 = vsel %vm907_vm5, %v8777_v0, %v904_v39  ;;  %vm910_vm9 = vcmp.eq.f32.partialorder %v909_v50, 8.507059e+37  ;;  %v7944_v0 = vld [vmem:[%s8576_s25 + $0x288] sm:$0xff]  ;;  %v7954_v16 = vld [vmem:[#allocation2 + $0x20] sm:$0xf0] }
 0x226   : > { %8321 = vtanh.f32 %v860_v5  ;;  %v942_v61 = vor.u32 1.1754944e-38, %v941_v45  ;;  %vm940_vm8 = vcmp.eq.f32.partialorder %v939_v40, 8.507059e+37  ;;  %v913_v63 = vsel %vm910_vm9, %v912_v26, %v908_v59 }
 0x227   : > { %v918_v60 = vmul.f32 %v8316_v15, %v917_v53  ;;  %8323 = vtanh.f32 %v858_v36 }
 0x229   : > { %v919_v2 = vadd.f32 %v8316_v15, %v918_v60 }
 0x22a   : > { %v8318_v21 = vpop.eup %8317 }
 0x22b   : > { %v923_v44 = vsel %vm922_vm11, %v8316_v15, %v919_v2  ;;  %v931_v34 = vmul.f32 %v8318_v21, %v884_v17  ;;  %v8320_v35 = vpop.eup %8319  ;;  %vm936_vm15 = vweird.f32 %v8318_v21  ;;  %v6569_v15 = vor.u32 %v7952_v49, %v6568_v13 }
 0x22c   : > { %v928_v58 = vsel %vm925_vm12, %v927_v47, %v923_v44  ;;  %vm937_vm7 = vmor %vm935_vm6, %vm936_vm15  ;;  %v8322_v25 = vpop.eup %8321  ;;  %v6577_v17 = vor.u32 %v7954_v16, %v6576_v28  ;;  %v10264_v49 = vmov 1   ;;  %v7946_v28 = vld [vmem:[%s8576_s25 + $0x298] sm:$0xff] }
 0x22d   : > { %v932_v37 = vsub.f32 1.0, %v931_v34  ;;  %v947_v38 = vmul.f32 %v8320_v35, %v928_v58  ;;  %v8324_v1 = vpop.eup %8323  ;;  %1128 = vrot.lane.b32.xlu1 %v6569_v15, %s8522_s30  ;;  %8220 = vset.pattern.permute.xlu0 %v10264_v49 }
 0x22e   : > { %v946_v62 = vmul.f32 %v8324_v1, %v913_v63  ;;  %1132 = vrot.lane.b32.xlu2 %v6577_v17, %s8522_s30  ;;  %8221 = vset.pattern.permute.xlu1 %v10264_v49 }
 0x22f   : > { %v933_v7 = vmul.f32 %v8318_v21, %v932_v37  ;;  %8222 = vset.pattern.permute.xlu2 %v10264_v49 }
 0x230   : > { %v949_v43 = vpack.c.bf16 %v946_v62, %v8780_v9  ;;  %v7969_v62 = vld [vmem:[#allocation2 + $0x8] sm:$0xf] }
 0x231   : > { %v934_v57 = vadd.f32 %v8318_v21, %v933_v7 }
 0x233   : > { %v938_v51 = vsel %vm937_vm7, %v8318_v21, %v934_v57 }
 0x234   : > { %v943_v41 = vsel %vm940_vm8, %v942_v61, %v938_v51 }
 0x235   : > { %v948_v48 = vmul.f32 %v8322_v25, %v943_v41  ;;  %1465 = vrot.lane.b32.xlu1 %v6665_v42, %s8524_s10 }
 0x237   : > { %v950_v20 = vpack.c.bf16 %v948_v48, %v947_v38 }
 0x239   : > { %1029 = vmatpush.bf16.msrb.mxu1 %v950_v20 }
 0x23d   : > { %1030 = vmatpush.bf16.msrb.mxu1 %v949_v43  ;;  %v6654_v43 = vld [vmem:[#allocation2 + $0x10] sm:$0xf0] }
 0x240   : > { %6546 = vmatmul.msk.bf16.vlgmr.msrb.gmra.mxu1 %vm392_vm1, %v7943_v11  ;;  %v6657_v11 = vor.u32 %v7969_v62, %v6654_v43 }
 0x250   : > { %6547 = vmatmul.msk.bf16.gmra.mxu1 %vm392_vm1, %v7944_v0  ;;  %v7945_v0 = vld [vmem:[%s8576_s25 + $0x290] sm:$0xff] }
 0x253   : > { %v961_v52 = vpop.permute.xlu2 %960 }
 0x260   : > { %6548 = vmatmul.msk.bf16.gmra.mxu1 %vm392_vm1, %v7945_v0 }
 0x269   : > { %v973_v22 = vpop.permute.xlu1 %972  ;;  %v969_v47 = vpop.permute.xlu0 %968 }
 0x270   : > { %6549 = vmatmul.msk.bf16.gmra.mxu1 %vm392_vm1, %v7946_v28 }
 0x271   : > { %v965_v6 = vpop.permute.xlu1 %964 }
 0x288   : > { %v1133_v13 = vpop.permute.xlu2 %1132 }
 0x2bd   : > { %v1032_v9 = vpop.f32.mrf.mxu1 }
 0x2be   : > { %v1033_v53 = vadd.f32 %v1032_v9, %v961_v52 }
 0x2c0   : > { %v1052_v60 = vadd.f32 %v1033_v53, %v8639_v46 }
 0x2c2   : > { %v8819_v27 = vmul.f32 %v8629_v29, %v1052_v60 }
 0x2c4   : > { %v1064_v2 = vpack.c.bf16 %v8819_v27, %v8819_v27 }
 0x2c5   : > { %v1034_v30 = vpop.f32.mrf.mxu1 }
 0x2c6   : > { %1068 = vst [vmem:[#allocation2 + $0x4] sm:$0xf] %v1064_v2  ;;  %v1035_v21 = vadd.f32 %v1034_v30, %v965_v6  ;;  %v7960_v2 = vld [vmem:[%s8576_s25 + $0xe8] sm:$0xff] }
 0x2c8   : > { %v1053_v56 = vadd.f32 %v1035_v21, %v8647_v55 }
 0x2ca   : > { %v8825_v5 = vmul.f32 %v8629_v29, %v1053_v56  ;;  %v7955_v56 = vld [vmem:[%s8576_s25 + $0xc0] sm:$0xff] }
 0x2cc   : > { %v1065_v46 = vpack.c.bf16 %v8825_v5, %v8825_v5 }
 0x2cd   : > { %v1037_v44 = vpop.f32.mrf.mxu1  ;;  %v7951_v55 = vld [vmem:[#allocation2 + $0x4] sm:$0xf] }
 0x2ce   : > { %1069 = vst [vmem:[#allocation2 + $0x10] sm:$0xf] %v1065_v46  ;;  %v1038_v34 = vadd.f32 %v1037_v44, %v969_v47  ;;  %v6652_v1 = vld [vmem:[#allocation2 + $0x4] sm:$0xf]  ;;  %v8882_v47 = vld [vmem:[%s8571_s22 + $0x18] sm:$0xff]  ;;  %v8885_v46 = vld [vmem:[%s8571_s22 + $0x10] sm:$0xff] }
 0x2d0   : > { %v1054_v35 = vadd.f32 %v1038_v34, %v8634_v31  ;;  %v7948_v34 = vld [vmem:[%s8576_s25 + $0xa8] sm:$0xff] }
 0x2d2   : > { %v8831_v36 = vmul.f32 %v8629_v29, %v1054_v35 }
 0x2d4   : > { %v1066_v58 = vpack.c.bf16 %v8831_v36, %v8831_v36 }
 0x2d5   : > { %v1039_v37 = vpop.f32.mrf.mxu1  ;;  %v6570_v38 = vld [vmem:[#allocation2 + $0xc] sm:$0xf0] }
 0x2d6   : > { %1070 = vst [vmem:[#allocation2 + $0x1c] sm:$0xf] %v1066_v58  ;;  %v1040_v39 = vadd.f32 %v1039_v37, %v973_v22  ;;  %v6573_v45 = vor.u32 %v7951_v55, %v6570_v38  ;;  %v7963_v51 = vld [vmem:[#allocation2 + $0xc] sm:$0xf0]  ;;  %v8866_v22 = vld [vmem:[%s8571_s22] sm:$0xff]  ;;  %v8894_v37 = vld [vmem:[%s8571_s22 + $0x8] sm:$0xff] }
 0x2d7   : > { %v7970_v41 = vld [vmem:[#allocation2 + $0xc] sm:$0xf0] }
 0x2d8   : > { %v1055_v10 = vadd.f32 %v1040_v39, %v8644_v54  ;;  %1130 = vrot.lane.b32.xlu2 %v6573_v45, %s8522_s30  ;;  %v6653_v20 = vor.u32 %v7970_v41, %v6652_v1  ;;  %v7961_v55 = vld [vmem:[%s8576_s25 + $0xf0] sm:$0xff]  ;;  %v7968_v41 = vld [vmem:[%s8576_s25 + $0x118] sm:$0xff] }
 0x2d9   : > { %v7976_v1 = vld [vmem:[%s8576_s25 + $0x138] sm:$0xff] }
 0x2da   : > { %v8838_v7 = vmul.f32 %v8629_v29, %v1055_v10  ;;  %v6624_v29 = vld [vmem:[#allocation2 + $0x4] sm:$0xf] }
 0x2db   : > { %v6625_v54 = vor.u32 %v7963_v51, %v6624_v29  ;;  %v7965_v10 = vld [vmem:[%s8576_s25 + $0x100] sm:$0xff]  ;;  %v7950_v51 = vld [vmem:[%s8576_s25 + $0xb8] sm:$0xff]  ;;  %v7967_v29 = vld [vmem:[%s8576_s25 + $0x110] sm:$0xff] }
 0x2dc   : > { %v1067_v31 = vpack.c.bf16 %v8838_v7, %v8838_v7 }
 0x2dd   : > { %v6628_v40 = vld [vmem:[#allocation2 + $0x1c] sm:$0xf] }
 0x2de   : > { %1071 = vst [vmem:[#allocation2 + $0x28] sm:$0xf] %v1067_v31  ;;  %v7953_v57 = vld [vmem:[#allocation2 + $0x1c] sm:$0xf] }
 0x2df   : > { %v6660_v63 = vld [vmem:[#allocation2 + $0x1c] sm:$0xf] }
 0x2e0   : > { %1257 = vrot.lane.b32.xlu2 %v6569_v15, %s8523_s7  ;;  %v1129_v15 = vpop.permute.xlu1 %1128 }
 0x2e5   : > { %v7964_v50 = vld [vmem:[#allocation2 + $0x24] sm:$0xf0] }
 0x2e6   : > { %v6578_v59 = vld [vmem:[#allocation2 + $0x24] sm:$0xf0]  ;;  %v6629_v61 = vor.u32 %v7964_v50, %v6628_v40 }
 0x2e7   : > { %v6581_v26 = vor.u32 %v7953_v57, %v6578_v59  ;;  %v7972_v25 = vld [vmem:[#allocation2 + $0x24] sm:$0xf0]  ;;  %v7949_v57 = vld [vmem:[%s8576_s25 + $0xb0] sm:$0xff]  ;;  %v7962_v59 = vld [vmem:[%s8576_s25 + $0xf8] sm:$0xff] }
 0x2e8   : > { %1380 = vmatpush.bf16.msra.mxu0 %v6629_v61  ;;  %1554 = vrot.lane.b32.xlu2 %v6665_v42, %s8525_s11  ;;  %v6661_v48 = vor.u32 %v7972_v25, %v6660_v63  ;;  %v7956_v50 = vld [vmem:[%s8576_s25 + $0xc8] sm:$0xff]  ;;  %v7973_v25 = vld [vmem:[%s8576_s25 + $0x120] sm:$0xff] }
 0x2e9   : > { %1263 = vrot.lane.b32.xlu1 %v6581_v26, %s8523_s7  ;;  %1134 = vrot.lane.b32.xlu0 %v6581_v26, %s8522_s30  ;;  %v7966_v61 = vld [vmem:[%s8576_s25 + $0x108] sm:$0xff]  ;;  %v7957_v26 = vld [vmem:[%s8576_s25 + $0xd0] sm:$0xff] }
 0x2ea   : > { %v7974_v63 = vld [vmem:[%s8576_s25 + $0x128] sm:$0xff] }
 0x2ec   : > { %1381 = vmatpush.bf16.msra.mxu0 %v6625_v54  ;;  %v7958_v54 = vld [vmem:[%s8576_s25 + $0xd8] sm:$0xff] }
 0x2f0   : > { %1548 = vrot.lane.b32.xlu2 %v6653_v20, %s8525_s11 }
 0x2f1   : > { %1552 = vrot.lane.b32.xlu1 %v6661_v48, %s8525_s11  ;;  %1261 = vrot.lane.b32.xlu0 %v6577_v17, %s8523_s7  ;;  %v1466_v17 = vpop.permute.xlu1 %1465 }
 0x2f8   : > { %1461 = vrot.lane.b32.xlu2 %v6657_v11, %s8524_s10 }
 0x2f9   : > { %1459 = vrot.lane.b32.xlu1 %v6653_v20, %s8524_s10  ;;  %1259 = vrot.lane.b32.xlu0 %v6573_v45, %s8523_s7  ;;  %v8928_v20 = vpop.f32.mrf.mxu1 }
 0x300   : > { %1203 = vperm.xlu2 %8222, %v8687_v33  }
 0x301   : > { %1463 = vrot.lane.b32.xlu0 %v6661_v48, %s8524_s10  ;;  %1218 = vperm.xlu1 %8221, %v8668_v23   ;;  %v7959_v23 = vld [vmem:[%s8576_s25 + $0xe0] sm:$0xff]  ;;  %v7975_v48 = vld [vmem:[%s8576_s25 + $0x130] sm:$0xff]  ;;  %v8933_v43 = vpop.f32.mrf.mxu1 }
 0x302   : > { %6630 = vmatmul.msk.bf16.vlgmr.msra.gmra.mxu0 %vm392_vm1, %v7959_v23 }
 0x308   : > { %1193 = vperm.xlu2 %8222, %v8885_v46  }
 0x309   : > { %1550 = vrot.lane.b32.xlu0 %v6657_v11, %s8525_s11  ;;  %1208 = vperm.xlu1 %8221, %v8675_v12   ;;  %v7947_v12 = vld [vmem:[%s8576_s25 + $0xa0] sm:$0xff]  ;;  %v8935_v0 = vpop.f32.mrf.mxu1 }
 0x310   : > { %1188 = vperm.xlu2 %8222, %v8894_v37  }
 0x311   : > { %1213 = vperm.xlu0 %8220, %v8683_v32   ;;  %1183 = vperm.xlu1 %8221, %v8866_v22  }
 0x312   : > { %6631 = vmatmul.msk.bf16.gmra.mxu0 %vm392_vm1, %v7960_v2 }
 0x319   : > { %1198 = vperm.xlu0 %8220, %v8882_v47  }
 0x322   : > { %6632 = vmatmul.msk.bf16.gmra.mxu0 %vm392_vm1, %v7961_v55 }
 0x332   : > { %v1131_v16 = vpop.permute.xlu2 %1130  ;;  %6633 = vmatmul.msk.bf16.gmra.mxu0 %vm392_vm1, %v7962_v59 }
 0x333   : > { %v1136_v53 = vsel %vm387_vm0, %v1129_v15, %v1131_v16  ;;  %v8939_v16 = vpop.f32.mrf.mxu1 }
 0x33a   : > { %v1258_v32 = vpop.permute.xlu2 %1257 }
 0x342   : > { %v1555_v18 = vpop.permute.xlu2 %1554 }
 0x34a   : > { %v1549_v44 = vpop.permute.xlu2 %1548 }
 0x352   : > { %v1462_v39 = vpop.permute.xlu2 %1461 }
 0x35b   : > { %v1264_v52 = vpop.permute.xlu1 %1263  ;;  %v1135_v33 = vpop.permute.xlu0 %1134 }
 0x35c   : > { %v1137_v9 = vsel %vm387_vm0, %v1133_v13, %v1135_v33 }
 0x35d   : > { %1158 = vmatpush.bf16.msrb.mxu2 %v1137_v9 }
 0x361   : > { %1159 = vmatpush.bf16.msrb.mxu2 %v1136_v53 }
 0x363   : > { %v1553_v19 = vpop.permute.xlu1 %1552  ;;  %v1262_v60 = vpop.permute.xlu0 %1261 }
 0x364   : > { %v1557_v42 = vsel %vm811_vm4, %v1553_v19, %v1555_v18  ;;  %6582 = vmatmul.msk.bf16.vlgmr.msrb.gmra.mxu2 %vm392_vm1, %v7947_v12  ;;  %v1266_v6 = vsel %vm518_vm3, %v1262_v60, %v1264_v52 }
 0x365   : > { %1287 = vmatpush.bf16.msrb.mxu3 %v1266_v6  ;;  %1578 = vmatpush.bf16.msra.mxu2 %v1557_v42 }
 0x36b   : > { %v1260_v30 = vpop.permute.xlu0 %1259  ;;  %v1460_v38 = vpop.permute.xlu1 %1459 }
 0x36c   : > { %v1265_v21 = vsel %vm518_vm3, %v1258_v32, %v1260_v30  ;;  %v1467_v45 = vsel %vm721_vm2, %v1460_v38, %v1462_v39 }
 0x36d   : > { %1288 = vmatpush.bf16.msrb.mxu3 %v1265_v21 }
 0x370   : > { %6602 = vmatmul.msk.bf16.vlgmr.msrb.gmra.mxu3 %vm392_vm1, %v7955_v56 }
 0x373   : > { %v1464_v35 = vpop.permute.xlu0 %1463  ;;  %v8931_v62 = vpop.permute.xlu1 %1218 }
 0x374   : > { %v1468_v58 = vsel %vm721_vm2, %v1464_v35, %v1466_v17  ;;  %6583 = vmatmul.msk.bf16.gmra.mxu2 %vm392_vm1, %v7948_v34 }
 0x375   : > { %1489 = vmatpush.bf16.msra.mxu1 %v1468_v58 }
 0x379   : > { %1490 = vmatpush.bf16.msra.mxu1 %v1467_v45 }
 0x37b   : > { %v1551_v31 = vpop.permute.xlu0 %1550  ;;  %v1209_v11 = vpop.permute.xlu1 %1208 }
 0x37c   : > { %6666 = vmatmul.msk.bf16.vlgmr.msra.gmra.mxu1 %vm392_vm1, %v7965_v10  ;;  %v1556_v40 = vsel %vm811_vm4, %v1549_v44, %v1551_v31 }
 0x37d   : > { %1579 = vmatpush.bf16.msra.mxu2 %v1556_v40 }
 0x37f   : > { %v1383_v32 = vpop.f32.mrf.mxu0 }
 0x380   : > { %6603 = vmatmul.msk.bf16.gmra.mxu3 %vm392_vm1, %v7956_v50  ;;  %v1204_v50 = vpop.permute.xlu2 %1203 }
 0x383   : > { %v1184_v15 = vpop.permute.xlu1 %1183 }
 0x384   : > { %6584 = vmatmul.msk.bf16.gmra.mxu2 %vm392_vm1, %v7949_v57 }
 0x387   : > { %v8947_v2 = vpop.f32.mrf.mxu0 }
 0x38c   : > { %6667 = vmatmul.msk.bf16.gmra.mxu1 %vm392_vm1, %v7966_v61 }
 0x38f   : > { %v8953_v44 = vpop.f32.mrf.mxu0 }
 0x390   : > { %6604 = vmatmul.msk.bf16.gmra.mxu3 %vm392_vm1, %v7957_v26 }
 0x394   : > { %6585 = vmatmul.msk.bf16.gmra.mxu2 %vm392_vm1, %v7950_v51 }
 0x397   : > { %v8961_v39 = vpop.f32.mrf.mxu0 }
 0x39c   : > { %6668 = vmatmul.msk.bf16.gmra.mxu1 %vm392_vm1, %v7967_v29 }
 0x39f   : > { %v1393_v40 = vpop.f32.mrf.mxu0 }
 0x3a0   : > { %6605 = vmatmul.msk.bf16.gmra.mxu3 %vm392_vm1, %v7958_v54 }
 0x3a4   : > { %6686 = vmatmul.msk.bf16.vlgmr.msra.gmra.mxu2 %vm392_vm1, %v7973_v25 }
 0x3a7   : > { %v1395_v54 = vpop.f32.mrf.mxu0 }
 0x3ac   : > { %6669 = vmatmul.msk.bf16.gmra.mxu1 %vm392_vm1, %v7968_v41 }
 0x3b4   : > { %6687 = vmatmul.msk.bf16.gmra.mxu2 %vm392_vm1, %v7974_v63 }
 0x3c4   : > { %6688 = vmatmul.msk.bf16.gmra.mxu2 %vm392_vm1, %v7975_v48 }
 0x3d4   : > { %6689 = vmatmul.msk.bf16.gmra.mxu2 %vm392_vm1, %v7976_v1 }
 0x3e7   : > { %v1161_v13 = vpop.f32.mrf.mxu2 }
 0x3e8   : > { %v1221_v17 = vadd.f32 %v1184_v15, %v1161_v13 }
 0x3ef   : > { %v8937_v28 = vpop.f32.mrf.mxu2 }
 0x3f3   : > { %v1290_v23 = vpop.f32.mrf.mxu3 }
 0x3f4   : > { %v1310_v52 = vadd.f32 %v1290_v23, %v1221_v17 }
 0x3f6   : > { %v1403_v33 = vadd.f32 %v1383_v32, %v1310_v52  ;;  %v1214_v32 = vpop.permute.xlu0 %1213 }
 0x3f7   : > { %v8941_v9 = vpop.f32.mrf.mxu2 }
 0x3f9   : > { %v1492_v53 = vpop.f32.mrf.mxu1 }
 0x3fa   : > { %v1512_v12 = vadd.f32 %v1492_v53, %v1403_v33  ;;  %v1398_v53 = vpop.f32.mrf.mxu0 }
 0x3fb   : > { %v8945_v6 = vpop.f32.mrf.mxu3 }
 0x3ff   : > { %v8943_v18 = vpop.f32.mrf.mxu2 }
 0x401   : > { %v8949_v30 = vpop.f32.mrf.mxu1 }
 0x403   : > { %v8951_v56 = vpop.f32.mrf.mxu3 }
 0x407   : > { %v1171_v19 = vpop.f32.mrf.mxu2 }
 0x408   : > { %v1225_v59 = vadd.f32 %v1204_v50, %v1171_v19 }
 0x409   : > { %v8955_v58 = vpop.f32.mrf.mxu1 }
 0x40b   : > { %v8957_v55 = vpop.f32.mrf.mxu3 }
 0x40f   : > { %v1173_v42 = vpop.f32.mrf.mxu2 }
 0x410   : > { %v1226_v25 = vadd.f32 %v1209_v11, %v1173_v42 }
 0x411   : > { %v8963_v45 = vpop.f32.mrf.mxu1 }
 0x413   : > { %v1300_v10 = vpop.f32.mrf.mxu3 }
 0x414   : > { %v1314_v26 = vadd.f32 %v1300_v10, %v1225_v59 }
 0x416   : > { %v1407_v29 = vadd.f32 %v1393_v40, %v1314_v26 }
 0x417   : > { %v1176_v60 = vpop.f32.mrf.mxu2 }
 0x418   : > { %v1227_v52 = vadd.f32 %v1214_v32, %v1176_v60  ;;  %v1400_v60 = vpop.f32.mrf.mxu0 }
 0x419   : > { %v1502_v57 = vpop.f32.mrf.mxu1 }
 0x41a   : > { %v1516_v41 = vadd.f32 %v1502_v57, %v1407_v29 }
 0x41b   : > { %v1302_v51 = vpop.f32.mrf.mxu3 }
 0x41c   : > { %v1315_v1 = vadd.f32 %v1302_v51, %v1226_v25 }
 0x41e   : > { %v1408_v23 = vadd.f32 %v1395_v54, %v1315_v1 }
 0x41f   : > { %v1178_v21 = vpop.f32.mrf.mxu2 }
 0x420   : > { %v1228_v59 = vadd.f32 %v8931_v62, %v1178_v21 }
 0x421   : > { %v1504_v63 = vpop.f32.mrf.mxu1 }
 0x422   : > { %v1517_v33 = vadd.f32 %v1504_v63, %v1408_v23 }
 0x423   : > { %v1305_v17 = vpop.f32.mrf.mxu3 }
 0x424   : > { %v1316_v19 = vadd.f32 %v1305_v17, %v1227_v52  ;;  %v1194_v17 = vpop.permute.xlu2 %1193 }
 0x426   : > { %v1409_v42 = vadd.f32 %v1398_v53, %v1316_v19  ;;  %v1223_v53 = vadd.f32 %v1194_v17, %v8941_v9 }
 0x427   : > { %v1581_v34 = vpop.f32.mrf.mxu2 }
 0x428   : > { %v1601_v35 = vadd.f32 %v1581_v34, %v1512_v12 }
 0x429   : > { %v1507_v10 = vpop.f32.mrf.mxu1 }
 0x42a   : > { %v1518_v26 = vadd.f32 %v1507_v10, %v1409_v42 }
 0x42b   : > { %v1307_v57 = vpop.f32.mrf.mxu3 }
 0x42c   : > { %v1317_v29 = vadd.f32 %v1307_v57, %v1228_v59  ;;  %v1199_v59 = vpop.permute.xlu0 %1198 }
 0x42e   : > { %v1410_v1 = vadd.f32 %v1400_v60, %v1317_v29 }
 0x42f   : > { %v8959_v38 = vpop.f32.mrf.mxu2 }
 0x437   : > { %v8965_v31 = vpop.f32.mrf.mxu2 }
 0x43f   : > { %v8967_v61 = vpop.f32.mrf.mxu2 }
 0x447   : > { %v1591_v48 = vpop.f32.mrf.mxu2 }
 0x448   : > { %v1605_v13 = vadd.f32 %v1591_v48, %v1516_v41  ;;  %v1509_v48 = vpop.f32.mrf.mxu1 }
 0x449   : > { %v1519_v23 = vadd.f32 %v1509_v48, %v1410_v1 }
 0x44a   : > { %v6690_v15 = vmul.f32 -1.442695, %v1605_v13 }
 0x44c   : > { %8325 = vpow2.f32 %v6690_v15 }
 0x44f   : > { %v1593_v12 = vpop.f32.mrf.mxu2 }
 0x450   : > { %v1606_v34 = vadd.f32 %v1593_v12, %v1517_v33 }
 0x452   : > { %v8326_v40 = vpop.eup %8325  ;;  %v6691_v50 = vmul.f32 -1.442695, %v1606_v34 }
 0x453   : > { %v1625_v11 = vadd.f32 1.0, %v8326_v40  ;;  %v1312_v40 = vadd.f32 %v8951_v56, %v1223_v53 }
 0x454   : > { %8327 = vpow2.f32 %v6691_v50 }
 0x455   : > { %8329 = vrcp.f32 %v1625_v11  ;;  %v1640_v33 = vand.u32 2147483648, %v1625_v11  ;;  %v1638_v12 = vand.u32 2147483647, %v1625_v11  ;;  %vm1634_vm11 = vweird.f32 %v1625_v11 }
 0x457   : > { %v1596_v51 = vpop.f32.mrf.mxu2  ;;  %v1641_v42 = vor.u32 1.1754944e-38, %v1640_v33  ;;  %vm1639_vm13 = vcmp.eq.f32.partialorder %v1638_v12, 8.507059e+37 }
 0x458   : > { %v1607_v54 = vadd.f32 %v1596_v51, %v1518_v26  ;;  %v1405_v51 = vadd.f32 %v8953_v44, %v1312_v40 }
 0x45a   : > { %v8328_v25 = vpop.eup %8327  ;;  %v6692_v41 = vmul.f32 -1.442695, %v1607_v54  ;;  %v1189_v54 = vpop.permute.xlu2 %1188  ;;  %v1514_v56 = vadd.f32 %v8955_v58, %v1405_v51 }
 0x45b   : > { %v8330_v63 = vpop.eup %8329  ;;  %v8970_v15 = vadd.f32 1.0, %v8328_v25  ;;  %v1222_v48 = vadd.f32 %v1189_v54, %v8937_v28 }
 0x45c   : > { %v1630_v13 = vmul.f32 %v8330_v63, %v1625_v11  ;;  %8331 = vpow2.f32 %v6692_v41  ;;  %vm1635_vm10 = vweird.f32 %v8330_v63  ;;  %v1224_v11 = vadd.f32 %v1199_v59, %v8943_v18 }
 0x45d   : > { %8333 = vtanh.f32 %v1601_v35  ;;  %vm1636_vm12 = vmor %vm1634_vm11, %vm1635_vm10  ;;  %v8529_v41 = vmov 5   ;;  %v1603_v1 = vadd.f32 %v8965_v31, %v1514_v56  ;;  %v1311_v58 = vadd.f32 %v8945_v6, %v1222_v48 }
 0x45e   : > { %v1631_v32 = vsub.f32 1.0, %v1630_v13  ;;  %8335 = vrcp.f32 %v8970_v15  ;;  %8224 = vset.pattern.permute.xlu1 %v8529_v41  ;;  %8223 = vset.pattern.permute.xlu0 %v8529_v41  ;;  %v1313_v44 = vadd.f32 %v8957_v55, %v1224_v11  ;;  %vm1649_vm8 = vweird.f32 %v8970_v15 }
 0x45f   : > { %v1598_v52 = vpop.f32.mrf.mxu2  ;;  %1716 = vperm.xlu1 %8224, %v8882_v47   ;;  %1712 = vperm.xlu0 %8223, %v8885_v46   ;;  %v1653_v59 = vand.u32 2147483647, %v8970_v15 }
 0x460   : > { %v1608_v62 = vadd.f32 %v1598_v52, %v1519_v23  ;;  %v1632_v21 = vmul.f32 %v8330_v63, %v1631_v32  ;;  %8225 = vset.pattern.permute.xlu2 %v8529_v41  ;;  %v1406_v28 = vadd.f32 %v8961_v39, %v1313_v44  ;;  %v1404_v52 = vadd.f32 %v8947_v2, %v1311_v58  ;;  %v7986_v58 = vld [vmem:[#allocation2 + $0x8] sm:$0xf0] }
 0x461   : > { %1704 = vperm.xlu2 %8225, %v8866_v22  }
 0x462   : > { %v8332_v19 = vpop.eup %8331  ;;  %v6693_v34 = vmul.f32 -1.442695, %v1608_v62  ;;  %v1633_v10 = vadd.f32 %v8330_v63, %v1632_v21  ;;  %v1515_v62 = vadd.f32 %v8963_v45, %v1406_v28  ;;  %v1513_v53 = vadd.f32 %v8949_v30, %v1404_v52  ;;  %v6826_v28 = vld [vmem:[#allocation2 + $0x28] sm:$0xf0] }
 0x463   : > { %v1627_v50 = vadd.f32 1.0, %v8332_v19  ;;  %v8334_v57 = vpop.eup %8333 }
 0x464   : > { %8337 = vpow2.f32 %v6693_v34  ;;  %v1637_v35 = vsel %vm1636_vm12, %v8330_v63, %v1633_v10  ;;  %v8975_v9 = vpop.eup %8335  ;;  %v1604_v12 = vadd.f32 %v8967_v61, %v1515_v62  ;;  %v1602_v2 = vadd.f32 %v8959_v38, %v1513_v53  ;;  %v9026_v53 = vld [vmem:[%s10258_s1] ss:$0 sm:$0xff] }
 0x465   : > { %8339 = vrcp.f32 %v1627_v50  ;;  %v1642_v26 = vsel %vm1639_vm13, %v1641_v42, %v1637_v35  ;;  %v1645_v25 = vmul.f32 %v8975_v9, %v8970_v15  ;;  %v1670_v55 = vand.u32 2147483648, %v1627_v50 }
 0x466   : > { %v8978_v29 = vmul.f32 %v8334_v57, %v1642_v26  ;;  %v1668_v32 = vand.u32 2147483647, %v1627_v50  ;;  %vm1664_vm15 = vweird.f32 %v1627_v50  ;;  %vm1650_vm7 = vweird.f32 %v8975_v9 }
 0x467   : > { %v1646_v17 = vsub.f32 1.0, %v1645_v25  ;;  %v1671_v39 = vor.u32 1.1754944e-38, %v1670_v55  ;;  %1708 = vperm.xlu1 %8224, %v8894_v37   ;;  %v1655_v61 = vand.u32 2147483648, %v8970_v15  ;;  %vm1651_vm10 = vmor %vm1649_vm8, %vm1650_vm7  ;;  %v6740_v55 = vld [vmem:[#allocation2 + $0x18] sm:$0xf] }
 0x468   : > { %vm1669_vm6 = vcmp.eq.f32.partialorder %v1668_v32, 8.507059e+37 }
 0x469   : > { %v1647_v6 = vmul.f32 %v8975_v9, %v1646_v17  ;;  %v1656_v54 = vor.u32 1.1754944e-38, %v1655_v61 }
 0x46a   : > { %v8338_v60 = vpop.eup %8337 }
 0x46b   : > { %v8340_v63 = vpop.eup %8339  ;;  %v1628_v13 = vadd.f32 1.0, %v8338_v60  ;;  %v1648_v35 = vadd.f32 %v8975_v9, %v1647_v6 }
 0x46c   : > { %v1660_v18 = vmul.f32 %v8340_v63, %v1627_v50  ;;  %vm1665_vm14 = vweird.f32 %v8340_v63 }
 0x46d   : > { %8341 = vrcp.f32 %v1628_v13  ;;  %vm1666_vm5 = vmor %vm1664_vm15, %vm1665_vm14  ;;  %v1685_v30 = vand.u32 2147483648, %v1628_v13  ;;  %v1683_v57 = vand.u32 2147483647, %v1628_v13  ;;  %vm1679_vm11 = vweird.f32 %v1628_v13 }
 0x46e   : > { %v1661_v23 = vsub.f32 1.0, %v1660_v18  ;;  %8343 = vtanh.f32 %v1603_v1  ;;  %v1652_v26 = vsel %vm1651_vm10, %v8975_v9, %v1648_v35  ;;  %vm1654_vm14 = vcmp.eq.f32.partialorder %v1653_v59, 8.507059e+37  ;;  %v7978_v9 = vld [vmem:[%s8576_s25 + $0x2a8] sm:$0xff]  ;;  %v6732_v18 = vld [vmem:[#allocation2] sm:$0xf] }
 0x46f   : > { %8345 = vtanh.f32 %v1604_v12  ;;  %v1686_v51 = vor.u32 1.1754944e-38, %v1685_v30  ;;  %vm1684_vm13 = vcmp.eq.f32.partialorder %v1683_v57, 8.507059e+37  ;;  %v1657_v25 = vsel %vm1654_vm14, %v1656_v54, %v1652_v26 }
 0x470   : > { %v1662_v31 = vmul.f32 %v8340_v63, %v1661_v23  ;;  %8347 = vtanh.f32 %v1602_v2  ;;  %v9013_v17 = vor.u32 %v7986_v58, %v6732_v18  ;;  %v8005_v23 = vld [vmem:[#allocation2 + $0x20] sm:$0xf] }
 0x472   : > { %v1663_v21 = vadd.f32 %v8340_v63, %v1662_v31  ;;  %1872 = vrot.lane.b32.xlu1 %v9013_v17, %s8522_s30  ;;  %v9017_v31 = vor.u32 %v8005_v23, %v6826_v28 }
 0x473   : > { %v8342_v33 = vpop.eup %8341 }
 0x474   : > { %v1675_v19 = vmul.f32 %v8342_v33, %v1628_v13  ;;  %v1667_v34 = vsel %vm1666_vm5, %v8340_v63, %v1663_v21  ;;  %v8344_v10 = vpop.eup %8343  ;;  %vm1680_vm9 = vweird.f32 %v8342_v33  ;;  %v7977_v13 = vld [vmem:[%s8576_s25 + $0x2a0] sm:$0xff] }
 0x475   : > { %v1672_v45 = vsel %vm1669_vm6, %v1671_v39, %v1667_v34  ;;  %vm1681_vm12 = vmor %vm1679_vm11, %vm1680_vm9  ;;  %v8346_v56 = vpop.eup %8345 }
 0x476   : > { %v1676_v40 = vsub.f32 1.0, %v1675_v19  ;;  %v1691_v50 = vmul.f32 %v8344_v10, %v1672_v45  ;;  %v8348_v48 = vpop.eup %8347 }
 0x477   : > { %v1690_v44 = vmul.f32 %v8348_v48, %v1657_v25  ;;  %v8003_v25 = vld [vmem:[#allocation2 + $0x8] sm:$0xf] }
 0x478   : > { %v1677_v42 = vmul.f32 %v8342_v33, %v1676_v40 }
 0x479   : > { %v1693_v1 = vpack.c.bf16 %v1690_v44, %v8978_v29  ;;  %v7988_v29 = vld [vmem:[#allocation2 + $0x20] sm:$0xf0] }
 0x47a   : > { %v1678_v38 = vadd.f32 %v8342_v33, %v1677_v42  ;;  %v6741_v32 = vor.u32 %v7988_v29, %v6740_v55  ;;  %2209 = vrot.lane.b32.xlu1 %v9017_v31, %s8524_s10 }
 0x47c   : > { %v1682_v11 = vsel %vm1681_vm12, %v8342_v33, %v1678_v38  ;;  %1876 = vrot.lane.b32.xlu2 %v6741_v32, %s8522_s30 }
 0x47d   : > { %v1687_v60 = vsel %vm1684_vm13, %v1686_v51, %v1682_v11 }
 0x47e   : > { %v1692_v63 = vmul.f32 %v8346_v56, %v1687_v60 }
 0x480   : > { %v1694_v15 = vpack.c.bf16 %v1692_v63, %v1691_v50  ;;  %v6818_v63 = vld [vmem:[#allocation2 + $0x10] sm:$0xf0] }
 0x482   : > { %1773 = vmatpush.bf16.msra.mxu3 %v1694_v15 }
 0x486   : > { %1774 = vmatpush.bf16.msra.mxu3 %v1693_v1  ;;  %v6821_v1 = vor.u32 %v8003_v25, %v6818_v63 }
 0x489   : > { %6710 = vmatmul.msk.bf16.vlgmr.msra.gmra.mxu3 %vm392_vm1, %v7977_v13 }
 0x499   : > { %6711 = vmatmul.msk.bf16.gmra.mxu3 %vm392_vm1, %v7978_v9 }
 0x4bb   : > { %v1705_v62 = vpop.permute.xlu2 %1704 }
 0x4d1   : > { %v1717_v52 = vpop.permute.xlu1 %1716 }
 0x4d9   : > { %v1709_v39 = vpop.permute.xlu1 %1708 }
 0x50c   : > { %v1776_v21 = vpop.f32.mrf.mxu3 }
 0x50d   : > { %v1777_v6 = vadd.f32 %v1776_v21, %v1705_v62  ;;  %v10262_v62 = vmov 2   ;;  %v7980_v21 = vld [vmem:[%s8576_s25 + $0x2b8] sm:$0xff] }
 0x50e   : > { %8227 = vset.pattern.permute.xlu1 %v10262_v62  ;;  %8226 = vset.pattern.permute.xlu0 %v10262_v62 }
 0x50f   : > { %v1796_v33 = vadd.f32 %v1777_v6, %v8819_v27  ;;  %v1713_v27 = vpop.permute.xlu0 %1712  ;;  %8228 = vset.pattern.permute.xlu2 %v10262_v62  ;;  %v7993_v6 = vld [vmem:[%s8576_s25 + $0x180] sm:$0xff] }
 0x511   : > { %v9029_v12 = vmul.f32 %v9026_v53, %v1796_v33  ;;  %v1873_v33 = vpop.permute.xlu1 %1872 }
 0x513   : > { %v1808_v19 = vpack.c.bf16 %v9029_v12, %v9029_v12 }
 0x514   : > { %v1778_v34 = vpop.f32.mrf.mxu3 }
 0x515   : > { %1812 = vst [vmem:[#allocation2 + $0x4] sm:$0xf] %v1808_v19  ;;  %v1779_v10 = vadd.f32 %v1778_v34, %v1709_v39 }
 0x517   : > { %v1797_v2 = vadd.f32 %v1779_v10, %v8825_v5  ;;  %v9086_v10 = vld [vmem:[%s8571_s22 + $0x30] sm:$0xff] }
 0x519   : > { %v9035_v45 = vmul.f32 %v9026_v53, %v1797_v2  ;;  %v9089_v2 = vld [vmem:[%s8571_s22 + $0x20] sm:$0xff] }
 0x51b   : > { %v1809_v40 = vpack.c.bf16 %v9035_v45, %v9035_v45 }
 0x51c   : > { %v1781_v50 = vpop.f32.mrf.mxu3  ;;  %v6816_v57 = vld [vmem:[#allocation2 + $0x4] sm:$0xf] }
 0x51d   : > { %1813 = vst [vmem:[#allocation2 + $0x10] sm:$0xf] %v1809_v40  ;;  %v1782_v35 = vadd.f32 %v1781_v50, %v1713_v27  ;;  %v7985_v38 = vld [vmem:[#allocation2 + $0x4] sm:$0xf]  ;;  %v2210_v27 = vpop.permute.xlu1 %2209 }
 0x51e   : > { %v6788_v58 = vld [vmem:[#allocation2 + $0x4] sm:$0xf] }
 0x51f   : > { %v1798_v30 = vadd.f32 %v1782_v35, %v8831_v36  ;;  %v7981_v40 = vld [vmem:[%s8576_s25 + $0x140] sm:$0xff] }
 0x521   : > { %v9041_v61 = vmul.f32 %v9026_v53, %v1798_v30  ;;  %v7994_v30 = vld [vmem:[%s8576_s25 + $0x188] sm:$0xff] }
 0x523   : > { %v1810_v42 = vpack.c.bf16 %v9041_v61, %v9041_v61 }
 0x524   : > { %v1783_v5 = vpop.f32.mrf.mxu3  ;;  %v8004_v59 = vld [vmem:[#allocation2 + $0xc] sm:$0xf0] }
 0x525   : > { %v6734_v26 = vld [vmem:[#allocation2 + $0xc] sm:$0xf0]  ;;  %1814 = vst [vmem:[#allocation2 + $0x1c] sm:$0xf] %v1810_v42  ;;  %v1784_v51 = vadd.f32 %v1783_v5, %v1717_v52  ;;  %v6817_v54 = vor.u32 %v8004_v59, %v6816_v57  ;;  %v9069_v52 = vld [vmem:[%s8571_s22 + $0x38] sm:$0xff] }
 0x526   : > { %v6737_v11 = vor.u32 %v7985_v38, %v6734_v26  ;;  %v7997_v18 = vld [vmem:[#allocation2 + $0xc] sm:$0xf0]  ;;  %v7982_v26 = vld [vmem:[%s8576_s25 + $0x148] sm:$0xff] }
 0x527   : > { %v1799_v56 = vadd.f32 %v1784_v51, %v8838_v7  ;;  %2203 = vrot.lane.b32.xlu1 %v6817_v54, %s8524_s10  ;;  %v6789_v23 = vor.u32 %v7997_v18, %v6788_v58  ;;  %v7999_v51 = vld [vmem:[%s8576_s25 + $0x1a0] sm:$0xff]  ;;  %v7984_v18 = vld [vmem:[%s8576_s25 + $0x158] sm:$0xff]  ;;  %v8001_v58 = vld [vmem:[%s8576_s25 + $0x1b0] sm:$0xff] }
 0x528   : > { %1874 = vrot.lane.b32.xlu2 %v6737_v11, %s8522_s30 }
 0x529   : > { %v9049_v36 = vmul.f32 %v9026_v53, %v1799_v56 }
 0x52b   : > { %v1811_v60 = vpack.c.bf16 %v9049_v36, %v9049_v36 }
 0x52c   : > { %v6792_v48 = vld [vmem:[#allocation2 + $0x1c] sm:$0xf] }
 0x52d   : > { %1815 = vst [vmem:[#allocation2 + $0x28] sm:$0xf] %v1811_v60  ;;  %v7987_v7 = vld [vmem:[#allocation2 + $0x1c] sm:$0xf]  ;;  %v7989_v60 = vld [vmem:[%s8576_s25 + $0x160] sm:$0xff] }
 0x52e   : > { %v6824_v55 = vld [vmem:[#allocation2 + $0x1c] sm:$0xf] }
 0x52f   : > { %2003 = vrot.lane.b32.xlu1 %v6737_v11, %s8523_s7  ;;  %v7995_v11 = vld [vmem:[%s8576_s25 + $0x190] sm:$0xff] }
 0x530   : > { %2005 = vrot.lane.b32.xlu2 %v6741_v32, %s8523_s7  ;;  %v7979_v32 = vld [vmem:[%s8576_s25 + $0x2b0] sm:$0xff] }
 0x531   : > { %6712 = vmatmul.msk.bf16.gmra.mxu3 %vm392_vm1, %v7979_v32  ;;  %v8008_v32 = vld [vmem:[%s8576_s25 + $0x1c8] sm:$0xff] }
 0x534   : > { %v7998_v15 = vld [vmem:[#allocation2 + $0x24] sm:$0xf0] }
 0x535   : > { %v6742_v44 = vld [vmem:[#allocation2 + $0x24] sm:$0xf0]  ;;  %v6793_v13 = vor.u32 %v7998_v15, %v6792_v48 }
 0x536   : > { %v6745_v9 = vor.u32 %v7987_v7, %v6742_v44  ;;  %v8006_v28 = vld [vmem:[#allocation2 + $0x24] sm:$0xf0]  ;;  %v7983_v44 = vld [vmem:[%s8576_s25 + $0x150] sm:$0xff] }
 0x537   : > { %2124 = vmatpush.bf16.msrb.mxu2 %v6793_v13  ;;  %2292 = vrot.lane.b32.xlu1 %v6817_v54, %s8525_s11  ;;  %v6825_v29 = vor.u32 %v8006_v28, %v6824_v55  ;;  %v7996_v13 = vld [vmem:[%s8576_s25 + $0x198] sm:$0xff]  ;;  %v8007_v28 = vld [vmem:[%s8576_s25 + $0x1c0] sm:$0xff] }
 0x538   : > { %1878 = vrot.lane.b32.xlu0 %v6745_v9, %s8522_s30  ;;  %2205 = vrot.lane.b32.xlu2 %v6821_v1, %s8524_s10  ;;  %v8002_v55 = vld [vmem:[%s8576_s25 + $0x1b8] sm:$0xff] }
 0x53b   : > { %2125 = vmatpush.bf16.msrb.mxu2 %v6789_v23  ;;  %v7991_v23 = vld [vmem:[%s8576_s25 + $0x170] sm:$0xff] }
 0x53e   : > { %6794 = vmatmul.msk.bf16.vlgmr.msrb.gmra.mxu2 %vm392_vm1, %v7993_v6 }
 0x53f   : > { %1962 = vperm.xlu1 %8227, %v9069_v52  }
 0x540   : > { %2001 = vrot.lane.b32.xlu0 %v9013_v17, %s8523_s7  ;;  %2296 = vrot.lane.b32.xlu2 %v6825_v29, %s8525_s11  ;;  %v9076_v17 = vld [vmem:[%s8571_s22 + $0x28] sm:$0xff] }
 0x541   : > { %6713 = vmatmul.msk.bf16.gmra.mxu3 %vm392_vm1, %v7980_v21  ;;  %v8009_v21 = vld [vmem:[%s8576_s25 + $0x1d0] sm:$0xff] }
 0x547   : > { %1952 = vperm.xlu1 %8227, %v9076_v17  }
 0x548   : > { %2207 = vrot.lane.b32.xlu0 %v6825_v29, %s8524_s10  ;;  %2294 = vrot.lane.b32.xlu2 %v6821_v1, %s8525_s11  ;;  %v8000_v1 = vld [vmem:[%s8576_s25 + $0x1a8] sm:$0xff]  ;;  %v7992_v29 = vld [vmem:[%s8576_s25 + $0x178] sm:$0xff] }
 0x54e   : > { %6795 = vmatmul.msk.bf16.gmra.mxu2 %vm392_vm1, %v7994_v30 }
 0x54f   : > { %1927 = vperm.xlu1 %8227, %v8866_v22  }
 0x550   : > { %2007 = vrot.lane.b32.xlu0 %v6745_v9, %s8523_s7  ;;  %1947 = vperm.xlu2 %8228, %v9089_v2   ;;  %v7990_v9 = vld [vmem:[%s8576_s25 + $0x168] sm:$0xff] }
 0x558   : > { %2298 = vrot.lane.b32.xlu0 %v9017_v31, %s8525_s11  ;;  %v1877_v31 = vpop.permute.xlu2 %1876  ;;  %1937 = vperm.xlu2 %8228, %v8885_v46  }
 0x55e   : > { %6796 = vmatmul.msk.bf16.gmra.mxu2 %vm392_vm1, %v7995_v11 }
 0x560   : > { %1957 = vperm.xlu0 %8226, %v9086_v10   ;;  %1932 = vperm.xlu2 %8228, %v8894_v37  }
 0x568   : > { %1942 = vperm.xlu0 %8226, %v8882_v47  }
 0x56e   : > { %6797 = vmatmul.msk.bf16.gmra.mxu2 %vm392_vm1, %v7996_v13 }
 0x582   : > { %v1875_v39 = vpop.permute.xlu2 %1874 }
 0x583   : > { %v1880_v22 = vsel %vm387_vm0, %v1873_v33, %v1875_v39 }
 0x58a   : > { %v2006_v50 = vpop.permute.xlu2 %2005 }
 0x592   : > { %v2206_v57 = vpop.permute.xlu2 %2205 }
 0x599   : > { %v2204_v42 = vpop.permute.xlu1 %2203 }
 0x59a   : > { %v2211_v38 = vsel %vm721_vm2, %v2204_v42, %v2206_v57  ;;  %v2297_v56 = vpop.permute.xlu2 %2296 }
 0x5a1   : > { %v2004_v47 = vpop.permute.xlu1 %2003 }
 0x5a2   : > { %v2295_v15 = vpop.permute.xlu2 %2294 }
 0x5a9   : > { %v2293_v48 = vpop.permute.xlu1 %2292 }
 0x5aa   : > { %v1879_v19 = vpop.permute.xlu0 %1878  ;;  %v2300_v7 = vsel %vm811_vm4, %v2293_v48, %v2295_v15 }
 0x5ab   : > { %v1881_v34 = vsel %vm387_vm0, %v1877_v31, %v1879_v19  ;;  %v8010_v31 = vld [vmem:[%s8576_s25 + $0x1d8] sm:$0xff] }
 0x5ac   : > { %1902 = vmatpush.bf16.msrb.mxu0 %v1881_v34 }
 0x5b0   : > { %1903 = vmatpush.bf16.msrb.mxu0 %v1880_v22 }
 0x5b1   : > { %v9145_v39 = vpop.permute.xlu1 %1962 }
 0x5b2   : > { %v2002_v35 = vpop.permute.xlu0 %2001 }
 0x5b3   : > { %6746 = vmatmul.msk.bf16.vlgmr.msrb.gmra.mxu0 %vm392_vm1, %v7981_v40  ;;  %v2009_v37 = vsel %vm518_vm3, %v2002_v35, %v2004_v47 }
 0x5b4   : > { %v9140_v6 = vpop.f32.mrf.mxu3 }
 0x5b9   : > { %v1953_v22 = vpop.permute.xlu1 %1952 }
 0x5ba   : > { %v2208_v5 = vpop.permute.xlu0 %2207 }
 0x5bb   : > { %v2212_v59 = vsel %vm721_vm2, %v2208_v5, %v2210_v27 }
 0x5bc   : > { %2233 = vmatpush.bf16.msrb.mxu3 %v2212_v59  ;;  %v9143_v33 = vpop.f32.mrf.mxu3 }
 0x5c0   : > { %2234 = vmatpush.bf16.msrb.mxu3 %v2211_v38 }
 0x5c1   : > { %v1928_v35 = vpop.permute.xlu1 %1927  ;;  %v2127_v42 = vpop.f32.mrf.mxu2 }
 0x5c2   : > { %v2008_v54 = vpop.permute.xlu0 %2007 }
 0x5c3   : > { %v2010_v46 = vsel %vm518_vm3, %v2006_v50, %v2008_v54  ;;  %6747 = vmatmul.msk.bf16.gmra.mxu0 %vm392_vm1, %v7982_v26  ;;  %6830 = vmatmul.msk.bf16.vlgmr.msrb.gmra.mxu3 %vm392_vm1, %v7999_v51 }
 0x5c4   : > { %2031 = vmatpush.bf16.msrb.mxu1 %v2010_v46  ;;  %v9147_v34 = vpop.f32.mrf.mxu3 }
 0x5c8   : > { %2032 = vmatpush.bf16.msrb.mxu1 %v2009_v37 }
 0x5ca   : > { %v2299_v25 = vpop.permute.xlu0 %2298 }
 0x5cb   : > { %v2301_v63 = vsel %vm811_vm4, %v2297_v56, %v2299_v25  ;;  %6766 = vmatmul.msk.bf16.vlgmr.msrb.gmra.mxu1 %vm392_vm1, %v7989_v60  ;;  %v9159_v56 = vpop.f32.mrf.mxu2 }
 0x5cc   : > { %2322 = vmatpush.bf16.msra.mxu0 %v2301_v63  ;;  %v9153_v50 = vpop.f32.mrf.mxu3 }
 0x5d0   : > { %2323 = vmatpush.bf16.msra.mxu0 %v2300_v7 }
 0x5d2   : > { %v1958_v49 = vpop.permute.xlu0 %1957 }
 0x5d3   : > { %6748 = vmatmul.msk.bf16.gmra.mxu0 %vm392_vm1, %v7983_v44  ;;  %6831 = vmatmul.msk.bf16.gmra.mxu3 %vm392_vm1, %v8000_v1  ;;  %v9165_v63 = vpop.f32.mrf.mxu2 }
 0x5db   : > { %6767 = vmatmul.msk.bf16.gmra.mxu1 %vm392_vm1, %v7990_v9  ;;  %v9171_v1 = vpop.f32.mrf.mxu2 }
 0x5e3   : > { %6749 = vmatmul.msk.bf16.gmra.mxu0 %vm392_vm1, %v7984_v18  ;;  %6832 = vmatmul.msk.bf16.gmra.mxu3 %vm392_vm1, %v8001_v58 }
 0x5eb   : > { %6768 = vmatmul.msk.bf16.gmra.mxu1 %vm392_vm1, %v7991_v23  ;;  %v2137_v23 = vpop.f32.mrf.mxu2 }
 0x5f3   : > { %6850 = vmatmul.msk.bf16.vlgmr.msra.gmra.mxu0 %vm392_vm1, %v8007_v28  ;;  %6833 = vmatmul.msk.bf16.gmra.mxu3 %vm392_vm1, %v8002_v55  ;;  %v1948_v28 = vpop.permute.xlu2 %1947 }
 0x5fb   : > { %6769 = vmatmul.msk.bf16.gmra.mxu1 %vm392_vm1, %v7992_v29 }
 0x603   : > { %6851 = vmatmul.msk.bf16.gmra.mxu0 %vm392_vm1, %v8008_v32 }
 0x613   : > { %6852 = vmatmul.msk.bf16.gmra.mxu0 %vm392_vm1, %v8009_v21 }
 0x623   : > { %6853 = vmatmul.msk.bf16.gmra.mxu0 %vm392_vm1, %v8010_v31 }
 0x630   : > { %v1905_v19 = vpop.f32.mrf.mxu0 }
 0x631   : > { %v1965_v30 = vadd.f32 %v1928_v35, %v1905_v19  ;;  %v2139_v35 = vpop.f32.mrf.mxu2 }
 0x638   : > { %v9149_v27 = vpop.f32.mrf.mxu0 }
 0x640   : > { %v9151_v40 = vpop.f32.mrf.mxu0 }
 0x646   : > { %v2236_v38 = vpop.f32.mrf.mxu3 }
 0x648   : > { %v9155_v57 = vpop.f32.mrf.mxu0  ;;  %v2034_v5 = vpop.f32.mrf.mxu1 }
 0x649   : > { %v2054_v59 = vadd.f32 %v2034_v5, %v1965_v30 }
 0x64b   : > { %v2147_v26 = vadd.f32 %v2127_v42, %v2054_v59 }
 0x64d   : > { %v2256_v51 = vadd.f32 %v2236_v38, %v2147_v26 }
 0x64e   : > { %v9161_v37 = vpop.f32.mrf.mxu3 }
 0x650   : > { %v1915_v47 = vpop.f32.mrf.mxu0  ;;  %v9157_v46 = vpop.f32.mrf.mxu1 }
 0x651   : > { %v1969_v55 = vadd.f32 %v1948_v28, %v1915_v47  ;;  %v2142_v47 = vpop.f32.mrf.mxu2 }
 0x656   : > { %v9167_v7 = vpop.f32.mrf.mxu3 }
 0x658   : > { %v1917_v54 = vpop.f32.mrf.mxu0  ;;  %v9163_v25 = vpop.f32.mrf.mxu1 }
 0x659   : > { %v1970_v30 = vadd.f32 %v1953_v22, %v1917_v54 }
 0x65e   : > { %v9175_v9 = vpop.f32.mrf.mxu3 }
 0x660   : > { %v1920_v11 = vpop.f32.mrf.mxu0  ;;  %v9169_v44 = vpop.f32.mrf.mxu1 }
 0x661   : > { %v1971_v24 = vadd.f32 %v1958_v49, %v1920_v11 }
 0x666   : > { %v2246_v29 = vpop.f32.mrf.mxu3 }
 0x668   : > { %v1922_v60 = vpop.f32.mrf.mxu0  ;;  %v2044_v18 = vpop.f32.mrf.mxu1 }
 0x669   : > { %v2058_v32 = vadd.f32 %v2044_v18, %v1969_v55 }
 0x66b   : > { %v2151_v19 = vadd.f32 %v2137_v23, %v2058_v32 }
 0x66d   : > { %v2260_v42 = vadd.f32 %v2246_v29, %v2151_v19 }
 0x66e   : > { %v2248_v59 = vpop.f32.mrf.mxu3 }
 0x670   : > { %v2325_v48 = vpop.f32.mrf.mxu0  ;;  %v2046_v21 = vpop.f32.mrf.mxu1 }
 0x671   : > { %v2345_v15 = vadd.f32 %v2325_v48, %v2256_v51  ;;  %v2059_v5 = vadd.f32 %v2046_v21, %v1970_v30  ;;  %v1972_v21 = vadd.f32 %v9145_v39, %v1922_v60  ;;  %v2144_v30 = vpop.f32.mrf.mxu2 }
 0x673   : > { %v2152_v48 = vadd.f32 %v2139_v35, %v2059_v5 }
 0x675   : > { %v2261_v28 = vadd.f32 %v2248_v59, %v2152_v48 }
 0x676   : > { %v2251_v3 = vpop.f32.mrf.mxu3 }
 0x678   : > { %v9173_v13 = vpop.f32.mrf.mxu0  ;;  %v2049_v51 = vpop.f32.mrf.mxu1 }
 0x679   : > { %v2060_v18 = vadd.f32 %v2049_v51, %v1971_v24 }
 0x67b   : > { %v2153_v32 = vadd.f32 %v2142_v47, %v2060_v18 }
 0x67d   : > { %v2262_v19 = vadd.f32 %v2251_v3, %v2153_v32 }
 0x67e   : > { %v2253_v59 = vpop.f32.mrf.mxu3 }
 0x680   : > { %v9177_v58 = vpop.f32.mrf.mxu0  ;;  %v2051_v54 = vpop.f32.mrf.mxu1 }
 0x681   : > { %v2061_v35 = vadd.f32 %v2051_v54, %v1972_v21  ;;  %v1943_v21 = vpop.permute.xlu0 %1942 }
 0x688   : > { %v9179_v31 = vpop.f32.mrf.mxu0 }
 0x690   : > { %v2335_v38 = vpop.f32.mrf.mxu0 }
 0x691   : > { %v2349_v26 = vadd.f32 %v2335_v38, %v2260_v42  ;;  %v2154_v42 = vadd.f32 %v2144_v30, %v2061_v35  ;;  %v1938_v38 = vpop.permute.xlu2 %1937 }
 0x692   : > { %v1967_v39 = vadd.f32 %v1938_v38, %v9151_v40 }
 0x693   : > { %v6854_v62 = vmul.f32 -1.442695, %v2349_v26  ;;  %v2263_v51 = vadd.f32 %v2253_v59, %v2154_v42  ;;  %v8531_v59 = vmov 6  }
 0x694   : > { %v2056_v18 = vadd.f32 %v9163_v25, %v1967_v39  ;;  %8230 = vset.pattern.permute.xlu1 %v8531_v59  ;;  %8229 = vset.pattern.permute.xlu0 %v8531_v59  ;;  %v8496_v39 = vld [vmem:[%s8571_s22] sm:$0xff] }
 0x695   : > { %8349 = vpow2.f32 %v6854_v62  ;;  %8231 = vset.pattern.permute.xlu2 %v8531_v59 }
 0x696   : > { %v2149_v35 = vadd.f32 %v9165_v63, %v2056_v18  ;;  %2448 = vperm.xlu2 %8231, %v8496_v39   ;;  %v8011_v39 = vld [vmem:[%s8576_s25 + $0x2c0] sm:$0xff] }
 0x698   : > { %v2337_v55 = vpop.f32.mrf.mxu0  ;;  %v2258_v42 = vadd.f32 %v9167_v7, %v2149_v35  ;;  %v8495_v7 = vld [vmem:[%s8571_s22 + $0x10] sm:$0xff] }
 0x699   : > { %v2350_v8 = vadd.f32 %v2337_v55, %v2261_v28  ;;  %v1933_v30 = vpop.permute.xlu2 %1932  ;;  %2456 = vperm.xlu0 %8229, %v8495_v7  }
 0x69b   : > { %v8350_v23 = vpop.eup %8349  ;;  %v6855_v22 = vmul.f32 -1.442695, %v2350_v8 }
 0x69c   : > { %v2369_v29 = vadd.f32 1.0, %v8350_v23 }
 0x69d   : > { %8351 = vpow2.f32 %v6855_v22 }
 0x69e   : > { %8353 = vrcp.f32 %v2369_v29  ;;  %v2384_v28 = vand.u32 2147483648, %v2369_v29  ;;  %v2382_v55 = vand.u32 2147483647, %v2369_v29  ;;  %vm2378_vm5 = vweird.f32 %v2369_v29 }
 0x6a0   : > { %v2340_v49 = vpop.f32.mrf.mxu0  ;;  %vm2383_vm7 = vcmp.eq.f32.partialorder %v2382_v55, 8.507059e+37 }
 0x6a1   : > { %v2351_v62 = vadd.f32 %v2340_v49, %v2262_v19 }
 0x6a3   : > { %v8352_v11 = vpop.eup %8351  ;;  %v6856_v24 = vmul.f32 -1.442695, %v2351_v62  ;;  %v1968_v62 = vadd.f32 %v1943_v21, %v9155_v57 }
 0x6a4   : > { %v8354_v5 = vpop.eup %8353  ;;  %v9182_v8 = vadd.f32 1.0, %v8352_v11  ;;  %v1966_v11 = vadd.f32 %v1933_v30, %v9149_v27 }
 0x6a5   : > { %v2374_v26 = vmul.f32 %v8354_v5, %v2369_v29  ;;  %8355 = vpow2.f32 %v6856_v24  ;;  %vm2379_vm15 = vweird.f32 %v8354_v5  ;;  %v2057_v24 = vadd.f32 %v9169_v44, %v1968_v62 }
 0x6a6   : > { %8357 = vtanh.f32 %v2345_v15  ;;  %vm2380_vm6 = vmor %vm2378_vm5, %vm2379_vm15  ;;  %v2385_v15 = vor.u32 1.1754944e-38, %v2384_v28  ;;  %v2055_v38 = vadd.f32 %v9157_v46, %v1966_v11  ;;  %vm2393_vm13 = vweird.f32 %v9182_v8 }
 0x6a7   : > { %v2375_v48 = vsub.f32 1.0, %v2374_v26  ;;  %8359 = vrcp.f32 %v9182_v8  ;;  %v2347_v26 = vadd.f32 %v9177_v58, %v2258_v42  ;;  %v2397_v42 = vand.u32 2147483647, %v9182_v8 }
 0x6a8   : > { %v2342_v3 = vpop.f32.mrf.mxu0  ;;  %v2148_v46 = vadd.f32 %v9159_v56, %v2055_v38 }
 0x6a9   : > { %v2352_v60 = vadd.f32 %v2342_v3, %v2263_v51  ;;  %v2376_v47 = vmul.f32 %v8354_v5, %v2375_v48  ;;  %v8494_v51 = vld [vmem:[%s8571_s22 + $0x18] sm:$0xff]  ;;  %v2150_v48 = vadd.f32 %v9171_v1, %v2057_v24 }
 0x6aa   : > { %2460 = vperm.xlu1 %8230, %v8494_v51  }
 0x6ab   : > { %v8356_v23 = vpop.eup %8355  ;;  %v6857_v32 = vmul.f32 -1.442695, %v2352_v60  ;;  %v2377_v22 = vadd.f32 %v8354_v5, %v2376_v47  ;;  %v2259_v18 = vadd.f32 %v9175_v9, %v2150_v48 }
 0x6ac   : > { %v2371_v54 = vadd.f32 1.0, %v8356_v23  ;;  %v8358_v19 = vpop.eup %8357 }
 0x6ad   : > { %8361 = vpow2.f32 %v6857_v32  ;;  %v2381_v40 = vsel %vm2380_vm6, %v8354_v5, %v2377_v22  ;;  %v9188_v49 = vpop.eup %8359  ;;  %v2257_v32 = vadd.f32 %v9161_v37, %v2148_v46  ;;  %v2348_v22 = vadd.f32 %v9179_v31, %v2259_v18 }
 0x6ae   : > { %8363 = vrcp.f32 %v2371_v54  ;;  %v2386_v25 = vsel %vm2383_vm7, %v2385_v15, %v2381_v40  ;;  %v2389_v63 = vmul.f32 %v9188_v49, %v9182_v8  ;;  %v2414_v58 = vand.u32 2147483648, %v2371_v54  ;;  %v8497_v40 = vld [vmem:[%s8571_s22 + $0x8] sm:$0xff] }
 0x6af   : > { %v9191_v29 = vmul.f32 %v8358_v19, %v2386_v25  ;;  %v2412_v28 = vand.u32 2147483647, %v2371_v54  ;;  %vm2408_vm9 = vweird.f32 %v2371_v54  ;;  %v2346_v35 = vadd.f32 %v9173_v13, %v2257_v32  ;;  %v6990_v32 = vld [vmem:[#allocation2 + $0x28] sm:$0xf0] }
 0x6b0   : > { %v2390_v3 = vsub.f32 1.0, %v2389_v63  ;;  %v2415_v21 = vor.u32 1.1754944e-38, %v2414_v58  ;;  %vm2394_vm12 = vweird.f32 %v9188_v49  ;;  %v2399_v31 = vand.u32 2147483648, %v9182_v8  ;;  %v6904_v58 = vld [vmem:[#allocation2 + $0x18] sm:$0xf] }
 0x6b1   : > { %vm2413_vm11 = vcmp.eq.f32.partialorder %v2412_v28, 8.507059e+37  ;;  %vm2395_vm15 = vmor %vm2393_vm13, %vm2394_vm12 }
 0x6b2   : > { %v2391_v23 = vmul.f32 %v9188_v49, %v2390_v3  ;;  %2452 = vperm.xlu1 %8230, %v8497_v40   ;;  %v2400_v63 = vor.u32 1.1754944e-38, %v2399_v31  ;;  %v6896_v3 = vld [vmem:[#allocation2] sm:$0xf] }
 0x6b3   : > { %v8362_v5 = vpop.eup %8361 }
 0x6b4   : > { %v8364_v57 = vpop.eup %8363  ;;  %v2372_v27 = vadd.f32 1.0, %v8362_v5  ;;  %v2392_v25 = vadd.f32 %v9188_v49, %v2391_v23 }
 0x6b5   : > { %v2404_v44 = vmul.f32 %v8364_v57, %v2371_v54  ;;  %vm2409_vm8 = vweird.f32 %v8364_v57 }
 0x6b6   : > { %8365 = vrcp.f32 %v2372_v27  ;;  %vm2410_vm10 = vmor %vm2408_vm9, %vm2409_vm8  ;;  %v2429_v37 = vand.u32 2147483648, %v2372_v27  ;;  %v2427_v11 = vand.u32 2147483647, %v2372_v27  ;;  %vm2423_vm5 = vweird.f32 %v2372_v27 }
 0x6b7   : > { %v2405_v60 = vsub.f32 1.0, %v2404_v44  ;;  %8367 = vtanh.f32 %v2347_v26  ;;  %v2396_v24 = vsel %vm2395_vm15, %v9188_v49, %v2392_v25  ;;  %vm2398_vm8 = vcmp.eq.f32.partialorder %v2397_v42, 8.507059e+37  ;;  %v8012_v49 = vld [vmem:[%s8576_s25 + $0x2c8] sm:$0xff] }
 0x6b8   : > { %8369 = vtanh.f32 %v2348_v22  ;;  %v2430_v5 = vor.u32 1.1754944e-38, %v2429_v37  ;;  %vm2428_vm7 = vcmp.eq.f32.partialorder %v2427_v11, 8.507059e+37  ;;  %v2401_v51 = vsel %vm2398_vm8, %v2400_v63, %v2396_v24 }
 0x6b9   : > { %v2406_v47 = vmul.f32 %v8364_v57, %v2405_v60  ;;  %8371 = vtanh.f32 %v2346_v35  ;;  %v8020_v60 = vld [vmem:[#allocation2 + $0x8] sm:$0xf0] }
 0x6ba   : > { %v6897_v46 = vor.u32 %v8020_v60, %v6896_v3 }
 0x6bb   : > { %v2407_v55 = vadd.f32 %v8364_v57, %v2406_v47  ;;  %v8022_v47 = vld [vmem:[#allocation2 + $0x20] sm:$0xf0] }
 0x6bc   : > { %v8366_v1 = vpop.eup %8365  ;;  %2616 = vrot.lane.b32.xlu1 %v6897_v46, %s8522_s30  ;;  %v9226_v28 = vor.u32 %v8022_v47, %v6904_v58 }
 0x6bd   : > { %v2419_v56 = vmul.f32 %v8366_v1, %v2372_v27  ;;  %v2411_v15 = vsel %vm2410_vm10, %v8364_v57, %v2407_v55  ;;  %v8368_v19 = vpop.eup %8367  ;;  %vm2424_vm14 = vweird.f32 %v8366_v1 }
 0x6be   : > { %v2416_v9 = vsel %vm2413_vm11, %v2415_v21, %v2411_v15  ;;  %vm2425_vm6 = vmor %vm2423_vm5, %vm2424_vm14  ;;  %v8370_v38 = vpop.eup %8369  ;;  %2620 = vrot.lane.b32.xlu2 %v9226_v28, %s8522_s30 }
 0x6bf   : > { %v2420_v54 = vsub.f32 1.0, %v2419_v56  ;;  %v2435_v30 = vmul.f32 %v8368_v19, %v2416_v9  ;;  %v8372_v44 = vpop.eup %8371 }
 0x6c0   : > { %v2434_v48 = vmul.f32 %v8372_v44, %v2401_v51 }
 0x6c1   : > { %v2421_v62 = vmul.f32 %v8366_v1, %v2420_v54 }
 0x6c2   : > { %v2437_v27 = vpack.c.bf16 %v2434_v48, %v9191_v29 }
 0x6c3   : > { %v2422_v13 = vadd.f32 %v8366_v1, %v2421_v62 }
 0x6c5   : > { %v2426_v57 = vsel %vm2425_vm6, %v8366_v1, %v2422_v13  ;;  %v8039_v1 = vld [vmem:[#allocation2 + $0x20] sm:$0xf] }
 0x6c6   : > { %v2431_v26 = vsel %vm2428_vm7, %v2430_v5, %v2426_v57  ;;  %v6993_v22 = vor.u32 %v8039_v1, %v6990_v32  ;;  %v2560_v1 = vld [vmem:[%s8571_s22] sm:$0xff]  ;;  %v2561_v32 = vld [vmem:[%s8571_s22 + $0x8] sm:$0xff] }
 0x6c7   : > { %v2436_v7 = vmul.f32 %v8370_v38, %v2431_v26  ;;  %v8532_v38 = vmov 3   ;;  %v8013_v26 = vld [vmem:[%s8576_s25 + $0x2d0] sm:$0xff] }
 0x6c8   : > { %2953 = vrot.lane.b32.xlu1 %v6993_v22, %s8524_s10  ;;  %8234 = vset.pattern.permute.xlu2 %v8532_v38 }
 0x6c9   : > { %v2438_v8 = vpack.c.bf16 %v2436_v7, %v2435_v30  ;;  %8233 = vset.pattern.permute.xlu1 %v8532_v38  ;;  %8232 = vset.pattern.permute.xlu0 %v8532_v38 }
 0x6cb   : > { %2517 = vmatpush.bf16.msra.mxu1 %v2438_v8 }
 0x6cf   : > { %2518 = vmatpush.bf16.msra.mxu1 %v2437_v27 }
 0x6d2   : > { %6874 = vmatmul.msk.bf16.vlgmr.msra.gmra.mxu1 %vm392_vm1, %v8011_v39 }
 0x6e2   : > { %6875 = vmatmul.msk.bf16.gmra.mxu1 %vm392_vm1, %v8012_v49 }
 0x6f0   : > { %v2449_v18 = vpop.permute.xlu2 %2448 }
 0x6f2   : > { %6876 = vmatmul.msk.bf16.gmra.mxu1 %vm392_vm1, %v8013_v26 }
 0x70b   : > { %v2457_v30 = vpop.permute.xlu0 %2456 }
 0x71c   : > { %v2461_v29 = vpop.permute.xlu1 %2460 }
 0x724   : > { %v2453_v56 = vpop.permute.xlu1 %2452 }
 0x74f   : > { %v2520_v55 = vpop.f32.mrf.mxu1 }
 0x750   : > { %v2521_v23 = vadd.f32 %v2520_v55, %v2449_v18  ;;  %v8037_v18 = vld [vmem:[#allocation2 + $0x8] sm:$0xf]  ;;  %v6982_v55 = vld [vmem:[#allocation2 + $0x10] sm:$0xf0] }
 0x752   : > { %v2540_v21 = vadd.f32 %v2521_v23, %v9029_v12  ;;  %v6985_v23 = vor.u32 %v8037_v18, %v6982_v55  ;;  %v8041_v18 = vld [vmem:[%s8576_s25 + $0x260] sm:$0xff]  ;;  %v8036_v55 = vld [vmem:[%s8576_s25 + $0x258] sm:$0xff] }
 0x754   : > { %v2544_v40 = vmul.f32 %v9026_v53, %v2540_v21  ;;  %v8498_v21 = vld [vmem:[%s8571_s22 + $0x38] sm:$0xff] }
 0x756   : > { %v2552_v15 = vpack.c.bf16 %v2544_v40, %v2544_v40  ;;  %v8499_v40 = vld [vmem:[%s8571_s22 + $0x30] sm:$0xff] }
 0x757   : > { %v2522_v19 = vpop.f32.mrf.mxu1 }
 0x758   : > { %2556 = vst [vmem:[#allocation2 + $0x4] sm:$0xf] %v2552_v15  ;;  %v2523_v35 = vadd.f32 %v2522_v19, %v2453_v56  ;;  %v8500_v56 = vld [vmem:[%s8571_s22 + $0x20] sm:$0xff]  ;;  %v8501_v15 = vld [vmem:[%s8571_s22 + $0x28] sm:$0xff]  ;;  %v8533_v19 = vmov 7  }
 0x75a   : > { %v2541_v9 = vadd.f32 %v2523_v35, %v9035_v45 }
 0x75c   : > { %v2545_v54 = vmul.f32 %v9026_v53, %v2541_v9 }
 0x75e   : > { %v2553_v25 = vpack.c.bf16 %v2545_v54, %v2545_v54  ;;  %v8027_v54 = vld [vmem:[%s8576_s25 + $0x220] sm:$0xff] }
 0x75f   : > { %v2525_v37 = vpop.f32.mrf.mxu1  ;;  %v8019_v13 = vld [vmem:[#allocation2 + $0x4] sm:$0xf] }
 0x760   : > { %2557 = vst [vmem:[#allocation2 + $0x10] sm:$0xf] %v2553_v25  ;;  %v2526_v31 = vadd.f32 %v2525_v37, %v2457_v30  ;;  %v6952_v27 = vld [vmem:[#allocation2 + $0x4] sm:$0xf] }
 0x761   : > { %v6980_v58 = vld [vmem:[#allocation2 + $0x4] sm:$0xf] }
 0x762   : > { %v2542_v12 = vadd.f32 %v2526_v31, %v9041_v61  ;;  %v8015_v31 = vld [vmem:[%s8576_s25 + $0x1e0] sm:$0xff] }
 0x764   : > { %v2546_v62 = vmul.f32 %v9026_v53, %v2542_v12 }
 0x766   : > { %v2554_v11 = vpack.c.bf16 %v2546_v62, %v2546_v62 }
 0x767   : > { %v2527_v42 = vpop.f32.mrf.mxu1  ;;  %v6898_v24 = vld [vmem:[#allocation2 + $0xc] sm:$0xf0] }
 0x768   : > { %2558 = vst [vmem:[#allocation2 + $0x1c] sm:$0xf] %v2554_v11  ;;  %v2528_v5 = vadd.f32 %v2527_v42, %v2461_v29  ;;  %v6901_v63 = vor.u32 %v8019_v13, %v6898_v24  ;;  %v8031_v48 = vld [vmem:[#allocation2 + $0xc] sm:$0xf0]  ;;  %v8014_v29 = vld [vmem:[%s8576_s25 + $0x2d8] sm:$0xff]  ;;  %v8028_v24 = vld [vmem:[%s8576_s25 + $0x228] sm:$0xff] }
 0x769   : > { %v6953_v39 = vor.u32 %v8031_v48, %v6952_v27  ;;  %v8038_v3 = vld [vmem:[#allocation2 + $0xc] sm:$0xf0]  ;;  %6877 = vmatmul.msk.bf16.gmra.mxu1 %vm392_vm1, %v8014_v29  ;;  %v8026_v29 = vld [vmem:[%s8576_s25 + $0x218] sm:$0xff] }
 0x76a   : > { %v2543_v45 = vadd.f32 %v2528_v5, %v9049_v36  ;;  %2618 = vrot.lane.b32.xlu2 %v6901_v63, %s8522_s30  ;;  %v6981_v47 = vor.u32 %v8038_v3, %v6980_v58  ;;  %v8030_v3 = vld [vmem:[%s8576_s25 + $0x238] sm:$0xff] }
 0x76b   : > { %v8018_v58 = vld [vmem:[%s8576_s25 + $0x1f8] sm:$0xff] }
 0x76c   : > { %v2547_v57 = vmul.f32 %v9026_v53, %v2543_v45  ;;  %v8023_v45 = vld [vmem:[%s8576_s25 + $0x200] sm:$0xff] }
 0x76e   : > { %v2555_v61 = vpack.c.bf16 %v2547_v57, %v2547_v57 }
 0x76f   : > { %v6956_v51 = vld [vmem:[#allocation2 + $0x1c] sm:$0xf] }
 0x770   : > { %2559 = vst [vmem:[#allocation2 + $0x28] sm:$0xf] %v2555_v61  ;;  %v8021_v7 = vld [vmem:[#allocation2 + $0x1c] sm:$0xf]  ;;  %v8016_v61 = vld [vmem:[%s8576_s25 + $0x1e8] sm:$0xff] }
 0x771   : > { %v6988_v60 = vld [vmem:[#allocation2 + $0x1c] sm:$0xf] }
 0x772   : > { %2745 = vrot.lane.b32.xlu2 %v6897_v46, %s8523_s7 }
 0x777   : > { %v8032_v36 = vld [vmem:[#allocation2 + $0x24] sm:$0xf0] }
 0x778   : > { %v6906_v44 = vld [vmem:[#allocation2 + $0x24] sm:$0xf0]  ;;  %v6957_v8 = vor.u32 %v8032_v36, %v6956_v51 }
 0x779   : > { %v6909_v53 = vor.u32 %v8021_v7, %v6906_v44  ;;  %v8040_v49 = vld [vmem:[#allocation2 + $0x24] sm:$0xf0]  ;;  %v8029_v44 = vld [vmem:[%s8576_s25 + $0x230] sm:$0xff] }
 0x77a   : > { %2868 = vmatpush.bf16.msrb.mxu0 %v6957_v8  ;;  %3042 = vrot.lane.b32.xlu2 %v6993_v22, %s8525_s11  ;;  %v6989_v46 = vor.u32 %v8040_v49, %v6988_v60  ;;  %v2563_v22 = vld [vmem:[%s8571_s22 + $0x18] sm:$0xff]  ;;  %v8017_v49 = vld [vmem:[%s8576_s25 + $0x1f0] sm:$0xff]  ;;  %v8034_v60 = vld [vmem:[%s8576_s25 + $0x248] sm:$0xff] }
 0x77b   : > { %2751 = vrot.lane.b32.xlu1 %v6909_v53, %s8523_s7  ;;  %2622 = vrot.lane.b32.xlu0 %v6909_v53, %s8522_s30  ;;  %v8033_v53 = vld [vmem:[%s8576_s25 + $0x240] sm:$0xff] }
 0x77e   : > { %2869 = vmatpush.bf16.msrb.mxu0 %v6953_v39  ;;  %v8024_v39 = vld [vmem:[%s8576_s25 + $0x208] sm:$0xff] }
 0x781   : > { %6958 = vmatmul.msk.bf16.vlgmr.msrb.gmra.mxu0 %vm392_vm1, %v8027_v54 }
 0x782   : > { %3036 = vrot.lane.b32.xlu2 %v6981_v47, %s8525_s11 }
 0x783   : > { %3040 = vrot.lane.b32.xlu1 %v6989_v46, %s8525_s11  ;;  %2749 = vrot.lane.b32.xlu0 %v9226_v28, %s8523_s7  ;;  %v2562_v28 = vld [vmem:[%s8571_s22 + $0x10] sm:$0xff] }
 0x78a   : > { %2949 = vrot.lane.b32.xlu2 %v6985_v23, %s8524_s10 }
 0x78b   : > { %2947 = vrot.lane.b32.xlu1 %v6981_v47, %s8524_s10  ;;  %2747 = vrot.lane.b32.xlu0 %v6901_v63, %s8523_s7  ;;  %v8035_v47 = vld [vmem:[%s8576_s25 + $0x250] sm:$0xff] }
 0x791   : > { %6959 = vmatmul.msk.bf16.gmra.mxu0 %vm392_vm1, %v8028_v24 }
 0x792   : > { %2691 = vperm.xlu2 %8234, %v9089_v2  }
 0x793   : > { %2706 = vperm.xlu1 %8233, %v9069_v52   ;;  %2951 = vrot.lane.b32.xlu0 %v6989_v46, %s8524_s10  ;;  %v8025_v46 = vld [vmem:[%s8576_s25 + $0x210] sm:$0xff] }
 0x79a   : > { %2681 = vperm.xlu2 %8234, %v2562_v28  }
 0x79b   : > { %2696 = vperm.xlu1 %8233, %v9076_v17   ;;  %3038 = vrot.lane.b32.xlu0 %v6985_v23, %s8525_s11  ;;  %v8042_v23 = vld [vmem:[%s8576_s25 + $0x268] sm:$0xff] }
 0x7a1   : > { %6960 = vmatmul.msk.bf16.gmra.mxu0 %vm392_vm1, %v8029_v44 }
 0x7a2   : > { %2676 = vperm.xlu2 %8234, %v2561_v32  }
 0x7a3   : > { %2671 = vperm.xlu1 %8233, %v2560_v1   ;;  %2701 = vperm.xlu0 %8232, %v9086_v10  }
 0x7aa   : > { %8237 = vset.pattern.permute.xlu2 %v8529_v41 }
 0x7ab   : > { %8236 = vset.pattern.permute.xlu1 %v8527_v14  ;;  %2686 = vperm.xlu0 %8232, %v2563_v22  }
 0x7ac   : > { %988 = vperm.xlu1 %8236, %v8498_v21   ;;  %1728 = vperm.xlu2 %8237, %v8499_v40  }
 0x7b1   : > { %6961 = vmatmul.msk.bf16.gmra.mxu0 %vm392_vm1, %v8030_v3 }
 0x7b3   : > { %8235 = vset.pattern.permute.xlu0 %v8527_v14 }
 0x7b4   : > { %8238 = vset.pattern.permute.xlu1 %v8529_v41  ;;  %984 = vperm.xlu0 %8235, %v8499_v40  }
 0x7b5   : > { %8239 = vset.pattern.permute.xlu2 %v8531_v59  ;;  %1732 = vperm.xlu1 %8238, %v8498_v21  }
 0x7b6   : > { %2472 = vperm.xlu2 %8239, %v9086_v10   ;;  %v2617_v10 = vpop.permute.xlu1 %2616 }
 0x7bc   : > { %8240 = vset.pattern.permute.xlu0 %v8531_v59 }
 0x7bd   : > { %8241 = vset.pattern.permute.xlu1 %v8527_v14  ;;  %2476 = vperm.xlu0 %8240, %v9069_v52   ;;  %v2621_v52 = vpop.permute.xlu2 %2620 }
 0x7be   : > { %8242 = vset.pattern.permute.xlu2 %v8527_v14  ;;  %976 = vperm.xlu1 %8241, %v8500_v56   ;;  %v2954_v9 = vpop.permute.xlu1 %2953 }
 0x7bf   : > { %980 = vperm.xlu2 %8242, %v8501_v15  }
 0x7c5   : > { %8245 = vset.pattern.permute.xlu0 %v8533_v19  ;;  %v2619_v35 = vpop.permute.xlu2 %2618 }
 0x7c6   : > { %8243 = vset.pattern.permute.xlu1 %v8529_v41  ;;  %3203 = vperm.xlu0 %8245, %v2562_v28   ;;  %v8043_v28 = vld [vmem:[%s8576_s25 + $0x270] sm:$0xff] }
 0x7c7   : > { %8244 = vset.pattern.permute.xlu2 %v8529_v41  ;;  %1720 = vperm.xlu1 %8243, %v8500_v56  }
 0x7c8   : > { %1724 = vperm.xlu2 %8244, %v8501_v15  }
 0x7ce   : > { %3198 = vperm.xlu0 %8245, %v2561_v32   ;;  %v9340_v32 = vpop.f32.mrf.mxu1 }
 0x7cf   : > { %8246 = vset.pattern.permute.xlu1 %v8533_v19 }
 0x7d0   : > { %3208 = vperm.xlu1 %8246, %v2563_v22   ;;  %8247 = vset.pattern.permute.xlu2 %v8531_v59 }
 0x7d1   : > { %2464 = vperm.xlu2 %8247, %v9089_v2   ;;  %v2746_v2 = vpop.permute.xlu2 %2745 }
 0x7d6   : > { %8252 = vset.pattern.permute.xlu0 %v8520_v4  ;;  %v9343_v22 = vpop.f32.mrf.mxu1 }
 0x7d8   : > { %8248 = vset.pattern.permute.xlu1 %v8531_v59 }
 0x7d9   : > { %2468 = vperm.xlu1 %8248, %v9076_v17   ;;  %8249 = vset.pattern.permute.xlu2 %v8533_v19  ;;  %v2624_v17 = vsel %vm387_vm0, %v2617_v10, %v2619_v35  ;;  %v3043_v12 = vpop.permute.xlu2 %3042 }
 0x7da   : > { %3193 = vperm.xlu2 %8249, %v2560_v1   ;;  %v8044_v1 = vld [vmem:[%s8576_s25 + $0x278] sm:$0xff] }
 0x7e1   : > { %v3037_v57 = vpop.permute.xlu2 %3036 }
 0x7e2   : > { %8251 = vset.pattern.permute.xlu2 %v8520_v4 }
 0x7e6   : > { %v9347_v40 = vpop.f32.mrf.mxu1 }
 0x7e9   : > { %v2950_v7 = vpop.permute.xlu2 %2949 }
 0x7ed   : > { %v2752_v30 = vpop.permute.xlu1 %2751  ;;  %v2623_v25 = vpop.permute.xlu0 %2622 }
 0x7ee   : > { %v2625_v37 = vsel %vm387_vm0, %v2621_v52, %v2623_v25  ;;  %v9351_v35 = vpop.f32.mrf.mxu1 }
 0x7ef   : > { %2646 = vmatpush.bf16.msra.mxu2 %v2625_v37 }
 0x7f3   : > { %2647 = vmatpush.bf16.msra.mxu2 %v2624_v17 }
 0x7f5   : > { %v3041_v62 = vpop.permute.xlu1 %3040  ;;  %v2750_v42 = vpop.permute.xlu0 %2749 }
 0x7f6   : > { %v3045_v11 = vsel %vm811_vm4, %v3041_v62, %v3043_v12  ;;  %v2754_v13 = vsel %vm518_vm3, %v2750_v42, %v2752_v30  ;;  %6910 = vmatmul.msk.bf16.vlgmr.msra.gmra.mxu2 %vm392_vm1, %v8015_v31 }
 0x7f7   : > { %2775 = vmatpush.bf16.msra.mxu3 %v2754_v13  ;;  %3066 = vmatpush.bf16.msrb.mxu2 %v3045_v11 }
 0x7fd   : > { %v2748_v5 = vpop.permute.xlu0 %2747  ;;  %v2948_v36 = vpop.permute.xlu1 %2947 }
 0x7fe   : > { %v2753_v63 = vsel %vm518_vm3, %v2746_v2, %v2748_v5  ;;  %v2955_v8 = vsel %vm721_vm2, %v2948_v36, %v2950_v7  ;;  %v2871_v2 = vpop.f32.mrf.mxu0 }
 0x7ff   : > { %2776 = vmatpush.bf16.msra.mxu3 %v2753_v63 }
 0x802   : > { %6930 = vmatmul.msk.bf16.vlgmr.msra.gmra.mxu3 %vm392_vm1, %v8023_v45 }
 0x805   : > { %v2952_v26 = vpop.permute.xlu0 %2951  ;;  %v9345_v21 = vpop.permute.xlu1 %2706 }
 0x806   : > { %v2956_v51 = vsel %vm721_vm2, %v2952_v26, %v2954_v9  ;;  %6911 = vmatmul.msk.bf16.gmra.mxu2 %vm392_vm1, %v8016_v61  ;;  %v9359_v24 = vpop.f32.mrf.mxu0 }
 0x807   : > { %2977 = vmatpush.bf16.msrb.mxu1 %v2956_v51 }
 0x80b   : > { %2978 = vmatpush.bf16.msrb.mxu1 %v2955_v8 }
 0x80d   : > { %v3039_v48 = vpop.permute.xlu0 %3038  ;;  %v2697_v56 = vpop.permute.xlu1 %2696 }
 0x80e   : > { %6994 = vmatmul.msk.bf16.vlgmr.msrb.gmra.mxu1 %vm392_vm1, %v8033_v53  ;;  %v3044_v27 = vsel %vm811_vm4, %v3037_v57, %v3039_v48  ;;  %v9365_v57 = vpop.f32.mrf.mxu0 }
 0x80f   : > { %3067 = vmatpush.bf16.msrb.mxu2 %v3044_v27 }
 0x812   : > { %6931 = vmatmul.msk.bf16.gmra.mxu3 %vm392_vm1, %v8024_v39  ;;  %v2692_v39 = vpop.permute.xlu2 %2691 }
 0x815   : > { %v2672_v10 = vpop.permute.xlu1 %2671 }
 0x816   : > { %6912 = vmatmul.msk.bf16.gmra.mxu2 %vm392_vm1, %v8017_v49  ;;  %v9373_v44 = vpop.f32.mrf.mxu0 }
 0x81e   : > { %6995 = vmatmul.msk.bf16.gmra.mxu1 %vm392_vm1, %v8034_v60  ;;  %v2881_v27 = vpop.f32.mrf.mxu0 }
 0x822   : > { %6932 = vmatmul.msk.bf16.gmra.mxu3 %vm392_vm1, %v8025_v46 }
 0x826   : > { %6913 = vmatmul.msk.bf16.gmra.mxu2 %vm392_vm1, %v8018_v58 }
 0x82e   : > { %6996 = vmatmul.msk.bf16.gmra.mxu1 %vm392_vm1, %v8035_v47 }
 0x832   : > { %6933 = vmatmul.msk.bf16.gmra.mxu3 %vm392_vm1, %v8026_v29  ;;  %v2883_v29 = vpop.f32.mrf.mxu0 }
 0x836   : > { %7014 = vmatmul.msk.bf16.vlgmr.msrb.gmra.mxu2 %vm392_vm1, %v8041_v18 }
 0x83e   : > { %6997 = vmatmul.msk.bf16.gmra.mxu1 %vm392_vm1, %v8036_v55 }
 0x846   : > { %7015 = vmatmul.msk.bf16.gmra.mxu2 %vm392_vm1, %v8042_v23 }
 0x856   : > { %7016 = vmatmul.msk.bf16.gmra.mxu2 %vm392_vm1, %v8043_v28 }
 0x866   : > { %7017 = vmatmul.msk.bf16.gmra.mxu2 %vm392_vm1, %v8044_v1 }
 0x879   : > { %v2649_v15 = vpop.f32.mrf.mxu2 }
 0x87a   : > { %v2709_v9 = vadd.f32 %v2672_v10, %v2649_v15 }
 0x881   : > { %v9349_v52 = vpop.f32.mrf.mxu2 }
 0x885   : > { %v2778_v54 = vpop.f32.mrf.mxu3 }
 0x886   : > { %v2798_v30 = vadd.f32 %v2778_v54, %v2709_v9 }
 0x888   : > { %v2891_v25 = vadd.f32 %v2871_v2, %v2798_v30  ;;  %v2702_v2 = vpop.permute.xlu0 %2701 }
 0x889   : > { %v9353_v37 = vpop.f32.mrf.mxu2 }
 0x88b   : > { %v2980_v17 = vpop.f32.mrf.mxu1 }
 0x88c   : > { %v3000_v31 = vadd.f32 %v2980_v17, %v2891_v25  ;;  %v2886_v17 = vpop.f32.mrf.mxu0 }
 0x88d   : > { %v9357_v13 = vpop.f32.mrf.mxu3 }
 0x891   : > { %v9355_v12 = vpop.f32.mrf.mxu2 }
 0x893   : > { %v9361_v5 = vpop.f32.mrf.mxu1 }
 0x895   : > { %v9363_v45 = vpop.f32.mrf.mxu3 }
 0x899   : > { %v2659_v62 = vpop.f32.mrf.mxu2 }
 0x89a   : > { %v2713_v3 = vadd.f32 %v2692_v39, %v2659_v62 }
 0x89b   : > { %v9367_v51 = vpop.f32.mrf.mxu1 }
 0x89d   : > { %v9369_v36 = vpop.f32.mrf.mxu3 }
 0x8a1   : > { %v2661_v11 = vpop.f32.mrf.mxu2 }
 0x8a2   : > { %v2714_v18 = vadd.f32 %v2697_v56, %v2661_v11 }
 0x8a3   : > { %v9375_v8 = vpop.f32.mrf.mxu1 }
 0x8a5   : > { %v2788_v53 = vpop.f32.mrf.mxu3 }
 0x8a6   : > { %v2802_v46 = vadd.f32 %v2788_v53, %v2713_v3 }
 0x8a8   : > { %v2895_v47 = vadd.f32 %v2881_v27, %v2802_v46 }
 0x8a9   : > { %v2664_v42 = vpop.f32.mrf.mxu2 }
 0x8aa   : > { %v2715_v30 = vadd.f32 %v2702_v2, %v2664_v42  ;;  %v2888_v42 = vpop.f32.mrf.mxu0 }
 0x8ab   : > { %v2990_v49 = vpop.f32.mrf.mxu1 }
 0x8ac   : > { %v3004_v55 = vadd.f32 %v2990_v49, %v2895_v47 }
 0x8ad   : > { %v2790_v58 = vpop.f32.mrf.mxu3 }
 0x8ae   : > { %v2803_v1 = vadd.f32 %v2790_v58, %v2714_v18 }
 0x8b0   : > { %v2896_v54 = vadd.f32 %v2883_v29, %v2803_v1 }
 0x8b1   : > { %v2666_v63 = vpop.f32.mrf.mxu2 }
 0x8b2   : > { %v2716_v3 = vadd.f32 %v9345_v21, %v2666_v63 }
 0x8b3   : > { %v2992_v23 = vpop.f32.mrf.mxu1 }
 0x8b4   : > { %v3005_v25 = vadd.f32 %v2992_v23, %v2896_v54 }
 0x8b5   : > { %v2793_v9 = vpop.f32.mrf.mxu3 }
 0x8b6   : > { %v2804_v62 = vadd.f32 %v2793_v9, %v2715_v30  ;;  %v2682_v30 = vpop.permute.xlu2 %2681 }
 0x8b8   : > { %v2897_v11 = vadd.f32 %v2886_v17, %v2804_v62  ;;  %v2711_v17 = vadd.f32 %v2682_v30, %v9353_v37 }
 0x8b9   : > { %v3069_v61 = vpop.f32.mrf.mxu2 }
 0x8ba   : > { %v3089_v26 = vadd.f32 %v3069_v61, %v3000_v31 }
 0x8bb   : > { %v2995_v53 = vpop.f32.mrf.mxu1 }
 0x8bc   : > { %v3006_v46 = vadd.f32 %v2995_v53, %v2897_v11 }
 0x8bd   : > { %v2795_v49 = vpop.f32.mrf.mxu3 }
 0x8be   : > { %v2805_v47 = vadd.f32 %v2795_v49, %v2716_v3 }
 0x8c0   : > { %v2898_v1 = vadd.f32 %v2888_v42, %v2805_v47  ;;  %v2687_v47 = vpop.permute.xlu0 %2686  ;;  %v2677_v42 = vpop.permute.xlu2 %2676 }
 0x8c1   : > { %v9371_v7 = vpop.f32.mrf.mxu2 }
 0x8c9   : > { %v9377_v48 = vpop.f32.mrf.mxu2 }
 0x8d1   : > { %v9379_v60 = vpop.f32.mrf.mxu2 }
 0x8d9   : > { %v3079_v28 = vpop.f32.mrf.mxu2 }
 0x8da   : > { %v3093_v15 = vadd.f32 %v3079_v28, %v3004_v55  ;;  %v2997_v28 = vpop.f32.mrf.mxu1 }
 0x8db   : > { %v3007_v9 = vadd.f32 %v2997_v28, %v2898_v1 }
 0x8dc   : > { %v7018_v10 = vmul.f32 -1.442695, %v3093_v15 }
 0x8de   : > { %8373 = vpow2.f32 %v7018_v10 }
 0x8e1   : > { %v3081_v31 = vpop.f32.mrf.mxu2 }
 0x8e2   : > { %v3094_v61 = vadd.f32 %v3081_v31, %v3005_v25 }
 0x8e4   : > { %v8374_v27 = vpop.eup %8373  ;;  %v7019_v39 = vmul.f32 -1.442695, %v3094_v61 }
 0x8e5   : > { %v3113_v56 = vadd.f32 1.0, %v8374_v27  ;;  %v2800_v27 = vadd.f32 %v9363_v45, %v2711_v17 }
 0x8e6   : > { %8375 = vpow2.f32 %v7019_v39 }
 0x8e7   : > { %8377 = vrcp.f32 %v3113_v56  ;;  %v3128_v25 = vand.u32 2147483648, %v3113_v56  ;;  %v3126_v31 = vand.u32 2147483647, %v3113_v56  ;;  %vm3122_vm10 = vweird.f32 %v3113_v56 }
 0x8e8   : > { %v2893_v37 = vadd.f32 %v9365_v57, %v2800_v27 }
 0x8e9   : > { %v3084_v58 = vpop.f32.mrf.mxu2  ;;  %v3129_v11 = vor.u32 1.1754944e-38, %v3128_v25  ;;  %vm3127_vm12 = vcmp.eq.f32.partialorder %v3126_v31, 8.507059e+37 }
 0x8ea   : > { %v3095_v29 = vadd.f32 %v3084_v58, %v3006_v46  ;;  %v3002_v45 = vadd.f32 %v9367_v51, %v2893_v37 }
 0x8ec   : > { %v8376_v18 = vpop.eup %8375  ;;  %v7020_v55 = vmul.f32 -1.442695, %v3095_v29  ;;  %v3091_v1 = vadd.f32 %v9377_v48, %v3002_v45 }
 0x8ed   : > { %v8378_v23 = vpop.eup %8377  ;;  %v9382_v10 = vadd.f32 1.0, %v8376_v18 }
 0x8ee   : > { %v3118_v15 = vmul.f32 %v8378_v23, %v3113_v56  ;;  %8379 = vpow2.f32 %v7020_v55  ;;  %vm3123_vm9 = vweird.f32 %v8378_v23  ;;  %v2712_v56 = vadd.f32 %v2687_v47, %v9355_v12 }
 0x8ef   : > { %8381 = vtanh.f32 %v3089_v26  ;;  %vm3124_vm11 = vmor %vm3122_vm10, %vm3123_vm9  ;;  %vm3137_vm7 = vweird.f32 %v9382_v10 }
 0x8f0   : > { %v3119_v54 = vsub.f32 1.0, %v3118_v15  ;;  %8383 = vrcp.f32 %v9382_v10  ;;  %v2801_v28 = vadd.f32 %v9369_v36, %v2712_v56 }
 0x8f1   : > { %v3086_v2 = vpop.f32.mrf.mxu2 }
 0x8f2   : > { %v3096_v21 = vadd.f32 %v3086_v2, %v3007_v9  ;;  %v3120_v63 = vmul.f32 %v8378_v23, %v3119_v54  ;;  %v2894_v51 = vadd.f32 %v9373_v44, %v2801_v28 }
 0x8f4   : > { %v8380_v62 = vpop.eup %8379  ;;  %v7021_v61 = vmul.f32 -1.442695, %v3096_v21  ;;  %v3121_v53 = vadd.f32 %v8378_v23, %v3120_v63  ;;  %v3003_v36 = vadd.f32 %v9375_v8, %v2894_v51  ;;  %v985_v51 = vpop.permute.xlu0 %984 }
 0x8f5   : > { %v3115_v39 = vadd.f32 1.0, %v8380_v62  ;;  %v8382_v49 = vpop.eup %8381 }
 0x8f6   : > { %8385 = vpow2.f32 %v7021_v61  ;;  %v3125_v26 = vsel %vm3124_vm11, %v8378_v23, %v3121_v53  ;;  %v9387_v46 = vpop.eup %8383  ;;  %v2710_v23 = vadd.f32 %v2677_v42, %v9349_v52  ;;  %v3092_v17 = vadd.f32 %v9379_v60, %v3003_v36 }
 0x8f7   : > { %8387 = vrcp.f32 %v3115_v39  ;;  %v3130_v3 = vsel %vm3127_vm12, %v3129_v11, %v3125_v26  ;;  %v3133_v18 = vmul.f32 %v9387_v46, %v9382_v10  ;;  %v3158_v2 = vand.u32 2147483648, %v3115_v39 }
 0x8f8   : > { %v9390_v58 = vmul.f32 %v8382_v49, %v3130_v3  ;;  %v2799_v9 = vadd.f32 %v9357_v13, %v2710_v23  ;;  %v3156_v21 = vand.u32 2147483647, %v3115_v39  ;;  %vm3152_vm14 = vweird.f32 %v3115_v39 }
 0x8f9   : > { %v3134_v12 = vsub.f32 1.0, %v3133_v18  ;;  %v3159_v44 = vor.u32 1.1754944e-38, %v3158_v2  ;;  %vm3138_vm6 = vweird.f32 %v9387_v46  ;;  %v3141_v49 = vand.u32 2147483647, %v9382_v10 }
 0x8fa   : > { %v2892_v52 = vadd.f32 %v9359_v24, %v2799_v9  ;;  %vm3157_vm5 = vcmp.eq.f32.partialorder %v3156_v21, 8.507059e+37  ;;  %vm3139_vm9 = vmor %vm3137_vm7, %vm3138_vm6  ;;  %v10272_v21 = vmov 9  }
 0x8fb   : > { %v3135_v63 = vmul.f32 %v9387_v46, %v3134_v12  ;;  %8250 = vset.pattern.permute.xlu1 %v10272_v21 }
 0x8fc   : > { %v8386_v29 = vpop.eup %8385  ;;  %v3001_v13 = vadd.f32 %v9361_v5, %v2892_v52  ;;  %v3143_v5 = vand.u32 2147483648, %v9382_v10  ;;  %v2477_v36 = vpop.permute.xlu0 %2476 }
 0x8fd   : > { %v8388_v55 = vpop.eup %8387  ;;  %v3116_v57 = vadd.f32 1.0, %v8386_v29 }
 0x8fe   : > { %v3148_v15 = vmul.f32 %v8388_v55, %v3115_v39  ;;  %vm3153_vm13 = vweird.f32 %v8388_v55  ;;  %v3090_v53 = vadd.f32 %v9371_v7, %v3001_v13  ;;  %v3136_v39 = vadd.f32 %v9387_v46, %v3135_v63 }
 0x8ff   : > { %8389 = vrcp.f32 %v3116_v57  ;;  %vm3154_vm15 = vmor %vm3152_vm14, %vm3153_vm13  ;;  %v3173_v26 = vand.u32 2147483648, %v3116_v57  ;;  %v3171_v11 = vand.u32 2147483647, %v3116_v57  ;;  %vm3167_vm10 = vweird.f32 %v3116_v57 }
 0x900   : > { %v3149_v54 = vsub.f32 1.0, %v3148_v15  ;;  %8391 = vtanh.f32 %v3091_v1  ;;  %v3140_v3 = vsel %vm3139_vm9, %v9387_v46, %v3136_v39  ;;  %v3144_v47 = vor.u32 1.1754944e-38, %v3143_v5  ;;  %v8045_v46 = vld [vmem:[%s8576_s25 + $0x2e0] sm:$0xff]  ;;  %v8046_v1 = vld [vmem:[%s8576_s25 + $0x2e8] sm:$0xff]  ;;  %v1729_v15 = vpop.permute.xlu2 %1728 }
 0x901   : > { %8393 = vtanh.f32 %v3092_v17  ;;  %v3174_v37 = vor.u32 1.1754944e-38, %v3173_v26  ;;  %vm3172_vm12 = vcmp.eq.f32.partialorder %v3171_v11, 8.507059e+37  ;;  %vm3142_vm13 = vcmp.eq.f32.partialorder %v3141_v49, 8.507059e+37  ;;  %v9422_v17 = vld [vmem:[%s8571_s22 + $0x50] sm:$0xff] }
 0x902   : > { %v3150_v30 = vmul.f32 %v8388_v55, %v3149_v54  ;;  %8395 = vtanh.f32 %v3090_v53  ;;  %v3145_v42 = vsel %vm3142_vm13, %v3144_v47, %v3140_v3  ;;  %v10274_v63 = vmov 11   ;;  %3302 = vperm.xlu2 %8251, %v9422_v17   ;;  %v9432_v53 = vld [vmem:[%s8571_s22 + $0x40] sm:$0xff] }
 0x904   : > { %v3151_v48 = vadd.f32 %v8388_v55, %v3150_v30  ;;  %v3257_v30 = vld [vmem:[%s8571_s22] sm:$0x3] }
 0x905   : > { %v8390_v25 = vpop.eup %8389  ;;  %3260 = vperm.xlu1 %8250, %v3257_v30   ;;  %v8054_v30 = vld [vmem:[#allocation2 + $0x20] sm:$0xf0] }
 0x906   : > { %v3163_v31 = vmul.f32 %v8390_v25, %v3116_v57  ;;  %v3155_v62 = vsel %vm3154_vm15, %v8388_v55, %v3151_v48  ;;  %v8392_v61 = vpop.eup %8391  ;;  %vm3168_vm8 = vweird.f32 %v8390_v25  ;;  %v989_v57 = vpop.permute.xlu1 %988 }
 0x907   : > { %v3160_v24 = vsel %vm3157_vm5, %v3159_v44, %v3155_v62  ;;  %vm3169_vm11 = vmor %vm3167_vm10, %vm3168_vm8  ;;  %v8394_v45 = vpop.eup %8393  ;;  %v9425_v44 = vld [vmem:[%s8571_s22 + $0x58] sm:$0xff]  ;;  %v1050_v11 = vadd.f32 %v8939_v16, %v989_v57 }
 0x908   : > { %v3164_v27 = vsub.f32 1.0, %v3163_v31  ;;  %v3179_v8 = vmul.f32 %v8392_v61, %v3160_v24  ;;  %v8396_v55 = vpop.eup %8395  ;;  %v2473_v12 = vpop.permute.xlu2 %2472  ;;  %3307 = vperm.xlu0 %8252, %v9425_v44   ;;  %v1048_v61 = vadd.f32 %v8935_v0, %v985_v51  ;;  %v3256_v51 = vld [vmem:[%s8576_s25 + $0x2f0] sm:$0x1] }
 0x909   : > { %v3178_v23 = vmul.f32 %v8396_v55, %v3145_v42  ;;  %v3204_v31 = vpop.permute.xlu0 %3203  ;;  %v2536_v0 = vadd.f32 %v9347_v40, %v2473_v12  ;;  %v9452_v42 = vld [vmem:[%s8571_s22 + $0x48] sm:$0xff] }
 0x90a   : > { %v3165_v60 = vmul.f32 %v8390_v25, %v3164_v27  ;;  %v1792_v27 = vadd.f32 %v9147_v34, %v1729_v15  ;;  %8254 = vset.pattern.permute.xlu2 %v10274_v63 }
 0x90b   : > { %v3181_v28 = vpack.c.bf16 %v3178_v23, %v9390_v58  ;;  %3332 = vperm.xlu2 %8254, %v9425_v44  }
 0x90c   : > { %v3166_v7 = vadd.f32 %v8390_v25, %v3165_v60  ;;  %v1806_v5 = vadd.f32 %v1792_v27, %v1048_v61  ;;  %v7189_v61 = vld [vmem:[#allocation2 + $0x28] sm:$0xf0]  ;;  %v8069_v27 = vld [vmem:[#allocation2 + $0x8] sm:$0xf] }
 0x90d   : > { %8253 = vset.pattern.permute.xlu1 %v10274_v63 }
 0x90e   : > { %v3170_v56 = vsel %vm3169_vm11, %v8390_v25, %v3166_v7  ;;  %v1733_v9 = vpop.permute.xlu1 %1732  ;;  %3328 = vperm.xlu1 %8253, %v9422_v17   ;;  %v2550_v47 = vadd.f32 %v2536_v0, %v1806_v5 }
 0x90f   : > { %v3175_v29 = vsel %vm3172_vm12, %v3174_v37, %v3170_v56  ;;  %v1794_v39 = vadd.f32 %v9153_v50, %v1733_v9 }
 0x910   : > { %v3180_v18 = vmul.f32 %v8394_v45, %v3175_v29  ;;  %v981_v2 = vpop.permute.xlu2 %980  ;;  %8257 = vset.pattern.permute.xlu0 %v10274_v63 }
 0x911   : > { %3320 = vperm.xlu0 %8257, %v9432_v53   ;;  %v1045_v34 = vadd.f32 %v8933_v43, %v981_v2  ;;  %v3199_v50 = vpop.permute.xlu0 %3198  ;;  %v1807_v37 = vadd.f32 %v1794_v39, %v1050_v11  ;;  %v7079_v2 = vld [vmem:[#allocation2 + $0x18] sm:$0xf] }
 0x912   : > { %v3182_v10 = vpack.c.bf16 %v3180_v18, %v3179_v8 }
 0x913   : > { %8256 = vset.pattern.permute.xlu2 %v8520_v4 }
 0x914   : > { %3233 = vmatpush.bf16.msrb.mxu3 %v3182_v10  ;;  %3297 = vperm.xlu2 %8256, %v9452_v42  }
 0x916   : > { %v977_v54 = vpop.permute.xlu1 %976  ;;  %8255 = vset.pattern.permute.xlu1 %v8520_v4  ;;  %v10276_v4 = vmov 0  }
 0x917   : > { %3292 = vperm.xlu1 %8255, %v9432_v53   ;;  %v1043_v49 = vadd.f32 %v8928_v20, %v977_v54  ;;  %v10275_v20 = vmov 8  }
 0x918   : > { %3234 = vmatpush.bf16.msrb.mxu3 %v3181_v28  ;;  %v1725_v48 = vpop.permute.xlu2 %1724 }
 0x919   : > { %v1789_v8 = vadd.f32 %v9143_v33, %v1725_v48  ;;  %v2538_v33 = vadd.f32 %v9351_v35, %v2477_v36  ;;  %8261 = vset.pattern.permute.xlu0 %v10275_v20  ;;  %v7071_v48 = vld [vmem:[#allocation2] sm:$0xf] }
 0x91a   : > { %3349 = vperm.xlu0 %8261, %v9452_v42  }
 0x91b   : > { %7030 = vmatmul.msk.bf16.vlgmr.msrb.gmra.mxu3 %vm392_vm1, %v8045_v46  ;;  %v1805_v40 = vadd.f32 %v1789_v8, %v1045_v34  ;;  %v2551_v16 = vadd.f32 %v2538_v33, %v1807_v37  ;;  %v9462_v46 = vld [vmem:[%s10258_s1] ss:$0 sm:$0xff]  ;;  %v7181_v8 = vld [vmem:[#allocation2 + $0x10] sm:$0xf0] }
 0x91c   : > { %8259 = vset.pattern.permute.xlu2 %v10275_v20 }
 0x91d   : > { %3353 = vperm.xlu2 %8259, %v9422_v17  }
 0x91e   : > { %v1721_v58 = vpop.permute.xlu1 %1720 }
 0x91f   : > { %v1787_v60 = vadd.f32 %v9140_v6, %v1721_v58  ;;  %8258 = vset.pattern.permute.xlu1 %v10274_v63  ;;  %v9479_v58 = vor.u32 %v8054_v30, %v7079_v2  ;;  %v8052_v63 = vld [vmem:[#allocation2 + $0x8] sm:$0xf0] }
 0x920   : > { %v2465_v62 = vpop.permute.xlu2 %2464  ;;  %3324 = vperm.xlu1 %8258, %v9452_v42  }
 0x921   : > { %v1804_v56 = vadd.f32 %v1787_v60, %v1043_v49  ;;  %v2531_v43 = vadd.f32 %v9340_v32, %v2465_v62  ;;  %v8071_v62 = vld [vmem:[#allocation2 + $0x20] sm:$0xf] }
 0x922   : > { %8262 = vset.pattern.permute.xlu0 %v10276_v4  ;;  %v8503_v60 = vld [vmem:[%s10261_s4] sm:$0xf] }
 0x923   : > { %v9499_v34 = vmul.f32 %v8503_v60, %v9462_v46 }
 0x925   : > { %3345 = vperm.xlu2 %8259, %v9432_v53   ;;  %v3282_v49 = vrot.slane %v9499_v34, 2 }
 0x926   : > { %v3209_v25 = vpop.permute.xlu1 %3208 }
 0x928   : > { %v3194_v6 = vpop.permute.xlu2 %3193  ;;  %8260 = vset.pattern.permute.xlu1 %v10275_v20 }
 0x929   : > { %3357 = vperm.xlu1 %8260, %v9425_v44  }
 0x92b   : > { %7031 = vmatmul.msk.bf16.gmra.mxu3 %vm392_vm1, %v8046_v1 }
 0x92d   : > { %8264 = vset.pattern.permute.xlu2 %v10276_v4 }
 0x92e   : > { %v2469_v26 = vpop.permute.xlu1 %2468 }
 0x92f   : > { %v2533_v7 = vadd.f32 %v9343_v22, %v2469_v26  ;;  %v2548_v22 = vadd.f32 %v2531_v43, %v1804_v56  ;;  %v9491_v26 = vor.u32 %v8069_v27, %v7181_v8 }
 0x931   : > { %v2549_v35 = vadd.f32 %v2533_v7, %v1805_v40  ;;  %8263 = vset.pattern.permute.xlu1 %v10276_v4 }
 0x932   : > { %3437 = vrot.lane.b32.xlu1 %v9479_v58, %s8522_s30 }
 0x95c   : > { %v3303_v36 = vpop.permute.xlu2 %3302 }
 0x97a   : > { %v3308_v5 = vpop.permute.xlu0 %3307 }
 0x983   : > { %v3321_v7 = vpop.permute.xlu0 %3320 }
 0x99e   : > { %v3236_v52 = vpop.f32.mrf.mxu3 }
 0x99f   : > { %v3237_v18 = vadd.f32 %v3236_v52, %v3194_v6  ;;  %v3261_v52 = vpop.permute.xlu1 %3260 }
 0x9a1   : > { %v3246_v32 = vadd.f32 %v3237_v18, %v2548_v22 }
 0x9a3   : > { %v3250_v12 = vmul.f32 %v9462_v46, %v3246_v32 }
 0x9a6   : > { %v3238_v13 = vpop.f32.mrf.mxu3 }
 0x9a7   : > { %v3239_v45 = vadd.f32 %v3238_v13, %v3199_v50  ;;  %v3329_v13 = vpop.permute.xlu1 %3328 }
 0x9a9   : > { %v3247_v23 = vadd.f32 %v3239_v45, %v2549_v35 }
 0x9ab   : > { %v3251_v15 = vmul.f32 %v9462_v46, %v3247_v23  ;;  %v3350_v23 = vpop.permute.xlu0 %3349 }
 0x9ad   : > { %v3254_v54 = vpack.c.bf16 %v3251_v15, %v3250_v12 }
 0x9ae   : > { %v3241_v24 = vpop.f32.mrf.mxu3 }
 0x9af   : > { %v3242_v3 = vadd.f32 %v3241_v24, %v3204_v31  ;;  %v3333_v31 = vpop.permute.xlu2 %3332  ;;  %v9487_v24 = vor.u32 %v8071_v62, %v7189_v61  ;;  %v3293_v39 = vpop.permute.xlu1 %3292 }
 0x9b1   : > { %v3248_v55 = vadd.f32 %v3242_v3, %v2550_v47 }
 0x9b3   : > { %v3252_v1 = vmul.f32 %v9462_v46, %v3248_v55 }
 0x9b6   : > { %v3243_v29 = vpop.f32.mrf.mxu3 }
 0x9b7   : > { %v3244_v10 = vadd.f32 %v3243_v29, %v3209_v25  ;;  %v9483_v25 = vor.u32 %v8052_v63, %v7071_v48  ;;  %v3298_v0 = vpop.permute.xlu2 %3297  ;;  %v3325_v33 = vpop.permute.xlu1 %3324 }
 0x9b9   : > { %v3249_v28 = vadd.f32 %v3244_v10, %v2551_v16  ;;  %3433 = vrot.lane.b32.xlu1 %v9483_v25, %s8522_s30 }
 0x9bb   : > { %v3253_v57 = vmul.f32 %v9462_v46, %v3249_v28 }
 0x9bd   : > { %v3255_v9 = vpack.c.bf16 %v3253_v57, %v3252_v1 }
 0x9bf   : > { %3272 = vmatpush.bf16.msra.mxu3 %v3255_v9  ;;  %v3354_v3 = vpop.permute.xlu2 %3353  ;;  %v3358_v35 = vpop.permute.xlu1 %3357 }
 0x9c1   : > { %3770 = vrot.lane.b32.xlu1 %v9487_v24, %s8524_s10 }
 0x9c3   : > { %3273 = vmatpush.bf16.msra.mxu3 %v3254_v54 }
 0x9c6   : > { %7032 = vmatmul.msk.bf16.vlgmr.msra.gmra.mxu3 %vm392_vm1, %v3256_v51 }
 0x9c7   : > { %v3346_v28 = vpop.permute.xlu2 %3345 }
 0x9c9   : > { %3766 = vrot.lane.b32.xlu1 %v9491_v26, %s8524_s10 }
 0xa49   : > { %v3275_v11 = vpop.f32.mrf.mxu3 }
 0xa4a   : > { %v3276_v50 = vadd.f32 %v3275_v11, %v3261_v52 }
 0xa4c   : > { %v3279_v40 = vmul.f32 %v9462_v46, %v3276_v50 }
 0xa4e   : > { %v9503_v37 = vadd.f32 %v3282_v49, %v3279_v40 }
 0xa50   : > { %v3310_v6 = vperm.slane %v9503_v37, 0  ;;  %v3335_v47 = vperm.slane %v9503_v37, 1 }
 0xa51   : > { %v3277_v56 = vpop.f32.mrf.mxu3 }
 0xa52   : > { %v3337_v43 = vmul.f32 %v3335_v47, %v3325_v33  ;;  %v3336_v45 = vmul.f32 %v3335_v47, %v3321_v7  ;;  %v3313_v16 = vmul.f32 %v3310_v6, %v3303_v36  ;;  %v3338_v29 = vmul.f32 %v3335_v47, %v3329_v13  ;;  %v3438_v56 = vpop.permute.xlu1 %3437 }
 0xa53   : > { %v3314_v18 = vmul.f32 %v3310_v6, %v3308_v5  ;;  %v3339_v55 = vmul.f32 %v3335_v47, %v3333_v31  ;;  %v3312_v10 = vmul.f32 %v3310_v6, %v3298_v0  ;;  %v3311_v20 = vmul.f32 %v3310_v6, %v3293_v39  ;;  %v9544_v47 = vld [vmem:[%s8571_s22 + $0x78] sm:$0xff] }
 0xa54   : > { %v3342_v22 = vadd.f32 %v3338_v29, %v3313_v16  ;;  %v8047_v29 = vld [vmem:[%s8576_s25 + $0x2f4] sm:$0xff] }
 0xa55   : > { %v3343_v32 = vadd.f32 %v3339_v55, %v3314_v18  ;;  %v3341_v1 = vadd.f32 %v3337_v43, %v3312_v10  ;;  %v3340_v57 = vadd.f32 %v3336_v45, %v3311_v20  ;;  %v9548_v43 = vld [vmem:[%s8571_s22 + $0x68] sm:$0xff]  ;;  %v9559_v18 = vld [vmem:[%s8571_s22 + $0x70] sm:$0xff]  ;;  %v9562_v55 = vld [vmem:[%s8571_s22 + $0x60] sm:$0xff] }
 0xa56   : > { %v3362_v15 = vadd.f32 %v3354_v3, %v3342_v22  ;;  %v8059_v20 = vld [vmem:[%s8576_s25 + $0x334] sm:$0xff] }
 0xa57   : > { %v3363_v9 = vadd.f32 %v3358_v35, %v3343_v32  ;;  %v3361_v12 = vadd.f32 %v3350_v23, %v3341_v1  ;;  %v3360_v54 = vadd.f32 %v3346_v28, %v3340_v57  ;;  %v10277_v28 = vmov 1  }
 0xa58   : > { %v9508_v4 = vmul.f32 %v9462_v46, %v3362_v15  ;;  %v8048_v15 = vld [vmem:[%s8576_s25 + $0x2fc] sm:$0xff] }
 0xa59   : > { %v9511_v51 = vmul.f32 %v9462_v46, %v3363_v9  ;;  %v9514_v2 = vmul.f32 %v9462_v46, %v3361_v12  ;;  %v9517_v30 = vmul.f32 %v9462_v46, %v3360_v54  ;;  %v8060_v54 = vld [vmem:[%s8576_s25 + $0x33c] sm:$0xff] }
 0xa5a   : > { %v3370_v52 = vpack.c.bf16 %v9508_v4, %v9508_v4 }
 0xa5b   : > { %v3371_v36 = vpack.c.bf16 %v9511_v51, %v9511_v51  ;;  %v3369_v48 = vpack.c.bf16 %v9514_v2, %v9514_v2  ;;  %v3368_v63 = vpack.c.bf16 %v9517_v30, %v9517_v30 }
 0xa5c   : > { %3374 = vst [vmem:[#allocation2 + $0x1c] sm:$0xf] %v3370_v52 }
 0xa5d   : > { %3375 = vst [vmem:[#allocation2 + $0x28] sm:$0xf] %v3371_v36 }
 0xa5e   : > { %3373 = vst [vmem:[#allocation2 + $0x10] sm:$0xf] %v3369_v48 }
 0xa5f   : > { %3372 = vst [vmem:[#allocation2 + $0x4] sm:$0xf] %v3368_v63 }
 0xa63   : > { %v7187_v13 = vld [vmem:[#allocation2 + $0x1c] sm:$0xf] }
 0xa64   : > { %v7147_v31 = vld [vmem:[#allocation2 + $0x1c] sm:$0xf]  ;;  %v8072_v61 = vld [vmem:[#allocation2 + $0x24] sm:$0xf0] }
 0xa65   : > { %v8053_v62 = vld [vmem:[#allocation2 + $0x1c] sm:$0xf]  ;;  %v8064_v27 = vld [vmem:[#allocation2 + $0x24] sm:$0xf0]  ;;  %v7188_v39 = vor.u32 %v8072_v61, %v7187_v13  ;;  %v8063_v11 = vld [vmem:[#allocation2 + $0xc] sm:$0xf0] }
 0xa66   : > { %v7081_v8 = vld [vmem:[#allocation2 + $0x24] sm:$0xf0]  ;;  %v7148_v5 = vor.u32 %v8064_v27, %v7147_v31  ;;  %v7143_v60 = vld [vmem:[#allocation2 + $0x4] sm:$0xf]  ;;  %v8070_v49 = vld [vmem:[#allocation2 + $0xc] sm:$0xf0] }
 0xa67   : > { %v7084_v0 = vor.u32 %v8053_v62, %v7081_v8  ;;  %3857 = vrot.lane.b32.xlu1 %v7188_v39, %s8525_s11  ;;  %3768 = vrot.lane.b32.xlu0 %v7188_v39, %s8524_s10  ;;  %v7144_v33 = vor.u32 %v8063_v11, %v7143_v60  ;;  %v7179_v50 = vld [vmem:[#allocation2 + $0x4] sm:$0xf]  ;;  %v7073_v3 = vld [vmem:[#allocation2 + $0xc] sm:$0xf0]  ;;  %v8055_v62 = vld [vmem:[%s8576_s25 + $0x314] sm:$0xff] }
 0xa68   : > { %3685 = vmatpush.bf16.msra.mxu1 %v7148_v5  ;;  %v8051_v7 = vld [vmem:[#allocation2 + $0x4] sm:$0xf]  ;;  %v7180_v40 = vor.u32 %v8070_v49, %v7179_v50  ;;  %v8066_v27 = vld [vmem:[%s8576_s25 + $0x35c] sm:$0xff]  ;;  %v8050_v8 = vld [vmem:[%s8576_s25 + $0x30c] sm:$0xff] }
 0xa69   : > { %3439 = vrot.lane.b32.xlu2 %v7084_v0, %s8522_s30  ;;  %v7076_v6 = vor.u32 %v8051_v7, %v7073_v3  ;;  %v8049_v13 = vld [vmem:[%s8576_s25 + $0x304] sm:$0xff]  ;;  %v8056_v39 = vld [vmem:[%s8576_s25 + $0x31c] sm:$0xff]  ;;  %v8062_v5 = vld [vmem:[%s8576_s25 + $0x34c] sm:$0xff] }
 0xa6a   : > { %v8061_v61 = vld [vmem:[%s8576_s25 + $0x344] sm:$0xff]  ;;  %v8073_v60 = vld [vmem:[%s8576_s25 + $0x374] sm:$0xff]  ;;  %v8074_v50 = vld [vmem:[%s8576_s25 + $0x37c] sm:$0xff] }
 0xa6b   : > { %v8057_v11 = vld [vmem:[%s8576_s25 + $0x324] sm:$0xff]  ;;  %v8058_v49 = vld [vmem:[%s8576_s25 + $0x32c] sm:$0xff] }
 0xa6c   : > { %3686 = vmatpush.bf16.msra.mxu1 %v7144_v33  ;;  %v8068_v33 = vld [vmem:[%s8576_s25 + $0x36c] sm:$0xff]  ;;  %v8075_v7 = vld [vmem:[%s8576_s25 + $0x384] sm:$0xff] }
 0xa6d   : > { %v8076_v3 = vld [vmem:[%s8576_s25 + $0x38c] sm:$0xff] }
 0xa6f   : > { %3568 = vrot.lane.b32.xlu0 %v7084_v0, %s8523_s7  ;;  %3853 = vrot.lane.b32.xlu1 %v7180_v40, %s8525_s11  ;;  %v8067_v0 = vld [vmem:[%s8576_s25 + $0x364] sm:$0xff] }
 0xa70   : > { %7149 = vmatmul.msk.bf16.vlgmr.msra.gmra.mxu1 %vm392_vm1, %v8059_v20 }
 0xa71   : > { %3435 = vrot.lane.b32.xlu2 %v7076_v6, %s8522_s30 }
 0xa77   : > { %3764 = vrot.lane.b32.xlu0 %v7180_v40, %s8524_s10  ;;  %3523 = vperm.xlu1 %8263, %v9544_v47  }
 0xa79   : > { %3566 = vrot.lane.b32.xlu2 %v9479_v58, %s8523_s7  ;;  %v3434_v58 = vpop.permute.xlu1 %3433 }
 0xa7f   : > { %3564 = vrot.lane.b32.xlu0 %v7076_v6, %s8523_s7  ;;  %3513 = vperm.xlu1 %8263, %v9548_v43  }
 0xa80   : > { %7150 = vmatmul.msk.bf16.gmra.mxu1 %vm392_vm1, %v8060_v54 }
 0xa81   : > { %3859 = vrot.lane.b32.xlu2 %v9487_v24, %s8525_s11 }
 0xa87   : > { %3488 = vperm.xlu1 %8263, %v9432_v53   ;;  %3518 = vperm.xlu0 %8262, %v9559_v18  }
 0xa89   : > { %3562 = vrot.lane.b32.xlu2 %v9483_v25, %s8523_s7 }
 0xa8f   : > { %8266 = vset.pattern.permute.xlu1 %v8527_v14  ;;  %3503 = vperm.xlu0 %8262, %v9425_v44  }
 0xa90   : > { %4021 = vperm.xlu1 %8266, %v9425_v44   ;;  %7151 = vmatmul.msk.bf16.gmra.mxu1 %vm392_vm1, %v8061_v61 }
 0xa91   : > { %3855 = vrot.lane.b32.xlu2 %v9491_v26, %s8525_s11  ;;  %v3771_v26 = vpop.permute.xlu1 %3770 }
 0xa97   : > { %8265 = vset.pattern.permute.xlu0 %v8527_v14 }
 0xa98   : > { %4013 = vperm.xlu1 %8266, %v9452_v42   ;;  %4017 = vperm.xlu0 %8265, %v9422_v17  }
 0xa99   : > { %v3767_v35 = vpop.permute.xlu1 %3766  ;;  %3508 = vperm.xlu2 %8264, %v9562_v55  }
 0xaa0   : > { %8269 = vset.pattern.permute.xlu1 %v10277_v28  ;;  %8268 = vset.pattern.permute.xlu0 %v10277_v28 }
 0xaa1   : > { %3498 = vperm.xlu2 %8264, %v9422_v17   ;;  %v8065_v17 = vld [vmem:[%s8576_s25 + $0x354] sm:$0xff]  ;;  %7152 = vmatmul.msk.bf16.gmra.mxu1 %vm392_vm1, %v8062_v5 }
 0xaa9   : > { %3493 = vperm.xlu2 %8264, %v9452_v42  }
 0xab1   : > { %8267 = vset.pattern.permute.xlu2 %v8527_v14 }
 0xab2   : > { %4009 = vperm.xlu2 %8267, %v9432_v53  }
 0xaba   : > { %8270 = vset.pattern.permute.xlu2 %v10277_v28 }
 0xac3   : > { %v3440_v24 = vpop.permute.xlu2 %3439 }
 0xac4   : > { %v3442_v25 = vsel %vm387_vm0, %v3438_v56, %v3440_v24 }
 0xac5   : > { %3463 = vmatpush.bf16.msrb.mxu3 %v3442_v25 }
 0xacb   : > { %v3436_v45 = vpop.permute.xlu2 %3435 }
 0xacc   : > { %v3441_v16 = vsel %vm387_vm0, %v3434_v58, %v3436_v45 }
 0xacd   : > { %3464 = vmatpush.bf16.msrb.mxu3 %v3441_v16 }
 0xad0   : > { %7085 = vmatmul.msk.bf16.vlgmr.msrb.gmra.mxu3 %vm392_vm1, %v8047_v29 }
 0xad3   : > { %v3567_v10 = vpop.permute.xlu2 %3566 }
 0xad9   : > { %v3858_v22 = vpop.permute.xlu1 %3857  ;;  %v3769_v23 = vpop.permute.xlu0 %3768 }
 0xada   : > { %v3773_v32 = vsel %vm721_vm2, %v3769_v23, %v3771_v26 }
 0xadb   : > { %v3860_v1 = vpop.permute.xlu2 %3859  ;;  %3794 = vmatpush.bf16.msra.mxu2 %v3773_v32 }
 0xadc   : > { %v3862_v57 = vsel %vm811_vm4, %v3858_v22, %v3860_v1 }
 0xadd   : > { %3883 = vmatpush.bf16.msra.mxu3 %v3862_v57 }
 0xae0   : > { %7086 = vmatmul.msk.bf16.gmra.mxu3 %vm392_vm1, %v8048_v15 }
 0xae1   : > { %v3569_v44 = vpop.permute.xlu0 %3568  ;;  %v3854_v42 = vpop.permute.xlu1 %3853 }
 0xae2   : > { %v3571_v9 = vsel %vm518_vm3, %v3567_v10, %v3569_v44 }
 0xae3   : > { %v3563_v12 = vpop.permute.xlu2 %3562  ;;  %3592 = vmatpush.bf16.msra.mxu0 %v3571_v9 }
 0xae9   : > { %v3765_v52 = vpop.permute.xlu0 %3764  ;;  %v3524_v56 = vpop.permute.xlu1 %3523 }
 0xaea   : > { %v3772_v48 = vsel %vm721_vm2, %v3765_v52, %v3767_v35 }
 0xaeb   : > { %v3856_v36 = vpop.permute.xlu2 %3855  ;;  %3795 = vmatpush.bf16.msra.mxu2 %v3772_v48 }
 0xaec   : > { %v3861_v63 = vsel %vm811_vm4, %v3854_v42, %v3856_v36 }
 0xaed   : > { %3884 = vmatpush.bf16.msra.mxu3 %v3861_v63  ;;  %v3688_v35 = vpop.f32.mrf.mxu1 }
 0xaee   : > { %7193 = vmatmul.msk.bf16.vlgmr.msra.gmra.mxu2 %vm392_vm1, %v8065_v17 }
 0xaf0   : > { %7087 = vmatmul.msk.bf16.gmra.mxu3 %vm392_vm1, %v8049_v13 }
 0xaf1   : > { %v3565_v53 = vpop.permute.xlu0 %3564  ;;  %v3514_v24 = vpop.permute.xlu1 %3513 }
 0xaf2   : > { %v3570_v31 = vsel %vm518_vm3, %v3563_v12, %v3565_v53 }
 0xaf3   : > { %3593 = vmatpush.bf16.msra.mxu0 %v3570_v31 }
 0xaf5   : > { %v9629_v57 = vpop.f32.mrf.mxu1 }
 0xaf6   : > { %7113 = vmatmul.msk.bf16.vlgmr.msra.gmra.mxu0 %vm392_vm1, %v8055_v62  ;;  %v3509_v62 = vpop.permute.xlu2 %3508 }
 0xaf9   : > { %v3489_v26 = vpop.permute.xlu1 %3488 }
 0xafd   : > { %v9635_v12 = vpop.f32.mrf.mxu1 }
 0xafe   : > { %7194 = vmatmul.msk.bf16.gmra.mxu2 %vm392_vm1, %v8066_v27 }
 0xb00   : > { %7088 = vmatmul.msk.bf16.gmra.mxu3 %vm392_vm1, %v8050_v8 }
 0xb05   : > { %v9641_v48 = vpop.f32.mrf.mxu1 }
 0xb06   : > { %7114 = vmatmul.msk.bf16.gmra.mxu0 %vm392_vm1, %v8056_v39 }
 0xb0d   : > { %v3698_v31 = vpop.f32.mrf.mxu1 }
 0xb0e   : > { %7195 = vmatmul.msk.bf16.gmra.mxu2 %vm392_vm1, %v8067_v0 }
 0xb10   : > { %7221 = vmatmul.msk.bf16.vlgmr.msra.gmra.mxu3 %vm392_vm1, %v8073_v60 }
 0xb15   : > { %v3700_v60 = vpop.f32.mrf.mxu1 }
 0xb16   : > { %7115 = vmatmul.msk.bf16.gmra.mxu0 %vm392_vm1, %v8057_v11 }
 0xb1e   : > { %7196 = vmatmul.msk.bf16.gmra.mxu2 %vm392_vm1, %v8068_v33 }
 0xb20   : > { %7222 = vmatmul.msk.bf16.gmra.mxu3 %vm392_vm1, %v8074_v50 }
 0xb26   : > { %7116 = vmatmul.msk.bf16.gmra.mxu0 %vm392_vm1, %v8058_v49 }
 0xb30   : > { %7223 = vmatmul.msk.bf16.gmra.mxu3 %vm392_vm1, %v8075_v7 }
 0xb40   : > { %7224 = vmatmul.msk.bf16.gmra.mxu3 %vm392_vm1, %v8076_v3 }
 0xb53   : > { %v3466_v40 = vpop.f32.mrf.mxu3 }
 0xb54   : > { %v3526_v45 = vadd.f32 %v3489_v26, %v3466_v40 }
 0xb5b   : > { %v9621_v6 = vpop.f32.mrf.mxu3 }
 0xb63   : > { %v9623_v58 = vpop.f32.mrf.mxu3 }
 0xb6b   : > { %v9625_v25 = vpop.f32.mrf.mxu3 }
 0xb71   : > { %v3797_v20 = vpop.f32.mrf.mxu2 }
 0xb73   : > { %v3476_v16 = vpop.f32.mrf.mxu3  ;;  %v3595_v29 = vpop.f32.mrf.mxu0 }
 0xb74   : > { %v3615_v10 = vadd.f32 %v3595_v29, %v3526_v45  ;;  %v3530_v61 = vadd.f32 %v3509_v62, %v3476_v16  ;;  %v3519_v29 = vpop.permute.xlu0 %3518  ;;  %v3703_v16 = vpop.f32.mrf.mxu1 }
 0xb76   : > { %v3708_v22 = vadd.f32 %v3688_v35, %v3615_v10 }
 0xb78   : > { %v3817_v23 = vadd.f32 %v3797_v20, %v3708_v22 }
 0xb79   : > { %v9631_v15 = vpop.f32.mrf.mxu2 }
 0xb7b   : > { %v3478_v28 = vpop.f32.mrf.mxu3  ;;  %v9627_v32 = vpop.f32.mrf.mxu0 }
 0xb7c   : > { %v3531_v11 = vadd.f32 %v3514_v24, %v3478_v28 }
 0xb81   : > { %v9637_v42 = vpop.f32.mrf.mxu2 }
 0xb83   : > { %v3481_v1 = vpop.f32.mrf.mxu3  ;;  %v9633_v9 = vpop.f32.mrf.mxu0 }
 0xb84   : > { %v3532_v35 = vadd.f32 %v3519_v29, %v3481_v1 }
 0xb89   : > { %v9645_v63 = vpop.f32.mrf.mxu2 }
 0xb8b   : > { %v3483_v44 = vpop.f32.mrf.mxu3  ;;  %v9639_v36 = vpop.f32.mrf.mxu0 }
 0xb91   : > { %v3807_v27 = vpop.f32.mrf.mxu2 }
 0xb93   : > { %v3886_v54 = vpop.f32.mrf.mxu3  ;;  %v3605_v13 = vpop.f32.mrf.mxu0 }
 0xb94   : > { %v3906_v52 = vadd.f32 %v3886_v54, %v3817_v23  ;;  %v3619_v8 = vadd.f32 %v3605_v13, %v3530_v61  ;;  %v3533_v61 = vadd.f32 %v3524_v56, %v3483_v44 }
 0xb96   : > { %v3712_v0 = vadd.f32 %v3698_v31, %v3619_v8 }
 0xb98   : > { %v3821_v33 = vadd.f32 %v3807_v27, %v3712_v0 }
 0xb99   : > { %v3809_v49 = vpop.f32.mrf.mxu2 }
 0xb9b   : > { %v9643_v17 = vpop.f32.mrf.mxu3  ;;  %v3607_v39 = vpop.f32.mrf.mxu0 }
 0xb9c   : > { %v3620_v50 = vadd.f32 %v3607_v39, %v3531_v11  ;;  %v3705_v39 = vpop.f32.mrf.mxu1 }
 0xb9e   : > { %v3713_v26 = vadd.f32 %v3700_v60, %v3620_v50 }
 0xba0   : > { %v3822_v10 = vadd.f32 %v3809_v49, %v3713_v26 }
 0xba1   : > { %v3812_v54 = vpop.f32.mrf.mxu2 }
 0xba3   : > { %v9647_v53 = vpop.f32.mrf.mxu3  ;;  %v3610_v40 = vpop.f32.mrf.mxu0 }
 0xba4   : > { %v3621_v20 = vadd.f32 %v3610_v40, %v3532_v35 }
 0xba6   : > { %v3714_v31 = vadd.f32 %v3703_v16, %v3621_v20 }
 0xba8   : > { %v3823_v27 = vadd.f32 %v3812_v54, %v3714_v31  ;;  %v3504_v31 = vpop.permute.xlu0 %3503 }
 0xba9   : > { %v3814_v49 = vpop.f32.mrf.mxu2 }
 0xbab   : > { %v9649_v5 = vpop.f32.mrf.mxu3  ;;  %v3612_v28 = vpop.f32.mrf.mxu0 }
 0xbac   : > { %v3622_v8 = vadd.f32 %v3612_v28, %v3533_v61 }
 0xbae   : > { %v3715_v11 = vadd.f32 %v3705_v39, %v3622_v8  ;;  %v3529_v8 = vadd.f32 %v3504_v31, %v9625_v25 }
 0xbb0   : > { %v3824_v26 = vadd.f32 %v3814_v49, %v3715_v11 }
 0xbb3   : > { %v3896_v7 = vpop.f32.mrf.mxu3 }
 0xbb4   : > { %v3910_v3 = vadd.f32 %v3896_v7, %v3821_v33  ;;  %v3499_v7 = vpop.permute.xlu2 %3498 }
 0xbb5   : > { %v3528_v56 = vadd.f32 %v3499_v7, %v9623_v58 }
 0xbb6   : > { %v7225_v45 = vmul.f32 -1.442695, %v3910_v3 }
 0xbb8   : > { %8397 = vpow2.f32 %v7225_v45 }
 0xbbb   : > { %v3898_v22 = vpop.f32.mrf.mxu3 }
 0xbbc   : > { %v3911_v23 = vadd.f32 %v3898_v22, %v3822_v10  ;;  %v3617_v10 = vadd.f32 %v9633_v9, %v3528_v56  ;;  %v3494_v61 = vpop.permute.xlu2 %3493 }
 0xbbe   : > { %v8398_v13 = vpop.eup %8397  ;;  %v7226_v24 = vmul.f32 -1.442695, %v3911_v23  ;;  %v3710_v28 = vadd.f32 %v9635_v12, %v3617_v10 }
 0xbbf   : > { %v3930_v62 = vadd.f32 1.0, %v8398_v13 }
 0xbc0   : > { %8399 = vpow2.f32 %v7226_v24 }
 0xbc1   : > { %8401 = vrcp.f32 %v3930_v62  ;;  %v3945_v16 = vand.u32 2147483648, %v3930_v62  ;;  %v3943_v20 = vand.u32 2147483647, %v3930_v62  ;;  %vm3939_vm15 = vweird.f32 %v3930_v62 }
 0xbc3   : > { %v3901_v0 = vpop.f32.mrf.mxu3  ;;  %vm3944_vm6 = vcmp.eq.f32.partialorder %v3943_v20, 8.507059e+37 }
 0xbc4   : > { %v3912_v1 = vadd.f32 %v3901_v0, %v3823_v27  ;;  %v3819_v0 = vadd.f32 %v9637_v42, %v3710_v28 }
 0xbc6   : > { %v8400_v60 = vpop.eup %8399  ;;  %v7227_v33 = vmul.f32 -1.442695, %v3912_v1  ;;  %v3618_v1 = vadd.f32 %v9639_v36, %v3529_v8 }
 0xbc7   : > { %v8402_v50 = vpop.eup %8401  ;;  %v9651_v40 = vadd.f32 1.0, %v8400_v60 }
 0xbc8   : > { %v3935_v3 = vmul.f32 %v8402_v50, %v3930_v62  ;;  %8403 = vpow2.f32 %v7227_v33  ;;  %vm3940_vm14 = vweird.f32 %v8402_v50  ;;  %v3527_v62 = vadd.f32 %v3494_v61, %v9621_v6 }
 0xbc9   : > { %8405 = vtanh.f32 %v3906_v52  ;;  %vm3941_vm5 = vmor %vm3939_vm15, %vm3940_vm14  ;;  %v3946_v52 = vor.u32 1.1754944e-38, %v3945_v16  ;;  %v3711_v25 = vadd.f32 %v9641_v48, %v3618_v1  ;;  %vm3954_vm12 = vweird.f32 %v9651_v40 }
 0xbca   : > { %v3936_v45 = vsub.f32 1.0, %v3935_v3  ;;  %8407 = vrcp.f32 %v9651_v40  ;;  %v3616_v33 = vadd.f32 %v9627_v32, %v3527_v62 }
 0xbcb   : > { %v3903_v44 = vpop.f32.mrf.mxu3  ;;  %v3820_v56 = vadd.f32 %v9645_v63, %v3711_v25  ;;  %v8088_v25 = vld [vmem:[#allocation2 + $0x20] sm:$0xf0] }
 0xbcc   : > { %v3913_v29 = vadd.f32 %v3903_v44, %v3824_v26  ;;  %v3937_v35 = vmul.f32 %v8402_v50, %v3936_v45  ;;  %v3709_v42 = vadd.f32 %v9629_v57, %v3616_v33  ;;  %v7291_v33 = vld [vmem:[#allocation2] sm:$0xf] }
 0xbcd   : > { %v3909_v48 = vadd.f32 %v9649_v5, %v3820_v56 }
 0xbce   : > { %v8404_v22 = vpop.eup %8403  ;;  %v7228_v23 = vmul.f32 -1.442695, %v3913_v29  ;;  %v3938_v54 = vadd.f32 %v8402_v50, %v3937_v35  ;;  %v3818_v29 = vadd.f32 %v9631_v15, %v3709_v42  ;;  %v3960_v15 = vand.u32 2147483648, %v9651_v40  ;;  %v4010_v42 = vpop.permute.xlu2 %4009 }
 0xbcf   : > { %v3932_v13 = vadd.f32 1.0, %v8404_v22  ;;  %v8406_v24 = vpop.eup %8405 }
 0xbd0   : > { %8409 = vpow2.f32 %v7228_v23  ;;  %v3942_v58 = vsel %vm3941_vm5, %v8402_v50, %v3938_v54  ;;  %v9657_v27 = vpop.eup %8407  ;;  %v3908_v50 = vadd.f32 %v9647_v53, %v3819_v0  ;;  %v3907_v20 = vadd.f32 %v9643_v17, %v3818_v29 }
 0xbd1   : > { %8411 = vrcp.f32 %v3932_v13  ;;  %v3947_v9 = vsel %vm3944_vm6, %v3946_v52, %v3942_v58  ;;  %v3950_v12 = vmul.f32 %v9657_v27, %v9651_v40  ;;  %v3975_v36 = vand.u32 2147483648, %v3932_v13 }
 0xbd2   : > { %v9660_v39 = vmul.f32 %v8406_v24, %v3947_v9  ;;  %v3973_v45 = vand.u32 2147483647, %v3932_v13  ;;  %vm3969_vm8 = vweird.f32 %v3932_v13  ;;  %vm3955_vm11 = vweird.f32 %v9657_v27 }
 0xbd3   : > { %v3951_v3 = vsub.f32 1.0, %v3950_v12  ;;  %v3976_v35 = vor.u32 1.1754944e-38, %v3975_v36  ;;  %v3958_v58 = vand.u32 2147483647, %v9651_v40  ;;  %vm3956_vm14 = vmor %vm3954_vm12, %vm3955_vm11  ;;  %v3961_v28 = vor.u32 1.1754944e-38, %v3960_v15 }
 0xbd4   : > { %vm3974_vm10 = vcmp.eq.f32.partialorder %v3973_v45, 8.507059e+37  ;;  %v7409_v45 = vld [vmem:[#allocation2 + $0x28] sm:$0xf0] }
 0xbd5   : > { %v3952_v53 = vmul.f32 %v9657_v27, %v3951_v3 }
 0xbd6   : > { %v8410_v60 = vpop.eup %8409 }
 0xbd7   : > { %v8412_v11 = vpop.eup %8411  ;;  %v3933_v49 = vadd.f32 1.0, %v8410_v60  ;;  %v3953_v54 = vadd.f32 %v9657_v27, %v3952_v53 }
 0xbd8   : > { %v3965_v7 = vmul.f32 %v8412_v11, %v3932_v13  ;;  %vm3970_vm7 = vweird.f32 %v8412_v11 }
 0xbd9   : > { %8413 = vrcp.f32 %v3933_v49  ;;  %vm3971_vm9 = vmor %vm3969_vm8, %vm3970_vm7  ;;  %v3990_v13 = vand.u32 2147483648, %v3933_v49  ;;  %v3988_v31 = vand.u32 2147483647, %v3933_v49  ;;  %vm3984_vm15 = vweird.f32 %v3933_v49 }
 0xbda   : > { %v3966_v6 = vsub.f32 1.0, %v3965_v7  ;;  %8415 = vtanh.f32 %v3908_v50  ;;  %v3957_v52 = vsel %vm3956_vm14, %v9657_v27, %v3953_v54  ;;  %vm3959_vm7 = vcmp.eq.f32.partialorder %v3958_v58, 8.507059e+37  ;;  %v8078_v27 = vld [vmem:[%s8576_s25 + $0x57c] sm:$0xff]  ;;  %v8086_v50 = vld [vmem:[#allocation2 + $0x8] sm:$0xf0] }
 0xbdb   : > { %8417 = vtanh.f32 %v3909_v48  ;;  %v3991_v24 = vor.u32 1.1754944e-38, %v3990_v13  ;;  %vm3989_vm6 = vcmp.eq.f32.partialorder %v3988_v31, 8.507059e+37  ;;  %v3962_v62 = vsel %vm3959_vm7, %v3961_v28, %v3957_v52  ;;  %v7299_v7 = vld [vmem:[#allocation2 + $0x18] sm:$0xf] }
 0xbdc   : > { %v3967_v26 = vmul.f32 %v8412_v11, %v3966_v6  ;;  %8419 = vtanh.f32 %v3907_v20  ;;  %v7300_v3 = vor.u32 %v8088_v25, %v7299_v7  ;;  %v4022_v6 = vpop.permute.xlu1 %4021 }
 0xbde   : > { %v3968_v32 = vadd.f32 %v8412_v11, %v3967_v26  ;;  %4181 = vrot.lane.b32.xlu2 %v7300_v3, %s8522_s30  ;;  %v8105_v26 = vld [vmem:[#allocation2 + $0x20] sm:$0xf] }
 0xbdf   : > { %v8414_v44 = vpop.eup %8413  ;;  %v7412_v56 = vor.u32 %v8105_v26, %v7409_v45  ;;  %v8081_v45 = vld [vmem:[%s8576_s25 + $0x394] sm:$0xff] }
 0xbe0   : > { %v3980_v16 = vmul.f32 %v8414_v44, %v3933_v49  ;;  %v3972_v57 = vsel %vm3971_vm9, %v8412_v11, %v3968_v32  ;;  %v8416_v10 = vpop.eup %8415  ;;  %vm3985_vm13 = vweird.f32 %v8414_v44  ;;  %v8077_v11 = vld [vmem:[%s8576_s25 + $0x574] sm:$0xff]  ;;  %v7292_v49 = vor.u32 %v8086_v50, %v7291_v33 }
 0xbe1   : > { %v3977_v22 = vsel %vm3974_vm10, %v3976_v35, %v3972_v57  ;;  %vm3986_vm5 = vmor %vm3984_vm15, %vm3985_vm13  ;;  %v8418_v9 = vpop.eup %8417  ;;  %v7401_v33 = vld [vmem:[#allocation2 + $0x10] sm:$0xf0] }
 0xbe2   : > { %v3981_v23 = vsub.f32 1.0, %v3980_v16  ;;  %v3996_v63 = vmul.f32 %v8416_v10, %v3977_v22  ;;  %v8420_v1 = vpop.eup %8419  ;;  %4177 = vrot.lane.b32.xlu1 %v7292_v49, %s8522_s30  ;;  %v4018_v10 = vpop.permute.xlu0 %4017 }
 0xbe3   : > { %v3995_v60 = vmul.f32 %v8420_v1, %v3962_v62 }
 0xbe4   : > { %v3982_v5 = vmul.f32 %v8414_v44, %v3981_v23 }
 0xbe5   : > { %v3998_v12 = vpack.c.bf16 %v3995_v60, %v9660_v39 }
 0xbe6   : > { %v3983_v17 = vadd.f32 %v8414_v44, %v3982_v5 }
 0xbe8   : > { %v3987_v61 = vsel %vm3986_vm5, %v8414_v44, %v3983_v17  ;;  %v4014_v44 = vpop.permute.xlu1 %4013 }
 0xbe9   : > { %v3992_v8 = vsel %vm3989_vm6, %v3991_v24, %v3987_v61 }
 0xbea   : > { %v3997_v0 = vmul.f32 %v8418_v9, %v3992_v8  ;;  %4603 = vrot.lane.b32.xlu1 %v7412_v56, %s8525_s11 }
 0xbec   : > { %v3999_v40 = vpack.c.bf16 %v3997_v0, %v3996_v63 }
 0xbee   : > { %4078 = vmatpush.bf16.msrb.mxu0 %v3999_v40 }
 0xbf2   : > { %4079 = vmatpush.bf16.msrb.mxu0 %v3998_v12 }
 0xbf5   : > { %7253 = vmatmul.msk.bf16.vlgmr.msrb.gmra.mxu0 %vm392_vm1, %v8077_v11 }
 0xc05   : > { %7254 = vmatmul.msk.bf16.gmra.mxu0 %vm392_vm1, %v8078_v27  ;;  %v8103_v27 = vld [vmem:[#allocation2 + $0x8] sm:$0xf] }
 0xc06   : > { %v7404_v50 = vor.u32 %v8103_v27, %v7401_v33  ;;  %v8109_v27 = vld [vmem:[%s8576_s25 + $0x424] sm:$0xff]  ;;  %v8110_v33 = vld [vmem:[%s8576_s25 + $0x42c] sm:$0xff] }
 0xc38   : > { %v4182_v7 = vpop.permute.xlu2 %4181 }
 0xc54   : > { %v4178_v25 = vpop.permute.xlu1 %4177 }
 0xc72   : > { %v4081_v39 = vpop.f32.mrf.mxu0 }
 0xc73   : > { %v4082_v36 = vadd.f32 %v4081_v39, %v4010_v42 }
 0xc75   : > { %v4101_v32 = vadd.f32 %v4082_v36, %v9517_v30 }
 0xc77   : > { %v9692_v53 = vmul.f32 %v9462_v46, %v4101_v32 }
 0xc79   : > { %v4113_v29 = vpack.c.bf16 %v9692_v53, %v9692_v53 }
 0xc7a   : > { %v4083_v48 = vpop.f32.mrf.mxu0 }
 0xc7b   : > { %4117 = vst [vmem:[#allocation2 + $0x4] sm:$0xf] %v4113_v29  ;;  %v4084_v35 = vadd.f32 %v4083_v48, %v4014_v44 }
 0xc7d   : > { %v4102_v16 = vadd.f32 %v4084_v35, %v9514_v2 }
 0xc7f   : > { %v9698_v57 = vmul.f32 %v9462_v46, %v4102_v16  ;;  %v9751_v16 = vld [vmem:[%s8571_s22 + $0x58] sm:$0xff] }
 0xc81   : > { %v4114_v30 = vpack.c.bf16 %v9698_v57, %v9698_v57 }
 0xc82   : > { %v4086_v20 = vpop.f32.mrf.mxu0  ;;  %v8085_v2 = vld [vmem:[#allocation2 + $0x4] sm:$0xf] }
 0xc83   : > { %4118 = vst [vmem:[#allocation2 + $0x10] sm:$0xf] %v4114_v30  ;;  %v4087_v22 = vadd.f32 %v4086_v20, %v4018_v10  ;;  %v7399_v12 = vld [vmem:[#allocation2 + $0x4] sm:$0xf]  ;;  %v9754_v10 = vld [vmem:[%s8571_s22 + $0x50] sm:$0xff]  ;;  %v9760_v20 = vld [vmem:[%s8571_s22 + $0x48] sm:$0xff] }
 0xc85   : > { %v4103_v23 = vadd.f32 %v4087_v22, %v9508_v4 }
 0xc87   : > { %v9704_v63 = vmul.f32 %v9462_v46, %v4103_v23  ;;  %v8089_v23 = vld [vmem:[%s8576_s25 + $0x3b4] sm:$0xff] }
 0xc89   : > { %v4115_v54 = vpack.c.bf16 %v9704_v63, %v9704_v63 }
 0xc8a   : > { %v4088_v13 = vpop.f32.mrf.mxu0  ;;  %v7293_v15 = vld [vmem:[#allocation2 + $0xc] sm:$0xf0] }
 0xc8b   : > { %4119 = vst [vmem:[#allocation2 + $0x1c] sm:$0xf] %v4115_v54  ;;  %v4089_v5 = vadd.f32 %v4088_v13, %v4022_v6  ;;  %v7296_v31 = vor.u32 %v8085_v2, %v7293_v15  ;;  %v8097_v62 = vld [vmem:[#allocation2 + $0xc] sm:$0xf0]  ;;  %v8082_v13 = vld [vmem:[%s8576_s25 + $0x39c] sm:$0xff]  ;;  %v8095_v2 = vld [vmem:[%s8576_s25 + $0x3e4] sm:$0xff] }
 0xc8c   : > { %v8104_v1 = vld [vmem:[#allocation2 + $0xc] sm:$0xf0] }
 0xc8d   : > { %v4104_v58 = vadd.f32 %v4089_v5, %v9511_v51  ;;  %4179 = vrot.lane.b32.xlu2 %v7296_v31, %s8522_s30  ;;  %v7400_v11 = vor.u32 %v8104_v1, %v7399_v12  ;;  %v8092_v1 = vld [vmem:[%s8576_s25 + $0x3cc] sm:$0xff] }
 0xc8e   : > { %v8102_v12 = vld [vmem:[%s8576_s25 + $0x40c] sm:$0xff] }
 0xc8f   : > { %v9711_v17 = vmul.f32 %v9462_v46, %v4104_v58  ;;  %v7363_v46 = vld [vmem:[#allocation2 + $0x4] sm:$0xf] }
 0xc90   : > { %v7364_v51 = vor.u32 %v8097_v62, %v7363_v46  ;;  %v8096_v62 = vld [vmem:[%s8576_s25 + $0x3ec] sm:$0xff]  ;;  %v8091_v46 = vld [vmem:[%s8576_s25 + $0x3c4] sm:$0xff] }
 0xc91   : > { %v4116_v4 = vpack.c.bf16 %v9711_v17, %v9711_v17 }
 0xc92   : > { %v7367_v52 = vld [vmem:[#allocation2 + $0x1c] sm:$0xf] }
 0xc93   : > { %4120 = vst [vmem:[#allocation2 + $0x28] sm:$0xf] %v4116_v4  ;;  %v8087_v28 = vld [vmem:[#allocation2 + $0x1c] sm:$0xf]  ;;  %v10278_v4 = vmov 2  }
 0xc94   : > { %v7407_v40 = vld [vmem:[#allocation2 + $0x1c] sm:$0xf] }
 0xc95   : > { %4306 = vrot.lane.b32.xlu2 %v7292_v49, %s8523_s7  ;;  %v8079_v49 = vld [vmem:[%s8576_s25 + $0x584] sm:$0xff] }
 0xc96   : > { %7255 = vmatmul.msk.bf16.gmra.mxu0 %vm392_vm1, %v8079_v49 }
 0xc9a   : > { %v8098_v24 = vld [vmem:[#allocation2 + $0x24] sm:$0xf0] }
 0xc9b   : > { %v7301_v61 = vld [vmem:[#allocation2 + $0x24] sm:$0xf0]  ;;  %v7368_v9 = vor.u32 %v8098_v24, %v7367_v52 }
 0xc9c   : > { %v7304_v8 = vor.u32 %v8087_v28, %v7301_v61  ;;  %v8106_v0 = vld [vmem:[#allocation2 + $0x24] sm:$0xf0]  ;;  %v8090_v61 = vld [vmem:[%s8576_s25 + $0x3bc] sm:$0xff] }
 0xc9d   : > { %4429 = vmatpush.bf16.msrb.mxu3 %v7368_v9  ;;  %4514 = vrot.lane.b32.xlu2 %v7412_v56, %s8524_s10  ;;  %v7408_v60 = vor.u32 %v8106_v0, %v7407_v40  ;;  %v8094_v56 = vld [vmem:[%s8576_s25 + $0x3dc] sm:$0xff]  ;;  %v8099_v9 = vld [vmem:[%s8576_s25 + $0x3f4] sm:$0xff]  ;;  %v8084_v0 = vld [vmem:[%s8576_s25 + $0x3ac] sm:$0xff] }
 0xc9e   : > { %4312 = vrot.lane.b32.xlu1 %v7304_v8, %s8523_s7  ;;  %4183 = vrot.lane.b32.xlu0 %v7304_v8, %s8522_s30  ;;  %v8083_v8 = vld [vmem:[%s8576_s25 + $0x3a4] sm:$0xff] }
 0xc9f   : > { %v8101_v40 = vld [vmem:[%s8576_s25 + $0x404] sm:$0xff] }
 0xca1   : > { %4430 = vmatpush.bf16.msrb.mxu3 %v7364_v51  ;;  %v8100_v51 = vld [vmem:[%s8576_s25 + $0x3fc] sm:$0xff] }
 0xca5   : > { %4508 = vrot.lane.b32.xlu2 %v7400_v11, %s8524_s10 }
 0xca6   : > { %4512 = vrot.lane.b32.xlu1 %v7408_v60, %s8524_s10  ;;  %4310 = vrot.lane.b32.xlu0 %v7300_v3, %s8523_s7  ;;  %v9734_v3 = vld [vmem:[%s8571_s22 + $0x40] sm:$0xff] }
 0xcad   : > { %4599 = vrot.lane.b32.xlu2 %v7404_v50, %s8525_s11 }
 0xcae   : > { %4597 = vrot.lane.b32.xlu1 %v7400_v11, %s8525_s11  ;;  %4308 = vrot.lane.b32.xlu0 %v7296_v31, %s8523_s7  ;;  %v8108_v11 = vld [vmem:[%s8576_s25 + $0x41c] sm:$0xff] }
 0xcb5   : > { %4252 = vperm.xlu2 %8270, %v9562_v55   ;;  %v8093_v55 = vld [vmem:[%s8576_s25 + $0x3d4] sm:$0xff] }
 0xcb6   : > { %4267 = vperm.xlu1 %8269, %v9544_v47   ;;  %4601 = vrot.lane.b32.xlu0 %v7408_v60, %s8525_s11  ;;  %v8080_v47 = vld [vmem:[%s8576_s25 + $0x58c] sm:$0xff]  ;;  %v8107_v60 = vld [vmem:[%s8576_s25 + $0x414] sm:$0xff] }
 0xcb7   : > { %7256 = vmatmul.msk.bf16.gmra.mxu0 %vm392_vm1, %v8080_v47  ;;  %7369 = vmatmul.msk.bf16.vlgmr.msrb.gmra.mxu3 %vm392_vm1, %v8093_v55 }
 0xcbd   : > { %4242 = vperm.xlu2 %8270, %v9754_v10  }
 0xcbe   : > { %4257 = vperm.xlu1 %8269, %v9548_v43   ;;  %4510 = vrot.lane.b32.xlu0 %v7404_v50, %s8524_s10  ;;  %v4604_v43 = vpop.permute.xlu1 %4603 }
 0xcc5   : > { %4237 = vperm.xlu2 %8270, %v9760_v20  }
 0xcc6   : > { %4262 = vperm.xlu0 %8268, %v9559_v18   ;;  %4232 = vperm.xlu1 %8269, %v9734_v3  }
 0xcc7   : > { %7370 = vmatmul.msk.bf16.gmra.mxu3 %vm392_vm1, %v8094_v56 }
 0xccd   : > { %8273 = vset.pattern.permute.xlu2 %v8529_v41 }
 0xcce   : > { %8272 = vset.pattern.permute.xlu1 %v8529_v41  ;;  %4247 = vperm.xlu0 %8268, %v9751_v16  }
 0xccf   : > { %4765 = vperm.xlu1 %8272, %v9751_v16   ;;  %4753 = vperm.xlu2 %8273, %v9734_v3  }
 0xcd6   : > { %8271 = vset.pattern.permute.xlu0 %v8529_v41 }
 0xcd7   : > { %4757 = vperm.xlu1 %8272, %v9760_v20   ;;  %4761 = vperm.xlu0 %8271, %v9754_v10  }
 0xcd8   : > { %7371 = vmatmul.msk.bf16.gmra.mxu3 %vm392_vm1, %v8095_v2  ;;  %8276 = vset.pattern.permute.xlu2 %v10278_v4 }
 0xcdf   : > { %8275 = vset.pattern.permute.xlu1 %v10278_v4  ;;  %8274 = vset.pattern.permute.xlu0 %v10278_v4 }
 0xce7   : > { %v4180_v6 = vpop.permute.xlu2 %4179 }
 0xce8   : > { %v4185_v26 = vsel %vm387_vm0, %v4178_v25, %v4180_v6  ;;  %7372 = vmatmul.msk.bf16.gmra.mxu3 %vm392_vm1, %v8096_v62 }
 0xcef   : > { %v4307_v18 = vpop.permute.xlu2 %4306 }
 0xcf7   : > { %v4515_v32 = vpop.permute.xlu2 %4514 }
 0xcff   : > { %v4509_v54 = vpop.permute.xlu2 %4508 }
 0xd07   : > { %v4600_v58 = vpop.permute.xlu2 %4599 }
 0xd0f   : > { %v4253_v62 = vpop.permute.xlu2 %4252 }
 0xd10   : > { %v4313_v42 = vpop.permute.xlu1 %4312  ;;  %v4184_v39 = vpop.permute.xlu0 %4183 }
 0xd11   : > { %v4186_v36 = vsel %vm387_vm0, %v4182_v7, %v4184_v39 }
 0xd12   : > { %4207 = vmatpush.bf16.msrb.mxu1 %v4186_v36 }
 0xd13   : > { %v9809_v50 = vpop.f32.mrf.mxu0 }
 0xd16   : > { %4208 = vmatpush.bf16.msrb.mxu1 %v4185_v26 }
 0xd18   : > { %v4513_v44 = vpop.permute.xlu1 %4512  ;;  %v4311_v48 = vpop.permute.xlu0 %4310 }
 0xd19   : > { %v4517_v29 = vsel %vm721_vm2, %v4513_v44, %v4515_v32  ;;  %v4315_v35 = vsel %vm518_vm3, %v4311_v48, %v4313_v42  ;;  %7305 = vmatmul.msk.bf16.vlgmr.msrb.gmra.mxu1 %vm392_vm1, %v8081_v45 }
 0xd1a   : > { %4538 = vmatpush.bf16.msra.mxu0 %v4517_v29  ;;  %4336 = vmatpush.bf16.msrb.mxu2 %v4315_v35 }
 0xd1b   : > { %v9813_v7 = vpop.f32.mrf.mxu0 }
 0xd20   : > { %v4309_v30 = vpop.permute.xlu0 %4308  ;;  %v4598_v31 = vpop.permute.xlu1 %4597 }
 0xd21   : > { %v4314_v22 = vsel %vm518_vm3, %v4307_v18, %v4309_v30  ;;  %v4605_v52 = vsel %vm811_vm4, %v4598_v31, %v4600_v58 }
 0xd22   : > { %4337 = vmatpush.bf16.msrb.mxu2 %v4314_v22 }
 0xd25   : > { %7333 = vmatmul.msk.bf16.vlgmr.msrb.gmra.mxu2 %vm392_vm1, %v8089_v23 }
 0xd28   : > { %v4602_v15 = vpop.permute.xlu0 %4601  ;;  %v9811_v49 = vpop.permute.xlu1 %4267 }
 0xd29   : > { %v4606_v5 = vsel %vm811_vm4, %v4602_v15, %v4604_v43  ;;  %7306 = vmatmul.msk.bf16.gmra.mxu1 %vm392_vm1, %v8082_v13 }
 0xd2a   : > { %4627 = vmatpush.bf16.msra.mxu1 %v4606_v5 }
 0xd2e   : > { %4628 = vmatpush.bf16.msra.mxu1 %v4605_v52 }
 0xd30   : > { %v4511_v24 = vpop.permute.xlu0 %4510  ;;  %v4258_v47 = vpop.permute.xlu1 %4257 }
 0xd31   : > { %v4516_v28 = vsel %vm721_vm2, %v4509_v54, %v4511_v24 }
 0xd32   : > { %4539 = vmatpush.bf16.msra.mxu0 %v4516_v28 }
 0xd34   : > { %v9815_v6 = vpop.f32.mrf.mxu0 }
 0xd35   : > { %7334 = vmatmul.msk.bf16.gmra.mxu2 %vm392_vm1, %v8090_v61  ;;  %7413 = vmatmul.msk.bf16.vlgmr.msra.gmra.mxu0 %vm392_vm1, %v8099_v9 }
 0xd38   : > { %v4233_v55 = vpop.permute.xlu1 %4232 }
 0xd39   : > { %7307 = vmatmul.msk.bf16.gmra.mxu1 %vm392_vm1, %v8083_v8 }
 0xd3a   : > { %v4432_v26 = vpop.f32.mrf.mxu3 }
 0xd3c   : > { %v9821_v39 = vpop.f32.mrf.mxu0 }
 0xd42   : > { %v9827_v23 = vpop.f32.mrf.mxu3 }
 0xd45   : > { %7335 = vmatmul.msk.bf16.gmra.mxu2 %vm392_vm1, %v8091_v46  ;;  %7414 = vmatmul.msk.bf16.gmra.mxu0 %vm392_vm1, %v8100_v51 }
 0xd49   : > { %7308 = vmatmul.msk.bf16.gmra.mxu1 %vm392_vm1, %v8084_v0 }
 0xd4a   : > { %v9833_v15 = vpop.f32.mrf.mxu3 }
 0xd52   : > { %v9841_v24 = vpop.f32.mrf.mxu3 }
 0xd55   : > { %7336 = vmatmul.msk.bf16.gmra.mxu2 %vm392_vm1, %v8092_v1  ;;  %7415 = vmatmul.msk.bf16.gmra.mxu0 %vm392_vm1, %v8101_v40 }
 0xd59   : > { %7441 = vmatmul.msk.bf16.vlgmr.msra.gmra.mxu1 %vm392_vm1, %v8107_v60 }
 0xd5b   : > { %v4442_v8 = vpop.f32.mrf.mxu3 }
 0xd65   : > { %7416 = vmatmul.msk.bf16.gmra.mxu0 %vm392_vm1, %v8102_v12  ;;  %v4444_v12 = vpop.f32.mrf.mxu3 }
 0xd69   : > { %7442 = vmatmul.msk.bf16.gmra.mxu1 %vm392_vm1, %v8108_v11 }
 0xd79   : > { %7443 = vmatmul.msk.bf16.gmra.mxu1 %vm392_vm1, %v8109_v27 }
 0xd89   : > { %7444 = vmatmul.msk.bf16.gmra.mxu1 %vm392_vm1, %v8110_v33 }
 0xd96   : > { %v4210_v25 = vpop.f32.mrf.mxu1 }
 0xd97   : > { %v4270_v42 = vadd.f32 %v4233_v55, %v4210_v25 }
 0xd9e   : > { %v9817_v43 = vpop.f32.mrf.mxu1 }
 0xda6   : > { %v9819_v18 = vpop.f32.mrf.mxu1 }
 0xda8   : > { %v4339_v36 = vpop.f32.mrf.mxu2 }
 0xda9   : > { %v4359_v45 = vadd.f32 %v4339_v36, %v4270_v42 }
 0xdab   : > { %v4452_v56 = vadd.f32 %v4432_v26, %v4359_v45 }
 0xdae   : > { %v9823_v32 = vpop.f32.mrf.mxu1 }
 0xdb0   : > { %v9825_v22 = vpop.f32.mrf.mxu2 }
 0xdb2   : > { %v4541_v44 = vpop.f32.mrf.mxu0 }
 0xdb3   : > { %v4561_v29 = vadd.f32 %v4541_v44, %v4452_v56  ;;  %v4263_v56 = vpop.permute.xlu0 %4262 }
 0xdb6   : > { %v4220_v48 = vpop.f32.mrf.mxu1 }
 0xdb7   : > { %v4274_v51 = vadd.f32 %v4253_v62, %v4220_v48  ;;  %v4447_v48 = vpop.f32.mrf.mxu3 }
 0xdb8   : > { %v9831_v2 = vpop.f32.mrf.mxu2 }
 0xdba   : > { %v9829_v54 = vpop.f32.mrf.mxu0 }
 0xdbe   : > { %v4222_v35 = vpop.f32.mrf.mxu1 }
 0xdbf   : > { %v4275_v11 = vadd.f32 %v4258_v47, %v4222_v35 }
 0xdc0   : > { %v9837_v4 = vpop.f32.mrf.mxu2 }
 0xdc2   : > { %v9835_v58 = vpop.f32.mrf.mxu0 }
 0xdc6   : > { %v4225_v30 = vpop.f32.mrf.mxu1 }
 0xdc7   : > { %v4276_v44 = vadd.f32 %v4263_v56, %v4225_v30  ;;  %v4449_v30 = vpop.f32.mrf.mxu3  ;;  %v4243_v56 = vpop.permute.xlu2 %4242 }
 0xdc8   : > { %v4349_v61 = vpop.f32.mrf.mxu2 }
 0xdc9   : > { %v4363_v1 = vadd.f32 %v4349_v61, %v4274_v51 }
 0xdca   : > { %v9843_v28 = vpop.f32.mrf.mxu0 }
 0xdcb   : > { %v4456_v60 = vadd.f32 %v4442_v8, %v4363_v1 }
 0xdce   : > { %v4227_v13 = vpop.f32.mrf.mxu1 }
 0xdd0   : > { %v4351_v40 = vpop.f32.mrf.mxu2 }
 0xdd1   : > { %v4364_v55 = vadd.f32 %v4351_v40, %v4275_v11  ;;  %v4277_v40 = vadd.f32 %v9811_v49, %v4227_v13 }
 0xdd2   : > { %v4551_v46 = vpop.f32.mrf.mxu0 }
 0xdd3   : > { %v4565_v27 = vadd.f32 %v4551_v46, %v4456_v60  ;;  %v4457_v45 = vadd.f32 %v4444_v12, %v4364_v55 }
 0xdd6   : > { %v4630_v5 = vpop.f32.mrf.mxu1 }
 0xdd7   : > { %v4650_v31 = vadd.f32 %v4630_v5, %v4561_v29 }
 0xdd8   : > { %v4354_v26 = vpop.f32.mrf.mxu2 }
 0xdd9   : > { %v4365_v62 = vadd.f32 %v4354_v26, %v4276_v44 }
 0xdda   : > { %v4553_v33 = vpop.f32.mrf.mxu0 }
 0xddb   : > { %v4566_v29 = vadd.f32 %v4553_v33, %v4457_v45  ;;  %v4458_v35 = vadd.f32 %v4447_v48, %v4365_v62  ;;  %v4272_v62 = vadd.f32 %v4243_v56, %v9819_v18 }
 0xdde   : > { %v9839_v52 = vpop.f32.mrf.mxu1 }
 0xde0   : > { %v4356_v46 = vpop.f32.mrf.mxu2 }
 0xde1   : > { %v4366_v11 = vadd.f32 %v4356_v46, %v4277_v40 }
 0xde2   : > { %v4556_v51 = vpop.f32.mrf.mxu0 }
 0xde3   : > { %v4567_v60 = vadd.f32 %v4556_v51, %v4458_v35  ;;  %v4361_v35 = vadd.f32 %v9831_v2, %v4272_v62 }
 0xde6   : > { %v9845_v9 = vpop.f32.mrf.mxu1 }
 0xdee   : > { %v9847_v0 = vpop.f32.mrf.mxu1 }
 0xdf6   : > { %v4640_v25 = vpop.f32.mrf.mxu1 }
 0xdf7   : > { %v4654_v42 = vadd.f32 %v4640_v25, %v4565_v27 }
 0xdf9   : > { %v7445_v36 = vmul.f32 -1.442695, %v4654_v42  ;;  %v4558_v42 = vpop.f32.mrf.mxu0 }
 0xdfb   : > { %8421 = vpow2.f32 %v7445_v36  ;;  %v4459_v36 = vadd.f32 %v4449_v30, %v4366_v11 }
 0xdfd   : > { %v4568_v44 = vadd.f32 %v4558_v42, %v4459_v36 }
 0xdfe   : > { %v4642_v5 = vpop.f32.mrf.mxu1 }
 0xdff   : > { %v4655_v61 = vadd.f32 %v4642_v5, %v4566_v29 }
 0xe01   : > { %v8422_v8 = vpop.eup %8421  ;;  %v7446_v1 = vmul.f32 -1.442695, %v4655_v61 }
 0xe02   : > { %v4674_v47 = vadd.f32 1.0, %v8422_v8 }
 0xe03   : > { %8423 = vpow2.f32 %v7446_v1 }
 0xe04   : > { %8425 = vrcp.f32 %v4674_v47  ;;  %v4689_v5 = vand.u32 2147483648, %v4674_v47  ;;  %v4687_v61 = vand.u32 2147483647, %v4674_v47  ;;  %vm4683_vm9 = vweird.f32 %v4674_v47 }
 0xe06   : > { %v4645_v12 = vpop.f32.mrf.mxu1  ;;  %v4690_v40 = vor.u32 1.1754944e-38, %v4689_v5  ;;  %vm4688_vm11 = vcmp.eq.f32.partialorder %v4687_v61, 8.507059e+37 }
 0xe07   : > { %v4656_v27 = vadd.f32 %v4645_v12, %v4567_v60  ;;  %v4248_v12 = vpop.permute.xlu0 %4247 }
 0xe09   : > { %v8424_v33 = vpop.eup %8423  ;;  %v7447_v25 = vmul.f32 -1.442695, %v4656_v27  ;;  %v4454_v27 = vadd.f32 %v9833_v15, %v4361_v35 }
 0xe0a   : > { %v8426_v55 = vpop.eup %8425  ;;  %v9850_v45 = vadd.f32 1.0, %v8424_v33  ;;  %v4238_v33 = vpop.permute.xlu2 %4237 }
 0xe0b   : > { %v4679_v26 = vmul.f32 %v8426_v55, %v4674_v47  ;;  %8427 = vpow2.f32 %v7447_v25  ;;  %vm4684_vm8 = vweird.f32 %v8426_v55  ;;  %v4273_v47 = vadd.f32 %v4248_v12, %v9823_v32 }
 0xe0c   : > { %8429 = vtanh.f32 %v4650_v31  ;;  %vm4685_vm10 = vmor %vm4683_vm9, %vm4684_vm8  ;;  %v4563_v2 = vadd.f32 %v9835_v58, %v4454_v27  ;;  %v4271_v36 = vadd.f32 %v4238_v33, %v9817_v43  ;;  %vm4698_vm6 = vweird.f32 %v9850_v45 }
 0xe0d   : > { %v4680_v29 = vsub.f32 1.0, %v4679_v26  ;;  %8431 = vrcp.f32 %v9850_v45  ;;  %v4362_v26 = vadd.f32 %v9837_v4, %v4273_v47 }
 0xe0e   : > { %v4647_v48 = vpop.f32.mrf.mxu1  ;;  %v4652_v56 = vadd.f32 %v9845_v9, %v4563_v2 }
 0xe0f   : > { %v4657_v49 = vadd.f32 %v4647_v48, %v4568_v44  ;;  %v4681_v13 = vmul.f32 %v8426_v55, %v4680_v29  ;;  %v4360_v29 = vadd.f32 %v9825_v22, %v4271_v36  ;;  %v4455_v58 = vadd.f32 %v9841_v24, %v4362_v26 }
 0xe11   : > { %v8428_v51 = vpop.eup %8427  ;;  %v7448_v8 = vmul.f32 -1.442695, %v4657_v49  ;;  %v4682_v1 = vadd.f32 %v8426_v55, %v4681_v13  ;;  %v4453_v43 = vadd.f32 %v9827_v23, %v4360_v29  ;;  %v4564_v4 = vadd.f32 %v9843_v28, %v4455_v58  ;;  %v7511_v29 = vld [vmem:[#allocation2] sm:$0xf]  ;;  %v7519_v58 = vld [vmem:[#allocation2 + $0x18] sm:$0xf] }
 0xe12   : > { %v4676_v46 = vadd.f32 1.0, %v8428_v51  ;;  %v8430_v60 = vpop.eup %8429 }
 0xe13   : > { %8433 = vpow2.f32 %v7448_v8  ;;  %v4686_v31 = vsel %vm4685_vm10, %v8426_v55, %v4682_v1  ;;  %v9855_v18 = vpop.eup %8431  ;;  %v4562_v22 = vadd.f32 %v9829_v54, %v4453_v43  ;;  %v4653_v51 = vadd.f32 %v9847_v0, %v4564_v4  ;;  %v4766_v4 = vpop.permute.xlu1 %4765 }
 0xe14   : > { %8435 = vrcp.f32 %v4676_v46  ;;  %v4691_v11 = vsel %vm4688_vm11, %v4690_v40, %v4686_v31  ;;  %v4694_v55 = vmul.f32 %v9855_v18, %v9850_v45  ;;  %v4719_v49 = vand.u32 2147483648, %v4676_v46 }
 0xe15   : > { %v9858_v30 = vmul.f32 %v8430_v60, %v4691_v11  ;;  %v4717_v5 = vand.u32 2147483647, %v4676_v46  ;;  %vm4713_vm13 = vweird.f32 %v4676_v46  ;;  %v4651_v31 = vadd.f32 %v9839_v52, %v4562_v22  ;;  %v8137_v22 = vld [vmem:[#allocation2 + $0x8] sm:$0xf] }
 0xe16   : > { %v4695_v48 = vsub.f32 1.0, %v4694_v55  ;;  %v4720_v24 = vor.u32 1.1754944e-38, %v4719_v49  ;;  %vm4699_vm5 = vweird.f32 %v9855_v18  ;;  %v4704_v54 = vand.u32 2147483648, %v9850_v45  ;;  %v8122_v49 = vld [vmem:[#allocation2 + $0x20] sm:$0xf0] }
 0xe17   : > { %vm4718_vm15 = vcmp.eq.f32.partialorder %v4717_v5, 8.507059e+37  ;;  %v4702_v11 = vand.u32 2147483647, %v9850_v45  ;;  %vm4700_vm8 = vmor %vm4698_vm6, %vm4699_vm5  ;;  %v7629_v5 = vld [vmem:[#allocation2 + $0x28] sm:$0xf0] }
 0xe18   : > { %v4696_v62 = vmul.f32 %v9855_v18, %v4695_v48  ;;  %v4705_v47 = vor.u32 1.1754944e-38, %v4704_v54  ;;  %v8120_v48 = vld [vmem:[#allocation2 + $0x8] sm:$0xf0] }
 0xe19   : > { %v8434_v25 = vpop.eup %8433 }
 0xe1a   : > { %v8436_v42 = vpop.eup %8435  ;;  %v4677_v44 = vadd.f32 1.0, %v8434_v25 }
 0xe1b   : > { %v4709_v15 = vmul.f32 %v8436_v42, %v4676_v46  ;;  %vm4714_vm12 = vweird.f32 %v8436_v42  ;;  %v4697_v46 = vadd.f32 %v9855_v18, %v4696_v62 }
 0xe1c   : > { %8437 = vrcp.f32 %v4677_v44  ;;  %vm4715_vm14 = vmor %vm4713_vm13, %vm4714_vm12  ;;  %v4734_v60 = vand.u32 2147483648, %v4677_v44  ;;  %v4732_v12 = vand.u32 2147483647, %v4677_v44  ;;  %vm4728_vm9 = vweird.f32 %v4677_v44 }
 0xe1d   : > { %v4710_v32 = vsub.f32 1.0, %v4709_v15  ;;  %8439 = vtanh.f32 %v4652_v56  ;;  %v4701_v27 = vsel %vm4700_vm8, %v9855_v18, %v4697_v46  ;;  %vm4703_vm12 = vcmp.eq.f32.partialorder %v4702_v11, 8.507059e+37  ;;  %v8111_v15 = vld [vmem:[%s8576_s25 + $0x594] sm:$0xff]  ;;  %v8112_v18 = vld [vmem:[%s8576_s25 + $0x59c] sm:$0xff] }
 0xe1e   : > { %8441 = vtanh.f32 %v4653_v51  ;;  %v4735_v33 = vor.u32 1.1754944e-38, %v4734_v60  ;;  %vm4733_vm11 = vcmp.eq.f32.partialorder %v4732_v12, 8.507059e+37  ;;  %v7621_v51 = vld [vmem:[#allocation2 + $0x10] sm:$0xf0]  ;;  %v4762_v60 = vpop.permute.xlu0 %4761 }
 0xe1f   : > { %v4711_v13 = vmul.f32 %v8436_v42, %v4710_v32  ;;  %8443 = vtanh.f32 %v4651_v31  ;;  %v9886_v32 = vor.u32 %v8120_v48, %v7511_v29  ;;  %v4758_v31 = vpop.permute.xlu1 %4757 }
 0xe21   : > { %v4712_v9 = vadd.f32 %v8436_v42, %v4711_v13  ;;  %4921 = vrot.lane.b32.xlu1 %v9886_v32, %s8522_s30  ;;  %v7520_v13 = vor.u32 %v8122_v49, %v7519_v58 }
 0xe22   : > { %v8438_v61 = vpop.eup %8437 }
 0xe23   : > { %v4724_v8 = vmul.f32 %v8438_v61, %v4677_v44  ;;  %v4716_v1 = vsel %vm4715_vm14, %v8436_v42, %v4712_v9  ;;  %v8440_v35 = vpop.eup %8439  ;;  %vm4729_vm7 = vweird.f32 %v8438_v61  ;;  %v4706_v42 = vsel %vm4703_vm12, %v4705_v47, %v4701_v27  ;;  %4925 = vrot.lane.b32.xlu2 %v7520_v13, %s8522_s30  ;;  %v4754_v9 = vpop.permute.xlu2 %4753 }
 0xe24   : > { %v4721_v23 = vsel %vm4718_vm15, %v4720_v24, %v4716_v1  ;;  %vm4730_vm10 = vmor %vm4728_vm9, %vm4729_vm7  ;;  %v8442_v25 = vpop.eup %8441  ;;  %v7624_v24 = vor.u32 %v8137_v22, %v7621_v51  ;;  %v9897_v1 = vld [vmem:[%s10258_s1] ss:$0 sm:$0xff]  ;;  %v9938_v22 = vld [vmem:[%s8571_s22 + $0x78] sm:$0xff] }
 0xe25   : > { %v4725_v40 = vsub.f32 1.0, %v4724_v8  ;;  %v4740_v28 = vmul.f32 %v8440_v35, %v4721_v23  ;;  %v8444_v26 = vpop.eup %8443 }
 0xe26   : > { %v4739_v56 = vmul.f32 %v8444_v26, %v4706_v42 }
 0xe27   : > { %v4726_v0 = vmul.f32 %v8438_v61, %v4725_v40 }
 0xe28   : > { %v4742_v44 = vpack.c.bf16 %v4739_v56, %v9858_v30  ;;  %v8139_v30 = vld [vmem:[#allocation2 + $0x20] sm:$0xf] }
 0xe29   : > { %v4727_v52 = vadd.f32 %v8438_v61, %v4726_v0  ;;  %v7632_v43 = vor.u32 %v8139_v30, %v7629_v5 }
 0xe2b   : > { %v4731_v2 = vsel %vm4730_vm10, %v8438_v61, %v4727_v52  ;;  %5258 = vrot.lane.b32.xlu1 %v7632_v43, %s8524_s10 }
 0xe2c   : > { %v4736_v55 = vsel %vm4733_vm11, %v4735_v33, %v4731_v2 }
 0xe2d   : > { %v4741_v36 = vmul.f32 %v8442_v25, %v4736_v55 }
 0xe2f   : > { %v4743_v45 = vpack.c.bf16 %v4741_v36, %v4740_v28 }
 0xe31   : > { %4822 = vmatpush.bf16.msra.mxu2 %v4743_v45 }
 0xe33   : > { %5254 = vrot.lane.b32.xlu1 %v7624_v24, %s8524_s10 }
 0xe35   : > { %4823 = vmatpush.bf16.msra.mxu2 %v4742_v44 }
 0xe38   : > { %7473 = vmatmul.msk.bf16.vlgmr.msra.gmra.mxu2 %vm392_vm1, %v8111_v15 }
 0xe48   : > { %7474 = vmatmul.msk.bf16.gmra.mxu2 %vm392_vm1, %v8112_v18 }
 0xebb   : > { %v4825_v62 = vpop.f32.mrf.mxu2 }
 0xebc   : > { %v4826_v61 = vadd.f32 %v4825_v62, %v4754_v9  ;;  %v8113_v9 = vld [vmem:[%s8576_s25 + $0x5a4] sm:$0xff]  ;;  %v4922_v62 = vpop.permute.xlu1 %4921 }
 0xebd   : > { %7475 = vmatmul.msk.bf16.gmra.mxu2 %vm392_vm1, %v8113_v9 }
 0xebe   : > { %v4845_v8 = vadd.f32 %v4826_v61, %v9692_v53 }
 0xec0   : > { %v9900_v35 = vmul.f32 %v9897_v1, %v4845_v8  ;;  %v9942_v8 = vld [vmem:[%s8571_s22 + $0x68] sm:$0xff] }
 0xec2   : > { %v4857_v23 = vpack.c.bf16 %v9900_v35, %v9900_v35 }
 0xec3   : > { %v4827_v40 = vpop.f32.mrf.mxu2 }
 0xec4   : > { %4861 = vst [vmem:[#allocation2 + $0x4] sm:$0xf] %v4857_v23  ;;  %v4828_v28 = vadd.f32 %v4827_v40, %v4758_v31 }
 0xec6   : > { %v4846_v46 = vadd.f32 %v4828_v28, %v9698_v57 }
 0xec8   : > { %v9906_v53 = vmul.f32 %v9897_v1, %v4846_v46 }
 0xeca   : > { %v4858_v54 = vpack.c.bf16 %v9906_v53, %v9906_v53 }
 0xecb   : > { %v4830_v0 = vpop.f32.mrf.mxu2  ;;  %v8119_v57 = vld [vmem:[#allocation2 + $0x4] sm:$0xf] }
 0xecc   : > { %4862 = vst [vmem:[#allocation2 + $0x10] sm:$0xf] %v4858_v54  ;;  %v4831_v12 = vadd.f32 %v4830_v0, %v4762_v60  ;;  %v7583_v58 = vld [vmem:[#allocation2 + $0x4] sm:$0xf]  ;;  %v8115_v0 = vld [vmem:[%s8576_s25 + $0x434] sm:$0xff] }
 0xecd   : > { %v7619_v30 = vld [vmem:[#allocation2 + $0x4] sm:$0xf] }
 0xece   : > { %v4847_v11 = vadd.f32 %v4831_v12, %v9704_v63  ;;  %v8127_v12 = vld [vmem:[%s8576_s25 + $0x474] sm:$0xff] }
 0xed0   : > { %v9912_v52 = vmul.f32 %v9897_v1, %v4847_v11 }
 0xed2   : > { %v4859_v27 = vpack.c.bf16 %v9912_v52, %v9912_v52 }
 0xed3   : > { %v4832_v33 = vpop.f32.mrf.mxu2  ;;  %v7513_v47 = vld [vmem:[#allocation2 + $0xc] sm:$0xf0] }
 0xed4   : > { %4863 = vst [vmem:[#allocation2 + $0x1c] sm:$0xf] %v4859_v27  ;;  %v4833_v2 = vadd.f32 %v4832_v33, %v4766_v4  ;;  %v7516_v25 = vor.u32 %v8119_v57, %v7513_v47  ;;  %v8131_v48 = vld [vmem:[#allocation2 + $0xc] sm:$0xf0] }
 0xed5   : > { %v7584_v49 = vor.u32 %v8131_v48, %v7583_v58  ;;  %v9959_v47 = vld [vmem:[%s8571_s22 + $0x70] sm:$0xff]  ;;  %v8135_v48 = vld [vmem:[%s8576_s25 + $0x4a4] sm:$0xff] }
 0xed6   : > { %v4848_v55 = vadd.f32 %v4833_v2, %v9711_v17  ;;  %4923 = vrot.lane.b32.xlu2 %v7516_v25, %s8522_s30  ;;  %v9962_v2 = vld [vmem:[%s8571_s22 + $0x60] sm:$0xff]  ;;  %v8130_v58 = vld [vmem:[%s8576_s25 + $0x48c] sm:$0xff] }
 0xed8   : > { %v9919_v42 = vmul.f32 %v9897_v1, %v4848_v55 }
 0xeda   : > { %v4860_v63 = vpack.c.bf16 %v9919_v42, %v9919_v42 }
 0xedb   : > { %v7627_v36 = vld [vmem:[#allocation2 + $0x1c] sm:$0xf] }
 0xedc   : > { %4864 = vst [vmem:[#allocation2 + $0x28] sm:$0xf] %v4860_v63  ;;  %v7587_v26 = vld [vmem:[#allocation2 + $0x1c] sm:$0xf] }
 0xedd   : > { %v8121_v45 = vld [vmem:[#allocation2 + $0x1c] sm:$0xf] }
 0xede   : > { %5054 = vrot.lane.b32.xlu2 %v7520_v13, %s8523_s7  ;;  %v8138_v13 = vld [vmem:[#allocation2 + $0xc] sm:$0xf0] }
 0xedf   : > { %v7620_v5 = vor.u32 %v8138_v13, %v7619_v30  ;;  %v8141_v13 = vld [vmem:[%s8576_s25 + $0x4b4] sm:$0xff]  ;;  %v8126_v30 = vld [vmem:[%s8576_s25 + $0x46c] sm:$0xff] }
 0xee3   : > { %v8140_v56 = vld [vmem:[#allocation2 + $0x24] sm:$0xf0] }
 0xee4   : > { %v8132_v44 = vld [vmem:[#allocation2 + $0x24] sm:$0xf0]  ;;  %v7628_v18 = vor.u32 %v8140_v56, %v7627_v36  ;;  %v8116_v36 = vld [vmem:[%s8576_s25 + $0x43c] sm:$0xff] }
 0xee5   : > { %v7521_v15 = vld [vmem:[#allocation2 + $0x24] sm:$0xf0]  ;;  %v7588_v29 = vor.u32 %v8132_v44, %v7587_v26  ;;  %v8133_v26 = vld [vmem:[%s8576_s25 + $0x494] sm:$0xff] }
 0xee6   : > { %v7524_v17 = vor.u32 %v8121_v45, %v7521_v15  ;;  %5345 = vrot.lane.b32.xlu1 %v7628_v18, %s8525_s11  ;;  %5347 = vrot.lane.b32.xlu2 %v7632_v43, %s8525_s11  ;;  %v4926_v43 = vpop.permute.xlu2 %4925  ;;  %v8128_v45 = vld [vmem:[%s8576_s25 + $0x47c] sm:$0xff] }
 0xee7   : > { %5173 = vmatpush.bf16.msrb.mxu1 %v7588_v29  ;;  %v8129_v29 = vld [vmem:[%s8576_s25 + $0x484] sm:$0xff] }
 0xee8   : > { %4927 = vrot.lane.b32.xlu0 %v7524_v17, %s8522_s30 }
 0xeeb   : > { %5174 = vmatpush.bf16.msrb.mxu1 %v7584_v49  ;;  %v8125_v49 = vld [vmem:[%s8576_s25 + $0x464] sm:$0xff] }
 0xeee   : > { %5341 = vrot.lane.b32.xlu1 %v7620_v5, %s8525_s11  ;;  %5050 = vrot.lane.b32.xlu2 %v9886_v32, %s8523_s7  ;;  %v5259_v32 = vpop.permute.xlu1 %5258 }
 0xeef   : > { %7589 = vmatmul.msk.bf16.vlgmr.msrb.gmra.mxu1 %vm392_vm1, %v8127_v12 }
 0xef0   : > { %5252 = vrot.lane.b32.xlu0 %v7620_v5, %s8524_s10  ;;  %v8142_v5 = vld [vmem:[%s8576_s25 + $0x4bc] sm:$0xff] }
 0xef6   : > { %5343 = vrot.lane.b32.xlu2 %v7624_v24, %s8525_s11  ;;  %5011 = vperm.xlu1 %8275, %v9938_v22   ;;  %v8114_v24 = vld [vmem:[%s8576_s25 + $0x5ac] sm:$0xff]  ;;  %v5255_v31 = vpop.permute.xlu1 %5254 }
 0xef7   : > { %7476 = vmatmul.msk.bf16.gmra.mxu2 %vm392_vm1, %v8114_v24 }
 0xef8   : > { %5256 = vrot.lane.b32.xlu0 %v7628_v18, %s8524_s10  ;;  %v8123_v18 = vld [vmem:[%s8576_s25 + $0x454] sm:$0xff] }
 0xefe   : > { %5001 = vperm.xlu1 %8275, %v9942_v8   ;;  %4996 = vperm.xlu2 %8276, %v9962_v2  }
 0xeff   : > { %7590 = vmatmul.msk.bf16.gmra.mxu1 %vm392_vm1, %v8128_v45 }
 0xf00   : > { %5056 = vrot.lane.b32.xlu0 %v7524_v17, %s8523_s7  ;;  %v8124_v17 = vld [vmem:[%s8576_s25 + $0x45c] sm:$0xff] }
 0xf06   : > { %4976 = vperm.xlu1 %8275, %v9734_v3   ;;  %4986 = vperm.xlu2 %8276, %v9754_v10  }
 0xf08   : > { %5052 = vrot.lane.b32.xlu0 %v7516_v25, %s8523_s7 }
 0xf0e   : > { %8278 = vset.pattern.permute.xlu1 %v8531_v59  ;;  %4981 = vperm.xlu2 %8276, %v9760_v20  }
 0xf0f   : > { %5509 = vperm.xlu1 %8278, %v9751_v16   ;;  %7591 = vmatmul.msk.bf16.gmra.mxu1 %vm392_vm1, %v8129_v29 }
 0xf10   : > { %5006 = vperm.xlu0 %8274, %v9959_v47  }
 0xf16   : > { %8279 = vset.pattern.permute.xlu2 %v8531_v59 }
 0xf17   : > { %5501 = vperm.xlu1 %8278, %v9760_v20   ;;  %5497 = vperm.xlu2 %8279, %v9734_v3   ;;  %v8117_v20 = vld [vmem:[%s8576_s25 + $0x444] sm:$0xff]  ;;  %v8118_v3 = vld [vmem:[%s8576_s25 + $0x44c] sm:$0xff] }
 0xf18   : > { %4991 = vperm.xlu0 %8274, %v9751_v16  }
 0xf1f   : > { %8281 = vset.pattern.permute.xlu1 %v8532_v38  ;;  %8282 = vset.pattern.permute.xlu2 %v8532_v38 }
 0xf20   : > { %8277 = vset.pattern.permute.xlu0 %v8531_v59  ;;  %7592 = vmatmul.msk.bf16.gmra.mxu1 %vm392_vm1, %v8130_v58 }
 0xf21   : > { %5505 = vperm.xlu0 %8277, %v9754_v10   ;;  %v8134_v10 = vld [vmem:[%s8576_s25 + $0x49c] sm:$0xff] }
 0xf29   : > { %8280 = vset.pattern.permute.xlu0 %v8532_v38  ;;  %v8136_v38 = vld [vmem:[%s8576_s25 + $0x4ac] sm:$0xff] }
 0xf30   : > { %v4924_v4 = vpop.permute.xlu2 %4923 }
 0xf31   : > { %v4929_v60 = vsel %vm387_vm0, %v4922_v62, %v4924_v4  ;;  %v8144_v4 = vld [vmem:[%s8576_s25 + $0x4cc] sm:$0xff] }
 0xf38   : > { %v5055_v61 = vpop.permute.xlu2 %5054 }
 0xf40   : > { %v5348_v51 = vpop.permute.xlu2 %5347  ;;  %v10017_v9 = vpop.f32.mrf.mxu2 }
 0xf48   : > { %v5051_v23 = vpop.permute.xlu2 %5050  ;;  %v10019_v62 = vpop.f32.mrf.mxu2 }
 0xf50   : > { %v5344_v54 = vpop.permute.xlu2 %5343 }
 0xf58   : > { %v5346_v40 = vpop.permute.xlu1 %5345  ;;  %v4997_v24 = vpop.permute.xlu2 %4996 }
 0xf59   : > { %v5350_v11 = vsel %vm811_vm4, %v5346_v40, %v5348_v51 }
 0xf5a   : > { %v4928_v28 = vpop.permute.xlu0 %4927 }
 0xf5b   : > { %v4930_v46 = vsel %vm387_vm0, %v4926_v43, %v4928_v28  ;;  %v8143_v43 = vld [vmem:[%s8576_s25 + $0x4c4] sm:$0xff] }
 0xf5c   : > { %4951 = vmatpush.bf16.msra.mxu3 %v4930_v46 }
 0xf60   : > { %4952 = vmatpush.bf16.msra.mxu3 %v4929_v60  ;;  %v5342_v27 = vpop.permute.xlu1 %5341  ;;  %v10027_v28 = vpop.permute.xlu2 %4986 }
 0xf61   : > { %v5349_v57 = vsel %vm811_vm4, %v5342_v27, %v5344_v54 }
 0xf62   : > { %v5253_v33 = vpop.permute.xlu0 %5252 }
 0xf63   : > { %7525 = vmatmul.msk.bf16.vlgmr.msra.gmra.mxu3 %vm392_vm1, %v8115_v0  ;;  %v5260_v63 = vsel %vm721_vm2, %v5253_v33, %v5255_v31 }
 0xf64   : > { %5371 = vmatpush.bf16.msrb.mxu3 %v5350_v11 }
 0xf68   : > { %5372 = vmatpush.bf16.msrb.mxu3 %v5349_v57 }
 0xf6a   : > { %v5257_v25 = vpop.permute.xlu0 %5256 }
 0xf6b   : > { %v5261_v55 = vsel %vm721_vm2, %v5257_v25, %v5259_v32  ;;  %v4982_v25 = vpop.permute.xlu2 %4981 }
 0xf6c   : > { %5282 = vmatpush.bf16.msrb.mxu2 %v5261_v55  ;;  %v5176_v54 = vpop.f32.mrf.mxu1 }
 0xf70   : > { %5283 = vmatpush.bf16.msrb.mxu2 %v5260_v63 }
 0xf72   : > { %v5057_v56 = vpop.permute.xlu0 %5056 }
 0xf73   : > { %v5059_v44 = vsel %vm518_vm3, %v5055_v61, %v5057_v56  ;;  %7526 = vmatmul.msk.bf16.gmra.mxu3 %vm392_vm1, %v8116_v36  ;;  %7633 = vmatmul.msk.bf16.vlgmr.msrb.gmra.mxu2 %vm392_vm1, %v8133_v26  ;;  %v10021_v61 = vpop.permute.xlu1 %5011 }
 0xf74   : > { %5080 = vmatpush.bf16.msrb.mxu0 %v5059_v44  ;;  %v5178_v26 = vpop.f32.mrf.mxu1 }
 0xf7a   : > { %v5053_v16 = vpop.permute.xlu0 %5052  ;;  %v10023_v51 = vpop.f32.mrf.mxu2 }
 0xf7b   : > { %v5058_v15 = vsel %vm518_vm3, %v5051_v23, %v5053_v16  ;;  %v5002_v31 = vpop.permute.xlu1 %5001 }
 0xf7c   : > { %5081 = vmatpush.bf16.msrb.mxu0 %v5058_v15 }
 0xf7f   : > { %7553 = vmatmul.msk.bf16.vlgmr.msrb.gmra.mxu0 %vm392_vm1, %v8123_v18 }
 0xf82   : > { %v10025_v40 = vpop.f32.mrf.mxu2 }
 0xf83   : > { %7527 = vmatmul.msk.bf16.gmra.mxu3 %vm392_vm1, %v8117_v20  ;;  %7634 = vmatmul.msk.bf16.gmra.mxu2 %vm392_vm1, %v8134_v10  ;;  %v4977_v60 = vpop.permute.xlu1 %4976 }
 0xf8f   : > { %7554 = vmatmul.msk.bf16.gmra.mxu0 %vm392_vm1, %v8124_v17  ;;  %v10035_v17 = vpop.f32.mrf.mxu1 }
 0xf93   : > { %7528 = vmatmul.msk.bf16.gmra.mxu3 %vm392_vm1, %v8118_v3  ;;  %7635 = vmatmul.msk.bf16.gmra.mxu2 %vm392_vm1, %v8135_v48 }
 0xf9f   : > { %7555 = vmatmul.msk.bf16.gmra.mxu0 %vm392_vm1, %v8125_v49 }
 0xfa3   : > { %7661 = vmatmul.msk.bf16.vlgmr.msrb.gmra.mxu3 %vm392_vm1, %v8141_v13  ;;  %7636 = vmatmul.msk.bf16.gmra.mxu2 %vm392_vm1, %v8136_v38  ;;  %v10041_v13 = vpop.f32.mrf.mxu1 }
 0xfaf   : > { %7556 = vmatmul.msk.bf16.gmra.mxu0 %vm392_vm1, %v8126_v30 }
 0xfb3   : > { %7662 = vmatmul.msk.bf16.gmra.mxu3 %vm392_vm1, %v8142_v5 }
 0xfc3   : > { %7663 = vmatmul.msk.bf16.gmra.mxu3 %vm392_vm1, %v8143_v43 }
 0xfd3   : > { %7664 = vmatmul.msk.bf16.gmra.mxu3 %vm392_vm1, %v8144_v4 }
 0xfe6   : > { %v4954_v32 = vpop.f32.mrf.mxu3 }
 0xfe7   : > { %v5014_v0 = vadd.f32 %v4977_v60, %v4954_v32  ;;  %v5186_v32 = vpop.f32.mrf.mxu1 }
 0xfee   : > { %v4956_v23 = vpop.f32.mrf.mxu3 }
 0xfef   : > { %v5015_v63 = vadd.f32 %v4982_v25, %v4956_v23 }
 0xff6   : > { %v10029_v46 = vpop.f32.mrf.mxu3  ;;  %v5285_v11 = vpop.f32.mrf.mxu2 }
 0xffc   : > { %v5083_v12 = vpop.f32.mrf.mxu0 }
 0xffd   : > { %v5103_v27 = vadd.f32 %v5083_v12, %v5014_v0 }
 0xffe   : > { %v10031_v33 = vpop.f32.mrf.mxu3  ;;  %v5287_v44 = vpop.f32.mrf.mxu2 }
 0xfff   : > { %v5196_v57 = vadd.f32 %v5176_v54, %v5103_v27  ;;  %v5188_v27 = vpop.f32.mrf.mxu1 }
0x1001   : > { %v5305_v55 = vadd.f32 %v5285_v11, %v5196_v57 }
0x1004   : > { %v5085_v36 = vpop.f32.mrf.mxu0 }
0x1005   : > { %v5104_v45 = vadd.f32 %v5085_v36, %v5015_v63 }
0x1006   : > { %v4964_v56 = vpop.f32.mrf.mxu3  ;;  %v10037_v58 = vpop.f32.mrf.mxu2 }
0x1007   : > { %v5197_v16 = vadd.f32 %v5178_v26, %v5104_v45  ;;  %v5018_v23 = vadd.f32 %v4997_v24, %v4964_v56  ;;  %v5191_v24 = vpop.f32.mrf.mxu1 }
0x1009   : > { %v5306_v15 = vadd.f32 %v5287_v44, %v5197_v16 }
0x100c   : > { %v10033_v29 = vpop.f32.mrf.mxu0 }
0x100e   : > { %v4966_v18 = vpop.f32.mrf.mxu3  ;;  %v10045_v5 = vpop.f32.mrf.mxu2 }
0x100f   : > { %v5019_v57 = vadd.f32 %v5002_v31, %v4966_v18 }
0x1014   : > { %v10039_v49 = vpop.f32.mrf.mxu0 }
0x1016   : > { %v4969_v20 = vpop.f32.mrf.mxu3  ;;  %v5295_v60 = vpop.f32.mrf.mxu2 }
0x101c   : > { %v5093_v43 = vpop.f32.mrf.mxu0 }
0x101d   : > { %v5107_v54 = vadd.f32 %v5093_v43, %v5018_v23 }
0x101e   : > { %v4971_v10 = vpop.f32.mrf.mxu3  ;;  %v5297_v63 = vpop.f32.mrf.mxu2 }
0x101f   : > { %v5200_v11 = vadd.f32 %v5186_v32, %v5107_v54 }
0x1021   : > { %v5309_v25 = vadd.f32 %v5295_v60, %v5200_v11 }
0x1024   : > { %v5095_v0 = vpop.f32.mrf.mxu0 }
0x1026   : > { %v5374_v3 = vpop.f32.mrf.mxu3  ;;  %v5300_v21 = vpop.f32.mrf.mxu2 }
0x1027   : > { %v5394_v48 = vadd.f32 %v5374_v3, %v5305_v55  ;;  %v5108_v55 = vadd.f32 %v5095_v0, %v5019_v57  ;;  %v5021_v0 = vadd.f32 %v10021_v61, %v4971_v10  ;;  %v5193_v57 = vpop.f32.mrf.mxu1  ;;  %v5016_v61 = vadd.f32 %v10027_v28, %v10029_v46 }
0x1029   : > { %v5201_v44 = vadd.f32 %v5188_v27, %v5108_v55 }
0x102b   : > { %v5310_v56 = vadd.f32 %v5297_v63, %v5201_v44 }
0x102c   : > { %v5098_v45 = vpop.f32.mrf.mxu0 }
0x102e   : > { %v5376_v38 = vpop.f32.mrf.mxu3 }
0x102f   : > { %v10043_v30 = vadd.f32 %v5376_v38, %v5306_v15  ;;  %v5007_v15 = vpop.permute.xlu0 %5006 }
0x1030   : > { %v5020_v3 = vadd.f32 %v5007_v15, %v4969_v20 }
0x1032   : > { %v5109_v38 = vadd.f32 %v5098_v45, %v5020_v3  ;;  %v5302_v45 = vpop.f32.mrf.mxu2 }
0x1034   : > { %v5202_v54 = vadd.f32 %v5191_v24, %v5109_v38  ;;  %v5100_v18 = vpop.f32.mrf.mxu0  ;;  %v5105_v38 = vadd.f32 %v10033_v29, %v5016_v61 }
0x1035   : > { %v5110_v27 = vadd.f32 %v5100_v18, %v5021_v0 }
0x1036   : > { %v10047_v4 = vpop.f32.mrf.mxu3  ;;  %v5311_v11 = vadd.f32 %v5300_v21, %v5202_v54 }
0x1037   : > { %v5203_v63 = vadd.f32 %v5193_v57, %v5110_v27  ;;  %v4992_v0 = vpop.permute.xlu0 %4991  ;;  %v5198_v27 = vadd.f32 %v10035_v17, %v5105_v38 }
0x1039   : > { %v5312_v15 = vadd.f32 %v5302_v45, %v5203_v63  ;;  %v5307_v63 = vadd.f32 %v10037_v58, %v5198_v27 }
0x103e   : > { %v10049_v12 = vpop.f32.mrf.mxu3 }
0x1046   : > { %v5384_v36 = vpop.f32.mrf.mxu3 }
0x1047   : > { %v5398_v26 = vadd.f32 %v5384_v36, %v5309_v25 }
0x1049   : > { %v7665_v16 = vmul.f32 -1.442695, %v5398_v26 }
0x104b   : > { %8445 = vpow2.f32 %v7665_v16 }
0x104e   : > { %v5386_v43 = vpop.f32.mrf.mxu3 }
0x104f   : > { %v5399_v23 = vadd.f32 %v5386_v43, %v5310_v56 }
0x1051   : > { %v8446_v32 = vpop.eup %8445  ;;  %v7666_v31 = vmul.f32 -1.442695, %v5399_v23 }
0x1052   : > { %v5418_v60 = vadd.f32 1.0, %v8446_v32 }
0x1053   : > { %8447 = vpow2.f32 %v7666_v31 }
0x1054   : > { %8449 = vrcp.f32 %v5418_v60  ;;  %v5433_v56 = vand.u32 2147483648, %v5418_v60  ;;  %v5431_v43 = vand.u32 2147483647, %v5418_v60  ;;  %vm5427_vm14 = vweird.f32 %v5418_v60 }
0x1056   : > { %v5389_v20 = vpop.f32.mrf.mxu3  ;;  %v5434_v46 = vor.u32 1.1754944e-38, %v5433_v56  ;;  %vm5432_vm5 = vcmp.eq.f32.partialorder %v5431_v43, 8.507059e+37 }
0x1057   : > { %v5400_v25 = vadd.f32 %v5389_v20, %v5311_v11  ;;  %v5017_v20 = vadd.f32 %v4992_v0, %v10031_v33 }
0x1059   : > { %v8448_v55 = vpop.eup %8447  ;;  %v7667_v36 = vmul.f32 -1.442695, %v5400_v25 }
0x105a   : > { %v8450_v26 = vpop.eup %8449  ;;  %v5419_v44 = vadd.f32 1.0, %v8448_v55 }
0x105b   : > { %v5423_v16 = vmul.f32 %v8450_v26, %v5418_v60  ;;  %8451 = vpow2.f32 %v7667_v36  ;;  %vm5428_vm13 = vweird.f32 %v8450_v26  ;;  %v5106_v36 = vadd.f32 %v10039_v49, %v5017_v20 }
0x105c   : > { %8453 = vrcp.f32 %v5419_v44  ;;  %vm5429_vm15 = vmor %vm5427_vm14, %vm5428_vm13  ;;  %v5448_v55 = vand.u32 2147483648, %v5419_v44  ;;  %vm5442_vm7 = vweird.f32 %v5419_v44 }
0x105d   : > { %v5424_v3 = vsub.f32 1.0, %v5423_v16  ;;  %8455 = vtanh.f32 %v5394_v48 }
0x105e   : > { %v5391_v21 = vpop.f32.mrf.mxu3 }
0x105f   : > { %v5401_v10 = vadd.f32 %v5391_v21, %v5312_v15  ;;  %v5425_v24 = vmul.f32 %v8450_v26, %v5424_v3  ;;  %v5396_v15 = vadd.f32 %v10047_v4, %v5307_v63  ;;  %v5449_v21 = vor.u32 1.1754944e-38, %v5448_v55  ;;  %v8145_v63 = vld [vmem:[%s8576_s25 + $0x5b4] sm:$0xff] }
0x1061   : > { %v8452_v23 = vpop.eup %8451  ;;  %v7668_v32 = vmul.f32 -1.442695, %v5401_v10  ;;  %v5426_v54 = vadd.f32 %v8450_v26, %v5425_v24 }
0x1062   : > { %v8454_v31 = vpop.eup %8453  ;;  %v5420_v18 = vadd.f32 1.0, %v8452_v23 }
0x1063   : > { %v5438_v11 = vmul.f32 %v8454_v31, %v5419_v44  ;;  %8457 = vpow2.f32 %v7668_v32  ;;  %v5430_v28 = vsel %vm5429_vm15, %v8450_v26, %v5426_v54  ;;  %v8456_v48 = vpop.eup %8455  ;;  %vm5443_vm6 = vweird.f32 %v8454_v31 }
0x1064   : > { %8459 = vrcp.f32 %v5420_v18  ;;  %v5435_v29 = vsel %vm5432_vm5, %v5434_v46, %v5430_v28  ;;  %v5446_v26 = vand.u32 2147483647, %v5419_v44  ;;  %vm5444_vm8 = vmor %vm5442_vm7, %vm5443_vm6  ;;  %v5463_v49 = vand.u32 2147483648, %v5420_v18 }
0x1065   : > { %v5439_v57 = vsub.f32 1.0, %v5438_v11  ;;  %v5482_v25 = vmul.f32 %v8456_v48, %v5435_v29  ;;  %8461 = vtanh.f32 %v10043_v30  ;;  %v5199_v30 = vadd.f32 %v10041_v13, %v5106_v36  ;;  %v8146_v36 = vld [vmem:[%s8576_s25 + $0x5bc] sm:$0xff] }
0x1066   : > { %vm5447_vm9 = vcmp.eq.f32.partialorder %v5446_v26, 8.507059e+37  ;;  %v5461_v44 = vand.u32 2147483647, %v5420_v18  ;;  %vm5457_vm11 = vweird.f32 %v5420_v18  ;;  %v5464_v13 = vor.u32 1.1754944e-38, %v5463_v49  ;;  %v7731_v26 = vld [vmem:[#allocation2] sm:$0xf] }
0x1067   : > { %v5440_v60 = vmul.f32 %v8454_v31, %v5439_v57  ;;  %v5308_v4 = vadd.f32 %v10045_v5, %v5199_v30 }
0x1068   : > { %vm5462_vm13 = vcmp.eq.f32.partialorder %v5461_v44, 8.507059e+37 }
0x1069   : > { %v8458_v45 = vpop.eup %8457  ;;  %v5441_v16 = vadd.f32 %v8454_v31, %v5440_v60  ;;  %v5397_v54 = vadd.f32 %v10049_v12, %v5308_v4 }
0x106a   : > { %v8460_v17 = vpop.eup %8459  ;;  %v5421_v3 = vadd.f32 1.0, %v8458_v45  ;;  %v8154_v45 = vld [vmem:[#allocation2 + $0x8] sm:$0xf0] }
0x106b   : > { %v5453_v33 = vmul.f32 %v8460_v17, %v5420_v18  ;;  %v5445_v61 = vsel %vm5444_vm8, %v8454_v31, %v5441_v16  ;;  %v8462_v10 = vpop.eup %8461  ;;  %vm5458_vm10 = vweird.f32 %v8460_v17  ;;  %v7732_v16 = vor.u32 %v8154_v45, %v7731_v26 }
0x106c   : > { %8463 = vrcp.f32 %v5421_v3  ;;  %v5450_v24 = vsel %vm5447_vm9, %v5449_v21, %v5445_v61  ;;  %vm5459_vm12 = vmor %vm5457_vm11, %vm5458_vm10  ;;  %v5478_v27 = vand.u32 2147483648, %v5421_v3  ;;  %v5476_v5 = vand.u32 2147483647, %v5421_v3  ;;  %v5498_v61 = vpop.permute.xlu2 %5497 }
0x106d   : > { %v5454_v58 = vsub.f32 1.0, %v5453_v33  ;;  %8465 = vtanh.f32 %v5396_v15  ;;  %v5483_v56 = vmul.f32 %v8462_v10, %v5450_v24  ;;  %vm5472_vm15 = vweird.f32 %v5421_v3  ;;  %5665 = vrot.lane.b32.xlu1 %v7732_v16, %s8522_s30  ;;  %v8156_v15 = vld [vmem:[#allocation2 + $0x20] sm:$0xf0]  ;;  %v5510_v33 = vpop.permute.xlu1 %5509  ;;  %v8173_v10 = vld [vmem:[#allocation2 + $0x20] sm:$0xf] }
0x106e   : > { %8467 = vtanh.f32 %v5397_v54  ;;  %v5479_v12 = vor.u32 1.1754944e-38, %v5478_v27  ;;  %vm5477_vm6 = vcmp.eq.f32.partialorder %v5476_v5, 8.507059e+37  ;;  %v5506_v54 = vpop.permute.xlu0 %5505 }
0x106f   : > { %v5455_v38 = vmul.f32 %v8460_v17, %v5454_v58  ;;  %v5486_v43 = vpack.c.bf16 %v5483_v56, %v5482_v25  ;;  %v7849_v58 = vld [vmem:[#allocation2 + $0x28] sm:$0xf0] }
0x1070   : > { %v7852_v24 = vor.u32 %v8173_v10, %v7849_v58  ;;  %v7697_v58 = vld [vmem:[%s8571_s22 + $0x40] sm:$0xff] }
0x1071   : > { %v5456_v23 = vadd.f32 %v8460_v17, %v5455_v38 }
0x1072   : > { %v8464_v32 = vpop.eup %8463 }
0x1073   : > { %v5468_v31 = vmul.f32 %v8464_v32, %v5421_v3  ;;  %v5460_v0 = vsel %vm5459_vm12, %v8460_v17, %v5456_v23  ;;  %v8466_v11 = vpop.eup %8465  ;;  %vm5473_vm14 = vweird.f32 %v8464_v32  ;;  %v7739_v17 = vld [vmem:[#allocation2 + $0x18] sm:$0xf] }
0x1074   : > { %v5465_v28 = vsel %vm5462_vm13, %v5464_v13, %v5460_v0  ;;  %vm5474_vm5 = vmor %vm5472_vm15, %vm5473_vm14  ;;  %v8468_v20 = vpop.eup %8467  ;;  %v7740_v3 = vor.u32 %v8156_v15, %v7739_v17 }
0x1075   : > { %v5469_v46 = vsub.f32 1.0, %v5468_v31  ;;  %v5484_v48 = vmul.f32 %v8466_v11, %v5465_v28  ;;  %6091 = vrot.lane.b32.xlu1 %v7852_v24, %s8525_s11  ;;  %v5502_v38 = vpop.permute.xlu1 %5501 }
0x1076   : > { %5669 = vrot.lane.b32.xlu2 %v7740_v3, %s8522_s30 }
0x1077   : > { %v5470_v57 = vmul.f32 %v8464_v32, %v5469_v46 }
0x1079   : > { %v5471_v18 = vadd.f32 %v8464_v32, %v5470_v57 }
0x107b   : > { %v5475_v29 = vsel %vm5474_vm5, %v8464_v32, %v5471_v18 }
0x107c   : > { %v5480_v25 = vsel %vm5477_vm6, %v5479_v12, %v5475_v29 }
0x107d   : > { %v5485_v60 = vmul.f32 %v8468_v20, %v5480_v25 }
0x107f   : > { %v5487_v55 = vpack.c.bf16 %v5485_v60, %v5484_v48 }
0x1081   : > { %5566 = vmatpush.bf16.msra.mxu0 %v5487_v55 }
0x1085   : > { %5567 = vmatpush.bf16.msra.mxu0 %v5486_v43 }
0x1088   : > { %7693 = vmatmul.msk.bf16.vlgmr.msra.gmra.mxu0 %vm392_vm1, %v8145_v63 }
0x1098   : > { %7694 = vmatmul.msk.bf16.gmra.mxu0 %vm392_vm1, %v8146_v36 }
0x1105   : > { %v5569_v21 = vpop.f32.mrf.mxu0 }
0x1106   : > { %v5570_v30 = vadd.f32 %v5569_v21, %v5498_v61  ;;  %v8148_v61 = vld [vmem:[%s8576_s25 + $0x5cc] sm:$0xff]  ;;  %v8171_v21 = vld [vmem:[#allocation2 + $0x8] sm:$0xf] }
0x1108   : > { %v5589_v49 = vadd.f32 %v5570_v30, %v9900_v35  ;;  %v7841_v30 = vld [vmem:[#allocation2 + $0x10] sm:$0xf0] }
0x1109   : > { %v7844_v10 = vor.u32 %v8171_v21, %v7841_v30  ;;  %v8177_v21 = vld [vmem:[%s8576_s25 + $0x564] sm:$0xff]  ;;  %v8178_v30 = vld [vmem:[%s8576_s25 + $0x56c] sm:$0xff] }
0x110a   : > { %v5593_v56 = vmul.f32 %v9897_v1, %v5589_v49  ;;  %v7700_v49 = vld [vmem:[%s8571_s22 + $0x58] sm:$0xff] }
0x110c   : > { %v5601_v44 = vpack.c.bf16 %v5593_v56, %v5593_v56  ;;  %v8505_v56 = vld [vmem:[%s8571_s22 + $0x78] sm:$0xff] }
0x110d   : > { %v5571_v4 = vpop.f32.mrf.mxu0 }
0x110e   : > { %5605 = vst [vmem:[#allocation2 + $0x4] sm:$0xf] %v5601_v44  ;;  %v5572_v43 = vadd.f32 %v5571_v4, %v5502_v38  ;;  %v8506_v38 = vld [vmem:[%s8571_s22 + $0x70] sm:$0xff]  ;;  %v8507_v44 = vld [vmem:[%s8571_s22 + $0x60] sm:$0xff]  ;;  %v8508_v4 = vld [vmem:[%s8571_s22 + $0x68] sm:$0xff] }
0x1110   : > { %v5590_v23 = vadd.f32 %v5572_v43, %v9906_v53 }
0x1112   : > { %v5594_v32 = vmul.f32 %v9897_v1, %v5590_v23  ;;  %v8161_v23 = vld [vmem:[%s8576_s25 + $0x514] sm:$0xff] }
0x1114   : > { %v5602_v13 = vpack.c.bf16 %v5594_v32, %v5594_v32 }
0x1115   : > { %v5574_v31 = vpop.f32.mrf.mxu0  ;;  %v8153_v48 = vld [vmem:[#allocation2 + $0x4] sm:$0xf] }
0x1116   : > { %5606 = vst [vmem:[#allocation2 + $0x10] sm:$0xf] %v5602_v13  ;;  %v5575_v0 = vadd.f32 %v5574_v31, %v5506_v54  ;;  %v7839_v15 = vld [vmem:[#allocation2 + $0x4] sm:$0xf]  ;;  %v8149_v13 = vld [vmem:[%s8576_s25 + $0x4d4] sm:$0xff] }
0x1118   : > { %v5591_v35 = vadd.f32 %v5575_v0, %v9912_v52  ;;  %v8147_v52 = vld [vmem:[%s8576_s25 + $0x5c4] sm:$0xff] }
0x1119   : > { %7695 = vmatmul.msk.bf16.gmra.mxu0 %vm392_vm1, %v8147_v52 }
0x111a   : > { %v5595_v11 = vmul.f32 %v9897_v1, %v5591_v35 }
0x111c   : > { %v5603_v28 = vpack.c.bf16 %v5595_v11, %v5595_v11 }
0x111d   : > { %v5576_v46 = vpop.f32.mrf.mxu0  ;;  %v7733_v27 = vld [vmem:[#allocation2 + $0xc] sm:$0xf0] }
0x111e   : > { %5607 = vst [vmem:[#allocation2 + $0x1c] sm:$0xf] %v5603_v28  ;;  %v5577_v57 = vadd.f32 %v5576_v46, %v5510_v33  ;;  %v7736_v5 = vor.u32 %v8153_v48, %v7733_v27  ;;  %v8165_v36 = vld [vmem:[#allocation2 + $0xc] sm:$0xf0]  ;;  %v8157_v27 = vld [vmem:[%s8576_s25 + $0x4f4] sm:$0xff] }
0x111f   : > { %v8172_v45 = vld [vmem:[#allocation2 + $0xc] sm:$0xf0] }
0x1120   : > { %v5592_v53 = vadd.f32 %v5577_v57, %v9919_v42  ;;  %5667 = vrot.lane.b32.xlu2 %v7736_v5, %s8522_s30  ;;  %v7840_v33 = vor.u32 %v8172_v45, %v7839_v15  ;;  %v8152_v45 = vld [vmem:[%s8576_s25 + $0x4ec] sm:$0xff]  ;;  %v8175_v15 = vld [vmem:[%s8576_s25 + $0x554] sm:$0xff] }
0x1122   : > { %v5596_v18 = vmul.f32 %v9897_v1, %v5592_v53  ;;  %v7803_v1 = vld [vmem:[#allocation2 + $0x4] sm:$0xf] }
0x1123   : > { %v7804_v42 = vor.u32 %v8165_v36, %v7803_v1  ;;  %v8163_v53 = vld [vmem:[%s8576_s25 + $0x524] sm:$0xff]  ;;  %v8164_v1 = vld [vmem:[%s8576_s25 + $0x52c] sm:$0xff] }
0x1124   : > { %v5604_v12 = vpack.c.bf16 %v5596_v18, %v5596_v18  ;;  %v8151_v36 = vld [vmem:[%s8576_s25 + $0x4e4] sm:$0xff] }
0x1125   : > { %v7807_v29 = vld [vmem:[#allocation2 + $0x1c] sm:$0xf] }
0x1126   : > { %5608 = vst [vmem:[#allocation2 + $0x28] sm:$0xf] %v5604_v12  ;;  %v8155_v25 = vld [vmem:[#allocation2 + $0x1c] sm:$0xf] }
0x1128   : > { %5794 = vrot.lane.b32.xlu2 %v7732_v16, %s8523_s7  ;;  %v7847_v16 = vld [vmem:[#allocation2 + $0x1c] sm:$0xf] }
0x1129   : > { %7696 = vmatmul.msk.bf16.gmra.mxu0 %vm392_vm1, %v8148_v61  ;;  %v8176_v61 = vld [vmem:[%s8576_s25 + $0x55c] sm:$0xff] }
0x112d   : > { %v8166_v20 = vld [vmem:[#allocation2 + $0x24] sm:$0xf0] }
0x112e   : > { %v7741_v60 = vld [vmem:[#allocation2 + $0x24] sm:$0xf0]  ;;  %v7808_v55 = vor.u32 %v8166_v20, %v7807_v29 }
0x112f   : > { %v7744_v63 = vor.u32 %v8155_v25, %v7741_v60  ;;  %v8174_v26 = vld [vmem:[#allocation2 + $0x24] sm:$0xf0] }
0x1130   : > { %5917 = vmatpush.bf16.msra.mxu3 %v7808_v55  ;;  %6002 = vrot.lane.b32.xlu2 %v7852_v24, %s8524_s10  ;;  %v7848_v17 = vor.u32 %v8174_v26, %v7847_v16  ;;  %v7698_v24 = vld [vmem:[%s8571_s22 + $0x48] sm:$0xff]  ;;  %v8158_v55 = vld [vmem:[%s8576_s25 + $0x4fc] sm:$0xff] }
0x1131   : > { %5800 = vrot.lane.b32.xlu1 %v7744_v63, %s8523_s7  ;;  %5671 = vrot.lane.b32.xlu0 %v7744_v63, %s8522_s30  ;;  %v8167_v63 = vld [vmem:[%s8576_s25 + $0x534] sm:$0xff]  ;;  %v8168_v26 = vld [vmem:[%s8576_s25 + $0x53c] sm:$0xff] }
0x1132   : > { %v8160_v16 = vld [vmem:[%s8576_s25 + $0x50c] sm:$0xff] }
0x1134   : > { %5918 = vmatpush.bf16.msra.mxu3 %v7804_v42  ;;  %v8159_v42 = vld [vmem:[%s8576_s25 + $0x504] sm:$0xff] }
0x1137   : > { %7809 = vmatmul.msk.bf16.vlgmr.msra.gmra.mxu3 %vm392_vm1, %v8161_v23 }
0x1138   : > { %5996 = vrot.lane.b32.xlu2 %v7840_v33, %s8524_s10 }
0x1139   : > { %6000 = vrot.lane.b32.xlu1 %v7848_v17, %s8524_s10  ;;  %5798 = vrot.lane.b32.xlu0 %v7740_v3, %s8523_s7  ;;  %v7699_v3 = vld [vmem:[%s8571_s22 + $0x50] sm:$0xff] }
0x1140   : > { %6087 = vrot.lane.b32.xlu2 %v7844_v10, %s8525_s11 }
0x1141   : > { %6085 = vrot.lane.b32.xlu1 %v7840_v33, %s8525_s11  ;;  %5796 = vrot.lane.b32.xlu0 %v7736_v5, %s8523_s7  ;;  %v8150_v5 = vld [vmem:[%s8576_s25 + $0x4dc] sm:$0xff]  ;;  %v8170_v33 = vld [vmem:[%s8576_s25 + $0x54c] sm:$0xff] }
0x1148   : > { %5740 = vperm.xlu2 %8282, %v9962_v2  }
0x1149   : > { %5755 = vperm.xlu1 %8281, %v9938_v22   ;;  %6089 = vrot.lane.b32.xlu0 %v7848_v17, %s8525_s11  ;;  %v8169_v17 = vld [vmem:[%s8576_s25 + $0x544] sm:$0xff] }
0x1150   : > { %5730 = vperm.xlu2 %8282, %v7699_v3  }
0x1151   : > { %5745 = vperm.xlu1 %8281, %v9942_v8   ;;  %5998 = vrot.lane.b32.xlu0 %v7844_v10, %s8524_s10 }
0x1158   : > { %5725 = vperm.xlu2 %8282, %v7698_v24  }
0x1159   : > { %5720 = vperm.xlu1 %8281, %v7697_v58   ;;  %5750 = vperm.xlu0 %8280, %v9959_v47  }
0x1160   : > { %8285 = vset.pattern.permute.xlu2 %v8529_v41 }
0x1161   : > { %8284 = vset.pattern.permute.xlu1 %v8527_v14  ;;  %5735 = vperm.xlu0 %8280, %v7700_v49  }
0x1162   : > { %4037 = vperm.xlu1 %8284, %v8505_v56   ;;  %4777 = vperm.xlu2 %8285, %v8506_v38  }
0x1169   : > { %8283 = vset.pattern.permute.xlu0 %v8527_v14 }
0x116a   : > { %8286 = vset.pattern.permute.xlu1 %v8529_v41  ;;  %4033 = vperm.xlu0 %8283, %v8506_v38  }
0x116b   : > { %8287 = vset.pattern.permute.xlu2 %v8531_v59  ;;  %4781 = vperm.xlu1 %8286, %v8505_v56  }
0x116c   : > { %5521 = vperm.xlu2 %8287, %v9959_v47  }
0x1172   : > { %8288 = vset.pattern.permute.xlu0 %v8531_v59 }
0x1173   : > { %8289 = vset.pattern.permute.xlu1 %v8527_v14  ;;  %5525 = vperm.xlu0 %8288, %v9938_v22   ;;  %v10279_v22 = vmov 9  }
0x1174   : > { %8290 = vset.pattern.permute.xlu2 %v8527_v14  ;;  %4025 = vperm.xlu1 %8289, %v8507_v44   ;;  %v5670_v14 = vpop.permute.xlu2 %5669 }
0x1175   : > { %4029 = vperm.xlu2 %8290, %v8508_v4  }
0x117b   : > { %8293 = vset.pattern.permute.xlu0 %v8533_v19 }
0x117c   : > { %8291 = vset.pattern.permute.xlu1 %v8529_v41  ;;  %6252 = vperm.xlu0 %8293, %v7699_v3   ;;  %v5668_v47 = vpop.permute.xlu2 %5667 }
0x117d   : > { %8292 = vset.pattern.permute.xlu2 %v8529_v41  ;;  %4769 = vperm.xlu1 %8291, %v8507_v44   ;;  %v5666_v41 = vpop.permute.xlu1 %5665 }
0x117e   : > { %4773 = vperm.xlu2 %8292, %v8508_v4  }
0x1184   : > { %6247 = vperm.xlu0 %8293, %v7698_v24  }
0x1185   : > { %8294 = vset.pattern.permute.xlu1 %v8533_v19  ;;  %v6092_v43 = vpop.permute.xlu1 %6091 }
0x1186   : > { %6257 = vperm.xlu1 %8294, %v7700_v49   ;;  %8295 = vset.pattern.permute.xlu2 %v8531_v59 }
0x1187   : > { %5513 = vperm.xlu2 %8295, %v9962_v2   ;;  %v5795_v2 = vpop.permute.xlu2 %5794 }
0x118c   : > { %8299 = vset.pattern.permute.xlu0 %v10279_v22 }
0x118e   : > { %8296 = vset.pattern.permute.xlu1 %v8531_v59 }
0x118f   : > { %5517 = vperm.xlu1 %8296, %v9942_v8   ;;  %8297 = vset.pattern.permute.xlu2 %v8533_v19  ;;  %v5673_v8 = vsel %vm387_vm0, %v5666_v41, %v5668_v47  ;;  %v8162_v19 = vld [vmem:[%s8576_s25 + $0x51c] sm:$0xff]  ;;  %v6003_v31 = vpop.permute.xlu2 %6002 }
0x1190   : > { %6242 = vperm.xlu2 %8297, %v7697_v58   ;;  %7810 = vmatmul.msk.bf16.gmra.mxu3 %vm392_vm1, %v8162_v19 }
0x1196   : > { %v10177_v10 = vpop.f32.mrf.mxu0 }
0x1197   : > { %8298 = vset.pattern.permute.xlu1 %v10279_v22  ;;  %v5997_v57 = vpop.permute.xlu2 %5996 }
0x119e   : > { %v10181_v58 = vpop.f32.mrf.mxu0 }
0x119f   : > { %v6088_v29 = vpop.permute.xlu2 %6087 }
0x11a0   : > { %7811 = vmatmul.msk.bf16.gmra.mxu3 %vm392_vm1, %v8163_v53 }
0x11a3   : > { %v5801_v32 = vpop.permute.xlu1 %5800  ;;  %v5672_v54 = vpop.permute.xlu0 %5671 }
0x11a4   : > { %v5674_v59 = vsel %vm387_vm0, %v5670_v14, %v5672_v54 }
0x11a5   : > { %5695 = vmatpush.bf16.msra.mxu1 %v5674_v59 }
0x11a6   : > { %v10183_v44 = vpop.f32.mrf.mxu0 }
0x11a7   : > { %v5741_v49 = vpop.permute.xlu2 %5740 }
0x11a9   : > { %5696 = vmatpush.bf16.msra.mxu1 %v5673_v8 }
0x11ab   : > { %v6001_v0 = vpop.permute.xlu1 %6000  ;;  %v5799_v11 = vpop.permute.xlu0 %5798 }
0x11ac   : > { %v6005_v35 = vsel %vm721_vm2, %v6001_v0, %v6003_v31  ;;  %v5803_v28 = vsel %vm518_vm3, %v5799_v11, %v5801_v32  ;;  %7745 = vmatmul.msk.bf16.vlgmr.msra.gmra.mxu1 %vm392_vm1, %v8149_v13 }
0x11ad   : > { %6026 = vmatpush.bf16.msrb.mxu0 %v6005_v35  ;;  %5824 = vmatpush.bf16.msra.mxu2 %v5803_v28 }
0x11af   : > { %v10185_v4 = vpop.permute.xlu2 %5730 }
0x11b0   : > { %7812 = vmatmul.msk.bf16.gmra.mxu3 %vm392_vm1, %v8164_v1 }
0x11b3   : > { %v5797_v46 = vpop.permute.xlu0 %5796  ;;  %v6086_v52 = vpop.permute.xlu1 %6085 }
0x11b4   : > { %v5802_v48 = vsel %vm518_vm3, %v5795_v2, %v5797_v46  ;;  %v6093_v20 = vsel %vm811_vm4, %v6086_v52, %v6088_v29  ;;  %v10189_v2 = vpop.f32.mrf.mxu0 }
0x11b5   : > { %5825 = vmatpush.bf16.msra.mxu2 %v5802_v48 }
0x11b7   : > { %v5726_v54 = vpop.permute.xlu2 %5725 }
0x11b8   : > { %7773 = vmatmul.msk.bf16.vlgmr.msra.gmra.mxu2 %vm392_vm1, %v8157_v27 }
0x11ba   : > { %v5920_v41 = vpop.f32.mrf.mxu3 }
0x11bb   : > { %v6090_v18 = vpop.permute.xlu0 %6089  ;;  %v10179_v3 = vpop.permute.xlu1 %5755 }
0x11bc   : > { %v6094_v12 = vsel %vm811_vm4, %v6090_v18, %v6092_v43  ;;  %7746 = vmatmul.msk.bf16.gmra.mxu1 %vm392_vm1, %v8150_v5 }
0x11bd   : > { %6115 = vmatpush.bf16.msrb.mxu1 %v6094_v12 }
0x11c1   : > { %6116 = vmatpush.bf16.msrb.mxu1 %v6093_v20 }
0x11c2   : > { %v5922_v19 = vpop.f32.mrf.mxu3 }
0x11c3   : > { %v5999_v25 = vpop.permute.xlu0 %5998  ;;  %v5746_v56 = vpop.permute.xlu1 %5745 }
0x11c4   : > { %v6004_v60 = vsel %vm721_vm2, %v5997_v57, %v5999_v25 }
0x11c5   : > { %6027 = vmatpush.bf16.msrb.mxu0 %v6004_v60 }
0x11c8   : > { %7774 = vmatmul.msk.bf16.gmra.mxu2 %vm392_vm1, %v8158_v55  ;;  %7853 = vmatmul.msk.bf16.vlgmr.msrb.gmra.mxu0 %vm392_vm1, %v8167_v63 }
0x11cb   : > { %v5721_v14 = vpop.permute.xlu1 %5720 }
0x11cc   : > { %7747 = vmatmul.msk.bf16.gmra.mxu1 %vm392_vm1, %v8151_v36 }
0x11d8   : > { %7775 = vmatmul.msk.bf16.gmra.mxu2 %vm392_vm1, %v8159_v42  ;;  %7854 = vmatmul.msk.bf16.gmra.mxu0 %vm392_vm1, %v8168_v26 }
0x11dc   : > { %7748 = vmatmul.msk.bf16.gmra.mxu1 %vm392_vm1, %v8152_v45 }
0x11e8   : > { %7776 = vmatmul.msk.bf16.gmra.mxu2 %vm392_vm1, %v8160_v16  ;;  %7855 = vmatmul.msk.bf16.gmra.mxu0 %vm392_vm1, %v8169_v17 }
0x11ec   : > { %7881 = vmatmul.msk.bf16.vlgmr.msrb.gmra.mxu1 %vm392_vm1, %v8175_v15 }
0x11f8   : > { %7856 = vmatmul.msk.bf16.gmra.mxu0 %vm392_vm1, %v8170_v33 }
0x11fc   : > { %7882 = vmatmul.msk.bf16.gmra.mxu1 %vm392_vm1, %v8176_v61 }
0x120c   : > { %7883 = vmatmul.msk.bf16.gmra.mxu1 %vm392_vm1, %v8177_v21 }
0x1213   : > { %v10195_v18 = vpop.f32.mrf.mxu3 }
0x121b   : > { %v10203_v55 = vpop.f32.mrf.mxu3 }
0x121c   : > { %7884 = vmatmul.msk.bf16.gmra.mxu1 %vm392_vm1, %v8178_v30 }
0x1223   : > { %v5930_v42 = vpop.f32.mrf.mxu3 }
0x1229   : > { %v5698_v24 = vpop.f32.mrf.mxu1 }
0x122a   : > { %v5758_v47 = vadd.f32 %v5721_v14, %v5698_v24 }
0x122b   : > { %v5932_v61 = vpop.f32.mrf.mxu3 }
0x1231   : > { %v5700_v38 = vpop.f32.mrf.mxu1 }
0x1232   : > { %v5759_v8 = vadd.f32 %v5726_v54, %v5700_v38 }
0x1239   : > { %v10187_v22 = vpop.f32.mrf.mxu1 }
0x123b   : > { %v5827_v43 = vpop.f32.mrf.mxu2 }
0x123c   : > { %v5847_v23 = vadd.f32 %v5827_v43, %v5758_v47 }
0x123e   : > { %v5940_v32 = vadd.f32 %v5920_v41, %v5847_v23 }
0x1241   : > { %v10191_v59 = vpop.f32.mrf.mxu1 }
0x1243   : > { %v5829_v13 = vpop.f32.mrf.mxu2 }
0x1244   : > { %v5848_v31 = vadd.f32 %v5829_v13, %v5759_v8 }
0x1245   : > { %v6029_v0 = vpop.f32.mrf.mxu0 }
0x1246   : > { %v5941_v35 = vadd.f32 %v5922_v19, %v5848_v31  ;;  %v6049_v11 = vadd.f32 %v6029_v0, %v5940_v32  ;;  %v5751_v32 = vpop.permute.xlu0 %5750 }
0x1249   : > { %v5708_v28 = vpop.f32.mrf.mxu1 }
0x124a   : > { %v5762_v45 = vadd.f32 %v5741_v49, %v5708_v28  ;;  %v5935_v49 = vpop.f32.mrf.mxu3 }
0x124b   : > { %v10193_v53 = vpop.f32.mrf.mxu2 }
0x124d   : > { %v6031_v46 = vpop.f32.mrf.mxu0 }
0x124e   : > { %v6050_v48 = vadd.f32 %v6031_v46, %v5941_v35 }
0x1251   : > { %v5710_v27 = vpop.f32.mrf.mxu1 }
0x1252   : > { %v5763_v21 = vadd.f32 %v5746_v56, %v5710_v27 }
0x1253   : > { %v10199_v20 = vpop.f32.mrf.mxu2 }
0x1255   : > { %v10197_v29 = vpop.f32.mrf.mxu0 }
0x1259   : > { %v5713_v57 = vpop.f32.mrf.mxu1 }
0x125a   : > { %v5764_v54 = vadd.f32 %v5751_v32, %v5713_v57  ;;  %v5937_v57 = vpop.f32.mrf.mxu3 }
0x125b   : > { %v5837_v36 = vpop.f32.mrf.mxu2 }
0x125c   : > { %v5851_v17 = vadd.f32 %v5837_v36, %v5762_v45 }
0x125d   : > { %v10205_v63 = vpop.f32.mrf.mxu0 }
0x125e   : > { %v5944_v33 = vadd.f32 %v5930_v42, %v5851_v17 }
0x1261   : > { %v5715_v5 = vpop.f32.mrf.mxu1 }
0x1263   : > { %v5839_v15 = vpop.f32.mrf.mxu2 }
0x1264   : > { %v5852_v14 = vadd.f32 %v5839_v15, %v5763_v21 }
0x1265   : > { %v6039_v26 = vpop.f32.mrf.mxu0 }
0x1266   : > { %v6053_v30 = vadd.f32 %v6039_v26, %v5944_v33  ;;  %v5945_v23 = vadd.f32 %v5932_v61, %v5852_v14  ;;  %v5760_v14 = vadd.f32 %v10185_v4, %v10187_v22 }
0x1269   : > { %v6118_v12 = vpop.f32.mrf.mxu1 }
0x126a   : > { %v6138_v52 = vadd.f32 %v6118_v12, %v6049_v11 }
0x126b   : > { %v5842_v43 = vpop.f32.mrf.mxu2 }
0x126c   : > { %v5853_v19 = vadd.f32 %v5842_v43, %v5764_v54  ;;  %v5849_v54 = vadd.f32 %v10193_v53, %v5760_v14 }
0x126d   : > { %v6041_v24 = vpop.f32.mrf.mxu0 }
0x126e   : > { %v6054_v8 = vadd.f32 %v6041_v24, %v5945_v23  ;;  %v5946_v28 = vadd.f32 %v5935_v49, %v5853_v19  ;;  %v5942_v4 = vadd.f32 %v10195_v18, %v5849_v54 }
0x1271   : > { %v6120_v25 = vpop.f32.mrf.mxu1 }
0x1272   : > { %v10201_v60 = vadd.f32 %v6120_v25, %v6050_v48  ;;  %v5765_v48 = vadd.f32 %v10179_v3, %v5715_v5 }
0x1273   : > { %v5844_v46 = vpop.f32.mrf.mxu2 }
0x1274   : > { %v5854_v25 = vadd.f32 %v5844_v46, %v5765_v48 }
0x1275   : > { %v6044_v0 = vpop.f32.mrf.mxu0 }
0x1276   : > { %v6055_v27 = vadd.f32 %v6044_v0, %v5946_v28  ;;  %v5947_v33 = vadd.f32 %v5937_v57, %v5854_v25  ;;  %v6051_v28 = vadd.f32 %v10197_v29, %v5942_v4  ;;  %v4778_v4 = vpop.permute.xlu2 %4777 }
0x1279   : > { %v10207_v1 = vpop.f32.mrf.mxu1 }
0x127a   : > { %v6140_v18 = vadd.f32 %v10207_v1, %v6051_v28 }
0x127d   : > { %v6046_v17 = vpop.f32.mrf.mxu0 }
0x127e   : > { %v6056_v21 = vadd.f32 %v6046_v17, %v5947_v33 }
0x1281   : > { %v10209_v16 = vpop.f32.mrf.mxu1 }
0x1289   : > { %v6128_v38 = vpop.f32.mrf.mxu1 }
0x128a   : > { %v6142_v41 = vadd.f32 %v6128_v38, %v6053_v30 }
0x128c   : > { %v7885_v47 = vmul.f32 -1.442695, %v6142_v41 }
0x128e   : > { %8469 = vpow2.f32 %v7885_v47 }
0x1291   : > { %v6130_v13 = vpop.f32.mrf.mxu1 }
0x1292   : > { %v6143_v31 = vadd.f32 %v6130_v13, %v6054_v8 }
0x1294   : > { %v8470_v35 = vpop.eup %8469  ;;  %v7886_v11 = vmul.f32 -1.442695, %v6143_v31 }
0x1295   : > { %v6162_v56 = vadd.f32 1.0, %v8470_v35  ;;  %v5736_v35 = vpop.permute.xlu0 %5735 }
0x1296   : > { %8471 = vpow2.f32 %v7886_v11 }
0x1297   : > { %8473 = vrcp.f32 %v6162_v56  ;;  %v6177_v5 = vand.u32 2147483648, %v6162_v56  ;;  %v6175_v41 = vand.u32 2147483647, %v6162_v56  ;;  %vm6171_vm2 = vweird.f32 %v6162_v56 }
0x1299   : > { %v6133_v12 = vpop.f32.mrf.mxu1  ;;  %v6178_v13 = vor.u32 1.1754944e-38, %v6177_v5  ;;  %vm6176_vm4 = vcmp.eq.f32.partialorder %v6175_v41, 8.507059e+37 }
0x129a   : > { %v6144_v36 = vadd.f32 %v6133_v12, %v6055_v27 }
0x129c   : > { %v8472_v42 = vpop.eup %8471  ;;  %v7887_v26 = vmul.f32 -1.442695, %v6144_v36 }
0x129d   : > { %v8474_v45 = vpop.eup %8473  ;;  %v6163_v15 = vadd.f32 1.0, %v8472_v42 }
0x129e   : > { %v6167_v61 = vmul.f32 %v8474_v45, %v6162_v56  ;;  %8475 = vpow2.f32 %v7887_v26  ;;  %vm6172_vm0 = vweird.f32 %v8474_v45  ;;  %v5761_v56 = vadd.f32 %v5736_v35, %v10191_v59  ;;  %v5522_v35 = vpop.permute.xlu2 %5521 }
0x129f   : > { %8477 = vrcp.f32 %v6163_v15  ;;  %vm6173_vm3 = vmor %vm6171_vm2, %vm6172_vm0  ;;  %v6192_v53 = vand.u32 2147483648, %v6163_v15  ;;  %v6190_v46 = vand.u32 2147483647, %v6163_v15  ;;  %vm6186_vm8 = vweird.f32 %v6163_v15 }
0x12a0   : > { %v6168_v30 = vsub.f32 1.0, %v6167_v61  ;;  %8479 = vtanh.f32 %v6138_v52  ;;  %v5850_v25 = vadd.f32 %v10199_v20, %v5761_v56  ;;  %vm6333_vm2 = vcmask 1041408  }
0x12a1   : > { %v6135_v24 = vpop.f32.mrf.mxu1  ;;  %v6193_v42 = vor.u32 1.1754944e-38, %v6192_v53  ;;  %vm6191_vm10 = vcmp.eq.f32.partialorder %v6190_v46, 8.507059e+37  ;;  %v4034_v53 = vpop.permute.xlu0 %4033 }
0x12a2   : > { %v6145_v38 = vadd.f32 %v6135_v24, %v6056_v21  ;;  %v6169_v3 = vmul.f32 %v8474_v45, %v6168_v30  ;;  %v5943_v29 = vadd.f32 %v10203_v55, %v5850_v25 }
0x12a4   : > { %v8476_v47 = vpop.eup %8475  ;;  %v7888_v43 = vmul.f32 -1.442695, %v6145_v38  ;;  %v6170_v23 = vadd.f32 %v8474_v45, %v6169_v3  ;;  %v6052_v1 = vadd.f32 %v10205_v63, %v5943_v29 }
0x12a5   : > { %v8478_v32 = vpop.eup %8477  ;;  %v6164_v8 = vadd.f32 1.0, %v8476_v47 }
0x12a6   : > { %v6182_v49 = vmul.f32 %v8478_v32, %v6163_v15  ;;  %8481 = vpow2.f32 %v7888_v43  ;;  %v6174_v52 = vsel %vm6173_vm3, %v8474_v45, %v6170_v23  ;;  %v8480_v19 = vpop.eup %8479  ;;  %vm6187_vm7 = vweird.f32 %v8478_v32  ;;  %v4030_v56 = vpop.permute.xlu2 %4029 }
0x12a7   : > { %8483 = vrcp.f32 %v6164_v8  ;;  %v6179_v0 = vsel %vm6176_vm4, %v6178_v13, %v6174_v52  ;;  %vm6188_vm9 = vmor %vm6186_vm8, %vm6187_vm7  ;;  %v6207_v17 = vand.u32 2147483648, %v6164_v8  ;;  %v6205_v20 = vand.u32 2147483647, %v6164_v8 }
0x12a8   : > { %v6183_v31 = vsub.f32 1.0, %v6182_v49  ;;  %v10216_v22 = vmul.f32 %v8480_v19, %v6179_v0  ;;  %8485 = vtanh.f32 %v10201_v60  ;;  %vm6201_vm12 = vweird.f32 %v6164_v8  ;;  %v8179_v19 = vld [vmem:[%s8576_s25 + $0x5d4] sm:$0xff]  ;;  %v4038_v0 = vpop.permute.xlu1 %4037 }
0x12a9   : > { %v6141_v24 = vadd.f32 %v10209_v16, %v6052_v1  ;;  %v6208_v38 = vor.u32 1.1754944e-38, %v6207_v17  ;;  %vm6206_vm14 = vcmp.eq.f32.partialorder %v6205_v20, 8.507059e+37  ;;  %v4094_v20 = vadd.f32 %v9813_v7, %v4030_v56 }
0x12aa   : > { %v6184_v11 = vmul.f32 %v8478_v32, %v6183_v31  ;;  %v8180_v31 = vld [vmem:[%s8576_s25 + $0x5dc] sm:$0xff]  ;;  %v4099_v1 = vadd.f32 %v9821_v39, %v4038_v0 }
0x12ac   : > { %v8482_v48 = vpop.eup %8481  ;;  %v6185_v27 = vadd.f32 %v8478_v32, %v6184_v11 }
0x12ad   : > { %v8484_v12 = vpop.eup %8483  ;;  %v6165_v36 = vadd.f32 1.0, %v8482_v48  ;;  %v5526_v48 = vpop.permute.xlu0 %5525 }
0x12ae   : > { %v6197_v57 = vmul.f32 %v8484_v12, %v6164_v8  ;;  %v6189_v60 = vsel %vm6188_vm9, %v8478_v32, %v6185_v27  ;;  %v8486_v26 = vpop.eup %8485  ;;  %vm6202_vm11 = vweird.f32 %v8484_v12  ;;  %v4774_v27 = vpop.permute.xlu2 %4773 }
0x12af   : > { %8487 = vrcp.f32 %v6165_v36  ;;  %v6194_v45 = vsel %vm6191_vm10, %v6193_v42, %v6189_v60  ;;  %vm6203_vm13 = vmor %vm6201_vm12, %vm6202_vm11  ;;  %v6222_v43 = vand.u32 2147483648, %v6165_v36  ;;  %v6220_v23 = vand.u32 2147483647, %v6165_v36 }
0x12b0   : > { %v6198_v59 = vsub.f32 1.0, %v6197_v57  ;;  %8489 = vtanh.f32 %v6140_v18  ;;  %v6227_v15 = vmul.f32 %v8486_v26, %v6194_v45  ;;  %vm6216_vm5 = vweird.f32 %v6165_v36  ;;  %v7908_v18 = vld [vmem:[%s8571_s22 + $0x40] sm:$0x3] }
0x12b1   : > { %8491 = vtanh.f32 %v6141_v24  ;;  %v6223_v16 = vor.u32 1.1754944e-38, %v6222_v43  ;;  %vm6221_vm0 = vcmp.eq.f32.partialorder %v6220_v23, 8.507059e+37  ;;  %6309 = vperm.xlu1 %8298, %v7908_v18   ;;  %v4097_v60 = vadd.f32 %v9815_v6, %v4034_v53  ;;  %v8509_v43 = vld [vmem:[%s10258_s1] ss:$0 sm:$0xff] }
0x12b2   : > { %v6199_v33 = vmul.f32 %v8484_v12, %v6198_v59  ;;  %v6230_v61 = vpack.c.bf16 %v6227_v15, %v10216_v22  ;;  %v4782_v22 = vpop.permute.xlu1 %4781  ;;  %v4841_v26 = vadd.f32 %v10023_v51, %v4778_v4  ;;  %v4838_v59 = vadd.f32 %v10019_v62, %v4774_v27 }
0x12b3   : > { %v4843_v45 = vadd.f32 %v10025_v40, %v4782_v22  ;;  %v5585_v15 = vadd.f32 %v10183_v44, %v5522_v35 }
0x12b4   : > { %v6200_v21 = vadd.f32 %v8484_v12, %v6199_v33  ;;  %v4855_v17 = vadd.f32 %v4841_v26, %v4097_v60 }
0x12b5   : > { %v8488_v30 = vpop.eup %8487  ;;  %v4856_v40 = vadd.f32 %v4843_v45, %v4099_v1 }
0x12b6   : > { %v6212_v3 = vmul.f32 %v8488_v30, %v6165_v36  ;;  %v6204_v5 = vsel %vm6203_vm13, %v8484_v12, %v6200_v21  ;;  %v8490_v55 = vpop.eup %8489  ;;  %vm6217_vm15 = vweird.f32 %v8488_v30  ;;  %v6253_v36 = vpop.permute.xlu0 %6252 }
0x12b7   : > { %v6209_v14 = vsel %vm6206_vm14, %v6208_v38, %v6204_v5  ;;  %vm6218_vm6 = vmor %vm6216_vm5, %vm6217_vm15  ;;  %v8492_v8 = vpop.eup %8491  ;;  %v5514_v57 = vpop.permute.xlu2 %5513  ;;  %v5599_v38 = vadd.f32 %v5585_v15, %v4855_v17 }
0x12b8   : > { %v6213_v41 = vsub.f32 1.0, %v6212_v3  ;;  %v6228_v47 = vmul.f32 %v8490_v55, %v6209_v14  ;;  %v5580_v44 = vadd.f32 %v10177_v10, %v5514_v57 }
0x12ba   : > { %v6214_v63 = vmul.f32 %v8488_v30, %v6213_v41  ;;  %v4026_v11 = vpop.permute.xlu1 %4025 }
0x12bb   : > { %v4092_v21 = vadd.f32 %v9809_v50, %v4026_v11 }
0x12bc   : > { %v6215_v32 = vadd.f32 %v8488_v30, %v6214_v63 }
0x12be   : > { %v6219_v54 = vsel %vm6218_vm6, %v8488_v30, %v6215_v32  ;;  %v6248_v6 = vpop.permute.xlu0 %6247  ;;  %v4854_v30 = vadd.f32 %v4838_v59, %v4094_v20 }
0x12bf   : > { %v6224_v49 = vsel %vm6221_vm0, %v6223_v16, %v6219_v54  ;;  %v6243_v24 = vpop.permute.xlu2 %6242 }
0x12c0   : > { %v6229_v52 = vmul.f32 %v8492_v8, %v6224_v49  ;;  %v7907_v8 = vld [vmem:[%s8576_s25 + $0x5e4] sm:$0x1] }
0x12c2   : > { %v6231_v13 = vpack.c.bf16 %v6229_v52, %v6228_v47  ;;  %v4770_v28 = vpop.permute.xlu1 %4769 }
0x12c3   : > { %v4836_v33 = vadd.f32 %v10017_v9, %v4770_v28 }
0x12c4   : > { %6282 = vmatpush.bf16.msrb.mxu2 %v6231_v13 }
0x12c5   : > { %v4853_v3 = vadd.f32 %v4836_v33, %v4092_v21 }
0x12c7   : > { %v5597_v41 = vadd.f32 %v5580_v44, %v4853_v3 }
0x12c8   : > { %6283 = vmatpush.bf16.msrb.mxu2 %v6230_v61  ;;  %v5587_v61 = vadd.f32 %v10189_v2, %v5526_v48 }
0x12ca   : > { %v6258_v12 = vpop.permute.xlu1 %6257  ;;  %v5600_v5 = vadd.f32 %v5587_v61, %v4856_v40 }
0x12cb   : > { %7905 = vmatmul.msk.bf16.vlgmr.msrb.gmra.mxu2 %vm392_vm1, %v8179_v19 }
0x12d2   : > { %v5518_v29 = vpop.permute.xlu1 %5517 }
0x12d3   : > { %v5582_v51 = vadd.f32 %v10181_v58, %v5518_v29 }
0x12d5   : > { %v5598_v55 = vadd.f32 %v5582_v51, %v4854_v30 }
0x12db   : > { %7906 = vmatmul.msk.bf16.gmra.mxu2 %vm392_vm1, %v8180_v31  ;;  %v6331_v31 = vrot.slane %v9503_v37, 6 }
0x1323   : > { %v6310_v49 = vpop.permute.xlu1 %6309 }
0x134e   : > { %v6285_v46 = vpop.f32.mrf.mxu2 }
0x134f   : > { %v6286_v39 = vadd.f32 %v6285_v46, %v6243_v24 }
0x1351   : > { %v6295_v58 = vadd.f32 %v6286_v39, %v5597_v41 }
0x1353   : > { %v6299_v16 = vmul.f32 %v8509_v43, %v6295_v58 }
0x1356   : > { %v6287_v25 = vpop.f32.mrf.mxu2 }
0x1357   : > { %v6288_v9 = vadd.f32 %v6287_v25, %v6248_v6 }
0x1359   : > { %v6296_v50 = vadd.f32 %v6288_v9, %v5598_v55 }
0x135b   : > { %v6300_v32 = vmul.f32 %v8509_v43, %v6296_v50 }
0x135d   : > { %v6303_v54 = vpack.c.bf16 %v6300_v32, %v6299_v16 }
0x135e   : > { %v6290_v42 = vpop.f32.mrf.mxu2 }
0x135f   : > { %v6291_v62 = vadd.f32 %v6290_v42, %v6253_v36 }
0x1361   : > { %v6297_v2 = vadd.f32 %v6291_v62, %v5599_v38 }
0x1363   : > { %v6301_v63 = vmul.f32 %v8509_v43, %v6297_v2 }
0x1366   : > { %v6292_v7 = vpop.f32.mrf.mxu2 }
0x1367   : > { %v6293_v14 = vadd.f32 %v6292_v7, %v6258_v12 }
0x1369   : > { %v6298_v47 = vadd.f32 %v6293_v14, %v5600_v5 }
0x136b   : > { %v6302_v23 = vmul.f32 %v8509_v43, %v6298_v47 }
0x136d   : > { %v6304_v10 = vpack.c.bf16 %v6302_v23, %v6301_v63 }
0x136f   : > { %6321 = vmatpush.bf16.msra.mxu2 %v6304_v10 }
0x1373   : > { %6322 = vmatpush.bf16.msra.mxu2 %v6303_v54 }
0x1376   : > { %7909 = vmatmul.msk.bf16.vlgmr.msra.gmra.mxu2 %vm392_vm1, %v7907_v8 }
0x13f9   : > { %v6324_v52 = vpop.f32.mrf.mxu2 }
0x13fa   : > { %v6325_v13 = vadd.f32 %v6324_v52, %v6310_v49 }
0x13fc   : > { %v6328_v19 = vmul.f32 %v8509_v43, %v6325_v13 }
0x13fe   : > { %v6329_v0 = vadd.f32 %v6328_v19, %v9499_v34 }
0x1400   : > { %v6334_v4 = vsel %vm6333_vm2, %v6329_v0, %v6331_v31 }
0x1401   : > { %6335 = vst [vmem:[%s10261_s4] sm:$0xf] %v6334_v4  ;;  %v6326_v22 = vpop.f32.mrf.mxu2 }
0x1402 PF: > { %s14_s15 = sadd.s32 1, %s8516_s15  }
0x1403   : > { %p11_p5 = scmp.ge.s32.totalorder %s14_s15, 4  }
0x1405   :  { %13 = sbr.rel (!%p11_p5) target bundleno = 1 (0x1), region = 71 }

</bundles_post_ra>
